<compile_context>
chip_gen: v5e
topology: v5e:2x2
jax: 0.10.0
libtpu: 0.0.40
codegen_flags: <defaults>
</compile_context>

<pallas_src>
import math
from functools import partial

import jax
import jax.numpy as jnp
import numpy as np
from jax import lax
from jax.experimental import pallas as pl
from jax.experimental.pallas import tpu as pltpu


def _fused_refine_kernel(n_conv, C, H, W, x_ref, w_ref, b_ref, o_ref):
    """All refinement blocks for one batch element, entirely in VMEM / vregs.

    x_ref : (1, C, H*W)        activations (channels on sublanes, spatial on lanes)
    w_ref : (n_conv, 9, C, C)  3x3 weights, indexed [conv, tap, c_out, c_in]
    b_ref : (n_conv, C, 1)     biases
    o_ref : (1, C, H*W)
    """
    HW = H * W
    x = x_ref[0].astype(jnp.float32)                       # (C, HW)
    w_all = w_ref[...].astype(jnp.float32)                 # (n_conv, 9, C, C) loaded once
    b_all = b_ref[...].astype(jnp.float32)                 # (n_conv, C, 1)   loaded once

    # ---- SAME-padding border masks: computed once, shared by all convs/taps ----
    pos = lax.broadcasted_iota(jnp.int32, (1, HW), 1)
    if (W & (W - 1)) == 0:                                 # power-of-two fast path
        col = jnp.bitwise_and(pos, W - 1)
    else:                                                  # exact for HW < 2**24
        q = jnp.floor((pos.astype(jnp.float32) + 0.5) * (1.0 / W)).astype(jnp.int32)
        col = pos - q * W
    row_ok = {-1: pos >= W, 0: None, 1: pos < (H - 1) * W}
    col_ok = {-1: col >= 1, 0: None, 1: col <= W - 2}

    tap_mask = {}
    for dy in (-1, 0, 1):
        for dx in (-1, 0, 1):
            m = None
            for mm in (row_ok[dy], col_ok[dx]):
                if mm is not None:
                    m = mm if m is None else jnp.logical_and(m, mm)
            tap_mask[(dy, dx)] = m

    def conv3x3(inp, li, relu):
        acc = jnp.zeros((C, HW), jnp.float32)
        t = 0
        for dy in (-1, 0, 1):
            for dx in (-1, 0, 1):
                off = dy * W + dx                          # flat-index shift for this tap
                if off == 0:
                    shifted = inp
                else:
                    # shifted[p] = inp[p + off] (wrapped values are masked below)
                    shifted = pltpu.roll(inp, shift=(-off) % HW, axis=1)
                mask = tap_mask[(dy, dx)]
                if mask is not None:
                    shifted = jnp.where(mask, shifted, 0.0)
                for ci in range(C):
                    wcol = w_all[li, t, :, ci:ci + 1]      # (C_out, 1), register slice
                    acc = acc + wcol * shifted[ci:ci + 1, :]
                t += 1
        acc = acc + b_all[li]                              # (C, 1) lane-broadcast bias
        if relu:
            acc = jnp.maximum(acc, 0.0)
        return acc

    h = x
    for blk in range(n_conv // 2):
        a = conv3x3(h, 2 * blk, relu=True)
        h = h + conv3x3(a, 2 * blk + 1, relu=False)

    o_ref[0] = h.astype(o_ref.dtype)


def motion_refinement_network(motion_nchw, params):
    """Matches MotionRefinementNetwork.forward: 3 sequential RefinementBlocks.

    motion_nchw: (B, C, H, W) float32 (PyTorch NCHW convention).
    params: list of 3 tuples (w1, b1, w2, b2) with w in HWIO (3, 3, C, C).
    Returns (B, C, H, W).
    """
    B, C, H, W = motion_nchw.shape
    HW = H * W
    x = motion_nchw.reshape(B, C, HW)                      # NCHW is already lane-dense

    ws, bs = [], []
    for (w1, b1, w2, b2) in params:
        for w, b in ((w1, b1), (w2, b2)):
            # HWIO (3,3,Cin,Cout) -> (9, Cout, Cin) so a static column slice is (Cout,1)
            ws.append(jnp.transpose(jnp.reshape(w, (9, C, C)), (0, 2, 1)))
            bs.append(jnp.reshape(b, (C, 1)))
    w_stack = jnp.stack(ws)                                # (6, 9, C, C)
    b_stack = jnp.stack(bs)                                # (6, C, 1)
    n_conv = len(ws)

    kernel = partial(_fused_refine_kernel, n_conv, C, H, W)

    out = pl.pallas_call(
        kernel,
        out_shape=jax.ShapeDtypeStruct((B, C, HW), jnp.float32),
        grid_spec=pltpu.PrefetchScalarGridSpec(
            num_scalar_prefetch=0,
            grid=(B,),
            in_specs=[
                pl.BlockSpec((1, C, HW), lambda bi: (bi, 0, 0)),
                pl.BlockSpec((n_conv, 9, C, C), lambda bi: (0, 0, 0, 0)),
                pl.BlockSpec((n_conv, C, 1), lambda bi: (0, 0, 0)),
            ],
            out_specs=pl.BlockSpec((1, C, HW), lambda bi: (bi, 0, 0)),
        ),
        compiler_params=pltpu.CompilerParams(
            dimension_semantics=("parallel",)),
    )(x, w_stack, b_stack)

    return out.reshape(B, C, H, W)


# ---------------------------------------------------------------------------
# Pure-JAX reference (for correctness check only)
# ---------------------------------------------------------------------------
def _ref_block(x_nhwc, w1, b1, w2, b2):
    dn = ("NHWC", "HWIO", "NHWC")
    h = lax.conv_general_dilated(x_nhwc, w1, (1, 1), "SAME",
                                 dimension_numbers=dn) + b1
    h = jnp.maximum(h, 0.0)
    h2 = lax.conv_general_dilated(h, w2, (1, 1), "SAME",
                                  dimension_numbers=dn) + b2
    return x_nhwc + h2


def _ref_network(motion_nchw, params):
    x = jnp.transpose(motion_nchw, (0, 2, 3, 1))
    for (w1, b1, w2, b2) in params:
        x = _ref_block(x, w1, b1, w2, b2)
    return jnp.transpose(x, (0, 3, 1, 2))


if __name__ == "__main__":
    B, C, H, W = 2, 4, 16, 16

    key = jax.random.PRNGKey(0)
    keys = jax.random.split(key, 1 + 3 * 4)
    motion = jax.random.normal(keys[0], (B, C, H, W), jnp.float32)

    # Deterministic PyTorch-style (kaiming-uniform bound) init, 3 blocks.
    bound = 1.0 / math.sqrt(C * 3 * 3)
    params = []
    k = 1
    for _ in range(3):
        w1 = jax.random.uniform(keys[k + 0], (3, 3, C, C), jnp.float32, -bound, bound)
        b1 = jax.random.uniform(keys[k + 1], (C,), jnp.float32, -bound, bound)
        w2 = jax.random.uniform(keys[k + 2], (3, 3, C, C), jnp.float32, -bound, bound)
        b2 = jax.random.uniform(keys[k + 3], (C,), jnp.float32, -bound, bound)
        params.append((w1, b1, w2, b2))
        k += 4

    fwd = jax.jit(motion_refinement_network)
    out = jax.block_until_ready(fwd(motion, params))

    ref = jax.block_until_ready(_ref_network(motion, params))
    assert out.shape == (B, C, H, W), out.shape
    np.testing.assert_allclose(np.asarray(out), np.asarray(ref),
                               rtol=1e-4, atol=1e-4)

    print("KERNEL_OK")
</pallas_src>

<mosaic_0001>
module attributes {stable_mosaic.version = 11 : i64} {
  func.func @_fused_refine_kernel(%arg0: i32, %arg1: memref<1x4x256xf32, #tpu.memory_space<vmem>>, %arg2: memref<6x9x4x4xf32, #tpu.memory_space<vmem>>, %arg3: memref<6x4x1xf32, #tpu.memory_space<vmem>>, %arg4: memref<1x4x256xf32, #tpu.memory_space<vmem>>) attributes {dimension_semantics = [#tpu.dimension_semantics<parallel>], iteration_bounds = array<i64: 2>, scalar_prefetch = 0 : i64, scratch_operands = 0 : i64, tpu.core_type = #tpu.core_type<tc>, window_params = [{transform_indices = @transform_0, window_bounds = array<i64: 1, 4, 256>}, {pipeline_mode = #tpu.pipeline_mode<synchronous>, transform_indices = @transform_1, window_bounds = array<i64: 6, 9, 4, 4>}, {pipeline_mode = #tpu.pipeline_mode<synchronous>, transform_indices = @transform_2, window_bounds = array<i64: 6, 4, 1>}, {transform_indices = @transform_3, window_bounds = array<i64: 1, 4, 256>}]} {
    %c0 = arith.constant 0 : index
    %c0_0 = arith.constant 0 : index
    %c0_1 = arith.constant 0 : index
    %0 = vector.load %arg1[%c0, %c0_0, %c0_1] : memref<1x4x256xf32, #tpu.memory_space<vmem>>, vector<1x4x256xf32>
    %1 = vector.shape_cast %0 : vector<1x4x256xf32> to vector<4x256xf32>
    %c0_2 = arith.constant 0 : index
    %c0_3 = arith.constant 0 : index
    %c0_4 = arith.constant 0 : index
    %c0_5 = arith.constant 0 : index
    %2 = vector.load %arg2[%c0_2, %c0_3, %c0_4, %c0_5] : memref<6x9x4x4xf32, #tpu.memory_space<vmem>>, vector<6x9x4x4xf32>
    %c0_6 = arith.constant 0 : index
    %c0_7 = arith.constant 0 : index
    %c0_8 = arith.constant 0 : index
    %3 = vector.load %arg3[%c0_6, %c0_7, %c0_8] : memref<6x4x1xf32, #tpu.memory_space<vmem>>, vector<6x4x1xf32>
    %4 = tpu.iota {dimensions = array<i32: 1>} : vector<1x256xi32>
    %c15_i32 = arith.constant 15 : i32
    %5 = vector.broadcast %c15_i32 : i32 to vector<1x256xi32>
    %6 = arith.andi %4, %5 : vector<1x256xi32>
    %c16_i32 = arith.constant 16 : i32
    %7 = vector.broadcast %c16_i32 : i32 to vector<1x256xi32>
    %8 = arith.cmpi sge, %4, %7 : vector<1x256xi32>
    %c240_i32 = arith.constant 240 : i32
    %9 = vector.broadcast %c240_i32 : i32 to vector<1x256xi32>
    %10 = arith.cmpi slt, %4, %9 : vector<1x256xi32>
    %c1_i32 = arith.constant 1 : i32
    %11 = vector.broadcast %c1_i32 : i32 to vector<1x256xi32>
    %12 = arith.cmpi sge, %6, %11 : vector<1x256xi32>
    %c14_i32 = arith.constant 14 : i32
    %13 = vector.broadcast %c14_i32 : i32 to vector<1x256xi32>
    %14 = arith.cmpi sle, %6, %13 : vector<1x256xi32>
    %15 = arith.andi %8, %12 : vector<1x256xi1>
    %16 = arith.andi %8, %14 : vector<1x256xi1>
    %17 = arith.andi %10, %12 : vector<1x256xi1>
    %18 = arith.andi %10, %14 : vector<1x256xi1>
    %cst = arith.constant 0.000000e+00 : f32
    %19 = vector.broadcast %cst : f32 to vector<4x256xf32>
    %c17_i32 = arith.constant 17 : i32
    %20 = tpu.dynamic_rotate %1 by %c17_i32 dim 1 : vector<4x256xf32>, i32 -> vector<4x256xf32>
    %cst_9 = arith.constant 0.000000e+00 : f32
    %21 = vector.shape_cast %15 : vector<1x256xi1> to vector<1x256xi1>
    %22 = vector.broadcast %21 : vector<1x256xi1> to vector<4x256xi1>
    %23 = vector.broadcast %cst_9 : f32 to vector<4x256xf32>
    %24 = arith.select %22, %20, %23 : vector<4x256xi1>, vector<4x256xf32>
    %25 = vector.extract_strided_slice %2 {offsets = [0, 0, 0, 0], sizes = [1, 1, 4, 1], strides = [1, 1, 1, 1]} : vector<6x9x4x4xf32> to vector<1x1x4x1xf32>
    %26 = vector.shape_cast %25 : vector<1x1x4x1xf32> to vector<4x1xf32>
    %27 = vector.extract_strided_slice %24 {offsets = [0, 0], sizes = [1, 256], strides = [1, 1]} : vector<4x256xf32> to vector<1x256xf32>
    %28 = vector.broadcast %26 : vector<4x1xf32> to vector<4x256xf32>
    %29 = vector.broadcast %27 : vector<1x256xf32> to vector<4x256xf32>
    %30 = arith.mulf %28, %29 : vector<4x256xf32>
    %31 = arith.addf %19, %30 : vector<4x256xf32>
    %32 = vector.extract_strided_slice %2 {offsets = [0, 0, 0, 1], sizes = [1, 1, 4, 1], strides = [1, 1, 1, 1]} : vector<6x9x4x4xf32> to vector<1x1x4x1xf32>
    %33 = vector.shape_cast %32 : vector<1x1x4x1xf32> to vector<4x1xf32>
    %34 = vector.extract_strided_slice %24 {offsets = [1, 0], sizes = [1, 256], strides = [1, 1]} : vector<4x256xf32> to vector<1x256xf32>
    %35 = vector.broadcast %33 : vector<4x1xf32> to vector<4x256xf32>
    %36 = vector.broadcast %34 : vector<1x256xf32> to vector<4x256xf32>
    %37 = arith.mulf %35, %36 : vector<4x256xf32>
    %38 = arith.addf %31, %37 : vector<4x256xf32>
    %39 = vector.extract_strided_slice %2 {offsets = [0, 0, 0, 2], sizes = [1, 1, 4, 1], strides = [1, 1, 1, 1]} : vector<6x9x4x4xf32> to vector<1x1x4x1xf32>
    %40 = vector.shape_cast %39 : vector<1x1x4x1xf32> to vector<4x1xf32>
    %41 = vector.extract_strided_slice %24 {offsets = [2, 0], sizes = [1, 256], strides = [1, 1]} : vector<4x256xf32> to vector<1x256xf32>
    %42 = vector.broadcast %40 : vector<4x1xf32> to vector<4x256xf32>
    %43 = vector.broadcast %41 : vector<1x256xf32> to vector<4x256xf32>
    %44 = arith.mulf %42, %43 : vector<4x256xf32>
    %45 = arith.addf %38, %44 : vector<4x256xf32>
    %46 = vector.extract_strided_slice %2 {offsets = [0, 0, 0, 3], sizes = [1, 1, 4, 1], strides = [1, 1, 1, 1]} : vector<6x9x4x4xf32> to vector<1x1x4x1xf32>
    %47 = vector.shape_cast %46 : vector<1x1x4x1xf32> to vector<4x1xf32>
    %48 = vector.extract_strided_slice %24 {offsets = [3, 0], sizes = [1, 256], strides = [1, 1]} : vector<4x256xf32> to vector<1x256xf32>
    %49 = vector.broadcast %47 : vector<4x1xf32> to vector<4x256xf32>
    %50 = vector.broadcast %48 : vector<1x256xf32> to vector<4x256xf32>
    %51 = arith.mulf %49, %50 : vector<4x256xf32>
    %52 = arith.addf %45, %51 : vector<4x256xf32>
    %c16_i32_10 = arith.constant 16 : i32
    %53 = tpu.dynamic_rotate %1 by %c16_i32_10 dim 1 : vector<4x256xf32>, i32 -> vector<4x256xf32>
    %cst_11 = arith.constant 0.000000e+00 : f32
    %54 = vector.shape_cast %8 : vector<1x256xi1> to vector<1x256xi1>
    %55 = vector.broadcast %54 : vector<1x256xi1> to vector<4x256xi1>
    %56 = vector.broadcast %cst_11 : f32 to vector<4x256xf32>
    %57 = arith.select %55, %53, %56 : vector<4x256xi1>, vector<4x256xf32>
    %58 = vector.extract_strided_slice %2 {offsets = [0, 1, 0, 0], sizes = [1, 1, 4, 1], strides = [1, 1, 1, 1]} : vector<6x9x4x4xf32> to vector<1x1x4x1xf32>
    %59 = vector.shape_cast %58 : vector<1x1x4x1xf32> to vector<4x1xf32>
    %60 = vector.extract_strided_slice %57 {offsets = [0, 0], sizes = [1, 256], strides = [1, 1]} : vector<4x256xf32> to vector<1x256xf32>
    %61 = vector.broadcast %59 : vector<4x1xf32> to vector<4x256xf32>
    %62 = vector.broadcast %60 : vector<1x256xf32> to vector<4x256xf32>
    %63 = arith.mulf %61, %62 : vector<4x256xf32>
    %64 = arith.addf %52, %63 : vector<4x256xf32>
    %65 = vector.extract_strided_slice %2 {offsets = [0, 1, 0, 1], sizes = [1, 1, 4, 1], strides = [1, 1, 1, 1]} : vector<6x9x4x4xf32> to vector<1x1x4x1xf32>
    %66 = vector.shape_cast %65 : vector<1x1x4x1xf32> to vector<4x1xf32>
    %67 = vector.extract_strided_slice %57 {offsets = [1, 0], sizes = [1, 256], strides = [1, 1]} : vector<4x256xf32> to vector<1x256xf32>
    %68 = vector.broadcast %66 : vector<4x1xf32> to vector<4x256xf32>
    %69 = vector.broadcast %67 : vector<1x256xf32> to vector<4x256xf32>
    %70 = arith.mulf %68, %69 : vector<4x256xf32>
    %71 = arith.addf %64, %70 : vector<4x256xf32>
    %72 = vector.extract_strided_slice %2 {offsets = [0, 1, 0, 2], sizes = [1, 1, 4, 1], strides = [1, 1, 1, 1]} : vector<6x9x4x4xf32> to vector<1x1x4x1xf32>
    %73 = vector.shape_cast %72 : vector<1x1x4x1xf32> to vector<4x1xf32>
    %74 = vector.extract_strided_slice %57 {offsets = [2, 0], sizes = [1, 256], strides = [1, 1]} : vector<4x256xf32> to vector<1x256xf32>
    %75 = vector.broadcast %73 : vector<4x1xf32> to vector<4x256xf32>
    %76 = vector.broadcast %74 : vector<1x256xf32> to vector<4x256xf32>
    %77 = arith.mulf %75, %76 : vector<4x256xf32>
    %78 = arith.addf %71, %77 : vector<4x256xf32>
    %79 = vector.extract_strided_slice %2 {offsets = [0, 1, 0, 3], sizes = [1, 1, 4, 1], strides = [1, 1, 1, 1]} : vector<6x9x4x4xf32> to vector<1x1x4x1xf32>
    %80 = vector.shape_cast %79 : vector<1x1x4x1xf32> to vector<4x1xf32>
    %81 = vector.extract_strided_slice %57 {offsets = [3, 0], sizes = [1, 256], strides = [1, 1]} : vector<4x256xf32> to vector<1x256xf32>
    %82 = vector.broadcast %80 : vector<4x1xf32> to vector<4x256xf32>
    %83 = vector.broadcast %81 : vector<1x256xf32> to vector<4x256xf32>
    %84 = arith.mulf %82, %83 : vector<4x256xf32>
    %85 = arith.addf %78, %84 : vector<4x256xf32>
    %c15_i32_12 = arith.constant 15 : i32
    %86 = tpu.dynamic_rotate %1 by %c15_i32_12 dim 1 : vector<4x256xf32>, i32 -> vector<4x256xf32>
    %cst_13 = arith.constant 0.000000e+00 : f32
    %87 = vector.shape_cast %16 : vector<1x256xi1> to vector<1x256xi1>
    %88 = vector.broadcast %87 : vector<1x256xi1> to vector<4x256xi1>
    %89 = vector.broadcast %cst_13 : f32 to vector<4x256xf32>
    %90 = arith.select %88, %86, %89 : vector<4x256xi1>, vector<4x256xf32>
    %91 = vector.extract_strided_slice %2 {offsets = [0, 2, 0, 0], sizes = [1, 1, 4, 1], strides = [1, 1, 1, 1]} : vector<6x9x4x4xf32> to vector<1x1x4x1xf32>
    %92 = vector.shape_cast %91 : vector<1x1x4x1xf32> to vector<4x1xf32>
    %93 = vector.extract_strided_slice %90 {offsets = [0, 0], sizes = [1, 256], strides = [1, 1]} : vector<4x256xf32> to vector<1x256xf32>
    %94 = vector.broadcast %92 : vector<4x1xf32> to vector<4x256xf32>
    %95 = vector.broadcast %93 : vector<1x256xf32> to vector<4x256xf32>
    %96 = arith.mulf %94, %95 : vector<4x256xf32>
    %97 = arith.addf %85, %96 : vector<4x256xf32>
    %98 = vector.extract_strided_slice %2 {offsets = [0, 2, 0, 1], sizes = [1, 1, 4, 1], strides = [1, 1, 1, 1]} : vector<6x9x4x4xf32> to vector<1x1x4x1xf32>
    %99 = vector.shape_cast %98 : vector<1x1x4x1xf32> to vector<4x1xf32>
    %100 = vector.extract_strided_slice %90 {offsets = [1, 0], sizes = [1, 256], strides = [1, 1]} : vector<4x256xf32> to vector<1x256xf32>
    %101 = vector.broadcast %99 : vector<4x1xf32> to vector<4x256xf32>
    %102 = vector.broadcast %100 : vector<1x256xf32> to vector<4x256xf32>
    %103 = arith.mulf %101, %102 : vector<4x256xf32>
    %104 = arith.addf %97, %103 : vector<4x256xf32>
    %105 = vector.extract_strided_slice %2 {offsets = [0, 2, 0, 2], sizes = [1, 1, 4, 1], strides = [1, 1, 1, 1]} : vector<6x9x4x4xf32> to vector<1x1x4x1xf32>
    %106 = vector.shape_cast %105 : vector<1x1x4x1xf32> to vector<4x1xf32>
    %107 = vector.extract_strided_slice %90 {offsets = [2, 0], sizes = [1, 256], strides = [1, 1]} : vector<4x256xf32> to vector<1x256xf32>
    %108 = vector.broadcast %106 : vector<4x1xf32> to vector<4x256xf32>
    %109 = vector.broadcast %107 : vector<1x256xf32> to vector<4x256xf32>
    %110 = arith.mulf %108, %109 : vector<4x256xf32>
    %111 = arith.addf %104, %110 : vector<4x256xf32>
    %112 = vector.extract_strided_slice %2 {offsets = [0, 2, 0, 3], sizes = [1, 1, 4, 1], strides = [1, 1, 1, 1]} : vector<6x9x4x4xf32> to vector<1x1x4x1xf32>
    %113 = vector.shape_cast %112 : vector<1x1x4x1xf32> to vector<4x1xf32>
    %114 = vector.extract_strided_slice %90 {offsets = [3, 0], sizes = [1, 256], strides = [1, 1]} : vector<4x256xf32> to vector<1x256xf32>
    %115 = vector.broadcast %113 : vector<4x1xf32> to vector<4x256xf32>
    %116 = vector.broadcast %114 : vector<1x256xf32> to vector<4x256xf32>
    %117 = arith.mulf %115, %116 : vector<4x256xf32>
    %118 = arith.addf %111, %117 : vector<4x256xf32>
    %c1_i32_14 = arith.constant 1 : i32
    %119 = tpu.dynamic_rotate %1 by %c1_i32_14 dim 1 : vector<4x256xf32>, i32 -> vector<4x256xf32>
    %cst_15 = arith.constant 0.000000e+00 : f32
    %120 = vector.shape_cast %12 : vector<1x256xi1> to vector<1x256xi1>
    %121 = vector.broadcast %120 : vector<1x256xi1> to vector<4x256xi1>
    %122 = vector.broadcast %cst_15 : f32 to vector<4x256xf32>
    %123 = arith.select %121, %119, %122 : vector<4x256xi1>, vector<4x256xf32>
    %124 = vector.extract_strided_slice %2 {offsets = [0, 3, 0, 0], sizes = [1, 1, 4, 1], strides = [1, 1, 1, 1]} : vector<6x9x4x4xf32> to vector<1x1x4x1xf32>
    %125 = vector.shape_cast %124 : vector<1x1x4x1xf32> to vector<4x1xf32>
    %126 = vector.extract_strided_slice %123 {offsets = [0, 0], sizes = [1, 256], strides = [1, 1]} : vector<4x256xf32> to vector<1x256xf32>
    %127 = vector.broadcast %125 : vector<4x1xf32> to vector<4x256xf32>
    %128 = vector.broadcast %126 : vector<1x256xf32> to vector<4x256xf32>
    %129 = arith.mulf %127, %128 : vector<4x256xf32>
    %130 = arith.addf %118, %129 : vector<4x256xf32>
    %131 = vector.extract_strided_slice %2 {offsets = [0, 3, 0, 1], sizes = [1, 1, 4, 1], strides = [1, 1, 1, 1]} : vector<6x9x4x4xf32> to vector<1x1x4x1xf32>
    %132 = vector.shape_cast %131 : vector<1x1x4x1xf32> to vector<4x1xf32>
    %133 = vector.extract_strided_slice %123 {offsets = [1, 0], sizes = [1, 256], strides = [1, 1]} : vector<4x256xf32> to vector<1x256xf32>
    %134 = vector.broadcast %132 : vector<4x1xf32> to vector<4x256xf32>
    %135 = vector.broadcast %133 : vector<1x256xf32> to vector<4x256xf32>
    %136 = arith.mulf %134, %135 : vector<4x256xf32>
    %137 = arith.addf %130, %136 : vector<4x256xf32>
    %138 = vector.extract_strided_slice %2 {offsets = [0, 3, 0, 2], sizes = [1, 1, 4, 1], strides = [1, 1, 1, 1]} : vector<6x9x4x4xf32> to vector<1x1x4x1xf32>
    %139 = vector.shape_cast %138 : vector<1x1x4x1xf32> to vector<4x1xf32>
    %140 = vector.extract_strided_slice %123 {offsets = [2, 0], sizes = [1, 256], strides = [1, 1]} : vector<4x256xf32> to vector<1x256xf32>
    %141 = vector.broadcast %139 : vector<4x1xf32> to vector<4x256xf32>
    %142 = vector.broadcast %140 : vector<1x256xf32> to vector<4x256xf32>
    %143 = arith.mulf %141, %142 : vector<4x256xf32>
    %144 = arith.addf %137, %143 : vector<4x256xf32>
    %145 = vector.extract_strided_slice %2 {offsets = [0, 3, 0, 3], sizes = [1, 1, 4, 1], strides = [1, 1, 1, 1]} : vector<6x9x4x4xf32> to vector<1x1x4x1xf32>
    %146 = vector.shape_cast %145 : vector<1x1x4x1xf32> to vector<4x1xf32>
    %147 = vector.extract_strided_slice %123 {offsets = [3, 0], sizes = [1, 256], strides = [1, 1]} : vector<4x256xf32> to vector<1x256xf32>
    %148 = vector.broadcast %146 : vector<4x1xf32> to vector<4x256xf32>
    %149 = vector.broadcast %147 : vector<1x256xf32> to vector<4x256xf32>
    %150 = arith.mulf %148, %149 : vector<4x256xf32>
    %151 = arith.addf %144, %150 : vector<4x256xf32>
    %152 = vector.extract_strided_slice %2 {offsets = [0, 4, 0, 0], sizes = [1, 1, 4, 1], strides = [1, 1, 1, 1]} : vector<6x9x4x4xf32> to vector<1x1x4x1xf32>
    %153 = vector.shape_cast %152 : vector<1x1x4x1xf32> to vector<4x1xf32>
    %154 = vector.extract_strided_slice %1 {offsets = [0, 0], sizes = [1, 256], strides = [1, 1]} : vector<4x256xf32> to vector<1x256xf32>
    %155 = vector.broadcast %153 : vector<4x1xf32> to vector<4x256xf32>
    %156 = vector.broadcast %154 : vector<1x256xf32> to vector<4x256xf32>
    %157 = arith.mulf %155, %156 : vector<4x256xf32>
    %158 = arith.addf %151, %157 : vector<4x256xf32>
    %159 = vector.extract_strided_slice %2 {offsets = [0, 4, 0, 1], sizes = [1, 1, 4, 1], strides = [1, 1, 1, 1]} : vector<6x9x4x4xf32> to vector<1x1x4x1xf32>
    %160 = vector.shape_cast %159 : vector<1x1x4x1xf32> to vector<4x1xf32>
    %161 = vector.extract_strided_slice %1 {offsets = [1, 0], sizes = [1, 256], strides = [1, 1]} : vector<4x256xf32> to vector<1x256xf32>
    %162 = vector.broadcast %160 : vector<4x1xf32> to vector<4x256xf32>
    %163 = vector.broadcast %161 : vector<1x256xf32> to vector<4x256xf32>
    %164 = arith.mulf %162, %163 : vector<4x256xf32>
    %165 = arith.addf %158, %164 : vector<4x256xf32>
    %166 = vector.extract_strided_slice %2 {offsets = [0, 4, 0, 2], sizes = [1, 1, 4, 1], strides = [1, 1, 1, 1]} : vector<6x9x4x4xf32> to vector<1x1x4x1xf32>
    %167 = vector.shape_cast %166 : vector<1x1x4x1xf32> to vector<4x1xf32>
    %168 = vector.extract_strided_slice %1 {offsets = [2, 0], sizes = [1, 256], strides = [1, 1]} : vector<4x256xf32> to vector<1x256xf32>
    %169 = vector.broadcast %167 : vector<4x1xf32> to vector<4x256xf32>
    %170 = vector.broadcast %168 : vector<1x256xf32> to vector<4x256xf32>
    %171 = arith.mulf %169, %170 : vector<4x256xf32>
    %172 = arith.addf %165, %171 : vector<4x256xf32>
    %173 = vector.extract_strided_slice %2 {offsets = [0, 4, 0, 3], sizes = [1, 1, 4, 1], strides = [1, 1, 1, 1]} : vector<6x9x4x4xf32> to vector<1x1x4x1xf32>
    %174 = vector.shape_cast %173 : vector<1x1x4x1xf32> to vector<4x1xf32>
    %175 = vector.extract_strided_slice %1 {offsets = [3, 0], sizes = [1, 256], strides = [1, 1]} : vector<4x256xf32> to vector<1x256xf32>
    %176 = vector.broadcast %174 : vector<4x1xf32> to vector<4x256xf32>
    %177 = vector.broadcast %175 : vector<1x256xf32> to vector<4x256xf32>
    %178 = arith.mulf %176, %177 : vector<4x256xf32>
    %179 = arith.addf %172, %178 : vector<4x256xf32>
    %c255_i32 = arith.constant 255 : i32
    %180 = tpu.dynamic_rotate %1 by %c255_i32 dim 1 : vector<4x256xf32>, i32 -> vector<4x256xf32>
    %cst_16 = arith.constant 0.000000e+00 : f32
    %181 = vector.shape_cast %14 : vector<1x256xi1> to vector<1x256xi1>
    %182 = vector.broadcast %181 : vector<1x256xi1> to vector<4x256xi1>
    %183 = vector.broadcast %cst_16 : f32 to vector<4x256xf32>
    %184 = arith.select %182, %180, %183 : vector<4x256xi1>, vector<4x256xf32>
    %185 = vector.extract_strided_slice %2 {offsets = [0, 5, 0, 0], sizes = [1, 1, 4, 1], strides = [1, 1, 1, 1]} : vector<6x9x4x4xf32> to vector<1x1x4x1xf32>
    %186 = vector.shape_cast %185 : vector<1x1x4x1xf32> to vector<4x1xf32>
    %187 = vector.extract_strided_slice %184 {offsets = [0, 0], sizes = [1, 256], strides = [1, 1]} : vector<4x256xf32> to vector<1x256xf32>
    %188 = vector.broadcast %186 : vector<4x1xf32> to vector<4x256xf32>
    %189 = vector.broadcast %187 : vector<1x256xf32> to vector<4x256xf32>
    %190 = arith.mulf %188, %189 : vector<4x256xf32>
    %191 = arith.addf %179, %190 : vector<4x256xf32>
    %192 = vector.extract_strided_slice %2 {offsets = [0, 5, 0, 1], sizes = [1, 1, 4, 1], strides = [1, 1, 1, 1]} : vector<6x9x4x4xf32> to vector<1x1x4x1xf32>
    %193 = vector.shape_cast %192 : vector<1x1x4x1xf32> to vector<4x1xf32>
    %194 = vector.extract_strided_slice %184 {offsets = [1, 0], sizes = [1, 256], strides = [1, 1]} : vector<4x256xf32> to vector<1x256xf32>
    %195 = vector.broadcast %193 : vector<4x1xf32> to vector<4x256xf32>
    %196 = vector.broadcast %194 : vector<1x256xf32> to vector<4x256xf32>
    %197 = arith.mulf %195, %196 : vector<4x256xf32>
    %198 = arith.addf %191, %197 : vector<4x256xf32>
    %199 = vector.extract_strided_slice %2 {offsets = [0, 5, 0, 2], sizes = [1, 1, 4, 1], strides = [1, 1, 1, 1]} : vector<6x9x4x4xf32> to vector<1x1x4x1xf32>
    %200 = vector.shape_cast %199 : vector<1x1x4x1xf32> to vector<4x1xf32>
    %201 = vector.extract_strided_slice %184 {offsets = [2, 0], sizes = [1, 256], strides = [1, 1]} : vector<4x256xf32> to vector<1x256xf32>
    %202 = vector.broadcast %200 : vector<4x1xf32> to vector<4x256xf32>
    %203 = vector.broadcast %201 : vector<1x256xf32> to vector<4x256xf32>
    %204 = arith.mulf %202, %203 : vector<4x256xf32>
    %205 = arith.addf %198, %204 : vector<4x256xf32>
    %206 = vector.extract_strided_slice %2 {offsets = [0, 5, 0, 3], sizes = [1, 1, 4, 1], strides = [1, 1, 1, 1]} : vector<6x9x4x4xf32> to vector<1x1x4x1xf32>
    %207 = vector.shape_cast %206 : vector<1x1x4x1xf32> to vector<4x1xf32>
    %208 = vector.extract_strided_slice %184 {offsets = [3, 0], sizes = [1, 256], strides = [1, 1]} : vector<4x256xf32> to vector<1x256xf32>
    %209 = vector.broadcast %207 : vector<4x1xf32> to vector<4x256xf32>
    %210 = vector.broadcast %208 : vector<1x256xf32> to vector<4x256xf32>
    %211 = arith.mulf %209, %210 : vector<4x256xf32>
    %212 = arith.addf %205, %211 : vector<4x256xf32>
    %c241_i32 = arith.constant 241 : i32
    %213 = tpu.dynamic_rotate %1 by %c241_i32 dim 1 : vector<4x256xf32>, i32 -> vector<4x256xf32>
    %cst_17 = arith.constant 0.000000e+00 : f32
    %214 = vector.shape_cast %17 : vector<1x256xi1> to vector<1x256xi1>
    %215 = vector.broadcast %214 : vector<1x256xi1> to vector<4x256xi1>
    %216 = vector.broadcast %cst_17 : f32 to vector<4x256xf32>
    %217 = arith.select %215, %213, %216 : vector<4x256xi1>, vector<4x256xf32>
    %218 = vector.extract_strided_slice %2 {offsets = [0, 6, 0, 0], sizes = [1, 1, 4, 1], strides = [1, 1, 1, 1]} : vector<6x9x4x4xf32> to vector<1x1x4x1xf32>
    %219 = vector.shape_cast %218 : vector<1x1x4x1xf32> to vector<4x1xf32>
    %220 = vector.extract_strided_slice %217 {offsets = [0, 0], sizes = [1, 256], strides = [1, 1]} : vector<4x256xf32> to vector<1x256xf32>
    %221 = vector.broadcast %219 : vector<4x1xf32> to vector<4x256xf32>
    %222 = vector.broadcast %220 : vector<1x256xf32> to vector<4x256xf32>
    %223 = arith.mulf %221, %222 : vector<4x256xf32>
    %224 = arith.addf %212, %223 : vector<4x256xf32>
    %225 = vector.extract_strided_slice %2 {offsets = [0, 6, 0, 1], sizes = [1, 1, 4, 1], strides = [1, 1, 1, 1]} : vector<6x9x4x4xf32> to vector<1x1x4x1xf32>
    %226 = vector.shape_cast %225 : vector<1x1x4x1xf32> to vector<4x1xf32>
    %227 = vector.extract_strided_slice %217 {offsets = [1, 0], sizes = [1, 256], strides = [1, 1]} : vector<4x256xf32> to vector<1x256xf32>
    %228 = vector.broadcast %226 : vector<4x1xf32> to vector<4x256xf32>
    %229 = vector.broadcast %227 : vector<1x256xf32> to vector<4x256xf32>
    %230 = arith.mulf %228, %229 : vector<4x256xf32>
    %231 = arith.addf %224, %230 : vector<4x256xf32>
    %232 = vector.extract_strided_slice %2 {offsets = [0, 6, 0, 2], sizes = [1, 1, 4, 1], strides = [1, 1, 1, 1]} : vector<6x9x4x4xf32> to vector<1x1x4x1xf32>
    %233 = vector.shape_cast %232 : vector<1x1x4x1xf32> to vector<4x1xf32>
    %234 = vector.extract_strided_slice %217 {offsets = [2, 0], sizes = [1, 256], strides = [1, 1]} : vector<4x256xf32> to vector<1x256xf32>
    %235 = vector.broadcast %233 : vector<4x1xf32> to vector<4x256xf32>
    %236 = vector.broadcast %234 : vector<1x256xf32> to vector<4x256xf32>
    %237 = arith.mulf %235, %236 : vector<4x256xf32>
    %238 = arith.addf %231, %237 : vector<4x256xf32>
    %239 = vector.extract_strided_slice %2 {offsets = [0, 6, 0, 3], sizes = [1, 1, 4, 1], strides = [1, 1, 1, 1]} : vector<6x9x4x4xf32> to vector<1x1x4x1xf32>
    %240 = vector.shape_cast %239 : vector<1x1x4x1xf32> to vector<4x1xf32>
    %241 = vector.extract_strided_slice %217 {offsets = [3, 0], sizes = [1, 256], strides = [1, 1]} : vector<4x256xf32> to vector<1x256xf32>
    %242 = vector.broadcast %240 : vector<4x1xf32> to vector<4x256xf32>
    %243 = vector.broadcast %241 : vector<1x256xf32> to vector<4x256xf32>
    %244 = arith.mulf %242, %243 : vector<4x256xf32>
    %245 = arith.addf %238, %244 : vector<4x256xf32>
    %c240_i32_18 = arith.constant 240 : i32
    %246 = tpu.dynamic_rotate %1 by %c240_i32_18 dim 1 : vector<4x256xf32>, i32 -> vector<4x256xf32>
    %cst_19 = arith.constant 0.000000e+00 : f32
    %247 = vector.shape_cast %10 : vector<1x256xi1> to vector<1x256xi1>
    %248 = vector.broadcast %247 : vector<1x256xi1> to vector<4x256xi1>
    %249 = vector.broadcast %cst_19 : f32 to vector<4x256xf32>
    %250 = arith.select %248, %246, %249 : vector<4x256xi1>, vector<4x256xf32>
    %251 = vector.extract_strided_slice %2 {offsets = [0, 7, 0, 0], sizes = [1, 1, 4, 1], strides = [1, 1, 1, 1]} : vector<6x9x4x4xf32> to vector<1x1x4x1xf32>
    %252 = vector.shape_cast %251 : vector<1x1x4x1xf32> to vector<4x1xf32>
    %253 = vector.extract_strided_slice %250 {offsets = [0, 0], sizes = [1, 256], strides = [1, 1]} : vector<4x256xf32> to vector<1x256xf32>
    %254 = vector.broadcast %252 : vector<4x1xf32> to vector<4x256xf32>
    %255 = vector.broadcast %253 : vector<1x256xf32> to vector<4x256xf32>
    %256 = arith.mulf %254, %255 : vector<4x256xf32>
    %257 = arith.addf %245, %256 : vector<4x256xf32>
    %258 = vector.extract_strided_slice %2 {offsets = [0, 7, 0, 1], sizes = [1, 1, 4, 1], strides = [1, 1, 1, 1]} : vector<6x9x4x4xf32> to vector<1x1x4x1xf32>
    %259 = vector.shape_cast %258 : vector<1x1x4x1xf32> to vector<4x1xf32>
    %260 = vector.extract_strided_slice %250 {offsets = [1, 0], sizes = [1, 256], strides = [1, 1]} : vector<4x256xf32> to vector<1x256xf32>
    %261 = vector.broadcast %259 : vector<4x1xf32> to vector<4x256xf32>
    %262 = vector.broadcast %260 : vector<1x256xf32> to vector<4x256xf32>
    %263 = arith.mulf %261, %262 : vector<4x256xf32>
    %264 = arith.addf %257, %263 : vector<4x256xf32>
    %265 = vector.extract_strided_slice %2 {offsets = [0, 7, 0, 2], sizes = [1, 1, 4, 1], strides = [1, 1, 1, 1]} : vector<6x9x4x4xf32> to vector<1x1x4x1xf32>
    %266 = vector.shape_cast %265 : vector<1x1x4x1xf32> to vector<4x1xf32>
    %267 = vector.extract_strided_slice %250 {offsets = [2, 0], sizes = [1, 256], strides = [1, 1]} : vector<4x256xf32> to vector<1x256xf32>
    %268 = vector.broadcast %266 : vector<4x1xf32> to vector<4x256xf32>
    %269 = vector.broadcast %267 : vector<1x256xf32> to vector<4x256xf32>
    %270 = arith.mulf %268, %269 : vector<4x256xf32>
    %271 = arith.addf %264, %270 : vector<4x256xf32>
    %272 = vector.extract_strided_slice %2 {offsets = [0, 7, 0, 3], sizes = [1, 1, 4, 1], strides = [1, 1, 1, 1]} : vector<6x9x4x4xf32> to vector<1x1x4x1xf32>
    %273 = vector.shape_cast %272 : vector<1x1x4x1xf32> to vector<4x1xf32>
    %274 = vector.extract_strided_slice %250 {offsets = [3, 0], sizes = [1, 256], strides = [1, 1]} : vector<4x256xf32> to vector<1x256xf32>
    %275 = vector.broadcast %273 : vector<4x1xf32> to vector<4x256xf32>
    %276 = vector.broadcast %274 : vector<1x256xf32> to vector<4x256xf32>
    %277 = arith.mulf %275, %276 : vector<4x256xf32>
    %278 = arith.addf %271, %277 : vector<4x256xf32>
    %c239_i32 = arith.constant 239 : i32
    %279 = tpu.dynamic_rotate %1 by %c239_i32 dim 1 : vector<4x256xf32>, i32 -> vector<4x256xf32>
    %cst_20 = arith.constant 0.000000e+00 : f32
    %280 = vector.shape_cast %18 : vector<1x256xi1> to vector<1x256xi1>
    %281 = vector.broadcast %280 : vector<1x256xi1> to vector<4x256xi1>
    %282 = vector.broadcast %cst_20 : f32 to vector<4x256xf32>
    %283 = arith.select %281, %279, %282 : vector<4x256xi1>, vector<4x256xf32>
    %284 = vector.extract_strided_slice %2 {offsets = [0, 8, 0, 0], sizes = [1, 1, 4, 1], strides = [1, 1, 1, 1]} : vector<6x9x4x4xf32> to vector<1x1x4x1xf32>
    %285 = vector.shape_cast %284 : vector<1x1x4x1xf32> to vector<4x1xf32>
    %286 = vector.extract_strided_slice %283 {offsets = [0, 0], sizes = [1, 256], strides = [1, 1]} : vector<4x256xf32> to vector<1x256xf32>
    %287 = vector.broadcast %285 : vector<4x1xf32> to vector<4x256xf32>
    %288 = vector.broadcast %286 : vector<1x256xf32> to vector<4x256xf32>
    %289 = arith.mulf %287, %288 : vector<4x256xf32>
    %290 = arith.addf %278, %289 : vector<4x256xf32>
    %291 = vector.extract_strided_slice %2 {offsets = [0, 8, 0, 1], sizes = [1, 1, 4, 1], strides = [1, 1, 1, 1]} : vector<6x9x4x4xf32> to vector<1x1x4x1xf32>
    %292 = vector.shape_cast %291 : vector<1x1x4x1xf32> to vector<4x1xf32>
    %293 = vector.extract_strided_slice %283 {offsets = [1, 0], sizes = [1, 256], strides = [1, 1]} : vector<4x256xf32> to vector<1x256xf32>
    %294 = vector.broadcast %292 : vector<4x1xf32> to vector<4x256xf32>
    %295 = vector.broadcast %293 : vector<1x256xf32> to vector<4x256xf32>
    %296 = arith.mulf %294, %295 : vector<4x256xf32>
    %297 = arith.addf %290, %296 : vector<4x256xf32>
    %298 = vector.extract_strided_slice %2 {offsets = [0, 8, 0, 2], sizes = [1, 1, 4, 1], strides = [1, 1, 1, 1]} : vector<6x9x4x4xf32> to vector<1x1x4x1xf32>
    %299 = vector.shape_cast %298 : vector<1x1x4x1xf32> to vector<4x1xf32>
    %300 = vector.extract_strided_slice %283 {offsets = [2, 0], sizes = [1, 256], strides = [1, 1]} : vector<4x256xf32> to vector<1x256xf32>
    %301 = vector.broadcast %299 : vector<4x1xf32> to vector<4x256xf32>
    %302 = vector.broadcast %300 : vector<1x256xf32> to vector<4x256xf32>
    %303 = arith.mulf %301, %302 : vector<4x256xf32>
    %304 = arith.addf %297, %303 : vector<4x256xf32>
    %305 = vector.extract_strided_slice %2 {offsets = [0, 8, 0, 3], sizes = [1, 1, 4, 1], strides = [1, 1, 1, 1]} : vector<6x9x4x4xf32> to vector<1x1x4x1xf32>
    %306 = vector.shape_cast %305 : vector<1x1x4x1xf32> to vector<4x1xf32>
    %307 = vector.extract_strided_slice %283 {offsets = [3, 0], sizes = [1, 256], strides = [1, 1]} : vector<4x256xf32> to vector<1x256xf32>
    %308 = vector.broadcast %306 : vector<4x1xf32> to vector<4x256xf32>
    %309 = vector.broadcast %307 : vector<1x256xf32> to vector<4x256xf32>
    %310 = arith.mulf %308, %309 : vector<4x256xf32>
    %311 = arith.addf %304, %310 : vector<4x256xf32>
    %312 = vector.extract_strided_slice %3 {offsets = [0, 0, 0], sizes = [1, 4, 1], strides = [1, 1, 1]} : vector<6x4x1xf32> to vector<1x4x1xf32>
    %313 = vector.shape_cast %312 : vector<1x4x1xf32> to vector<4x1xf32>
    %314 = vector.broadcast %313 : vector<4x1xf32> to vector<4x256xf32>
    %315 = arith.addf %311, %314 : vector<4x256xf32>
    %cst_21 = arith.constant 0.000000e+00 : f32
    %316 = vector.broadcast %cst_21 : f32 to vector<4x256xf32>
    %317 = arith.maximumf %315, %316 : vector<4x256xf32>
    %cst_22 = arith.constant 0.000000e+00 : f32
    %318 = vector.broadcast %cst_22 : f32 to vector<4x256xf32>
    %c17_i32_23 = arith.constant 17 : i32
    %319 = tpu.dynamic_rotate %317 by %c17_i32_23 dim 1 : vector<4x256xf32>, i32 -> vector<4x256xf32>
    %cst_24 = arith.constant 0.000000e+00 : f32
    %320 = vector.shape_cast %15 : vector<1x256xi1> to vector<1x256xi1>
    %321 = vector.broadcast %320 : vector<1x256xi1> to vector<4x256xi1>
    %322 = vector.broadcast %cst_24 : f32 to vector<4x256xf32>
    %323 = arith.select %321, %319, %322 : vector<4x256xi1>, vector<4x256xf32>
    %324 = vector.extract_strided_slice %2 {offsets = [1, 0, 0, 0], sizes = [1, 1, 4, 1], strides = [1, 1, 1, 1]} : vector<6x9x4x4xf32> to vector<1x1x4x1xf32>
    %325 = vector.shape_cast %324 : vector<1x1x4x1xf32> to vector<4x1xf32>
    %326 = vector.extract_strided_slice %323 {offsets = [0, 0], sizes = [1, 256], strides = [1, 1]} : vector<4x256xf32> to vector<1x256xf32>
    %327 = vector.broadcast %325 : vector<4x1xf32> to vector<4x256xf32>
    %328 = vector.broadcast %326 : vector<1x256xf32> to vector<4x256xf32>
    %329 = arith.mulf %327, %328 : vector<4x256xf32>
    %330 = arith.addf %318, %329 : vector<4x256xf32>
    %331 = vector.extract_strided_slice %2 {offsets = [1, 0, 0, 1], sizes = [1, 1, 4, 1], strides = [1, 1, 1, 1]} : vector<6x9x4x4xf32> to vector<1x1x4x1xf32>
    %332 = vector.shape_cast %331 : vector<1x1x4x1xf32> to vector<4x1xf32>
    %333 = vector.extract_strided_slice %323 {offsets = [1, 0], sizes = [1, 256], strides = [1, 1]} : vector<4x256xf32> to vector<1x256xf32>
    %334 = vector.broadcast %332 : vector<4x1xf32> to vector<4x256xf32>
    %335 = vector.broadcast %333 : vector<1x256xf32> to vector<4x256xf32>
    %336 = arith.mulf %334, %335 : vector<4x256xf32>
    %337 = arith.addf %330, %336 : vector<4x256xf32>
    %338 = vector.extract_strided_slice %2 {offsets = [1, 0, 0, 2], sizes = [1, 1, 4, 1], strides = [1, 1, 1, 1]} : vector<6x9x4x4xf32> to vector<1x1x4x1xf32>
    %339 = vector.shape_cast %338 : vector<1x1x4x1xf32> to vector<4x1xf32>
    %340 = vector.extract_strided_slice %323 {offsets = [2, 0], sizes = [1, 256], strides = [1, 1]} : vector<4x256xf32> to vector<1x256xf32>
    %341 = vector.broadcast %339 : vector<4x1xf32> to vector<4x256xf32>
    %342 = vector.broadcast %340 : vector<1x256xf32> to vector<4x256xf32>
    %343 = arith.mulf %341, %342 : vector<4x256xf32>
    %344 = arith.addf %337, %343 : vector<4x256xf32>
    %345 = vector.extract_strided_slice %2 {offsets = [1, 0, 0, 3], sizes = [1, 1, 4, 1], strides = [1, 1, 1, 1]} : vector<6x9x4x4xf32> to vector<1x1x4x1xf32>
    %346 = vector.shape_cast %345 : vector<1x1x4x1xf32> to vector<4x1xf32>
    %347 = vector.extract_strided_slice %323 {offsets = [3, 0], sizes = [1, 256], strides = [1, 1]} : vector<4x256xf32> to vector<1x256xf32>
    %348 = vector.broadcast %346 : vector<4x1xf32> to vector<4x256xf32>
    %349 = vector.broadcast %347 : vector<1x256xf32> to vector<4x256xf32>
    %350 = arith.mulf %348, %349 : vector<4x256xf32>
    %351 = arith.addf %344, %350 : vector<4x256xf32>
    %c16_i32_25 = arith.constant 16 : i32
    %352 = tpu.dynamic_rotate %317 by %c16_i32_25 dim 1 : vector<4x256xf32>, i32 -> vector<4x256xf32>
    %cst_26 = arith.constant 0.000000e+00 : f32
    %353 = vector.shape_cast %8 : vector<1x256xi1> to vector<1x256xi1>
    %354 = vector.broadcast %353 : vector<1x256xi1> to vector<4x256xi1>
    %355 = vector.broadcast %cst_26 : f32 to vector<4x256xf32>
    %356 = arith.select %354, %352, %355 : vector<4x256xi1>, vector<4x256xf32>
    %357 = vector.extract_strided_slice %2 {offsets = [1, 1, 0, 0], sizes = [1, 1, 4, 1], strides = [1, 1, 1, 1]} : vector<6x9x4x4xf32> to vector<1x1x4x1xf32>
    %358 = vector.shape_cast %357 : vector<1x1x4x1xf32> to vector<4x1xf32>
    %359 = vector.extract_strided_slice %356 {offsets = [0, 0], sizes = [1, 256], strides = [1, 1]} : vector<4x256xf32> to vector<1x256xf32>
    %360 = vector.broadcast %358 : vector<4x1xf32> to vector<4x256xf32>
    %361 = vector.broadcast %359 : vector<1x256xf32> to vector<4x256xf32>
    %362 = arith.mulf %360, %361 : vector<4x256xf32>
    %363 = arith.addf %351, %362 : vector<4x256xf32>
    %364 = vector.extract_strided_slice %2 {offsets = [1, 1, 0, 1], sizes = [1, 1, 4, 1], strides = [1, 1, 1, 1]} : vector<6x9x4x4xf32> to vector<1x1x4x1xf32>
    %365 = vector.shape_cast %364 : vector<1x1x4x1xf32> to vector<4x1xf32>
    %366 = vector.extract_strided_slice %356 {offsets = [1, 0], sizes = [1, 256], strides = [1, 1]} : vector<4x256xf32> to vector<1x256xf32>
    %367 = vector.broadcast %365 : vector<4x1xf32> to vector<4x256xf32>
    %368 = vector.broadcast %366 : vector<1x256xf32> to vector<4x256xf32>
    %369 = arith.mulf %367, %368 : vector<4x256xf32>
    %370 = arith.addf %363, %369 : vector<4x256xf32>
    %371 = vector.extract_strided_slice %2 {offsets = [1, 1, 0, 2], sizes = [1, 1, 4, 1], strides = [1, 1, 1, 1]} : vector<6x9x4x4xf32> to vector<1x1x4x1xf32>
    %372 = vector.shape_cast %371 : vector<1x1x4x1xf32> to vector<4x1xf32>
    %373 = vector.extract_strided_slice %356 {offsets = [2, 0], sizes = [1, 256], strides = [1, 1]} : vector<4x256xf32> to vector<1x256xf32>
    %374 = vector.broadcast %372 : vector<4x1xf32> to vector<4x256xf32>
    %375 = vector.broadcast %373 : vector<1x256xf32> to vector<4x256xf32>
    %376 = arith.mulf %374, %375 : vector<4x256xf32>
    %377 = arith.addf %370, %376 : vector<4x256xf32>
    %378 = vector.extract_strided_slice %2 {offsets = [1, 1, 0, 3], sizes = [1, 1, 4, 1], strides = [1, 1, 1, 1]} : vector<6x9x4x4xf32> to vector<1x1x4x1xf32>
    %379 = vector.shape_cast %378 : vector<1x1x4x1xf32> to vector<4x1xf32>
    %380 = vector.extract_strided_slice %356 {offsets = [3, 0], sizes = [1, 256], strides = [1, 1]} : vector<4x256xf32> to vector<1x256xf32>
    %381 = vector.broadcast %379 : vector<4x1xf32> to vector<4x256xf32>
    %382 = vector.broadcast %380 : vector<1x256xf32> to vector<4x256xf32>
    %383 = arith.mulf %381, %382 : vector<4x256xf32>
    %384 = arith.addf %377, %383 : vector<4x256xf32>
    %c15_i32_27 = arith.constant 15 : i32
    %385 = tpu.dynamic_rotate %317 by %c15_i32_27 dim 1 : vector<4x256xf32>, i32 -> vector<4x256xf32>
    %cst_28 = arith.constant 0.000000e+00 : f32
    %386 = vector.shape_cast %16 : vector<1x256xi1> to vector<1x256xi1>
    %387 = vector.broadcast %386 : vector<1x256xi1> to vector<4x256xi1>
    %388 = vector.broadcast %cst_28 : f32 to vector<4x256xf32>
    %389 = arith.select %387, %385, %388 : vector<4x256xi1>, vector<4x256xf32>
    %390 = vector.extract_strided_slice %2 {offsets = [1, 2, 0, 0], sizes = [1, 1, 4, 1], strides = [1, 1, 1, 1]} : vector<6x9x4x4xf32> to vector<1x1x4x1xf32>
    %391 = vector.shape_cast %390 : vector<1x1x4x1xf32> to vector<4x1xf32>
    %392 = vector.extract_strided_slice %389 {offsets = [0, 0], sizes = [1, 256], strides = [1, 1]} : vector<4x256xf32> to vector<1x256xf32>
    %393 = vector.broadcast %391 : vector<4x1xf32> to vector<4x256xf32>
    %394 = vector.broadcast %392 : vector<1x256xf32> to vector<4x256xf32>
    %395 = arith.mulf %393, %394 : vector<4x256xf32>
    %396 = arith.addf %384, %395 : vector<4x256xf32>
    %397 = vector.extract_strided_slice %2 {offsets = [1, 2, 0, 1], sizes = [1, 1, 4, 1], strides = [1, 1, 1, 1]} : vector<6x9x4x4xf32> to vector<1x1x4x1xf32>
    %398 = vector.shape_cast %397 : vector<1x1x4x1xf32> to vector<4x1xf32>
    %399 = vector.extract_strided_slice %389 {offsets = [1, 0], sizes = [1, 256], strides = [1, 1]} : vector<4x256xf32> to vector<1x256xf32>
    %400 = vector.broadcast %398 : vector<4x1xf32> to vector<4x256xf32>
    %401 = vector.broadcast %399 : vector<1x256xf32> to vector<4x256xf32>
    %402 = arith.mulf %400, %401 : vector<4x256xf32>
    %403 = arith.addf %396, %402 : vector<4x256xf32>
    %404 = vector.extract_strided_slice %2 {offsets = [1, 2, 0, 2], sizes = [1, 1, 4, 1], strides = [1, 1, 1, 1]} : vector<6x9x4x4xf32> to vector<1x1x4x1xf32>
    %405 = vector.shape_cast %404 : vector<1x1x4x1xf32> to vector<4x1xf32>
    %406 = vector.extract_strided_slice %389 {offsets = [2, 0], sizes = [1, 256], strides = [1, 1]} : vector<4x256xf32> to vector<1x256xf32>
    %407 = vector.broadcast %405 : vector<4x1xf32> to vector<4x256xf32>
    %408 = vector.broadcast %406 : vector<1x256xf32> to vector<4x256xf32>
    %409 = arith.mulf %407, %408 : vector<4x256xf32>
    %410 = arith.addf %403, %409 : vector<4x256xf32>
    %411 = vector.extract_strided_slice %2 {offsets = [1, 2, 0, 3], sizes = [1, 1, 4, 1], strides = [1, 1, 1, 1]} : vector<6x9x4x4xf32> to vector<1x1x4x1xf32>
    %412 = vector.shape_cast %411 : vector<1x1x4x1xf32> to vector<4x1xf32>
    %413 = vector.extract_strided_slice %389 {offsets = [3, 0], sizes = [1, 256], strides = [1, 1]} : vector<4x256xf32> to vector<1x256xf32>
    %414 = vector.broadcast %412 : vector<4x1xf32> to vector<4x256xf32>
    %415 = vector.broadcast %413 : vector<1x256xf32> to vector<4x256xf32>
    %416 = arith.mulf %414, %415 : vector<4x256xf32>
    %417 = arith.addf %410, %416 : vector<4x256xf32>
    %c1_i32_29 = arith.constant 1 : i32
    %418 = tpu.dynamic_rotate %317 by %c1_i32_29 dim 1 : vector<4x256xf32>, i32 -> vector<4x256xf32>
    %cst_30 = arith.constant 0.000000e+00 : f32
    %419 = vector.shape_cast %12 : vector<1x256xi1> to vector<1x256xi1>
    %420 = vector.broadcast %419 : vector<1x256xi1> to vector<4x256xi1>
    %421 = vector.broadcast %cst_30 : f32 to vector<4x256xf32>
    %422 = arith.select %420, %418, %421 : vector<4x256xi1>, vector<4x256xf32>
    %423 = vector.extract_strided_slice %2 {offsets = [1, 3, 0, 0], sizes = [1, 1, 4, 1], strides = [1, 1, 1, 1]} : vector<6x9x4x4xf32> to vector<1x1x4x1xf32>
    %424 = vector.shape_cast %423 : vector<1x1x4x1xf32> to vector<4x1xf32>
    %425 = vector.extract_strided_slice %422 {offsets = [0, 0], sizes = [1, 256], strides = [1, 1]} : vector<4x256xf32> to vector<1x256xf32>
    %426 = vector.broadcast %424 : vector<4x1xf32> to vector<4x256xf32>
    %427 = vector.broadcast %425 : vector<1x256xf32> to vector<4x256xf32>
    %428 = arith.mulf %426, %427 : vector<4x256xf32>
    %429 = arith.addf %417, %428 : vector<4x256xf32>
    %430 = vector.extract_strided_slice %2 {offsets = [1, 3, 0, 1], sizes = [1, 1, 4, 1], strides = [1, 1, 1, 1]} : vector<6x9x4x4xf32> to vector<1x1x4x1xf32>
    %431 = vector.shape_cast %430 : vector<1x1x4x1xf32> to vector<4x1xf32>
    %432 = vector.extract_strided_slice %422 {offsets = [1, 0], sizes = [1, 256], strides = [1, 1]} : vector<4x256xf32> to vector<1x256xf32>
    %433 = vector.broadcast %431 : vector<4x1xf32> to vector<4x256xf32>
    %434 = vector.broadcast %432 : vector<1x256xf32> to vector<4x256xf32>
    %435 = arith.mulf %433, %434 : vector<4x256xf32>
    %436 = arith.addf %429, %435 : vector<4x256xf32>
    %437 = vector.extract_strided_slice %2 {offsets = [1, 3, 0, 2], sizes = [1, 1, 4, 1], strides = [1, 1, 1, 1]} : vector<6x9x4x4xf32> to vector<1x1x4x1xf32>
    %438 = vector.shape_cast %437 : vector<1x1x4x1xf32> to vector<4x1xf32>
    %439 = vector.extract_strided_slice %422 {offsets = [2, 0], sizes = [1, 256], strides = [1, 1]} : vector<4x256xf32> to vector<1x256xf32>
    %440 = vector.broadcast %438 : vector<4x1xf32> to vector<4x256xf32>
    %441 = vector.broadcast %439 : vector<1x256xf32> to vector<4x256xf32>
    %442 = arith.mulf %440, %441 : vector<4x256xf32>
    %443 = arith.addf %436, %442 : vector<4x256xf32>
    %444 = vector.extract_strided_slice %2 {offsets = [1, 3, 0, 3], sizes = [1, 1, 4, 1], strides = [1, 1, 1, 1]} : vector<6x9x4x4xf32> to vector<1x1x4x1xf32>
    %445 = vector.shape_cast %444 : vector<1x1x4x1xf32> to vector<4x1xf32>
    %446 = vector.extract_strided_slice %422 {offsets = [3, 0], sizes = [1, 256], strides = [1, 1]} : vector<4x256xf32> to vector<1x256xf32>
    %447 = vector.broadcast %445 : vector<4x1xf32> to vector<4x256xf32>
    %448 = vector.broadcast %446 : vector<1x256xf32> to vector<4x256xf32>
    %449 = arith.mulf %447, %448 : vector<4x256xf32>
    %450 = arith.addf %443, %449 : vector<4x256xf32>
    %451 = vector.extract_strided_slice %2 {offsets = [1, 4, 0, 0], sizes = [1, 1, 4, 1], strides = [1, 1, 1, 1]} : vector<6x9x4x4xf32> to vector<1x1x4x1xf32>
    %452 = vector.shape_cast %451 : vector<1x1x4x1xf32> to vector<4x1xf32>
    %453 = vector.extract_strided_slice %317 {offsets = [0, 0], sizes = [1, 256], strides = [1, 1]} : vector<4x256xf32> to vector<1x256xf32>
    %454 = vector.broadcast %452 : vector<4x1xf32> to vector<4x256xf32>
    %455 = vector.broadcast %453 : vector<1x256xf32> to vector<4x256xf32>
    %456 = arith.mulf %454, %455 : vector<4x256xf32>
    %457 = arith.addf %450, %456 : vector<4x256xf32>
    %458 = vector.extract_strided_slice %2 {offsets = [1, 4, 0, 1], sizes = [1, 1, 4, 1], strides = [1, 1, 1, 1]} : vector<6x9x4x4xf32> to vector<1x1x4x1xf32>
    %459 = vector.shape_cast %458 : vector<1x1x4x1xf32> to vector<4x1xf32>
    %460 = vector.extract_strided_slice %317 {offsets = [1, 0], sizes = [1, 256], strides = [1, 1]} : vector<4x256xf32> to vector<1x256xf32>
    %461 = vector.broadcast %459 : vector<4x1xf32> to vector<4x256xf32>
    %462 = vector.broadcast %460 : vector<1x256xf32> to vector<4x256xf32>
    %463 = arith.mulf %461, %462 : vector<4x256xf32>
    %464 = arith.addf %457, %463 : vector<4x256xf32>
    %465 = vector.extract_strided_slice %2 {offsets = [1, 4, 0, 2], sizes = [1, 1, 4, 1], strides = [1, 1, 1, 1]} : vector<6x9x4x4xf32> to vector<1x1x4x1xf32>
    %466 = vector.shape_cast %465 : vector<1x1x4x1xf32> to vector<4x1xf32>
    %467 = vector.extract_strided_slice %317 {offsets = [2, 0], sizes = [1, 256], strides = [1, 1]} : vector<4x256xf32> to vector<1x256xf32>
    %468 = vector.broadcast %466 : vector<4x1xf32> to vector<4x256xf32>
    %469 = vector.broadcast %467 : vector<1x256xf32> to vector<4x256xf32>
    %470 = arith.mulf %468, %469 : vector<4x256xf32>
    %471 = arith.addf %464, %470 : vector<4x256xf32>
    %472 = vector.extract_strided_slice %2 {offsets = [1, 4, 0, 3], sizes = [1, 1, 4, 1], strides = [1, 1, 1, 1]} : vector<6x9x4x4xf32> to vector<1x1x4x1xf32>
    %473 = vector.shape_cast %472 : vector<1x1x4x1xf32> to vector<4x1xf32>
    %474 = vector.extract_strided_slice %317 {offsets = [3, 0], sizes = [1, 256], strides = [1, 1]} : vector<4x256xf32> to vector<1x256xf32>
    %475 = vector.broadcast %473 : vector<4x1xf32> to vector<4x256xf32>
    %476 = vector.broadcast %474 : vector<1x256xf32> to vector<4x256xf32>
    %477 = arith.mulf %475, %476 : vector<4x256xf32>
    %478 = arith.addf %471, %477 : vector<4x256xf32>
    %c255_i32_31 = arith.constant 255 : i32
    %479 = tpu.dynamic_rotate %317 by %c255_i32_31 dim 1 : vector<4x256xf32>, i32 -> vector<4x256xf32>
    %cst_32 = arith.constant 0.000000e+00 : f32
    %480 = vector.shape_cast %14 : vector<1x256xi1> to vector<1x256xi1>
    %481 = vector.broadcast %480 : vector<1x256xi1> to vector<4x256xi1>
    %482 = vector.broadcast %cst_32 : f32 to vector<4x256xf32>
    %483 = arith.select %481, %479, %482 : vector<4x256xi1>, vector<4x256xf32>
    %484 = vector.extract_strided_slice %2 {offsets = [1, 5, 0, 0], sizes = [1, 1, 4, 1], strides = [1, 1, 1, 1]} : vector<6x9x4x4xf32> to vector<1x1x4x1xf32>
    %485 = vector.shape_cast %484 : vector<1x1x4x1xf32> to vector<4x1xf32>
    %486 = vector.extract_strided_slice %483 {offsets = [0, 0], sizes = [1, 256], strides = [1, 1]} : vector<4x256xf32> to vector<1x256xf32>
    %487 = vector.broadcast %485 : vector<4x1xf32> to vector<4x256xf32>
    %488 = vector.broadcast %486 : vector<1x256xf32> to vector<4x256xf32>
    %489 = arith.mulf %487, %488 : vector<4x256xf32>
    %490 = arith.addf %478, %489 : vector<4x256xf32>
    %491 = vector.extract_strided_slice %2 {offsets = [1, 5, 0, 1], sizes = [1, 1, 4, 1], strides = [1, 1, 1, 1]} : vector<6x9x4x4xf32> to vector<1x1x4x1xf32>
    %492 = vector.shape_cast %491 : vector<1x1x4x1xf32> to vector<4x1xf32>
    %493 = vector.extract_strided_slice %483 {offsets = [1, 0], sizes = [1, 256], strides = [1, 1]} : vector<4x256xf32> to vector<1x256xf32>
    %494 = vector.broadcast %492 : vector<4x1xf32> to vector<4x256xf32>
    %495 = vector.broadcast %493 : vector<1x256xf32> to vector<4x256xf32>
    %496 = arith.mulf %494, %495 : vector<4x256xf32>
    %497 = arith.addf %490, %496 : vector<4x256xf32>
    %498 = vector.extract_strided_slice %2 {offsets = [1, 5, 0, 2], sizes = [1, 1, 4, 1], strides = [1, 1, 1, 1]} : vector<6x9x4x4xf32> to vector<1x1x4x1xf32>
    %499 = vector.shape_cast %498 : vector<1x1x4x1xf32> to vector<4x1xf32>
    %500 = vector.extract_strided_slice %483 {offsets = [2, 0], sizes = [1, 256], strides = [1, 1]} : vector<4x256xf32> to vector<1x256xf32>
    %501 = vector.broadcast %499 : vector<4x1xf32> to vector<4x256xf32>
    %502 = vector.broadcast %500 : vector<1x256xf32> to vector<4x256xf32>
    %503 = arith.mulf %501, %502 : vector<4x256xf32>
    %504 = arith.addf %497, %503 : vector<4x256xf32>
    %505 = vector.extract_strided_slice %2 {offsets = [1, 5, 0, 3], sizes = [1, 1, 4, 1], strides = [1, 1, 1, 1]} : vector<6x9x4x4xf32> to vector<1x1x4x1xf32>
    %506 = vector.shape_cast %505 : vector<1x1x4x1xf32> to vector<4x1xf32>
    %507 = vector.extract_strided_slice %483 {offsets = [3, 0], sizes = [1, 256], strides = [1, 1]} : vector<4x256xf32> to vector<1x256xf32>
    %508 = vector.broadcast %506 : vector<4x1xf32> to vector<4x256xf32>
    %509 = vector.broadcast %507 : vector<1x256xf32> to vector<4x256xf32>
    %510 = arith.mulf %508, %509 : vector<4x256xf32>
    %511 = arith.addf %504, %510 : vector<4x256xf32>
    %c241_i32_33 = arith.constant 241 : i32
    %512 = tpu.dynamic_rotate %317 by %c241_i32_33 dim 1 : vector<4x256xf32>, i32 -> vector<4x256xf32>
    %cst_34 = arith.constant 0.000000e+00 : f32
    %513 = vector.shape_cast %17 : vector<1x256xi1> to vector<1x256xi1>
    %514 = vector.broadcast %513 : vector<1x256xi1> to vector<4x256xi1>
    %515 = vector.broadcast %cst_34 : f32 to vector<4x256xf32>
    %516 = arith.select %514, %512, %515 : vector<4x256xi1>, vector<4x256xf32>
    %517 = vector.extract_strided_slice %2 {offsets = [1, 6, 0, 0], sizes = [1, 1, 4, 1], strides = [1, 1, 1, 1]} : vector<6x9x4x4xf32> to vector<1x1x4x1xf32>
    %518 = vector.shape_cast %517 : vector<1x1x4x1xf32> to vector<4x1xf32>
    %519 = vector.extract_strided_slice %516 {offsets = [0, 0], sizes = [1, 256], strides = [1, 1]} : vector<4x256xf32> to vector<1x256xf32>
    %520 = vector.broadcast %518 : vector<4x1xf32> to vector<4x256xf32>
    %521 = vector.broadcast %519 : vector<1x256xf32> to vector<4x256xf32>
    %522 = arith.mulf %520, %521 : vector<4x256xf32>
    %523 = arith.addf %511, %522 : vector<4x256xf32>
    %524 = vector.extract_strided_slice %2 {offsets = [1, 6, 0, 1], sizes = [1, 1, 4, 1], strides = [1, 1, 1, 1]} : vector<6x9x4x4xf32> to vector<1x1x4x1xf32>
    %525 = vector.shape_cast %524 : vector<1x1x4x1xf32> to vector<4x1xf32>
    %526 = vector.extract_strided_slice %516 {offsets = [1, 0], sizes = [1, 256], strides = [1, 1]} : vector<4x256xf32> to vector<1x256xf32>
    %527 = vector.broadcast %525 : vector<4x1xf32> to vector<4x256xf32>
    %528 = vector.broadcast %526 : vector<1x256xf32> to vector<4x256xf32>
    %529 = arith.mulf %527, %528 : vector<4x256xf32>
    %530 = arith.addf %523, %529 : vector<4x256xf32>
    %531 = vector.extract_strided_slice %2 {offsets = [1, 6, 0, 2], sizes = [1, 1, 4, 1], strides = [1, 1, 1, 1]} : vector<6x9x4x4xf32> to vector<1x1x4x1xf32>
    %532 = vector.shape_cast %531 : vector<1x1x4x1xf32> to vector<4x1xf32>
    %533 = vector.extract_strided_slice %516 {offsets = [2, 0], sizes = [1, 256], strides = [1, 1]} : vector<4x256xf32> to vector<1x256xf32>
    %534 = vector.broadcast %532 : vector<4x1xf32> to vector<4x256xf32>
    %535 = vector.broadcast %533 : vector<1x256xf32> to vector<4x256xf32>
    %536 = arith.mulf %534, %535 : vector<4x256xf32>
    %537 = arith.addf %530, %536 : vector<4x256xf32>
    %538 = vector.extract_strided_slice %2 {offsets = [1, 6, 0, 3], sizes = [1, 1, 4, 1], strides = [1, 1, 1, 1]} : vector<6x9x4x4xf32> to vector<1x1x4x1xf32>
    %539 = vector.shape_cast %538 : vector<1x1x4x1xf32> to vector<4x1xf32>
    %540 = vector.extract_strided_slice %516 {offsets = [3, 0], sizes = [1, 256], strides = [1, 1]} : vector<4x256xf32> to vector<1x256xf32>
    %541 = vector.broadcast %539 : vector<4x1xf32> to vector<4x256xf32>
    %542 = vector.broadcast %540 : vector<1x256xf32> to vector<4x256xf32>
    %543 = arith.mulf %541, %542 : vector<4x256xf32>
    %544 = arith.addf %537, %543 : vector<4x256xf32>
    %c240_i32_35 = arith.constant 240 : i32
    %545 = tpu.dynamic_rotate %317 by %c240_i32_35 dim 1 : vector<4x256xf32>, i32 -> vector<4x256xf32>
    %cst_36 = arith.constant 0.000000e+00 : f32
    %546 = vector.shape_cast %10 : vector<1x256xi1> to vector<1x256xi1>
    %547 = vector.broadcast %546 : vector<1x256xi1> to vector<4x256xi1>
    %548 = vector.broadcast %cst_36 : f32 to vector<4x256xf32>
    %549 = arith.select %547, %545, %548 : vector<4x256xi1>, vector<4x256xf32>
    %550 = vector.extract_strided_slice %2 {offsets = [1, 7, 0, 0], sizes = [1, 1, 4, 1], strides = [1, 1, 1, 1]} : vector<6x9x4x4xf32> to vector<1x1x4x1xf32>
    %551 = vector.shape_cast %550 : vector<1x1x4x1xf32> to vector<4x1xf32>
    %552 = vector.extract_strided_slice %549 {offsets = [0, 0], sizes = [1, 256], strides = [1, 1]} : vector<4x256xf32> to vector<1x256xf32>
    %553 = vector.broadcast %551 : vector<4x1xf32> to vector<4x256xf32>
    %554 = vector.broadcast %552 : vector<1x256xf32> to vector<4x256xf32>
    %555 = arith.mulf %553, %554 : vector<4x256xf32>
    %556 = arith.addf %544, %555 : vector<4x256xf32>
    %557 = vector.extract_strided_slice %2 {offsets = [1, 7, 0, 1], sizes = [1, 1, 4, 1], strides = [1, 1, 1, 1]} : vector<6x9x4x4xf32> to vector<1x1x4x1xf32>
    %558 = vector.shape_cast %557 : vector<1x1x4x1xf32> to vector<4x1xf32>
    %559 = vector.extract_strided_slice %549 {offsets = [1, 0], sizes = [1, 256], strides = [1, 1]} : vector<4x256xf32> to vector<1x256xf32>
    %560 = vector.broadcast %558 : vector<4x1xf32> to vector<4x256xf32>
    %561 = vector.broadcast %559 : vector<1x256xf32> to vector<4x256xf32>
    %562 = arith.mulf %560, %561 : vector<4x256xf32>
    %563 = arith.addf %556, %562 : vector<4x256xf32>
    %564 = vector.extract_strided_slice %2 {offsets = [1, 7, 0, 2], sizes = [1, 1, 4, 1], strides = [1, 1, 1, 1]} : vector<6x9x4x4xf32> to vector<1x1x4x1xf32>
    %565 = vector.shape_cast %564 : vector<1x1x4x1xf32> to vector<4x1xf32>
    %566 = vector.extract_strided_slice %549 {offsets = [2, 0], sizes = [1, 256], strides = [1, 1]} : vector<4x256xf32> to vector<1x256xf32>
    %567 = vector.broadcast %565 : vector<4x1xf32> to vector<4x256xf32>
    %568 = vector.broadcast %566 : vector<1x256xf32> to vector<4x256xf32>
    %569 = arith.mulf %567, %568 : vector<4x256xf32>
    %570 = arith.addf %563, %569 : vector<4x256xf32>
    %571 = vector.extract_strided_slice %2 {offsets = [1, 7, 0, 3], sizes = [1, 1, 4, 1], strides = [1, 1, 1, 1]} : vector<6x9x4x4xf32> to vector<1x1x4x1xf32>
    %572 = vector.shape_cast %571 : vector<1x1x4x1xf32> to vector<4x1xf32>
    %573 = vector.extract_strided_slice %549 {offsets = [3, 0], sizes = [1, 256], strides = [1, 1]} : vector<4x256xf32> to vector<1x256xf32>
    %574 = vector.broadcast %572 : vector<4x1xf32> to vector<4x256xf32>
    %575 = vector.broadcast %573 : vector<1x256xf32> to vector<4x256xf32>
    %576 = arith.mulf %574, %575 : vector<4x256xf32>
    %577 = arith.addf %570, %576 : vector<4x256xf32>
    %c239_i32_37 = arith.constant 239 : i32
    %578 = tpu.dynamic_rotate %317 by %c239_i32_37 dim 1 : vector<4x256xf32>, i32 -> vector<4x256xf32>
    %cst_38 = arith.constant 0.000000e+00 : f32
    %579 = vector.shape_cast %18 : vector<1x256xi1> to vector<1x256xi1>
    %580 = vector.broadcast %579 : vector<1x256xi1> to vector<4x256xi1>
    %581 = vector.broadcast %cst_38 : f32 to vector<4x256xf32>
    %582 = arith.select %580, %578, %581 : vector<4x256xi1>, vector<4x256xf32>
    %583 = vector.extract_strided_slice %2 {offsets = [1, 8, 0, 0], sizes = [1, 1, 4, 1], strides = [1, 1, 1, 1]} : vector<6x9x4x4xf32> to vector<1x1x4x1xf32>
    %584 = vector.shape_cast %583 : vector<1x1x4x1xf32> to vector<4x1xf32>
    %585 = vector.extract_strided_slice %582 {offsets = [0, 0], sizes = [1, 256], strides = [1, 1]} : vector<4x256xf32> to vector<1x256xf32>
    %586 = vector.broadcast %584 : vector<4x1xf32> to vector<4x256xf32>
    %587 = vector.broadcast %585 : vector<1x256xf32> to vector<4x256xf32>
    %588 = arith.mulf %586, %587 : vector<4x256xf32>
    %589 = arith.addf %577, %588 : vector<4x256xf32>
    %590 = vector.extract_strided_slice %2 {offsets = [1, 8, 0, 1], sizes = [1, 1, 4, 1], strides = [1, 1, 1, 1]} : vector<6x9x4x4xf32> to vector<1x1x4x1xf32>
    %591 = vector.shape_cast %590 : vector<1x1x4x1xf32> to vector<4x1xf32>
    %592 = vector.extract_strided_slice %582 {offsets = [1, 0], sizes = [1, 256], strides = [1, 1]} : vector<4x256xf32> to vector<1x256xf32>
    %593 = vector.broadcast %591 : vector<4x1xf32> to vector<4x256xf32>
    %594 = vector.broadcast %592 : vector<1x256xf32> to vector<4x256xf32>
    %595 = arith.mulf %593, %594 : vector<4x256xf32>
    %596 = arith.addf %589, %595 : vector<4x256xf32>
    %597 = vector.extract_strided_slice %2 {offsets = [1, 8, 0, 2], sizes = [1, 1, 4, 1], strides = [1, 1, 1, 1]} : vector<6x9x4x4xf32> to vector<1x1x4x1xf32>
    %598 = vector.shape_cast %597 : vector<1x1x4x1xf32> to vector<4x1xf32>
    %599 = vector.extract_strided_slice %582 {offsets = [2, 0], sizes = [1, 256], strides = [1, 1]} : vector<4x256xf32> to vector<1x256xf32>
    %600 = vector.broadcast %598 : vector<4x1xf32> to vector<4x256xf32>
    %601 = vector.broadcast %599 : vector<1x256xf32> to vector<4x256xf32>
    %602 = arith.mulf %600, %601 : vector<4x256xf32>
    %603 = arith.addf %596, %602 : vector<4x256xf32>
    %604 = vector.extract_strided_slice %2 {offsets = [1, 8, 0, 3], sizes = [1, 1, 4, 1], strides = [1, 1, 1, 1]} : vector<6x9x4x4xf32> to vector<1x1x4x1xf32>
    %605 = vector.shape_cast %604 : vector<1x1x4x1xf32> to vector<4x1xf32>
    %606 = vector.extract_strided_slice %582 {offsets = [3, 0], sizes = [1, 256], strides = [1, 1]} : vector<4x256xf32> to vector<1x256xf32>
    %607 = vector.broadcast %605 : vector<4x1xf32> to vector<4x256xf32>
    %608 = vector.broadcast %606 : vector<1x256xf32> to vector<4x256xf32>
    %609 = arith.mulf %607, %608 : vector<4x256xf32>
    %610 = arith.addf %603, %609 : vector<4x256xf32>
    %611 = vector.extract_strided_slice %3 {offsets = [1, 0, 0], sizes = [1, 4, 1], strides = [1, 1, 1]} : vector<6x4x1xf32> to vector<1x4x1xf32>
    %612 = vector.shape_cast %611 : vector<1x4x1xf32> to vector<4x1xf32>
    %613 = vector.broadcast %612 : vector<4x1xf32> to vector<4x256xf32>
    %614 = arith.addf %610, %613 : vector<4x256xf32>
    %615 = arith.addf %1, %614 : vector<4x256xf32>
    %cst_39 = arith.constant 0.000000e+00 : f32
    %616 = vector.broadcast %cst_39 : f32 to vector<4x256xf32>
    %c17_i32_40 = arith.constant 17 : i32
    %617 = tpu.dynamic_rotate %615 by %c17_i32_40 dim 1 : vector<4x256xf32>, i32 -> vector<4x256xf32>
    %cst_41 = arith.constant 0.000000e+00 : f32
    %618 = vector.shape_cast %15 : vector<1x256xi1> to vector<1x256xi1>
    %619 = vector.broadcast %618 : vector<1x256xi1> to vector<4x256xi1>
    %620 = vector.broadcast %cst_41 : f32 to vector<4x256xf32>
    %621 = arith.select %619, %617, %620 : vector<4x256xi1>, vector<4x256xf32>
    %622 = vector.extract_strided_slice %2 {offsets = [2, 0, 0, 0], sizes = [1, 1, 4, 1], strides = [1, 1, 1, 1]} : vector<6x9x4x4xf32> to vector<1x1x4x1xf32>
    %623 = vector.shape_cast %622 : vector<1x1x4x1xf32> to vector<4x1xf32>
    %624 = vector.extract_strided_slice %621 {offsets = [0, 0], sizes = [1, 256], strides = [1, 1]} : vector<4x256xf32> to vector<1x256xf32>
    %625 = vector.broadcast %623 : vector<4x1xf32> to vector<4x256xf32>
    %626 = vector.broadcast %624 : vector<1x256xf32> to vector<4x256xf32>
    %627 = arith.mulf %625, %626 : vector<4x256xf32>
    %628 = arith.addf %616, %627 : vector<4x256xf32>
    %629 = vector.extract_strided_slice %2 {offsets = [2, 0, 0, 1], sizes = [1, 1, 4, 1], strides = [1, 1, 1, 1]} : vector<6x9x4x4xf32> to vector<1x1x4x1xf32>
    %630 = vector.shape_cast %629 : vector<1x1x4x1xf32> to vector<4x1xf32>
    %631 = vector.extract_strided_slice %621 {offsets = [1, 0], sizes = [1, 256], strides = [1, 1]} : vector<4x256xf32> to vector<1x256xf32>
    %632 = vector.broadcast %630 : vector<4x1xf32> to vector<4x256xf32>
    %633 = vector.broadcast %631 : vector<1x256xf32> to vector<4x256xf32>
    %634 = arith.mulf %632, %633 : vector<4x256xf32>
    %635 = arith.addf %628, %634 : vector<4x256xf32>
    %636 = vector.extract_strided_slice %2 {offsets = [2, 0, 0, 2], sizes = [1, 1, 4, 1], strides = [1, 1, 1, 1]} : vector<6x9x4x4xf32> to vector<1x1x4x1xf32>
    %637 = vector.shape_cast %636 : vector<1x1x4x1xf32> to vector<4x1xf32>
    %638 = vector.extract_strided_slice %621 {offsets = [2, 0], sizes = [1, 256], strides = [1, 1]} : vector<4x256xf32> to vector<1x256xf32>
    %639 = vector.broadcast %637 : vector<4x1xf32> to vector<4x256xf32>
    %640 = vector.broadcast %638 : vector<1x256xf32> to vector<4x256xf32>
    %641 = arith.mulf %639, %640 : vector<4x256xf32>
    %642 = arith.addf %635, %641 : vector<4x256xf32>
    %643 = vector.extract_strided_slice %2 {offsets = [2, 0, 0, 3], sizes = [1, 1, 4, 1], strides = [1, 1, 1, 1]} : vector<6x9x4x4xf32> to vector<1x1x4x1xf32>
    %644 = vector.shape_cast %643 : vector<1x1x4x1xf32> to vector<4x1xf32>
    %645 = vector.extract_strided_slice %621 {offsets = [3, 0], sizes = [1, 256], strides = [1, 1]} : vector<4x256xf32> to vector<1x256xf32>
    %646 = vector.broadcast %644 : vector<4x1xf32> to vector<4x256xf32>
    %647 = vector.broadcast %645 : vector<1x256xf32> to vector<4x256xf32>
    %648 = arith.mulf %646, %647 : vector<4x256xf32>
    %649 = arith.addf %642, %648 : vector<4x256xf32>
    %c16_i32_42 = arith.constant 16 : i32
    %650 = tpu.dynamic_rotate %615 by %c16_i32_42 dim 1 : vector<4x256xf32>, i32 -> vector<4x256xf32>
    %cst_43 = arith.constant 0.000000e+00 : f32
    %651 = vector.shape_cast %8 : vector<1x256xi1> to vector<1x256xi1>
    %652 = vector.broadcast %651 : vector<1x256xi1> to vector<4x256xi1>
    %653 = vector.broadcast %cst_43 : f32 to vector<4x256xf32>
    %654 = arith.select %652, %650, %653 : vector<4x256xi1>, vector<4x256xf32>
    %655 = vector.extract_strided_slice %2 {offsets = [2, 1, 0, 0], sizes = [1, 1, 4, 1], strides = [1, 1, 1, 1]} : vector<6x9x4x4xf32> to vector<1x1x4x1xf32>
    %656 = vector.shape_cast %655 : vector<1x1x4x1xf32> to vector<4x1xf32>
    %657 = vector.extract_strided_slice %654 {offsets = [0, 0], sizes = [1, 256], strides = [1, 1]} : vector<4x256xf32> to vector<1x256xf32>
    %658 = vector.broadcast %656 : vector<4x1xf32> to vector<4x256xf32>
    %659 = vector.broadcast %657 : vector<1x256xf32> to vector<4x256xf32>
    %660 = arith.mulf %658, %659 : vector<4x256xf32>
    %661 = arith.addf %649, %660 : vector<4x256xf32>
    %662 = vector.extract_strided_slice %2 {offsets = [2, 1, 0, 1], sizes = [1, 1, 4, 1], strides = [1, 1, 1, 1]} : vector<6x9x4x4xf32> to vector<1x1x4x1xf32>
    %663 = vector.shape_cast %662 : vector<1x1x4x1xf32> to vector<4x1xf32>
    %664 = vector.extract_strided_slice %654 {offsets = [1, 0], sizes = [1, 256], strides = [1, 1]} : vector<4x256xf32> to vector<1x256xf32>
    %665 = vector.broadcast %663 : vector<4x1xf32> to vector<4x256xf32>
    %666 = vector.broadcast %664 : vector<1x256xf32> to vector<4x256xf32>
    %667 = arith.mulf %665, %666 : vector<4x256xf32>
    %668 = arith.addf %661, %667 : vector<4x256xf32>
    %669 = vector.extract_strided_slice %2 {offsets = [2, 1, 0, 2], sizes = [1, 1, 4, 1], strides = [1, 1, 1, 1]} : vector<6x9x4x4xf32> to vector<1x1x4x1xf32>
    %670 = vector.shape_cast %669 : vector<1x1x4x1xf32> to vector<4x1xf32>
    %671 = vector.extract_strided_slice %654 {offsets = [2, 0], sizes = [1, 256], strides = [1, 1]} : vector<4x256xf32> to vector<1x256xf32>
    %672 = vector.broadcast %670 : vector<4x1xf32> to vector<4x256xf32>
    %673 = vector.broadcast %671 : vector<1x256xf32> to vector<4x256xf32>
    %674 = arith.mulf %672, %673 : vector<4x256xf32>
    %675 = arith.addf %668, %674 : vector<4x256xf32>
    %676 = vector.extract_strided_slice %2 {offsets = [2, 1, 0, 3], sizes = [1, 1, 4, 1], strides = [1, 1, 1, 1]} : vector<6x9x4x4xf32> to vector<1x1x4x1xf32>
    %677 = vector.shape_cast %676 : vector<1x1x4x1xf32> to vector<4x1xf32>
    %678 = vector.extract_strided_slice %654 {offsets = [3, 0], sizes = [1, 256], strides = [1, 1]} : vector<4x256xf32> to vector<1x256xf32>
    %679 = vector.broadcast %677 : vector<4x1xf32> to vector<4x256xf32>
    %680 = vector.broadcast %678 : vector<1x256xf32> to vector<4x256xf32>
    %681 = arith.mulf %679, %680 : vector<4x256xf32>
    %682 = arith.addf %675, %681 : vector<4x256xf32>
    %c15_i32_44 = arith.constant 15 : i32
    %683 = tpu.dynamic_rotate %615 by %c15_i32_44 dim 1 : vector<4x256xf32>, i32 -> vector<4x256xf32>
    %cst_45 = arith.constant 0.000000e+00 : f32
    %684 = vector.shape_cast %16 : vector<1x256xi1> to vector<1x256xi1>
    %685 = vector.broadcast %684 : vector<1x256xi1> to vector<4x256xi1>
    %686 = vector.broadcast %cst_45 : f32 to vector<4x256xf32>
    %687 = arith.select %685, %683, %686 : vector<4x256xi1>, vector<4x256xf32>
    %688 = vector.extract_strided_slice %2 {offsets = [2, 2, 0, 0], sizes = [1, 1, 4, 1], strides = [1, 1, 1, 1]} : vector<6x9x4x4xf32> to vector<1x1x4x1xf32>
    %689 = vector.shape_cast %688 : vector<1x1x4x1xf32> to vector<4x1xf32>
    %690 = vector.extract_strided_slice %687 {offsets = [0, 0], sizes = [1, 256], strides = [1, 1]} : vector<4x256xf32> to vector<1x256xf32>
    %691 = vector.broadcast %689 : vector<4x1xf32> to vector<4x256xf32>
    %692 = vector.broadcast %690 : vector<1x256xf32> to vector<4x256xf32>
    %693 = arith.mulf %691, %692 : vector<4x256xf32>
    %694 = arith.addf %682, %693 : vector<4x256xf32>
    %695 = vector.extract_strided_slice %2 {offsets = [2, 2, 0, 1], sizes = [1, 1, 4, 1], strides = [1, 1, 1, 1]} : vector<6x9x4x4xf32> to vector<1x1x4x1xf32>
    %696 = vector.shape_cast %695 : vector<1x1x4x1xf32> to vector<4x1xf32>
    %697 = vector.extract_strided_slice %687 {offsets = [1, 0], sizes = [1, 256], strides = [1, 1]} : vector<4x256xf32> to vector<1x256xf32>
    %698 = vector.broadcast %696 : vector<4x1xf32> to vector<4x256xf32>
    %699 = vector.broadcast %697 : vector<1x256xf32> to vector<4x256xf32>
    %700 = arith.mulf %698, %699 : vector<4x256xf32>
    %701 = arith.addf %694, %700 : vector<4x256xf32>
    %702 = vector.extract_strided_slice %2 {offsets = [2, 2, 0, 2], sizes = [1, 1, 4, 1], strides = [1, 1, 1, 1]} : vector<6x9x4x4xf32> to vector<1x1x4x1xf32>
    %703 = vector.shape_cast %702 : vector<1x1x4x1xf32> to vector<4x1xf32>
    %704 = vector.extract_strided_slice %687 {offsets = [2, 0], sizes = [1, 256], strides = [1, 1]} : vector<4x256xf32> to vector<1x256xf32>
    %705 = vector.broadcast %703 : vector<4x1xf32> to vector<4x256xf32>
    %706 = vector.broadcast %704 : vector<1x256xf32> to vector<4x256xf32>
    %707 = arith.mulf %705, %706 : vector<4x256xf32>
    %708 = arith.addf %701, %707 : vector<4x256xf32>
    %709 = vector.extract_strided_slice %2 {offsets = [2, 2, 0, 3], sizes = [1, 1, 4, 1], strides = [1, 1, 1, 1]} : vector<6x9x4x4xf32> to vector<1x1x4x1xf32>
    %710 = vector.shape_cast %709 : vector<1x1x4x1xf32> to vector<4x1xf32>
    %711 = vector.extract_strided_slice %687 {offsets = [3, 0], sizes = [1, 256], strides = [1, 1]} : vector<4x256xf32> to vector<1x256xf32>
    %712 = vector.broadcast %710 : vector<4x1xf32> to vector<4x256xf32>
    %713 = vector.broadcast %711 : vector<1x256xf32> to vector<4x256xf32>
    %714 = arith.mulf %712, %713 : vector<4x256xf32>
    %715 = arith.addf %708, %714 : vector<4x256xf32>
    %c1_i32_46 = arith.constant 1 : i32
    %716 = tpu.dynamic_rotate %615 by %c1_i32_46 dim 1 : vector<4x256xf32>, i32 -> vector<4x256xf32>
    %cst_47 = arith.constant 0.000000e+00 : f32
    %717 = vector.shape_cast %12 : vector<1x256xi1> to vector<1x256xi1>
    %718 = vector.broadcast %717 : vector<1x256xi1> to vector<4x256xi1>
    %719 = vector.broadcast %cst_47 : f32 to vector<4x256xf32>
    %720 = arith.select %718, %716, %719 : vector<4x256xi1>, vector<4x256xf32>
    %721 = vector.extract_strided_slice %2 {offsets = [2, 3, 0, 0], sizes = [1, 1, 4, 1], strides = [1, 1, 1, 1]} : vector<6x9x4x4xf32> to vector<1x1x4x1xf32>
    %722 = vector.shape_cast %721 : vector<1x1x4x1xf32> to vector<4x1xf32>
    %723 = vector.extract_strided_slice %720 {offsets = [0, 0], sizes = [1, 256], strides = [1, 1]} : vector<4x256xf32> to vector<1x256xf32>
    %724 = vector.broadcast %722 : vector<4x1xf32> to vector<4x256xf32>
    %725 = vector.broadcast %723 : vector<1x256xf32> to vector<4x256xf32>
    %726 = arith.mulf %724, %725 : vector<4x256xf32>
    %727 = arith.addf %715, %726 : vector<4x256xf32>
    %728 = vector.extract_strided_slice %2 {offsets = [2, 3, 0, 1], sizes = [1, 1, 4, 1], strides = [1, 1, 1, 1]} : vector<6x9x4x4xf32> to vector<1x1x4x1xf32>
    %729 = vector.shape_cast %728 : vector<1x1x4x1xf32> to vector<4x1xf32>
    %730 = vector.extract_strided_slice %720 {offsets = [1, 0], sizes = [1, 256], strides = [1, 1]} : vector<4x256xf32> to vector<1x256xf32>
    %731 = vector.broadcast %729 : vector<4x1xf32> to vector<4x256xf32>
    %732 = vector.broadcast %730 : vector<1x256xf32> to vector<4x256xf32>
    %733 = arith.mulf %731, %732 : vector<4x256xf32>
    %734 = arith.addf %727, %733 : vector<4x256xf32>
    %735 = vector.extract_strided_slice %2 {offsets = [2, 3, 0, 2], sizes = [1, 1, 4, 1], strides = [1, 1, 1, 1]} : vector<6x9x4x4xf32> to vector<1x1x4x1xf32>
    %736 = vector.shape_cast %735 : vector<1x1x4x1xf32> to vector<4x1xf32>
    %737 = vector.extract_strided_slice %720 {offsets = [2, 0], sizes = [1, 256], strides = [1, 1]} : vector<4x256xf32> to vector<1x256xf32>
    %738 = vector.broadcast %736 : vector<4x1xf32> to vector<4x256xf32>
    %739 = vector.broadcast %737 : vector<1x256xf32> to vector<4x256xf32>
    %740 = arith.mulf %738, %739 : vector<4x256xf32>
    %741 = arith.addf %734, %740 : vector<4x256xf32>
    %742 = vector.extract_strided_slice %2 {offsets = [2, 3, 0, 3], sizes = [1, 1, 4, 1], strides = [1, 1, 1, 1]} : vector<6x9x4x4xf32> to vector<1x1x4x1xf32>
    %743 = vector.shape_cast %742 : vector<1x1x4x1xf32> to vector<4x1xf32>
    %744 = vector.extract_strided_slice %720 {offsets = [3, 0], sizes = [1, 256], strides = [1, 1]} : vector<4x256xf32> to vector<1x256xf32>
    %745 = vector.broadcast %743 : vector<4x1xf32> to vector<4x256xf32>
    %746 = vector.broadcast %744 : vector<1x256xf32> to vector<4x256xf32>
    %747 = arith.mulf %745, %746 : vector<4x256xf32>
    %748 = arith.addf %741, %747 : vector<4x256xf32>
    %749 = vector.extract_strided_slice %2 {offsets = [2, 4, 0, 0], sizes = [1, 1, 4, 1], strides = [1, 1, 1, 1]} : vector<6x9x4x4xf32> to vector<1x1x4x1xf32>
    %750 = vector.shape_cast %749 : vector<1x1x4x1xf32> to vector<4x1xf32>
    %751 = vector.extract_strided_slice %615 {offsets = [0, 0], sizes = [1, 256], strides = [1, 1]} : vector<4x256xf32> to vector<1x256xf32>
    %752 = vector.broadcast %750 : vector<4x1xf32> to vector<4x256xf32>
    %753 = vector.broadcast %751 : vector<1x256xf32> to vector<4x256xf32>
    %754 = arith.mulf %752, %753 : vector<4x256xf32>
    %755 = arith.addf %748, %754 : vector<4x256xf32>
    %756 = vector.extract_strided_slice %2 {offsets = [2, 4, 0, 1], sizes = [1, 1, 4, 1], strides = [1, 1, 1, 1]} : vector<6x9x4x4xf32> to vector<1x1x4x1xf32>
    %757 = vector.shape_cast %756 : vector<1x1x4x1xf32> to vector<4x1xf32>
    %758 = vector.extract_strided_slice %615 {offsets = [1, 0], sizes = [1, 256], strides = [1, 1]} : vector<4x256xf32> to vector<1x256xf32>
    %759 = vector.broadcast %757 : vector<4x1xf32> to vector<4x256xf32>
    %760 = vector.broadcast %758 : vector<1x256xf32> to vector<4x256xf32>
    %761 = arith.mulf %759, %760 : vector<4x256xf32>
    %762 = arith.addf %755, %761 : vector<4x256xf32>
    %763 = vector.extract_strided_slice %2 {offsets = [2, 4, 0, 2], sizes = [1, 1, 4, 1], strides = [1, 1, 1, 1]} : vector<6x9x4x4xf32> to vector<1x1x4x1xf32>
    %764 = vector.shape_cast %763 : vector<1x1x4x1xf32> to vector<4x1xf32>
    %765 = vector.extract_strided_slice %615 {offsets = [2, 0], sizes = [1, 256], strides = [1, 1]} : vector<4x256xf32> to vector<1x256xf32>
    %766 = vector.broadcast %764 : vector<4x1xf32> to vector<4x256xf32>
    %767 = vector.broadcast %765 : vector<1x256xf32> to vector<4x256xf32>
    %768 = arith.mulf %766, %767 : vector<4x256xf32>
    %769 = arith.addf %762, %768 : vector<4x256xf32>
    %770 = vector.extract_strided_slice %2 {offsets = [2, 4, 0, 3], sizes = [1, 1, 4, 1], strides = [1, 1, 1, 1]} : vector<6x9x4x4xf32> to vector<1x1x4x1xf32>
    %771 = vector.shape_cast %770 : vector<1x1x4x1xf32> to vector<4x1xf32>
    %772 = vector.extract_strided_slice %615 {offsets = [3, 0], sizes = [1, 256], strides = [1, 1]} : vector<4x256xf32> to vector<1x256xf32>
    %773 = vector.broadcast %771 : vector<4x1xf32> to vector<4x256xf32>
    %774 = vector.broadcast %772 : vector<1x256xf32> to vector<4x256xf32>
    %775 = arith.mulf %773, %774 : vector<4x256xf32>
    %776 = arith.addf %769, %775 : vector<4x256xf32>
    %c255_i32_48 = arith.constant 255 : i32
    %777 = tpu.dynamic_rotate %615 by %c255_i32_48 dim 1 : vector<4x256xf32>, i32 -> vector<4x256xf32>
    %cst_49 = arith.constant 0.000000e+00 : f32
    %778 = vector.shape_cast %14 : vector<1x256xi1> to vector<1x256xi1>
    %779 = vector.broadcast %778 : vector<1x256xi1> to vector<4x256xi1>
    %780 = vector.broadcast %cst_49 : f32 to vector<4x256xf32>
    %781 = arith.select %779, %777, %780 : vector<4x256xi1>, vector<4x256xf32>
    %782 = vector.extract_strided_slice %2 {offsets = [2, 5, 0, 0], sizes = [1, 1, 4, 1], strides = [1, 1, 1, 1]} : vector<6x9x4x4xf32> to vector<1x1x4x1xf32>
    %783 = vector.shape_cast %782 : vector<1x1x4x1xf32> to vector<4x1xf32>
    %784 = vector.extract_strided_slice %781 {offsets = [0, 0], sizes = [1, 256], strides = [1, 1]} : vector<4x256xf32> to vector<1x256xf32>
    %785 = vector.broadcast %783 : vector<4x1xf32> to vector<4x256xf32>
    %786 = vector.broadcast %784 : vector<1x256xf32> to vector<4x256xf32>
    %787 = arith.mulf %785, %786 : vector<4x256xf32>
    %788 = arith.addf %776, %787 : vector<4x256xf32>
    %789 = vector.extract_strided_slice %2 {offsets = [2, 5, 0, 1], sizes = [1, 1, 4, 1], strides = [1, 1, 1, 1]} : vector<6x9x4x4xf32> to vector<1x1x4x1xf32>
    %790 = vector.shape_cast %789 : vector<1x1x4x1xf32> to vector<4x1xf32>
    %791 = vector.extract_strided_slice %781 {offsets = [1, 0], sizes = [1, 256], strides = [1, 1]} : vector<4x256xf32> to vector<1x256xf32>
    %792 = vector.broadcast %790 : vector<4x1xf32> to vector<4x256xf32>
    %793 = vector.broadcast %791 : vector<1x256xf32> to vector<4x256xf32>
    %794 = arith.mulf %792, %793 : vector<4x256xf32>
    %795 = arith.addf %788, %794 : vector<4x256xf32>
    %796 = vector.extract_strided_slice %2 {offsets = [2, 5, 0, 2], sizes = [1, 1, 4, 1], strides = [1, 1, 1, 1]} : vector<6x9x4x4xf32> to vector<1x1x4x1xf32>
    %797 = vector.shape_cast %796 : vector<1x1x4x1xf32> to vector<4x1xf32>
    %798 = vector.extract_strided_slice %781 {offsets = [2, 0], sizes = [1, 256], strides = [1, 1]} : vector<4x256xf32> to vector<1x256xf32>
    %799 = vector.broadcast %797 : vector<4x1xf32> to vector<4x256xf32>
    %800 = vector.broadcast %798 : vector<1x256xf32> to vector<4x256xf32>
    %801 = arith.mulf %799, %800 : vector<4x256xf32>
    %802 = arith.addf %795, %801 : vector<4x256xf32>
    %803 = vector.extract_strided_slice %2 {offsets = [2, 5, 0, 3], sizes = [1, 1, 4, 1], strides = [1, 1, 1, 1]} : vector<6x9x4x4xf32> to vector<1x1x4x1xf32>
    %804 = vector.shape_cast %803 : vector<1x1x4x1xf32> to vector<4x1xf32>
    %805 = vector.extract_strided_slice %781 {offsets = [3, 0], sizes = [1, 256], strides = [1, 1]} : vector<4x256xf32> to vector<1x256xf32>
    %806 = vector.broadcast %804 : vector<4x1xf32> to vector<4x256xf32>
    %807 = vector.broadcast %805 : vector<1x256xf32> to vector<4x256xf32>
    %808 = arith.mulf %806, %807 : vector<4x256xf32>
    %809 = arith.addf %802, %808 : vector<4x256xf32>
    %c241_i32_50 = arith.constant 241 : i32
    %810 = tpu.dynamic_rotate %615 by %c241_i32_50 dim 1 : vector<4x256xf32>, i32 -> vector<4x256xf32>
    %cst_51 = arith.constant 0.000000e+00 : f32
    %811 = vector.shape_cast %17 : vector<1x256xi1> to vector<1x256xi1>
    %812 = vector.broadcast %811 : vector<1x256xi1> to vector<4x256xi1>
    %813 = vector.broadcast %cst_51 : f32 to vector<4x256xf32>
    %814 = arith.select %812, %810, %813 : vector<4x256xi1>, vector<4x256xf32>
    %815 = vector.extract_strided_slice %2 {offsets = [2, 6, 0, 0], sizes = [1, 1, 4, 1], strides = [1, 1, 1, 1]} : vector<6x9x4x4xf32> to vector<1x1x4x1xf32>
    %816 = vector.shape_cast %815 : vector<1x1x4x1xf32> to vector<4x1xf32>
    %817 = vector.extract_strided_slice %814 {offsets = [0, 0], sizes = [1, 256], strides = [1, 1]} : vector<4x256xf32> to vector<1x256xf32>
    %818 = vector.broadcast %816 : vector<4x1xf32> to vector<4x256xf32>
    %819 = vector.broadcast %817 : vector<1x256xf32> to vector<4x256xf32>
    %820 = arith.mulf %818, %819 : vector<4x256xf32>
    %821 = arith.addf %809, %820 : vector<4x256xf32>
    %822 = vector.extract_strided_slice %2 {offsets = [2, 6, 0, 1], sizes = [1, 1, 4, 1], strides = [1, 1, 1, 1]} : vector<6x9x4x4xf32> to vector<1x1x4x1xf32>
    %823 = vector.shape_cast %822 : vector<1x1x4x1xf32> to vector<4x1xf32>
    %824 = vector.extract_strided_slice %814 {offsets = [1, 0], sizes = [1, 256], strides = [1, 1]} : vector<4x256xf32> to vector<1x256xf32>
    %825 = vector.broadcast %823 : vector<4x1xf32> to vector<4x256xf32>
    %826 = vector.broadcast %824 : vector<1x256xf32> to vector<4x256xf32>
    %827 = arith.mulf %825, %826 : vector<4x256xf32>
    %828 = arith.addf %821, %827 : vector<4x256xf32>
    %829 = vector.extract_strided_slice %2 {offsets = [2, 6, 0, 2], sizes = [1, 1, 4, 1], strides = [1, 1, 1, 1]} : vector<6x9x4x4xf32> to vector<1x1x4x1xf32>
    %830 = vector.shape_cast %829 : vector<1x1x4x1xf32> to vector<4x1xf32>
    %831 = vector.extract_strided_slice %814 {offsets = [2, 0], sizes = [1, 256], strides = [1, 1]} : vector<4x256xf32> to vector<1x256xf32>
    %832 = vector.broadcast %830 : vector<4x1xf32> to vector<4x256xf32>
    %833 = vector.broadcast %831 : vector<1x256xf32> to vector<4x256xf32>
    %834 = arith.mulf %832, %833 : vector<4x256xf32>
    %835 = arith.addf %828, %834 : vector<4x256xf32>
    %836 = vector.extract_strided_slice %2 {offsets = [2, 6, 0, 3], sizes = [1, 1, 4, 1], strides = [1, 1, 1, 1]} : vector<6x9x4x4xf32> to vector<1x1x4x1xf32>
    %837 = vector.shape_cast %836 : vector<1x1x4x1xf32> to vector<4x1xf32>
    %838 = vector.extract_strided_slice %814 {offsets = [3, 0], sizes = [1, 256], strides = [1, 1]} : vector<4x256xf32> to vector<1x256xf32>
    %839 = vector.broadcast %837 : vector<4x1xf32> to vector<4x256xf32>
    %840 = vector.broadcast %838 : vector<1x256xf32> to vector<4x256xf32>
    %841 = arith.mulf %839, %840 : vector<4x256xf32>
    %842 = arith.addf %835, %841 : vector<4x256xf32>
    %c240_i32_52 = arith.constant 240 : i32
    %843 = tpu.dynamic_rotate %615 by %c240_i32_52 dim 1 : vector<4x256xf32>, i32 -> vector<4x256xf32>
    %cst_53 = arith.constant 0.000000e+00 : f32
    %844 = vector.shape_cast %10 : vector<1x256xi1> to vector<1x256xi1>
    %845 = vector.broadcast %844 : vector<1x256xi1> to vector<4x256xi1>
    %846 = vector.broadcast %cst_53 : f32 to vector<4x256xf32>
    %847 = arith.select %845, %843, %846 : vector<4x256xi1>, vector<4x256xf32>
    %848 = vector.extract_strided_slice %2 {offsets = [2, 7, 0, 0], sizes = [1, 1, 4, 1], strides = [1, 1, 1, 1]} : vector<6x9x4x4xf32> to vector<1x1x4x1xf32>
    %849 = vector.shape_cast %848 : vector<1x1x4x1xf32> to vector<4x1xf32>
    %850 = vector.extract_strided_slice %847 {offsets = [0, 0], sizes = [1, 256], strides = [1, 1]} : vector<4x256xf32> to vector<1x256xf32>
    %851 = vector.broadcast %849 : vector<4x1xf32> to vector<4x256xf32>
    %852 = vector.broadcast %850 : vector<1x256xf32> to vector<4x256xf32>
    %853 = arith.mulf %851, %852 : vector<4x256xf32>
    %854 = arith.addf %842, %853 : vector<4x256xf32>
    %855 = vector.extract_strided_slice %2 {offsets = [2, 7, 0, 1], sizes = [1, 1, 4, 1], strides = [1, 1, 1, 1]} : vector<6x9x4x4xf32> to vector<1x1x4x1xf32>
    %856 = vector.shape_cast %855 : vector<1x1x4x1xf32> to vector<4x1xf32>
    %857 = vector.extract_strided_slice %847 {offsets = [1, 0], sizes = [1, 256], strides = [1, 1]} : vector<4x256xf32> to vector<1x256xf32>
    %858 = vector.broadcast %856 : vector<4x1xf32> to vector<4x256xf32>
    %859 = vector.broadcast %857 : vector<1x256xf32> to vector<4x256xf32>
    %860 = arith.mulf %858, %859 : vector<4x256xf32>
    %861 = arith.addf %854, %860 : vector<4x256xf32>
    %862 = vector.extract_strided_slice %2 {offsets = [2, 7, 0, 2], sizes = [1, 1, 4, 1], strides = [1, 1, 1, 1]} : vector<6x9x4x4xf32> to vector<1x1x4x1xf32>
    %863 = vector.shape_cast %862 : vector<1x1x4x1xf32> to vector<4x1xf32>
    %864 = vector.extract_strided_slice %847 {offsets = [2, 0], sizes = [1, 256], strides = [1, 1]} : vector<4x256xf32> to vector<1x256xf32>
    %865 = vector.broadcast %863 : vector<4x1xf32> to vector<4x256xf32>
    %866 = vector.broadcast %864 : vector<1x256xf32> to vector<4x256xf32>
    %867 = arith.mulf %865, %866 : vector<4x256xf32>
    %868 = arith.addf %861, %867 : vector<4x256xf32>
    %869 = vector.extract_strided_slice %2 {offsets = [2, 7, 0, 3], sizes = [1, 1, 4, 1], strides = [1, 1, 1, 1]} : vector<6x9x4x4xf32> to vector<1x1x4x1xf32>
    %870 = vector.shape_cast %869 : vector<1x1x4x1xf32> to vector<4x1xf32>
    %871 = vector.extract_strided_slice %847 {offsets = [3, 0], sizes = [1, 256], strides = [1, 1]} : vector<4x256xf32> to vector<1x256xf32>
    %872 = vector.broadcast %870 : vector<4x1xf32> to vector<4x256xf32>
    %873 = vector.broadcast %871 : vector<1x256xf32> to vector<4x256xf32>
    %874 = arith.mulf %872, %873 : vector<4x256xf32>
    %875 = arith.addf %868, %874 : vector<4x256xf32>
    %c239_i32_54 = arith.constant 239 : i32
    %876 = tpu.dynamic_rotate %615 by %c239_i32_54 dim 1 : vector<4x256xf32>, i32 -> vector<4x256xf32>
    %cst_55 = arith.constant 0.000000e+00 : f32
    %877 = vector.shape_cast %18 : vector<1x256xi1> to vector<1x256xi1>
    %878 = vector.broadcast %877 : vector<1x256xi1> to vector<4x256xi1>
    %879 = vector.broadcast %cst_55 : f32 to vector<4x256xf32>
    %880 = arith.select %878, %876, %879 : vector<4x256xi1>, vector<4x256xf32>
    %881 = vector.extract_strided_slice %2 {offsets = [2, 8, 0, 0], sizes = [1, 1, 4, 1], strides = [1, 1, 1, 1]} : vector<6x9x4x4xf32> to vector<1x1x4x1xf32>
    %882 = vector.shape_cast %881 : vector<1x1x4x1xf32> to vector<4x1xf32>
    %883 = vector.extract_strided_slice %880 {offsets = [0, 0], sizes = [1, 256], strides = [1, 1]} : vector<4x256xf32> to vector<1x256xf32>
    %884 = vector.broadcast %882 : vector<4x1xf32> to vector<4x256xf32>
    %885 = vector.broadcast %883 : vector<1x256xf32> to vector<4x256xf32>
    %886 = arith.mulf %884, %885 : vector<4x256xf32>
    %887 = arith.addf %875, %886 : vector<4x256xf32>
    %888 = vector.extract_strided_slice %2 {offsets = [2, 8, 0, 1], sizes = [1, 1, 4, 1], strides = [1, 1, 1, 1]} : vector<6x9x4x4xf32> to vector<1x1x4x1xf32>
    %889 = vector.shape_cast %888 : vector<1x1x4x1xf32> to vector<4x1xf32>
    %890 = vector.extract_strided_slice %880 {offsets = [1, 0], sizes = [1, 256], strides = [1, 1]} : vector<4x256xf32> to vector<1x256xf32>
    %891 = vector.broadcast %889 : vector<4x1xf32> to vector<4x256xf32>
    %892 = vector.broadcast %890 : vector<1x256xf32> to vector<4x256xf32>
    %893 = arith.mulf %891, %892 : vector<4x256xf32>
    %894 = arith.addf %887, %893 : vector<4x256xf32>
    %895 = vector.extract_strided_slice %2 {offsets = [2, 8, 0, 2], sizes = [1, 1, 4, 1], strides = [1, 1, 1, 1]} : vector<6x9x4x4xf32> to vector<1x1x4x1xf32>
    %896 = vector.shape_cast %895 : vector<1x1x4x1xf32> to vector<4x1xf32>
    %897 = vector.extract_strided_slice %880 {offsets = [2, 0], sizes = [1, 256], strides = [1, 1]} : vector<4x256xf32> to vector<1x256xf32>
    %898 = vector.broadcast %896 : vector<4x1xf32> to vector<4x256xf32>
    %899 = vector.broadcast %897 : vector<1x256xf32> to vector<4x256xf32>
    %900 = arith.mulf %898, %899 : vector<4x256xf32>
    %901 = arith.addf %894, %900 : vector<4x256xf32>
    %902 = vector.extract_strided_slice %2 {offsets = [2, 8, 0, 3], sizes = [1, 1, 4, 1], strides = [1, 1, 1, 1]} : vector<6x9x4x4xf32> to vector<1x1x4x1xf32>
    %903 = vector.shape_cast %902 : vector<1x1x4x1xf32> to vector<4x1xf32>
    %904 = vector.extract_strided_slice %880 {offsets = [3, 0], sizes = [1, 256], strides = [1, 1]} : vector<4x256xf32> to vector<1x256xf32>
    %905 = vector.broadcast %903 : vector<4x1xf32> to vector<4x256xf32>
    %906 = vector.broadcast %904 : vector<1x256xf32> to vector<4x256xf32>
    %907 = arith.mulf %905, %906 : vector<4x256xf32>
    %908 = arith.addf %901, %907 : vector<4x256xf32>
    %909 = vector.extract_strided_slice %3 {offsets = [2, 0, 0], sizes = [1, 4, 1], strides = [1, 1, 1]} : vector<6x4x1xf32> to vector<1x4x1xf32>
    %910 = vector.shape_cast %909 : vector<1x4x1xf32> to vector<4x1xf32>
    %911 = vector.broadcast %910 : vector<4x1xf32> to vector<4x256xf32>
    %912 = arith.addf %908, %911 : vector<4x256xf32>
    %cst_56 = arith.constant 0.000000e+00 : f32
    %913 = vector.broadcast %cst_56 : f32 to vector<4x256xf32>
    %914 = arith.maximumf %912, %913 : vector<4x256xf32>
    %cst_57 = arith.constant 0.000000e+00 : f32
    %915 = vector.broadcast %cst_57 : f32 to vector<4x256xf32>
    %c17_i32_58 = arith.constant 17 : i32
    %916 = tpu.dynamic_rotate %914 by %c17_i32_58 dim 1 : vector<4x256xf32>, i32 -> vector<4x256xf32>
    %cst_59 = arith.constant 0.000000e+00 : f32
    %917 = vector.shape_cast %15 : vector<1x256xi1> to vector<1x256xi1>
    %918 = vector.broadcast %917 : vector<1x256xi1> to vector<4x256xi1>
    %919 = vector.broadcast %cst_59 : f32 to vector<4x256xf32>
    %920 = arith.select %918, %916, %919 : vector<4x256xi1>, vector<4x256xf32>
    %921 = vector.extract_strided_slice %2 {offsets = [3, 0, 0, 0], sizes = [1, 1, 4, 1], strides = [1, 1, 1, 1]} : vector<6x9x4x4xf32> to vector<1x1x4x1xf32>
    %922 = vector.shape_cast %921 : vector<1x1x4x1xf32> to vector<4x1xf32>
    %923 = vector.extract_strided_slice %920 {offsets = [0, 0], sizes = [1, 256], strides = [1, 1]} : vector<4x256xf32> to vector<1x256xf32>
    %924 = vector.broadcast %922 : vector<4x1xf32> to vector<4x256xf32>
    %925 = vector.broadcast %923 : vector<1x256xf32> to vector<4x256xf32>
    %926 = arith.mulf %924, %925 : vector<4x256xf32>
    %927 = arith.addf %915, %926 : vector<4x256xf32>
    %928 = vector.extract_strided_slice %2 {offsets = [3, 0, 0, 1], sizes = [1, 1, 4, 1], strides = [1, 1, 1, 1]} : vector<6x9x4x4xf32> to vector<1x1x4x1xf32>
    %929 = vector.shape_cast %928 : vector<1x1x4x1xf32> to vector<4x1xf32>
    %930 = vector.extract_strided_slice %920 {offsets = [1, 0], sizes = [1, 256], strides = [1, 1]} : vector<4x256xf32> to vector<1x256xf32>
    %931 = vector.broadcast %929 : vector<4x1xf32> to vector<4x256xf32>
    %932 = vector.broadcast %930 : vector<1x256xf32> to vector<4x256xf32>
    %933 = arith.mulf %931, %932 : vector<4x256xf32>
    %934 = arith.addf %927, %933 : vector<4x256xf32>
    %935 = vector.extract_strided_slice %2 {offsets = [3, 0, 0, 2], sizes = [1, 1, 4, 1], strides = [1, 1, 1, 1]} : vector<6x9x4x4xf32> to vector<1x1x4x1xf32>
    %936 = vector.shape_cast %935 : vector<1x1x4x1xf32> to vector<4x1xf32>
    %937 = vector.extract_strided_slice %920 {offsets = [2, 0], sizes = [1, 256], strides = [1, 1]} : vector<4x256xf32> to vector<1x256xf32>
    %938 = vector.broadcast %936 : vector<4x1xf32> to vector<4x256xf32>
    %939 = vector.broadcast %937 : vector<1x256xf32> to vector<4x256xf32>
    %940 = arith.mulf %938, %939 : vector<4x256xf32>
    %941 = arith.addf %934, %940 : vector<4x256xf32>
    %942 = vector.extract_strided_slice %2 {offsets = [3, 0, 0, 3], sizes = [1, 1, 4, 1], strides = [1, 1, 1, 1]} : vector<6x9x4x4xf32> to vector<1x1x4x1xf32>
    %943 = vector.shape_cast %942 : vector<1x1x4x1xf32> to vector<4x1xf32>
    %944 = vector.extract_strided_slice %920 {offsets = [3, 0], sizes = [1, 256], strides = [1, 1]} : vector<4x256xf32> to vector<1x256xf32>
    %945 = vector.broadcast %943 : vector<4x1xf32> to vector<4x256xf32>
    %946 = vector.broadcast %944 : vector<1x256xf32> to vector<4x256xf32>
    %947 = arith.mulf %945, %946 : vector<4x256xf32>
    %948 = arith.addf %941, %947 : vector<4x256xf32>
    %c16_i32_60 = arith.constant 16 : i32
    %949 = tpu.dynamic_rotate %914 by %c16_i32_60 dim 1 : vector<4x256xf32>, i32 -> vector<4x256xf32>
    %cst_61 = arith.constant 0.000000e+00 : f32
    %950 = vector.shape_cast %8 : vector<1x256xi1> to vector<1x256xi1>
    %951 = vector.broadcast %950 : vector<1x256xi1> to vector<4x256xi1>
    %952 = vector.broadcast %cst_61 : f32 to vector<4x256xf32>
    %953 = arith.select %951, %949, %952 : vector<4x256xi1>, vector<4x256xf32>
    %954 = vector.extract_strided_slice %2 {offsets = [3, 1, 0, 0], sizes = [1, 1, 4, 1], strides = [1, 1, 1, 1]} : vector<6x9x4x4xf32> to vector<1x1x4x1xf32>
    %955 = vector.shape_cast %954 : vector<1x1x4x1xf32> to vector<4x1xf32>
    %956 = vector.extract_strided_slice %953 {offsets = [0, 0], sizes = [1, 256], strides = [1, 1]} : vector<4x256xf32> to vector<1x256xf32>
    %957 = vector.broadcast %955 : vector<4x1xf32> to vector<4x256xf32>
    %958 = vector.broadcast %956 : vector<1x256xf32> to vector<4x256xf32>
    %959 = arith.mulf %957, %958 : vector<4x256xf32>
    %960 = arith.addf %948, %959 : vector<4x256xf32>
    %961 = vector.extract_strided_slice %2 {offsets = [3, 1, 0, 1], sizes = [1, 1, 4, 1], strides = [1, 1, 1, 1]} : vector<6x9x4x4xf32> to vector<1x1x4x1xf32>
    %962 = vector.shape_cast %961 : vector<1x1x4x1xf32> to vector<4x1xf32>
    %963 = vector.extract_strided_slice %953 {offsets = [1, 0], sizes = [1, 256], strides = [1, 1]} : vector<4x256xf32> to vector<1x256xf32>
    %964 = vector.broadcast %962 : vector<4x1xf32> to vector<4x256xf32>
    %965 = vector.broadcast %963 : vector<1x256xf32> to vector<4x256xf32>
    %966 = arith.mulf %964, %965 : vector<4x256xf32>
    %967 = arith.addf %960, %966 : vector<4x256xf32>
    %968 = vector.extract_strided_slice %2 {offsets = [3, 1, 0, 2], sizes = [1, 1, 4, 1], strides = [1, 1, 1, 1]} : vector<6x9x4x4xf32> to vector<1x1x4x1xf32>
    %969 = vector.shape_cast %968 : vector<1x1x4x1xf32> to vector<4x1xf32>
    %970 = vector.extract_strided_slice %953 {offsets = [2, 0], sizes = [1, 256], strides = [1, 1]} : vector<4x256xf32> to vector<1x256xf32>
    %971 = vector.broadcast %969 : vector<4x1xf32> to vector<4x256xf32>
    %972 = vector.broadcast %970 : vector<1x256xf32> to vector<4x256xf32>
    %973 = arith.mulf %971, %972 : vector<4x256xf32>
    %974 = arith.addf %967, %973 : vector<4x256xf32>
    %975 = vector.extract_strided_slice %2 {offsets = [3, 1, 0, 3], sizes = [1, 1, 4, 1], strides = [1, 1, 1, 1]} : vector<6x9x4x4xf32> to vector<1x1x4x1xf32>
    %976 = vector.shape_cast %975 : vector<1x1x4x1xf32> to vector<4x1xf32>
    %977 = vector.extract_strided_slice %953 {offsets = [3, 0], sizes = [1, 256], strides = [1, 1]} : vector<4x256xf32> to vector<1x256xf32>
    %978 = vector.broadcast %976 : vector<4x1xf32> to vector<4x256xf32>
    %979 = vector.broadcast %977 : vector<1x256xf32> to vector<4x256xf32>
    %980 = arith.mulf %978, %979 : vector<4x256xf32>
    %981 = arith.addf %974, %980 : vector<4x256xf32>
    %c15_i32_62 = arith.constant 15 : i32
    %982 = tpu.dynamic_rotate %914 by %c15_i32_62 dim 1 : vector<4x256xf32>, i32 -> vector<4x256xf32>
    %cst_63 = arith.constant 0.000000e+00 : f32
    %983 = vector.shape_cast %16 : vector<1x256xi1> to vector<1x256xi1>
    %984 = vector.broadcast %983 : vector<1x256xi1> to vector<4x256xi1>
    %985 = vector.broadcast %cst_63 : f32 to vector<4x256xf32>
    %986 = arith.select %984, %982, %985 : vector<4x256xi1>, vector<4x256xf32>
    %987 = vector.extract_strided_slice %2 {offsets = [3, 2, 0, 0], sizes = [1, 1, 4, 1], strides = [1, 1, 1, 1]} : vector<6x9x4x4xf32> to vector<1x1x4x1xf32>
    %988 = vector.shape_cast %987 : vector<1x1x4x1xf32> to vector<4x1xf32>
    %989 = vector.extract_strided_slice %986 {offsets = [0, 0], sizes = [1, 256], strides = [1, 1]} : vector<4x256xf32> to vector<1x256xf32>
    %990 = vector.broadcast %988 : vector<4x1xf32> to vector<4x256xf32>
    %991 = vector.broadcast %989 : vector<1x256xf32> to vector<4x256xf32>
    %992 = arith.mulf %990, %991 : vector<4x256xf32>
    %993 = arith.addf %981, %992 : vector<4x256xf32>
    %994 = vector.extract_strided_slice %2 {offsets = [3, 2, 0, 1], sizes = [1, 1, 4, 1], strides = [1, 1, 1, 1]} : vector<6x9x4x4xf32> to vector<1x1x4x1xf32>
    %995 = vector.shape_cast %994 : vector<1x1x4x1xf32> to vector<4x1xf32>
    %996 = vector.extract_strided_slice %986 {offsets = [1, 0], sizes = [1, 256], strides = [1, 1]} : vector<4x256xf32> to vector<1x256xf32>
    %997 = vector.broadcast %995 : vector<4x1xf32> to vector<4x256xf32>
    %998 = vector.broadcast %996 : vector<1x256xf32> to vector<4x256xf32>
    %999 = arith.mulf %997, %998 : vector<4x256xf32>
    %1000 = arith.addf %993, %999 : vector<4x256xf32>
    %1001 = vector.extract_strided_slice %2 {offsets = [3, 2, 0, 2], sizes = [1, 1, 4, 1], strides = [1, 1, 1, 1]} : vector<6x9x4x4xf32> to vector<1x1x4x1xf32>
    %1002 = vector.shape_cast %1001 : vector<1x1x4x1xf32> to vector<4x1xf32>
    %1003 = vector.extract_strided_slice %986 {offsets = [2, 0], sizes = [1, 256], strides = [1, 1]} : vector<4x256xf32> to vector<1x256xf32>
    %1004 = vector.broadcast %1002 : vector<4x1xf32> to vector<4x256xf32>
    %1005 = vector.broadcast %1003 : vector<1x256xf32> to vector<4x256xf32>
    %1006 = arith.mulf %1004, %1005 : vector<4x256xf32>
    %1007 = arith.addf %1000, %1006 : vector<4x256xf32>
    %1008 = vector.extract_strided_slice %2 {offsets = [3, 2, 0, 3], sizes = [1, 1, 4, 1], strides = [1, 1, 1, 1]} : vector<6x9x4x4xf32> to vector<1x1x4x1xf32>
    %1009 = vector.shape_cast %1008 : vector<1x1x4x1xf32> to vector<4x1xf32>
    %1010 = vector.extract_strided_slice %986 {offsets = [3, 0], sizes = [1, 256], strides = [1, 1]} : vector<4x256xf32> to vector<1x256xf32>
    %1011 = vector.broadcast %1009 : vector<4x1xf32> to vector<4x256xf32>
    %1012 = vector.broadcast %1010 : vector<1x256xf32> to vector<4x256xf32>
    %1013 = arith.mulf %1011, %1012 : vector<4x256xf32>
    %1014 = arith.addf %1007, %1013 : vector<4x256xf32>
    %c1_i32_64 = arith.constant 1 : i32
    %1015 = tpu.dynamic_rotate %914 by %c1_i32_64 dim 1 : vector<4x256xf32>, i32 -> vector<4x256xf32>
    %cst_65 = arith.constant 0.000000e+00 : f32
    %1016 = vector.shape_cast %12 : vector<1x256xi1> to vector<1x256xi1>
    %1017 = vector.broadcast %1016 : vector<1x256xi1> to vector<4x256xi1>
    %1018 = vector.broadcast %cst_65 : f32 to vector<4x256xf32>
    %1019 = arith.select %1017, %1015, %1018 : vector<4x256xi1>, vector<4x256xf32>
    %1020 = vector.extract_strided_slice %2 {offsets = [3, 3, 0, 0], sizes = [1, 1, 4, 1], strides = [1, 1, 1, 1]} : vector<6x9x4x4xf32> to vector<1x1x4x1xf32>
    %1021 = vector.shape_cast %1020 : vector<1x1x4x1xf32> to vector<4x1xf32>
    %1022 = vector.extract_strided_slice %1019 {offsets = [0, 0], sizes = [1, 256], strides = [1, 1]} : vector<4x256xf32> to vector<1x256xf32>
    %1023 = vector.broadcast %1021 : vector<4x1xf32> to vector<4x256xf32>
    %1024 = vector.broadcast %1022 : vector<1x256xf32> to vector<4x256xf32>
    %1025 = arith.mulf %1023, %1024 : vector<4x256xf32>
    %1026 = arith.addf %1014, %1025 : vector<4x256xf32>
    %1027 = vector.extract_strided_slice %2 {offsets = [3, 3, 0, 1], sizes = [1, 1, 4, 1], strides = [1, 1, 1, 1]} : vector<6x9x4x4xf32> to vector<1x1x4x1xf32>
    %1028 = vector.shape_cast %1027 : vector<1x1x4x1xf32> to vector<4x1xf32>
    %1029 = vector.extract_strided_slice %1019 {offsets = [1, 0], sizes = [1, 256], strides = [1, 1]} : vector<4x256xf32> to vector<1x256xf32>
    %1030 = vector.broadcast %1028 : vector<4x1xf32> to vector<4x256xf32>
    %1031 = vector.broadcast %1029 : vector<1x256xf32> to vector<4x256xf32>
    %1032 = arith.mulf %1030, %1031 : vector<4x256xf32>
    %1033 = arith.addf %1026, %1032 : vector<4x256xf32>
    %1034 = vector.extract_strided_slice %2 {offsets = [3, 3, 0, 2], sizes = [1, 1, 4, 1], strides = [1, 1, 1, 1]} : vector<6x9x4x4xf32> to vector<1x1x4x1xf32>
    %1035 = vector.shape_cast %1034 : vector<1x1x4x1xf32> to vector<4x1xf32>
    %1036 = vector.extract_strided_slice %1019 {offsets = [2, 0], sizes = [1, 256], strides = [1, 1]} : vector<4x256xf32> to vector<1x256xf32>
    %1037 = vector.broadcast %1035 : vector<4x1xf32> to vector<4x256xf32>
    %1038 = vector.broadcast %1036 : vector<1x256xf32> to vector<4x256xf32>
    %1039 = arith.mulf %1037, %1038 : vector<4x256xf32>
    %1040 = arith.addf %1033, %1039 : vector<4x256xf32>
    %1041 = vector.extract_strided_slice %2 {offsets = [3, 3, 0, 3], sizes = [1, 1, 4, 1], strides = [1, 1, 1, 1]} : vector<6x9x4x4xf32> to vector<1x1x4x1xf32>
    %1042 = vector.shape_cast %1041 : vector<1x1x4x1xf32> to vector<4x1xf32>
    %1043 = vector.extract_strided_slice %1019 {offsets = [3, 0], sizes = [1, 256], strides = [1, 1]} : vector<4x256xf32> to vector<1x256xf32>
    %1044 = vector.broadcast %1042 : vector<4x1xf32> to vector<4x256xf32>
    %1045 = vector.broadcast %1043 : vector<1x256xf32> to vector<4x256xf32>
    %1046 = arith.mulf %1044, %1045 : vector<4x256xf32>
    %1047 = arith.addf %1040, %1046 : vector<4x256xf32>
    %1048 = vector.extract_strided_slice %2 {offsets = [3, 4, 0, 0], sizes = [1, 1, 4, 1], strides = [1, 1, 1, 1]} : vector<6x9x4x4xf32> to vector<1x1x4x1xf32>
    %1049 = vector.shape_cast %1048 : vector<1x1x4x1xf32> to vector<4x1xf32>
    %1050 = vector.extract_strided_slice %914 {offsets = [0, 0], sizes = [1, 256], strides = [1, 1]} : vector<4x256xf32> to vector<1x256xf32>
    %1051 = vector.broadcast %1049 : vector<4x1xf32> to vector<4x256xf32>
    %1052 = vector.broadcast %1050 : vector<1x256xf32> to vector<4x256xf32>
    %1053 = arith.mulf %1051, %1052 : vector<4x256xf32>
    %1054 = arith.addf %1047, %1053 : vector<4x256xf32>
    %1055 = vector.extract_strided_slice %2 {offsets = [3, 4, 0, 1], sizes = [1, 1, 4, 1], strides = [1, 1, 1, 1]} : vector<6x9x4x4xf32> to vector<1x1x4x1xf32>
    %1056 = vector.shape_cast %1055 : vector<1x1x4x1xf32> to vector<4x1xf32>
    %1057 = vector.extract_strided_slice %914 {offsets = [1, 0], sizes = [1, 256], strides = [1, 1]} : vector<4x256xf32> to vector<1x256xf32>
    %1058 = vector.broadcast %1056 : vector<4x1xf32> to vector<4x256xf32>
    %1059 = vector.broadcast %1057 : vector<1x256xf32> to vector<4x256xf32>
    %1060 = arith.mulf %1058, %1059 : vector<4x256xf32>
    %1061 = arith.addf %1054, %1060 : vector<4x256xf32>
    %1062 = vector.extract_strided_slice %2 {offsets = [3, 4, 0, 2], sizes = [1, 1, 4, 1], strides = [1, 1, 1, 1]} : vector<6x9x4x4xf32> to vector<1x1x4x1xf32>
    %1063 = vector.shape_cast %1062 : vector<1x1x4x1xf32> to vector<4x1xf32>
    %1064 = vector.extract_strided_slice %914 {offsets = [2, 0], sizes = [1, 256], strides = [1, 1]} : vector<4x256xf32> to vector<1x256xf32>
    %1065 = vector.broadcast %1063 : vector<4x1xf32> to vector<4x256xf32>
    %1066 = vector.broadcast %1064 : vector<1x256xf32> to vector<4x256xf32>
    %1067 = arith.mulf %1065, %1066 : vector<4x256xf32>
    %1068 = arith.addf %1061, %1067 : vector<4x256xf32>
    %1069 = vector.extract_strided_slice %2 {offsets = [3, 4, 0, 3], sizes = [1, 1, 4, 1], strides = [1, 1, 1, 1]} : vector<6x9x4x4xf32> to vector<1x1x4x1xf32>
    %1070 = vector.shape_cast %1069 : vector<1x1x4x1xf32> to vector<4x1xf32>
    %1071 = vector.extract_strided_slice %914 {offsets = [3, 0], sizes = [1, 256], strides = [1, 1]} : vector<4x256xf32> to vector<1x256xf32>
    %1072 = vector.broadcast %1070 : vector<4x1xf32> to vector<4x256xf32>
    %1073 = vector.broadcast %1071 : vector<1x256xf32> to vector<4x256xf32>
    %1074 = arith.mulf %1072, %1073 : vector<4x256xf32>
    %1075 = arith.addf %1068, %1074 : vector<4x256xf32>
    %c255_i32_66 = arith.constant 255 : i32
    %1076 = tpu.dynamic_rotate %914 by %c255_i32_66 dim 1 : vector<4x256xf32>, i32 -> vector<4x256xf32>
    %cst_67 = arith.constant 0.000000e+00 : f32
    %1077 = vector.shape_cast %14 : vector<1x256xi1> to vector<1x256xi1>
    %1078 = vector.broadcast %1077 : vector<1x256xi1> to vector<4x256xi1>
    %1079 = vector.broadcast %cst_67 : f32 to vector<4x256xf32>
    %1080 = arith.select %1078, %1076, %1079 : vector<4x256xi1>, vector<4x256xf32>
    %1081 = vector.extract_strided_slice %2 {offsets = [3, 5, 0, 0], sizes = [1, 1, 4, 1], strides = [1, 1, 1, 1]} : vector<6x9x4x4xf32> to vector<1x1x4x1xf32>
    %1082 = vector.shape_cast %1081 : vector<1x1x4x1xf32> to vector<4x1xf32>
    %1083 = vector.extract_strided_slice %1080 {offsets = [0, 0], sizes = [1, 256], strides = [1, 1]} : vector<4x256xf32> to vector<1x256xf32>
    %1084 = vector.broadcast %1082 : vector<4x1xf32> to vector<4x256xf32>
    %1085 = vector.broadcast %1083 : vector<1x256xf32> to vector<4x256xf32>
    %1086 = arith.mulf %1084, %1085 : vector<4x256xf32>
    %1087 = arith.addf %1075, %1086 : vector<4x256xf32>
    %1088 = vector.extract_strided_slice %2 {offsets = [3, 5, 0, 1], sizes = [1, 1, 4, 1], strides = [1, 1, 1, 1]} : vector<6x9x4x4xf32> to vector<1x1x4x1xf32>
    %1089 = vector.shape_cast %1088 : vector<1x1x4x1xf32> to vector<4x1xf32>
    %1090 = vector.extract_strided_slice %1080 {offsets = [1, 0], sizes = [1, 256], strides = [1, 1]} : vector<4x256xf32> to vector<1x256xf32>
    %1091 = vector.broadcast %1089 : vector<4x1xf32> to vector<4x256xf32>
    %1092 = vector.broadcast %1090 : vector<1x256xf32> to vector<4x256xf32>
    %1093 = arith.mulf %1091, %1092 : vector<4x256xf32>
    %1094 = arith.addf %1087, %1093 : vector<4x256xf32>
    %1095 = vector.extract_strided_slice %2 {offsets = [3, 5, 0, 2], sizes = [1, 1, 4, 1], strides = [1, 1, 1, 1]} : vector<6x9x4x4xf32> to vector<1x1x4x1xf32>
    %1096 = vector.shape_cast %1095 : vector<1x1x4x1xf32> to vector<4x1xf32>
    %1097 = vector.extract_strided_slice %1080 {offsets = [2, 0], sizes = [1, 256], strides = [1, 1]} : vector<4x256xf32> to vector<1x256xf32>
    %1098 = vector.broadcast %1096 : vector<4x1xf32> to vector<4x256xf32>
    %1099 = vector.broadcast %1097 : vector<1x256xf32> to vector<4x256xf32>
    %1100 = arith.mulf %1098, %1099 : vector<4x256xf32>
    %1101 = arith.addf %1094, %1100 : vector<4x256xf32>
    %1102 = vector.extract_strided_slice %2 {offsets = [3, 5, 0, 3], sizes = [1, 1, 4, 1], strides = [1, 1, 1, 1]} : vector<6x9x4x4xf32> to vector<1x1x4x1xf32>
    %1103 = vector.shape_cast %1102 : vector<1x1x4x1xf32> to vector<4x1xf32>
    %1104 = vector.extract_strided_slice %1080 {offsets = [3, 0], sizes = [1, 256], strides = [1, 1]} : vector<4x256xf32> to vector<1x256xf32>
    %1105 = vector.broadcast %1103 : vector<4x1xf32> to vector<4x256xf32>
    %1106 = vector.broadcast %1104 : vector<1x256xf32> to vector<4x256xf32>
    %1107 = arith.mulf %1105, %1106 : vector<4x256xf32>
    %1108 = arith.addf %1101, %1107 : vector<4x256xf32>
    %c241_i32_68 = arith.constant 241 : i32
    %1109 = tpu.dynamic_rotate %914 by %c241_i32_68 dim 1 : vector<4x256xf32>, i32 -> vector<4x256xf32>
    %cst_69 = arith.constant 0.000000e+00 : f32
    %1110 = vector.shape_cast %17 : vector<1x256xi1> to vector<1x256xi1>
    %1111 = vector.broadcast %1110 : vector<1x256xi1> to vector<4x256xi1>
    %1112 = vector.broadcast %cst_69 : f32 to vector<4x256xf32>
    %1113 = arith.select %1111, %1109, %1112 : vector<4x256xi1>, vector<4x256xf32>
    %1114 = vector.extract_strided_slice %2 {offsets = [3, 6, 0, 0], sizes = [1, 1, 4, 1], strides = [1, 1, 1, 1]} : vector<6x9x4x4xf32> to vector<1x1x4x1xf32>
    %1115 = vector.shape_cast %1114 : vector<1x1x4x1xf32> to vector<4x1xf32>
    %1116 = vector.extract_strided_slice %1113 {offsets = [0, 0], sizes = [1, 256], strides = [1, 1]} : vector<4x256xf32> to vector<1x256xf32>
    %1117 = vector.broadcast %1115 : vector<4x1xf32> to vector<4x256xf32>
    %1118 = vector.broadcast %1116 : vector<1x256xf32> to vector<4x256xf32>
    %1119 = arith.mulf %1117, %1118 : vector<4x256xf32>
    %1120 = arith.addf %1108, %1119 : vector<4x256xf32>
    %1121 = vector.extract_strided_slice %2 {offsets = [3, 6, 0, 1], sizes = [1, 1, 4, 1], strides = [1, 1, 1, 1]} : vector<6x9x4x4xf32> to vector<1x1x4x1xf32>
    %1122 = vector.shape_cast %1121 : vector<1x1x4x1xf32> to vector<4x1xf32>
    %1123 = vector.extract_strided_slice %1113 {offsets = [1, 0], sizes = [1, 256], strides = [1, 1]} : vector<4x256xf32> to vector<1x256xf32>
    %1124 = vector.broadcast %1122 : vector<4x1xf32> to vector<4x256xf32>
    %1125 = vector.broadcast %1123 : vector<1x256xf32> to vector<4x256xf32>
    %1126 = arith.mulf %1124, %1125 : vector<4x256xf32>
    %1127 = arith.addf %1120, %1126 : vector<4x256xf32>
    %1128 = vector.extract_strided_slice %2 {offsets = [3, 6, 0, 2], sizes = [1, 1, 4, 1], strides = [1, 1, 1, 1]} : vector<6x9x4x4xf32> to vector<1x1x4x1xf32>
    %1129 = vector.shape_cast %1128 : vector<1x1x4x1xf32> to vector<4x1xf32>
    %1130 = vector.extract_strided_slice %1113 {offsets = [2, 0], sizes = [1, 256], strides = [1, 1]} : vector<4x256xf32> to vector<1x256xf32>
    %1131 = vector.broadcast %1129 : vector<4x1xf32> to vector<4x256xf32>
    %1132 = vector.broadcast %1130 : vector<1x256xf32> to vector<4x256xf32>
    %1133 = arith.mulf %1131, %1132 : vector<4x256xf32>
    %1134 = arith.addf %1127, %1133 : vector<4x256xf32>
    %1135 = vector.extract_strided_slice %2 {offsets = [3, 6, 0, 3], sizes = [1, 1, 4, 1], strides = [1, 1, 1, 1]} : vector<6x9x4x4xf32> to vector<1x1x4x1xf32>
    %1136 = vector.shape_cast %1135 : vector<1x1x4x1xf32> to vector<4x1xf32>
    %1137 = vector.extract_strided_slice %1113 {offsets = [3, 0], sizes = [1, 256], strides = [1, 1]} : vector<4x256xf32> to vector<1x256xf32>
    %1138 = vector.broadcast %1136 : vector<4x1xf32> to vector<4x256xf32>
    %1139 = vector.broadcast %1137 : vector<1x256xf32> to vector<4x256xf32>
    %1140 = arith.mulf %1138, %1139 : vector<4x256xf32>
    %1141 = arith.addf %1134, %1140 : vector<4x256xf32>
    %c240_i32_70 = arith.constant 240 : i32
    %1142 = tpu.dynamic_rotate %914 by %c240_i32_70 dim 1 : vector<4x256xf32>, i32 -> vector<4x256xf32>
    %cst_71 = arith.constant 0.000000e+00 : f32
    %1143 = vector.shape_cast %10 : vector<1x256xi1> to vector<1x256xi1>
    %1144 = vector.broadcast %1143 : vector<1x256xi1> to vector<4x256xi1>
    %1145 = vector.broadcast %cst_71 : f32 to vector<4x256xf32>
    %1146 = arith.select %1144, %1142, %1145 : vector<4x256xi1>, vector<4x256xf32>
    %1147 = vector.extract_strided_slice %2 {offsets = [3, 7, 0, 0], sizes = [1, 1, 4, 1], strides = [1, 1, 1, 1]} : vector<6x9x4x4xf32> to vector<1x1x4x1xf32>
    %1148 = vector.shape_cast %1147 : vector<1x1x4x1xf32> to vector<4x1xf32>
    %1149 = vector.extract_strided_slice %1146 {offsets = [0, 0], sizes = [1, 256], strides = [1, 1]} : vector<4x256xf32> to vector<1x256xf32>
    %1150 = vector.broadcast %1148 : vector<4x1xf32> to vector<4x256xf32>
    %1151 = vector.broadcast %1149 : vector<1x256xf32> to vector<4x256xf32>
    %1152 = arith.mulf %1150, %1151 : vector<4x256xf32>
    %1153 = arith.addf %1141, %1152 : vector<4x256xf32>
    %1154 = vector.extract_strided_slice %2 {offsets = [3, 7, 0, 1], sizes = [1, 1, 4, 1], strides = [1, 1, 1, 1]} : vector<6x9x4x4xf32> to vector<1x1x4x1xf32>
    %1155 = vector.shape_cast %1154 : vector<1x1x4x1xf32> to vector<4x1xf32>
    %1156 = vector.extract_strided_slice %1146 {offsets = [1, 0], sizes = [1, 256], strides = [1, 1]} : vector<4x256xf32> to vector<1x256xf32>
    %1157 = vector.broadcast %1155 : vector<4x1xf32> to vector<4x256xf32>
    %1158 = vector.broadcast %1156 : vector<1x256xf32> to vector<4x256xf32>
    %1159 = arith.mulf %1157, %1158 : vector<4x256xf32>
    %1160 = arith.addf %1153, %1159 : vector<4x256xf32>
    %1161 = vector.extract_strided_slice %2 {offsets = [3, 7, 0, 2], sizes = [1, 1, 4, 1], strides = [1, 1, 1, 1]} : vector<6x9x4x4xf32> to vector<1x1x4x1xf32>
    %1162 = vector.shape_cast %1161 : vector<1x1x4x1xf32> to vector<4x1xf32>
    %1163 = vector.extract_strided_slice %1146 {offsets = [2, 0], sizes = [1, 256], strides = [1, 1]} : vector<4x256xf32> to vector<1x256xf32>
    %1164 = vector.broadcast %1162 : vector<4x1xf32> to vector<4x256xf32>
    %1165 = vector.broadcast %1163 : vector<1x256xf32> to vector<4x256xf32>
    %1166 = arith.mulf %1164, %1165 : vector<4x256xf32>
    %1167 = arith.addf %1160, %1166 : vector<4x256xf32>
    %1168 = vector.extract_strided_slice %2 {offsets = [3, 7, 0, 3], sizes = [1, 1, 4, 1], strides = [1, 1, 1, 1]} : vector<6x9x4x4xf32> to vector<1x1x4x1xf32>
    %1169 = vector.shape_cast %1168 : vector<1x1x4x1xf32> to vector<4x1xf32>
    %1170 = vector.extract_strided_slice %1146 {offsets = [3, 0], sizes = [1, 256], strides = [1, 1]} : vector<4x256xf32> to vector<1x256xf32>
    %1171 = vector.broadcast %1169 : vector<4x1xf32> to vector<4x256xf32>
    %1172 = vector.broadcast %1170 : vector<1x256xf32> to vector<4x256xf32>
    %1173 = arith.mulf %1171, %1172 : vector<4x256xf32>
    %1174 = arith.addf %1167, %1173 : vector<4x256xf32>
    %c239_i32_72 = arith.constant 239 : i32
    %1175 = tpu.dynamic_rotate %914 by %c239_i32_72 dim 1 : vector<4x256xf32>, i32 -> vector<4x256xf32>
    %cst_73 = arith.constant 0.000000e+00 : f32
    %1176 = vector.shape_cast %18 : vector<1x256xi1> to vector<1x256xi1>
    %1177 = vector.broadcast %1176 : vector<1x256xi1> to vector<4x256xi1>
    %1178 = vector.broadcast %cst_73 : f32 to vector<4x256xf32>
    %1179 = arith.select %1177, %1175, %1178 : vector<4x256xi1>, vector<4x256xf32>
    %1180 = vector.extract_strided_slice %2 {offsets = [3, 8, 0, 0], sizes = [1, 1, 4, 1], strides = [1, 1, 1, 1]} : vector<6x9x4x4xf32> to vector<1x1x4x1xf32>
    %1181 = vector.shape_cast %1180 : vector<1x1x4x1xf32> to vector<4x1xf32>
    %1182 = vector.extract_strided_slice %1179 {offsets = [0, 0], sizes = [1, 256], strides = [1, 1]} : vector<4x256xf32> to vector<1x256xf32>
    %1183 = vector.broadcast %1181 : vector<4x1xf32> to vector<4x256xf32>
    %1184 = vector.broadcast %1182 : vector<1x256xf32> to vector<4x256xf32>
    %1185 = arith.mulf %1183, %1184 : vector<4x256xf32>
    %1186 = arith.addf %1174, %1185 : vector<4x256xf32>
    %1187 = vector.extract_strided_slice %2 {offsets = [3, 8, 0, 1], sizes = [1, 1, 4, 1], strides = [1, 1, 1, 1]} : vector<6x9x4x4xf32> to vector<1x1x4x1xf32>
    %1188 = vector.shape_cast %1187 : vector<1x1x4x1xf32> to vector<4x1xf32>
    %1189 = vector.extract_strided_slice %1179 {offsets = [1, 0], sizes = [1, 256], strides = [1, 1]} : vector<4x256xf32> to vector<1x256xf32>
    %1190 = vector.broadcast %1188 : vector<4x1xf32> to vector<4x256xf32>
    %1191 = vector.broadcast %1189 : vector<1x256xf32> to vector<4x256xf32>
    %1192 = arith.mulf %1190, %1191 : vector<4x256xf32>
    %1193 = arith.addf %1186, %1192 : vector<4x256xf32>
    %1194 = vector.extract_strided_slice %2 {offsets = [3, 8, 0, 2], sizes = [1, 1, 4, 1], strides = [1, 1, 1, 1]} : vector<6x9x4x4xf32> to vector<1x1x4x1xf32>
    %1195 = vector.shape_cast %1194 : vector<1x1x4x1xf32> to vector<4x1xf32>
    %1196 = vector.extract_strided_slice %1179 {offsets = [2, 0], sizes = [1, 256], strides = [1, 1]} : vector<4x256xf32> to vector<1x256xf32>
    %1197 = vector.broadcast %1195 : vector<4x1xf32> to vector<4x256xf32>
    %1198 = vector.broadcast %1196 : vector<1x256xf32> to vector<4x256xf32>
    %1199 = arith.mulf %1197, %1198 : vector<4x256xf32>
    %1200 = arith.addf %1193, %1199 : vector<4x256xf32>
    %1201 = vector.extract_strided_slice %2 {offsets = [3, 8, 0, 3], sizes = [1, 1, 4, 1], strides = [1, 1, 1, 1]} : vector<6x9x4x4xf32> to vector<1x1x4x1xf32>
    %1202 = vector.shape_cast %1201 : vector<1x1x4x1xf32> to vector<4x1xf32>
    %1203 = vector.extract_strided_slice %1179 {offsets = [3, 0], sizes = [1, 256], strides = [1, 1]} : vector<4x256xf32> to vector<1x256xf32>
    %1204 = vector.broadcast %1202 : vector<4x1xf32> to vector<4x256xf32>
    %1205 = vector.broadcast %1203 : vector<1x256xf32> to vector<4x256xf32>
    %1206 = arith.mulf %1204, %1205 : vector<4x256xf32>
    %1207 = arith.addf %1200, %1206 : vector<4x256xf32>
    %1208 = vector.extract_strided_slice %3 {offsets = [3, 0, 0], sizes = [1, 4, 1], strides = [1, 1, 1]} : vector<6x4x1xf32> to vector<1x4x1xf32>
    %1209 = vector.shape_cast %1208 : vector<1x4x1xf32> to vector<4x1xf32>
    %1210 = vector.broadcast %1209 : vector<4x1xf32> to vector<4x256xf32>
    %1211 = arith.addf %1207, %1210 : vector<4x256xf32>
    %1212 = arith.addf %615, %1211 : vector<4x256xf32>
    %cst_74 = arith.constant 0.000000e+00 : f32
    %1213 = vector.broadcast %cst_74 : f32 to vector<4x256xf32>
    %c17_i32_75 = arith.constant 17 : i32
    %1214 = tpu.dynamic_rotate %1212 by %c17_i32_75 dim 1 : vector<4x256xf32>, i32 -> vector<4x256xf32>
    %cst_76 = arith.constant 0.000000e+00 : f32
    %1215 = vector.shape_cast %15 : vector<1x256xi1> to vector<1x256xi1>
    %1216 = vector.broadcast %1215 : vector<1x256xi1> to vector<4x256xi1>
    %1217 = vector.broadcast %cst_76 : f32 to vector<4x256xf32>
    %1218 = arith.select %1216, %1214, %1217 : vector<4x256xi1>, vector<4x256xf32>
    %1219 = vector.extract_strided_slice %2 {offsets = [4, 0, 0, 0], sizes = [1, 1, 4, 1], strides = [1, 1, 1, 1]} : vector<6x9x4x4xf32> to vector<1x1x4x1xf32>
    %1220 = vector.shape_cast %1219 : vector<1x1x4x1xf32> to vector<4x1xf32>
    %1221 = vector.extract_strided_slice %1218 {offsets = [0, 0], sizes = [1, 256], strides = [1, 1]} : vector<4x256xf32> to vector<1x256xf32>
    %1222 = vector.broadcast %1220 : vector<4x1xf32> to vector<4x256xf32>
    %1223 = vector.broadcast %1221 : vector<1x256xf32> to vector<4x256xf32>
    %1224 = arith.mulf %1222, %1223 : vector<4x256xf32>
    %1225 = arith.addf %1213, %1224 : vector<4x256xf32>
    %1226 = vector.extract_strided_slice %2 {offsets = [4, 0, 0, 1], sizes = [1, 1, 4, 1], strides = [1, 1, 1, 1]} : vector<6x9x4x4xf32> to vector<1x1x4x1xf32>
    %1227 = vector.shape_cast %1226 : vector<1x1x4x1xf32> to vector<4x1xf32>
    %1228 = vector.extract_strided_slice %1218 {offsets = [1, 0], sizes = [1, 256], strides = [1, 1]} : vector<4x256xf32> to vector<1x256xf32>
    %1229 = vector.broadcast %1227 : vector<4x1xf32> to vector<4x256xf32>
    %1230 = vector.broadcast %1228 : vector<1x256xf32> to vector<4x256xf32>
    %1231 = arith.mulf %1229, %1230 : vector<4x256xf32>
    %1232 = arith.addf %1225, %1231 : vector<4x256xf32>
    %1233 = vector.extract_strided_slice %2 {offsets = [4, 0, 0, 2], sizes = [1, 1, 4, 1], strides = [1, 1, 1, 1]} : vector<6x9x4x4xf32> to vector<1x1x4x1xf32>
    %1234 = vector.shape_cast %1233 : vector<1x1x4x1xf32> to vector<4x1xf32>
    %1235 = vector.extract_strided_slice %1218 {offsets = [2, 0], sizes = [1, 256], strides = [1, 1]} : vector<4x256xf32> to vector<1x256xf32>
    %1236 = vector.broadcast %1234 : vector<4x1xf32> to vector<4x256xf32>
    %1237 = vector.broadcast %1235 : vector<1x256xf32> to vector<4x256xf32>
    %1238 = arith.mulf %1236, %1237 : vector<4x256xf32>
    %1239 = arith.addf %1232, %1238 : vector<4x256xf32>
    %1240 = vector.extract_strided_slice %2 {offsets = [4, 0, 0, 3], sizes = [1, 1, 4, 1], strides = [1, 1, 1, 1]} : vector<6x9x4x4xf32> to vector<1x1x4x1xf32>
    %1241 = vector.shape_cast %1240 : vector<1x1x4x1xf32> to vector<4x1xf32>
    %1242 = vector.extract_strided_slice %1218 {offsets = [3, 0], sizes = [1, 256], strides = [1, 1]} : vector<4x256xf32> to vector<1x256xf32>
    %1243 = vector.broadcast %1241 : vector<4x1xf32> to vector<4x256xf32>
    %1244 = vector.broadcast %1242 : vector<1x256xf32> to vector<4x256xf32>
    %1245 = arith.mulf %1243, %1244 : vector<4x256xf32>
    %1246 = arith.addf %1239, %1245 : vector<4x256xf32>
    %c16_i32_77 = arith.constant 16 : i32
    %1247 = tpu.dynamic_rotate %1212 by %c16_i32_77 dim 1 : vector<4x256xf32>, i32 -> vector<4x256xf32>
    %cst_78 = arith.constant 0.000000e+00 : f32
    %1248 = vector.shape_cast %8 : vector<1x256xi1> to vector<1x256xi1>
    %1249 = vector.broadcast %1248 : vector<1x256xi1> to vector<4x256xi1>
    %1250 = vector.broadcast %cst_78 : f32 to vector<4x256xf32>
    %1251 = arith.select %1249, %1247, %1250 : vector<4x256xi1>, vector<4x256xf32>
    %1252 = vector.extract_strided_slice %2 {offsets = [4, 1, 0, 0], sizes = [1, 1, 4, 1], strides = [1, 1, 1, 1]} : vector<6x9x4x4xf32> to vector<1x1x4x1xf32>
    %1253 = vector.shape_cast %1252 : vector<1x1x4x1xf32> to vector<4x1xf32>
    %1254 = vector.extract_strided_slice %1251 {offsets = [0, 0], sizes = [1, 256], strides = [1, 1]} : vector<4x256xf32> to vector<1x256xf32>
    %1255 = vector.broadcast %1253 : vector<4x1xf32> to vector<4x256xf32>
    %1256 = vector.broadcast %1254 : vector<1x256xf32> to vector<4x256xf32>
    %1257 = arith.mulf %1255, %1256 : vector<4x256xf32>
    %1258 = arith.addf %1246, %1257 : vector<4x256xf32>
    %1259 = vector.extract_strided_slice %2 {offsets = [4, 1, 0, 1], sizes = [1, 1, 4, 1], strides = [1, 1, 1, 1]} : vector<6x9x4x4xf32> to vector<1x1x4x1xf32>
    %1260 = vector.shape_cast %1259 : vector<1x1x4x1xf32> to vector<4x1xf32>
    %1261 = vector.extract_strided_slice %1251 {offsets = [1, 0], sizes = [1, 256], strides = [1, 1]} : vector<4x256xf32> to vector<1x256xf32>
    %1262 = vector.broadcast %1260 : vector<4x1xf32> to vector<4x256xf32>
    %1263 = vector.broadcast %1261 : vector<1x256xf32> to vector<4x256xf32>
    %1264 = arith.mulf %1262, %1263 : vector<4x256xf32>
    %1265 = arith.addf %1258, %1264 : vector<4x256xf32>
    %1266 = vector.extract_strided_slice %2 {offsets = [4, 1, 0, 2], sizes = [1, 1, 4, 1], strides = [1, 1, 1, 1]} : vector<6x9x4x4xf32> to vector<1x1x4x1xf32>
    %1267 = vector.shape_cast %1266 : vector<1x1x4x1xf32> to vector<4x1xf32>
    %1268 = vector.extract_strided_slice %1251 {offsets = [2, 0], sizes = [1, 256], strides = [1, 1]} : vector<4x256xf32> to vector<1x256xf32>
    %1269 = vector.broadcast %1267 : vector<4x1xf32> to vector<4x256xf32>
    %1270 = vector.broadcast %1268 : vector<1x256xf32> to vector<4x256xf32>
    %1271 = arith.mulf %1269, %1270 : vector<4x256xf32>
    %1272 = arith.addf %1265, %1271 : vector<4x256xf32>
    %1273 = vector.extract_strided_slice %2 {offsets = [4, 1, 0, 3], sizes = [1, 1, 4, 1], strides = [1, 1, 1, 1]} : vector<6x9x4x4xf32> to vector<1x1x4x1xf32>
    %1274 = vector.shape_cast %1273 : vector<1x1x4x1xf32> to vector<4x1xf32>
    %1275 = vector.extract_strided_slice %1251 {offsets = [3, 0], sizes = [1, 256], strides = [1, 1]} : vector<4x256xf32> to vector<1x256xf32>
    %1276 = vector.broadcast %1274 : vector<4x1xf32> to vector<4x256xf32>
    %1277 = vector.broadcast %1275 : vector<1x256xf32> to vector<4x256xf32>
    %1278 = arith.mulf %1276, %1277 : vector<4x256xf32>
    %1279 = arith.addf %1272, %1278 : vector<4x256xf32>
    %c15_i32_79 = arith.constant 15 : i32
    %1280 = tpu.dynamic_rotate %1212 by %c15_i32_79 dim 1 : vector<4x256xf32>, i32 -> vector<4x256xf32>
    %cst_80 = arith.constant 0.000000e+00 : f32
    %1281 = vector.shape_cast %16 : vector<1x256xi1> to vector<1x256xi1>
    %1282 = vector.broadcast %1281 : vector<1x256xi1> to vector<4x256xi1>
    %1283 = vector.broadcast %cst_80 : f32 to vector<4x256xf32>
    %1284 = arith.select %1282, %1280, %1283 : vector<4x256xi1>, vector<4x256xf32>
    %1285 = vector.extract_strided_slice %2 {offsets = [4, 2, 0, 0], sizes = [1, 1, 4, 1], strides = [1, 1, 1, 1]} : vector<6x9x4x4xf32> to vector<1x1x4x1xf32>
    %1286 = vector.shape_cast %1285 : vector<1x1x4x1xf32> to vector<4x1xf32>
    %1287 = vector.extract_strided_slice %1284 {offsets = [0, 0], sizes = [1, 256], strides = [1, 1]} : vector<4x256xf32> to vector<1x256xf32>
    %1288 = vector.broadcast %1286 : vector<4x1xf32> to vector<4x256xf32>
    %1289 = vector.broadcast %1287 : vector<1x256xf32> to vector<4x256xf32>
    %1290 = arith.mulf %1288, %1289 : vector<4x256xf32>
    %1291 = arith.addf %1279, %1290 : vector<4x256xf32>
    %1292 = vector.extract_strided_slice %2 {offsets = [4, 2, 0, 1], sizes = [1, 1, 4, 1], strides = [1, 1, 1, 1]} : vector<6x9x4x4xf32> to vector<1x1x4x1xf32>
    %1293 = vector.shape_cast %1292 : vector<1x1x4x1xf32> to vector<4x1xf32>
    %1294 = vector.extract_strided_slice %1284 {offsets = [1, 0], sizes = [1, 256], strides = [1, 1]} : vector<4x256xf32> to vector<1x256xf32>
    %1295 = vector.broadcast %1293 : vector<4x1xf32> to vector<4x256xf32>
    %1296 = vector.broadcast %1294 : vector<1x256xf32> to vector<4x256xf32>
    %1297 = arith.mulf %1295, %1296 : vector<4x256xf32>
    %1298 = arith.addf %1291, %1297 : vector<4x256xf32>
    %1299 = vector.extract_strided_slice %2 {offsets = [4, 2, 0, 2], sizes = [1, 1, 4, 1], strides = [1, 1, 1, 1]} : vector<6x9x4x4xf32> to vector<1x1x4x1xf32>
    %1300 = vector.shape_cast %1299 : vector<1x1x4x1xf32> to vector<4x1xf32>
    %1301 = vector.extract_strided_slice %1284 {offsets = [2, 0], sizes = [1, 256], strides = [1, 1]} : vector<4x256xf32> to vector<1x256xf32>
    %1302 = vector.broadcast %1300 : vector<4x1xf32> to vector<4x256xf32>
    %1303 = vector.broadcast %1301 : vector<1x256xf32> to vector<4x256xf32>
    %1304 = arith.mulf %1302, %1303 : vector<4x256xf32>
    %1305 = arith.addf %1298, %1304 : vector<4x256xf32>
    %1306 = vector.extract_strided_slice %2 {offsets = [4, 2, 0, 3], sizes = [1, 1, 4, 1], strides = [1, 1, 1, 1]} : vector<6x9x4x4xf32> to vector<1x1x4x1xf32>
    %1307 = vector.shape_cast %1306 : vector<1x1x4x1xf32> to vector<4x1xf32>
    %1308 = vector.extract_strided_slice %1284 {offsets = [3, 0], sizes = [1, 256], strides = [1, 1]} : vector<4x256xf32> to vector<1x256xf32>
    %1309 = vector.broadcast %1307 : vector<4x1xf32> to vector<4x256xf32>
    %1310 = vector.broadcast %1308 : vector<1x256xf32> to vector<4x256xf32>
    %1311 = arith.mulf %1309, %1310 : vector<4x256xf32>
    %1312 = arith.addf %1305, %1311 : vector<4x256xf32>
    %c1_i32_81 = arith.constant 1 : i32
    %1313 = tpu.dynamic_rotate %1212 by %c1_i32_81 dim 1 : vector<4x256xf32>, i32 -> vector<4x256xf32>
    %cst_82 = arith.constant 0.000000e+00 : f32
    %1314 = vector.shape_cast %12 : vector<1x256xi1> to vector<1x256xi1>
    %1315 = vector.broadcast %1314 : vector<1x256xi1> to vector<4x256xi1>
    %1316 = vector.broadcast %cst_82 : f32 to vector<4x256xf32>
    %1317 = arith.select %1315, %1313, %1316 : vector<4x256xi1>, vector<4x256xf32>
    %1318 = vector.extract_strided_slice %2 {offsets = [4, 3, 0, 0], sizes = [1, 1, 4, 1], strides = [1, 1, 1, 1]} : vector<6x9x4x4xf32> to vector<1x1x4x1xf32>
    %1319 = vector.shape_cast %1318 : vector<1x1x4x1xf32> to vector<4x1xf32>
    %1320 = vector.extract_strided_slice %1317 {offsets = [0, 0], sizes = [1, 256], strides = [1, 1]} : vector<4x256xf32> to vector<1x256xf32>
    %1321 = vector.broadcast %1319 : vector<4x1xf32> to vector<4x256xf32>
    %1322 = vector.broadcast %1320 : vector<1x256xf32> to vector<4x256xf32>
    %1323 = arith.mulf %1321, %1322 : vector<4x256xf32>
    %1324 = arith.addf %1312, %1323 : vector<4x256xf32>
    %1325 = vector.extract_strided_slice %2 {offsets = [4, 3, 0, 1], sizes = [1, 1, 4, 1], strides = [1, 1, 1, 1]} : vector<6x9x4x4xf32> to vector<1x1x4x1xf32>
    %1326 = vector.shape_cast %1325 : vector<1x1x4x1xf32> to vector<4x1xf32>
    %1327 = vector.extract_strided_slice %1317 {offsets = [1, 0], sizes = [1, 256], strides = [1, 1]} : vector<4x256xf32> to vector<1x256xf32>
    %1328 = vector.broadcast %1326 : vector<4x1xf32> to vector<4x256xf32>
    %1329 = vector.broadcast %1327 : vector<1x256xf32> to vector<4x256xf32>
    %1330 = arith.mulf %1328, %1329 : vector<4x256xf32>
    %1331 = arith.addf %1324, %1330 : vector<4x256xf32>
    %1332 = vector.extract_strided_slice %2 {offsets = [4, 3, 0, 2], sizes = [1, 1, 4, 1], strides = [1, 1, 1, 1]} : vector<6x9x4x4xf32> to vector<1x1x4x1xf32>
    %1333 = vector.shape_cast %1332 : vector<1x1x4x1xf32> to vector<4x1xf32>
    %1334 = vector.extract_strided_slice %1317 {offsets = [2, 0], sizes = [1, 256], strides = [1, 1]} : vector<4x256xf32> to vector<1x256xf32>
    %1335 = vector.broadcast %1333 : vector<4x1xf32> to vector<4x256xf32>
    %1336 = vector.broadcast %1334 : vector<1x256xf32> to vector<4x256xf32>
    %1337 = arith.mulf %1335, %1336 : vector<4x256xf32>
    %1338 = arith.addf %1331, %1337 : vector<4x256xf32>
    %1339 = vector.extract_strided_slice %2 {offsets = [4, 3, 0, 3], sizes = [1, 1, 4, 1], strides = [1, 1, 1, 1]} : vector<6x9x4x4xf32> to vector<1x1x4x1xf32>
    %1340 = vector.shape_cast %1339 : vector<1x1x4x1xf32> to vector<4x1xf32>
    %1341 = vector.extract_strided_slice %1317 {offsets = [3, 0], sizes = [1, 256], strides = [1, 1]} : vector<4x256xf32> to vector<1x256xf32>
    %1342 = vector.broadcast %1340 : vector<4x1xf32> to vector<4x256xf32>
    %1343 = vector.broadcast %1341 : vector<1x256xf32> to vector<4x256xf32>
    %1344 = arith.mulf %1342, %1343 : vector<4x256xf32>
    %1345 = arith.addf %1338, %1344 : vector<4x256xf32>
    %1346 = vector.extract_strided_slice %2 {offsets = [4, 4, 0, 0], sizes = [1, 1, 4, 1], strides = [1, 1, 1, 1]} : vector<6x9x4x4xf32> to vector<1x1x4x1xf32>
    %1347 = vector.shape_cast %1346 : vector<1x1x4x1xf32> to vector<4x1xf32>
    %1348 = vector.extract_strided_slice %1212 {offsets = [0, 0], sizes = [1, 256], strides = [1, 1]} : vector<4x256xf32> to vector<1x256xf32>
    %1349 = vector.broadcast %1347 : vector<4x1xf32> to vector<4x256xf32>
    %1350 = vector.broadcast %1348 : vector<1x256xf32> to vector<4x256xf32>
    %1351 = arith.mulf %1349, %1350 : vector<4x256xf32>
    %1352 = arith.addf %1345, %1351 : vector<4x256xf32>
    %1353 = vector.extract_strided_slice %2 {offsets = [4, 4, 0, 1], sizes = [1, 1, 4, 1], strides = [1, 1, 1, 1]} : vector<6x9x4x4xf32> to vector<1x1x4x1xf32>
    %1354 = vector.shape_cast %1353 : vector<1x1x4x1xf32> to vector<4x1xf32>
    %1355 = vector.extract_strided_slice %1212 {offsets = [1, 0], sizes = [1, 256], strides = [1, 1]} : vector<4x256xf32> to vector<1x256xf32>
    %1356 = vector.broadcast %1354 : vector<4x1xf32> to vector<4x256xf32>
    %1357 = vector.broadcast %1355 : vector<1x256xf32> to vector<4x256xf32>
    %1358 = arith.mulf %1356, %1357 : vector<4x256xf32>
    %1359 = arith.addf %1352, %1358 : vector<4x256xf32>
    %1360 = vector.extract_strided_slice %2 {offsets = [4, 4, 0, 2], sizes = [1, 1, 4, 1], strides = [1, 1, 1, 1]} : vector<6x9x4x4xf32> to vector<1x1x4x1xf32>
    %1361 = vector.shape_cast %1360 : vector<1x1x4x1xf32> to vector<4x1xf32>
    %1362 = vector.extract_strided_slice %1212 {offsets = [2, 0], sizes = [1, 256], strides = [1, 1]} : vector<4x256xf32> to vector<1x256xf32>
    %1363 = vector.broadcast %1361 : vector<4x1xf32> to vector<4x256xf32>
    %1364 = vector.broadcast %1362 : vector<1x256xf32> to vector<4x256xf32>
    %1365 = arith.mulf %1363, %1364 : vector<4x256xf32>
    %1366 = arith.addf %1359, %1365 : vector<4x256xf32>
    %1367 = vector.extract_strided_slice %2 {offsets = [4, 4, 0, 3], sizes = [1, 1, 4, 1], strides = [1, 1, 1, 1]} : vector<6x9x4x4xf32> to vector<1x1x4x1xf32>
    %1368 = vector.shape_cast %1367 : vector<1x1x4x1xf32> to vector<4x1xf32>
    %1369 = vector.extract_strided_slice %1212 {offsets = [3, 0], sizes = [1, 256], strides = [1, 1]} : vector<4x256xf32> to vector<1x256xf32>
    %1370 = vector.broadcast %1368 : vector<4x1xf32> to vector<4x256xf32>
    %1371 = vector.broadcast %1369 : vector<1x256xf32> to vector<4x256xf32>
    %1372 = arith.mulf %1370, %1371 : vector<4x256xf32>
    %1373 = arith.addf %1366, %1372 : vector<4x256xf32>
    %c255_i32_83 = arith.constant 255 : i32
    %1374 = tpu.dynamic_rotate %1212 by %c255_i32_83 dim 1 : vector<4x256xf32>, i32 -> vector<4x256xf32>
    %cst_84 = arith.constant 0.000000e+00 : f32
    %1375 = vector.shape_cast %14 : vector<1x256xi1> to vector<1x256xi1>
    %1376 = vector.broadcast %1375 : vector<1x256xi1> to vector<4x256xi1>
    %1377 = vector.broadcast %cst_84 : f32 to vector<4x256xf32>
    %1378 = arith.select %1376, %1374, %1377 : vector<4x256xi1>, vector<4x256xf32>
    %1379 = vector.extract_strided_slice %2 {offsets = [4, 5, 0, 0], sizes = [1, 1, 4, 1], strides = [1, 1, 1, 1]} : vector<6x9x4x4xf32> to vector<1x1x4x1xf32>
    %1380 = vector.shape_cast %1379 : vector<1x1x4x1xf32> to vector<4x1xf32>
    %1381 = vector.extract_strided_slice %1378 {offsets = [0, 0], sizes = [1, 256], strides = [1, 1]} : vector<4x256xf32> to vector<1x256xf32>
    %1382 = vector.broadcast %1380 : vector<4x1xf32> to vector<4x256xf32>
    %1383 = vector.broadcast %1381 : vector<1x256xf32> to vector<4x256xf32>
    %1384 = arith.mulf %1382, %1383 : vector<4x256xf32>
    %1385 = arith.addf %1373, %1384 : vector<4x256xf32>
    %1386 = vector.extract_strided_slice %2 {offsets = [4, 5, 0, 1], sizes = [1, 1, 4, 1], strides = [1, 1, 1, 1]} : vector<6x9x4x4xf32> to vector<1x1x4x1xf32>
    %1387 = vector.shape_cast %1386 : vector<1x1x4x1xf32> to vector<4x1xf32>
    %1388 = vector.extract_strided_slice %1378 {offsets = [1, 0], sizes = [1, 256], strides = [1, 1]} : vector<4x256xf32> to vector<1x256xf32>
    %1389 = vector.broadcast %1387 : vector<4x1xf32> to vector<4x256xf32>
    %1390 = vector.broadcast %1388 : vector<1x256xf32> to vector<4x256xf32>
    %1391 = arith.mulf %1389, %1390 : vector<4x256xf32>
    %1392 = arith.addf %1385, %1391 : vector<4x256xf32>
    %1393 = vector.extract_strided_slice %2 {offsets = [4, 5, 0, 2], sizes = [1, 1, 4, 1], strides = [1, 1, 1, 1]} : vector<6x9x4x4xf32> to vector<1x1x4x1xf32>
    %1394 = vector.shape_cast %1393 : vector<1x1x4x1xf32> to vector<4x1xf32>
    %1395 = vector.extract_strided_slice %1378 {offsets = [2, 0], sizes = [1, 256], strides = [1, 1]} : vector<4x256xf32> to vector<1x256xf32>
    %1396 = vector.broadcast %1394 : vector<4x1xf32> to vector<4x256xf32>
    %1397 = vector.broadcast %1395 : vector<1x256xf32> to vector<4x256xf32>
    %1398 = arith.mulf %1396, %1397 : vector<4x256xf32>
    %1399 = arith.addf %1392, %1398 : vector<4x256xf32>
    %1400 = vector.extract_strided_slice %2 {offsets = [4, 5, 0, 3], sizes = [1, 1, 4, 1], strides = [1, 1, 1, 1]} : vector<6x9x4x4xf32> to vector<1x1x4x1xf32>
    %1401 = vector.shape_cast %1400 : vector<1x1x4x1xf32> to vector<4x1xf32>
    %1402 = vector.extract_strided_slice %1378 {offsets = [3, 0], sizes = [1, 256], strides = [1, 1]} : vector<4x256xf32> to vector<1x256xf32>
    %1403 = vector.broadcast %1401 : vector<4x1xf32> to vector<4x256xf32>
    %1404 = vector.broadcast %1402 : vector<1x256xf32> to vector<4x256xf32>
    %1405 = arith.mulf %1403, %1404 : vector<4x256xf32>
    %1406 = arith.addf %1399, %1405 : vector<4x256xf32>
    %c241_i32_85 = arith.constant 241 : i32
    %1407 = tpu.dynamic_rotate %1212 by %c241_i32_85 dim 1 : vector<4x256xf32>, i32 -> vector<4x256xf32>
    %cst_86 = arith.constant 0.000000e+00 : f32
    %1408 = vector.shape_cast %17 : vector<1x256xi1> to vector<1x256xi1>
    %1409 = vector.broadcast %1408 : vector<1x256xi1> to vector<4x256xi1>
    %1410 = vector.broadcast %cst_86 : f32 to vector<4x256xf32>
    %1411 = arith.select %1409, %1407, %1410 : vector<4x256xi1>, vector<4x256xf32>
    %1412 = vector.extract_strided_slice %2 {offsets = [4, 6, 0, 0], sizes = [1, 1, 4, 1], strides = [1, 1, 1, 1]} : vector<6x9x4x4xf32> to vector<1x1x4x1xf32>
    %1413 = vector.shape_cast %1412 : vector<1x1x4x1xf32> to vector<4x1xf32>
    %1414 = vector.extract_strided_slice %1411 {offsets = [0, 0], sizes = [1, 256], strides = [1, 1]} : vector<4x256xf32> to vector<1x256xf32>
    %1415 = vector.broadcast %1413 : vector<4x1xf32> to vector<4x256xf32>
    %1416 = vector.broadcast %1414 : vector<1x256xf32> to vector<4x256xf32>
    %1417 = arith.mulf %1415, %1416 : vector<4x256xf32>
    %1418 = arith.addf %1406, %1417 : vector<4x256xf32>
    %1419 = vector.extract_strided_slice %2 {offsets = [4, 6, 0, 1], sizes = [1, 1, 4, 1], strides = [1, 1, 1, 1]} : vector<6x9x4x4xf32> to vector<1x1x4x1xf32>
    %1420 = vector.shape_cast %1419 : vector<1x1x4x1xf32> to vector<4x1xf32>
    %1421 = vector.extract_strided_slice %1411 {offsets = [1, 0], sizes = [1, 256], strides = [1, 1]} : vector<4x256xf32> to vector<1x256xf32>
    %1422 = vector.broadcast %1420 : vector<4x1xf32> to vector<4x256xf32>
    %1423 = vector.broadcast %1421 : vector<1x256xf32> to vector<4x256xf32>
    %1424 = arith.mulf %1422, %1423 : vector<4x256xf32>
    %1425 = arith.addf %1418, %1424 : vector<4x256xf32>
    %1426 = vector.extract_strided_slice %2 {offsets = [4, 6, 0, 2], sizes = [1, 1, 4, 1], strides = [1, 1, 1, 1]} : vector<6x9x4x4xf32> to vector<1x1x4x1xf32>
    %1427 = vector.shape_cast %1426 : vector<1x1x4x1xf32> to vector<4x1xf32>
    %1428 = vector.extract_strided_slice %1411 {offsets = [2, 0], sizes = [1, 256], strides = [1, 1]} : vector<4x256xf32> to vector<1x256xf32>
    %1429 = vector.broadcast %1427 : vector<4x1xf32> to vector<4x256xf32>
    %1430 = vector.broadcast %1428 : vector<1x256xf32> to vector<4x256xf32>
    %1431 = arith.mulf %1429, %1430 : vector<4x256xf32>
    %1432 = arith.addf %1425, %1431 : vector<4x256xf32>
    %1433 = vector.extract_strided_slice %2 {offsets = [4, 6, 0, 3], sizes = [1, 1, 4, 1], strides = [1, 1, 1, 1]} : vector<6x9x4x4xf32> to vector<1x1x4x1xf32>
    %1434 = vector.shape_cast %1433 : vector<1x1x4x1xf32> to vector<4x1xf32>
    %1435 = vector.extract_strided_slice %1411 {offsets = [3, 0], sizes = [1, 256], strides = [1, 1]} : vector<4x256xf32> to vector<1x256xf32>
    %1436 = vector.broadcast %1434 : vector<4x1xf32> to vector<4x256xf32>
    %1437 = vector.broadcast %1435 : vector<1x256xf32> to vector<4x256xf32>
    %1438 = arith.mulf %1436, %1437 : vector<4x256xf32>
    %1439 = arith.addf %1432, %1438 : vector<4x256xf32>
    %c240_i32_87 = arith.constant 240 : i32
    %1440 = tpu.dynamic_rotate %1212 by %c240_i32_87 dim 1 : vector<4x256xf32>, i32 -> vector<4x256xf32>
    %cst_88 = arith.constant 0.000000e+00 : f32
    %1441 = vector.shape_cast %10 : vector<1x256xi1> to vector<1x256xi1>
    %1442 = vector.broadcast %1441 : vector<1x256xi1> to vector<4x256xi1>
    %1443 = vector.broadcast %cst_88 : f32 to vector<4x256xf32>
    %1444 = arith.select %1442, %1440, %1443 : vector<4x256xi1>, vector<4x256xf32>
    %1445 = vector.extract_strided_slice %2 {offsets = [4, 7, 0, 0], sizes = [1, 1, 4, 1], strides = [1, 1, 1, 1]} : vector<6x9x4x4xf32> to vector<1x1x4x1xf32>
    %1446 = vector.shape_cast %1445 : vector<1x1x4x1xf32> to vector<4x1xf32>
    %1447 = vector.extract_strided_slice %1444 {offsets = [0, 0], sizes = [1, 256], strides = [1, 1]} : vector<4x256xf32> to vector<1x256xf32>
    %1448 = vector.broadcast %1446 : vector<4x1xf32> to vector<4x256xf32>
    %1449 = vector.broadcast %1447 : vector<1x256xf32> to vector<4x256xf32>
    %1450 = arith.mulf %1448, %1449 : vector<4x256xf32>
    %1451 = arith.addf %1439, %1450 : vector<4x256xf32>
    %1452 = vector.extract_strided_slice %2 {offsets = [4, 7, 0, 1], sizes = [1, 1, 4, 1], strides = [1, 1, 1, 1]} : vector<6x9x4x4xf32> to vector<1x1x4x1xf32>
    %1453 = vector.shape_cast %1452 : vector<1x1x4x1xf32> to vector<4x1xf32>
    %1454 = vector.extract_strided_slice %1444 {offsets = [1, 0], sizes = [1, 256], strides = [1, 1]} : vector<4x256xf32> to vector<1x256xf32>
    %1455 = vector.broadcast %1453 : vector<4x1xf32> to vector<4x256xf32>
    %1456 = vector.broadcast %1454 : vector<1x256xf32> to vector<4x256xf32>
    %1457 = arith.mulf %1455, %1456 : vector<4x256xf32>
    %1458 = arith.addf %1451, %1457 : vector<4x256xf32>
    %1459 = vector.extract_strided_slice %2 {offsets = [4, 7, 0, 2], sizes = [1, 1, 4, 1], strides = [1, 1, 1, 1]} : vector<6x9x4x4xf32> to vector<1x1x4x1xf32>
    %1460 = vector.shape_cast %1459 : vector<1x1x4x1xf32> to vector<4x1xf32>
    %1461 = vector.extract_strided_slice %1444 {offsets = [2, 0], sizes = [1, 256], strides = [1, 1]} : vector<4x256xf32> to vector<1x256xf32>
    %1462 = vector.broadcast %1460 : vector<4x1xf32> to vector<4x256xf32>
    %1463 = vector.broadcast %1461 : vector<1x256xf32> to vector<4x256xf32>
    %1464 = arith.mulf %1462, %1463 : vector<4x256xf32>
    %1465 = arith.addf %1458, %1464 : vector<4x256xf32>
    %1466 = vector.extract_strided_slice %2 {offsets = [4, 7, 0, 3], sizes = [1, 1, 4, 1], strides = [1, 1, 1, 1]} : vector<6x9x4x4xf32> to vector<1x1x4x1xf32>
    %1467 = vector.shape_cast %1466 : vector<1x1x4x1xf32> to vector<4x1xf32>
    %1468 = vector.extract_strided_slice %1444 {offsets = [3, 0], sizes = [1, 256], strides = [1, 1]} : vector<4x256xf32> to vector<1x256xf32>
    %1469 = vector.broadcast %1467 : vector<4x1xf32> to vector<4x256xf32>
    %1470 = vector.broadcast %1468 : vector<1x256xf32> to vector<4x256xf32>
    %1471 = arith.mulf %1469, %1470 : vector<4x256xf32>
    %1472 = arith.addf %1465, %1471 : vector<4x256xf32>
    %c239_i32_89 = arith.constant 239 : i32
    %1473 = tpu.dynamic_rotate %1212 by %c239_i32_89 dim 1 : vector<4x256xf32>, i32 -> vector<4x256xf32>
    %cst_90 = arith.constant 0.000000e+00 : f32
    %1474 = vector.shape_cast %18 : vector<1x256xi1> to vector<1x256xi1>
    %1475 = vector.broadcast %1474 : vector<1x256xi1> to vector<4x256xi1>
    %1476 = vector.broadcast %cst_90 : f32 to vector<4x256xf32>
    %1477 = arith.select %1475, %1473, %1476 : vector<4x256xi1>, vector<4x256xf32>
    %1478 = vector.extract_strided_slice %2 {offsets = [4, 8, 0, 0], sizes = [1, 1, 4, 1], strides = [1, 1, 1, 1]} : vector<6x9x4x4xf32> to vector<1x1x4x1xf32>
    %1479 = vector.shape_cast %1478 : vector<1x1x4x1xf32> to vector<4x1xf32>
    %1480 = vector.extract_strided_slice %1477 {offsets = [0, 0], sizes = [1, 256], strides = [1, 1]} : vector<4x256xf32> to vector<1x256xf32>
    %1481 = vector.broadcast %1479 : vector<4x1xf32> to vector<4x256xf32>
    %1482 = vector.broadcast %1480 : vector<1x256xf32> to vector<4x256xf32>
    %1483 = arith.mulf %1481, %1482 : vector<4x256xf32>
    %1484 = arith.addf %1472, %1483 : vector<4x256xf32>
    %1485 = vector.extract_strided_slice %2 {offsets = [4, 8, 0, 1], sizes = [1, 1, 4, 1], strides = [1, 1, 1, 1]} : vector<6x9x4x4xf32> to vector<1x1x4x1xf32>
    %1486 = vector.shape_cast %1485 : vector<1x1x4x1xf32> to vector<4x1xf32>
    %1487 = vector.extract_strided_slice %1477 {offsets = [1, 0], sizes = [1, 256], strides = [1, 1]} : vector<4x256xf32> to vector<1x256xf32>
    %1488 = vector.broadcast %1486 : vector<4x1xf32> to vector<4x256xf32>
    %1489 = vector.broadcast %1487 : vector<1x256xf32> to vector<4x256xf32>
    %1490 = arith.mulf %1488, %1489 : vector<4x256xf32>
    %1491 = arith.addf %1484, %1490 : vector<4x256xf32>
    %1492 = vector.extract_strided_slice %2 {offsets = [4, 8, 0, 2], sizes = [1, 1, 4, 1], strides = [1, 1, 1, 1]} : vector<6x9x4x4xf32> to vector<1x1x4x1xf32>
    %1493 = vector.shape_cast %1492 : vector<1x1x4x1xf32> to vector<4x1xf32>
    %1494 = vector.extract_strided_slice %1477 {offsets = [2, 0], sizes = [1, 256], strides = [1, 1]} : vector<4x256xf32> to vector<1x256xf32>
    %1495 = vector.broadcast %1493 : vector<4x1xf32> to vector<4x256xf32>
    %1496 = vector.broadcast %1494 : vector<1x256xf32> to vector<4x256xf32>
    %1497 = arith.mulf %1495, %1496 : vector<4x256xf32>
    %1498 = arith.addf %1491, %1497 : vector<4x256xf32>
    %1499 = vector.extract_strided_slice %2 {offsets = [4, 8, 0, 3], sizes = [1, 1, 4, 1], strides = [1, 1, 1, 1]} : vector<6x9x4x4xf32> to vector<1x1x4x1xf32>
    %1500 = vector.shape_cast %1499 : vector<1x1x4x1xf32> to vector<4x1xf32>
    %1501 = vector.extract_strided_slice %1477 {offsets = [3, 0], sizes = [1, 256], strides = [1, 1]} : vector<4x256xf32> to vector<1x256xf32>
    %1502 = vector.broadcast %1500 : vector<4x1xf32> to vector<4x256xf32>
    %1503 = vector.broadcast %1501 : vector<1x256xf32> to vector<4x256xf32>
    %1504 = arith.mulf %1502, %1503 : vector<4x256xf32>
    %1505 = arith.addf %1498, %1504 : vector<4x256xf32>
    %1506 = vector.extract_strided_slice %3 {offsets = [4, 0, 0], sizes = [1, 4, 1], strides = [1, 1, 1]} : vector<6x4x1xf32> to vector<1x4x1xf32>
    %1507 = vector.shape_cast %1506 : vector<1x4x1xf32> to vector<4x1xf32>
    %1508 = vector.broadcast %1507 : vector<4x1xf32> to vector<4x256xf32>
    %1509 = arith.addf %1505, %1508 : vector<4x256xf32>
    %cst_91 = arith.constant 0.000000e+00 : f32
    %1510 = vector.broadcast %cst_91 : f32 to vector<4x256xf32>
    %1511 = arith.maximumf %1509, %1510 : vector<4x256xf32>
    %cst_92 = arith.constant 0.000000e+00 : f32
    %1512 = vector.broadcast %cst_92 : f32 to vector<4x256xf32>
    %c17_i32_93 = arith.constant 17 : i32
    %1513 = tpu.dynamic_rotate %1511 by %c17_i32_93 dim 1 : vector<4x256xf32>, i32 -> vector<4x256xf32>
    %cst_94 = arith.constant 0.000000e+00 : f32
    %1514 = vector.shape_cast %15 : vector<1x256xi1> to vector<1x256xi1>
    %1515 = vector.broadcast %1514 : vector<1x256xi1> to vector<4x256xi1>
    %1516 = vector.broadcast %cst_94 : f32 to vector<4x256xf32>
    %1517 = arith.select %1515, %1513, %1516 : vector<4x256xi1>, vector<4x256xf32>
    %1518 = vector.extract_strided_slice %2 {offsets = [5, 0, 0, 0], sizes = [1, 1, 4, 1], strides = [1, 1, 1, 1]} : vector<6x9x4x4xf32> to vector<1x1x4x1xf32>
    %1519 = vector.shape_cast %1518 : vector<1x1x4x1xf32> to vector<4x1xf32>
    %1520 = vector.extract_strided_slice %1517 {offsets = [0, 0], sizes = [1, 256], strides = [1, 1]} : vector<4x256xf32> to vector<1x256xf32>
    %1521 = vector.broadcast %1519 : vector<4x1xf32> to vector<4x256xf32>
    %1522 = vector.broadcast %1520 : vector<1x256xf32> to vector<4x256xf32>
    %1523 = arith.mulf %1521, %1522 : vector<4x256xf32>
    %1524 = arith.addf %1512, %1523 : vector<4x256xf32>
    %1525 = vector.extract_strided_slice %2 {offsets = [5, 0, 0, 1], sizes = [1, 1, 4, 1], strides = [1, 1, 1, 1]} : vector<6x9x4x4xf32> to vector<1x1x4x1xf32>
    %1526 = vector.shape_cast %1525 : vector<1x1x4x1xf32> to vector<4x1xf32>
    %1527 = vector.extract_strided_slice %1517 {offsets = [1, 0], sizes = [1, 256], strides = [1, 1]} : vector<4x256xf32> to vector<1x256xf32>
    %1528 = vector.broadcast %1526 : vector<4x1xf32> to vector<4x256xf32>
    %1529 = vector.broadcast %1527 : vector<1x256xf32> to vector<4x256xf32>
    %1530 = arith.mulf %1528, %1529 : vector<4x256xf32>
    %1531 = arith.addf %1524, %1530 : vector<4x256xf32>
    %1532 = vector.extract_strided_slice %2 {offsets = [5, 0, 0, 2], sizes = [1, 1, 4, 1], strides = [1, 1, 1, 1]} : vector<6x9x4x4xf32> to vector<1x1x4x1xf32>
    %1533 = vector.shape_cast %1532 : vector<1x1x4x1xf32> to vector<4x1xf32>
    %1534 = vector.extract_strided_slice %1517 {offsets = [2, 0], sizes = [1, 256], strides = [1, 1]} : vector<4x256xf32> to vector<1x256xf32>
    %1535 = vector.broadcast %1533 : vector<4x1xf32> to vector<4x256xf32>
    %1536 = vector.broadcast %1534 : vector<1x256xf32> to vector<4x256xf32>
    %1537 = arith.mulf %1535, %1536 : vector<4x256xf32>
    %1538 = arith.addf %1531, %1537 : vector<4x256xf32>
    %1539 = vector.extract_strided_slice %2 {offsets = [5, 0, 0, 3], sizes = [1, 1, 4, 1], strides = [1, 1, 1, 1]} : vector<6x9x4x4xf32> to vector<1x1x4x1xf32>
    %1540 = vector.shape_cast %1539 : vector<1x1x4x1xf32> to vector<4x1xf32>
    %1541 = vector.extract_strided_slice %1517 {offsets = [3, 0], sizes = [1, 256], strides = [1, 1]} : vector<4x256xf32> to vector<1x256xf32>
    %1542 = vector.broadcast %1540 : vector<4x1xf32> to vector<4x256xf32>
    %1543 = vector.broadcast %1541 : vector<1x256xf32> to vector<4x256xf32>
    %1544 = arith.mulf %1542, %1543 : vector<4x256xf32>
    %1545 = arith.addf %1538, %1544 : vector<4x256xf32>
    %c16_i32_95 = arith.constant 16 : i32
    %1546 = tpu.dynamic_rotate %1511 by %c16_i32_95 dim 1 : vector<4x256xf32>, i32 -> vector<4x256xf32>
    %cst_96 = arith.constant 0.000000e+00 : f32
    %1547 = vector.shape_cast %8 : vector<1x256xi1> to vector<1x256xi1>
    %1548 = vector.broadcast %1547 : vector<1x256xi1> to vector<4x256xi1>
    %1549 = vector.broadcast %cst_96 : f32 to vector<4x256xf32>
    %1550 = arith.select %1548, %1546, %1549 : vector<4x256xi1>, vector<4x256xf32>
    %1551 = vector.extract_strided_slice %2 {offsets = [5, 1, 0, 0], sizes = [1, 1, 4, 1], strides = [1, 1, 1, 1]} : vector<6x9x4x4xf32> to vector<1x1x4x1xf32>
    %1552 = vector.shape_cast %1551 : vector<1x1x4x1xf32> to vector<4x1xf32>
    %1553 = vector.extract_strided_slice %1550 {offsets = [0, 0], sizes = [1, 256], strides = [1, 1]} : vector<4x256xf32> to vector<1x256xf32>
    %1554 = vector.broadcast %1552 : vector<4x1xf32> to vector<4x256xf32>
    %1555 = vector.broadcast %1553 : vector<1x256xf32> to vector<4x256xf32>
    %1556 = arith.mulf %1554, %1555 : vector<4x256xf32>
    %1557 = arith.addf %1545, %1556 : vector<4x256xf32>
    %1558 = vector.extract_strided_slice %2 {offsets = [5, 1, 0, 1], sizes = [1, 1, 4, 1], strides = [1, 1, 1, 1]} : vector<6x9x4x4xf32> to vector<1x1x4x1xf32>
    %1559 = vector.shape_cast %1558 : vector<1x1x4x1xf32> to vector<4x1xf32>
    %1560 = vector.extract_strided_slice %1550 {offsets = [1, 0], sizes = [1, 256], strides = [1, 1]} : vector<4x256xf32> to vector<1x256xf32>
    %1561 = vector.broadcast %1559 : vector<4x1xf32> to vector<4x256xf32>
    %1562 = vector.broadcast %1560 : vector<1x256xf32> to vector<4x256xf32>
    %1563 = arith.mulf %1561, %1562 : vector<4x256xf32>
    %1564 = arith.addf %1557, %1563 : vector<4x256xf32>
    %1565 = vector.extract_strided_slice %2 {offsets = [5, 1, 0, 2], sizes = [1, 1, 4, 1], strides = [1, 1, 1, 1]} : vector<6x9x4x4xf32> to vector<1x1x4x1xf32>
    %1566 = vector.shape_cast %1565 : vector<1x1x4x1xf32> to vector<4x1xf32>
    %1567 = vector.extract_strided_slice %1550 {offsets = [2, 0], sizes = [1, 256], strides = [1, 1]} : vector<4x256xf32> to vector<1x256xf32>
    %1568 = vector.broadcast %1566 : vector<4x1xf32> to vector<4x256xf32>
    %1569 = vector.broadcast %1567 : vector<1x256xf32> to vector<4x256xf32>
    %1570 = arith.mulf %1568, %1569 : vector<4x256xf32>
    %1571 = arith.addf %1564, %1570 : vector<4x256xf32>
    %1572 = vector.extract_strided_slice %2 {offsets = [5, 1, 0, 3], sizes = [1, 1, 4, 1], strides = [1, 1, 1, 1]} : vector<6x9x4x4xf32> to vector<1x1x4x1xf32>
    %1573 = vector.shape_cast %1572 : vector<1x1x4x1xf32> to vector<4x1xf32>
    %1574 = vector.extract_strided_slice %1550 {offsets = [3, 0], sizes = [1, 256], strides = [1, 1]} : vector<4x256xf32> to vector<1x256xf32>
    %1575 = vector.broadcast %1573 : vector<4x1xf32> to vector<4x256xf32>
    %1576 = vector.broadcast %1574 : vector<1x256xf32> to vector<4x256xf32>
    %1577 = arith.mulf %1575, %1576 : vector<4x256xf32>
    %1578 = arith.addf %1571, %1577 : vector<4x256xf32>
    %c15_i32_97 = arith.constant 15 : i32
    %1579 = tpu.dynamic_rotate %1511 by %c15_i32_97 dim 1 : vector<4x256xf32>, i32 -> vector<4x256xf32>
    %cst_98 = arith.constant 0.000000e+00 : f32
    %1580 = vector.shape_cast %16 : vector<1x256xi1> to vector<1x256xi1>
    %1581 = vector.broadcast %1580 : vector<1x256xi1> to vector<4x256xi1>
    %1582 = vector.broadcast %cst_98 : f32 to vector<4x256xf32>
    %1583 = arith.select %1581, %1579, %1582 : vector<4x256xi1>, vector<4x256xf32>
    %1584 = vector.extract_strided_slice %2 {offsets = [5, 2, 0, 0], sizes = [1, 1, 4, 1], strides = [1, 1, 1, 1]} : vector<6x9x4x4xf32> to vector<1x1x4x1xf32>
    %1585 = vector.shape_cast %1584 : vector<1x1x4x1xf32> to vector<4x1xf32>
    %1586 = vector.extract_strided_slice %1583 {offsets = [0, 0], sizes = [1, 256], strides = [1, 1]} : vector<4x256xf32> to vector<1x256xf32>
    %1587 = vector.broadcast %1585 : vector<4x1xf32> to vector<4x256xf32>
    %1588 = vector.broadcast %1586 : vector<1x256xf32> to vector<4x256xf32>
    %1589 = arith.mulf %1587, %1588 : vector<4x256xf32>
    %1590 = arith.addf %1578, %1589 : vector<4x256xf32>
    %1591 = vector.extract_strided_slice %2 {offsets = [5, 2, 0, 1], sizes = [1, 1, 4, 1], strides = [1, 1, 1, 1]} : vector<6x9x4x4xf32> to vector<1x1x4x1xf32>
    %1592 = vector.shape_cast %1591 : vector<1x1x4x1xf32> to vector<4x1xf32>
    %1593 = vector.extract_strided_slice %1583 {offsets = [1, 0], sizes = [1, 256], strides = [1, 1]} : vector<4x256xf32> to vector<1x256xf32>
    %1594 = vector.broadcast %1592 : vector<4x1xf32> to vector<4x256xf32>
    %1595 = vector.broadcast %1593 : vector<1x256xf32> to vector<4x256xf32>
    %1596 = arith.mulf %1594, %1595 : vector<4x256xf32>
    %1597 = arith.addf %1590, %1596 : vector<4x256xf32>
    %1598 = vector.extract_strided_slice %2 {offsets = [5, 2, 0, 2], sizes = [1, 1, 4, 1], strides = [1, 1, 1, 1]} : vector<6x9x4x4xf32> to vector<1x1x4x1xf32>
    %1599 = vector.shape_cast %1598 : vector<1x1x4x1xf32> to vector<4x1xf32>
    %1600 = vector.extract_strided_slice %1583 {offsets = [2, 0], sizes = [1, 256], strides = [1, 1]} : vector<4x256xf32> to vector<1x256xf32>
    %1601 = vector.broadcast %1599 : vector<4x1xf32> to vector<4x256xf32>
    %1602 = vector.broadcast %1600 : vector<1x256xf32> to vector<4x256xf32>
    %1603 = arith.mulf %1601, %1602 : vector<4x256xf32>
    %1604 = arith.addf %1597, %1603 : vector<4x256xf32>
    %1605 = vector.extract_strided_slice %2 {offsets = [5, 2, 0, 3], sizes = [1, 1, 4, 1], strides = [1, 1, 1, 1]} : vector<6x9x4x4xf32> to vector<1x1x4x1xf32>
    %1606 = vector.shape_cast %1605 : vector<1x1x4x1xf32> to vector<4x1xf32>
    %1607 = vector.extract_strided_slice %1583 {offsets = [3, 0], sizes = [1, 256], strides = [1, 1]} : vector<4x256xf32> to vector<1x256xf32>
    %1608 = vector.broadcast %1606 : vector<4x1xf32> to vector<4x256xf32>
    %1609 = vector.broadcast %1607 : vector<1x256xf32> to vector<4x256xf32>
    %1610 = arith.mulf %1608, %1609 : vector<4x256xf32>
    %1611 = arith.addf %1604, %1610 : vector<4x256xf32>
    %c1_i32_99 = arith.constant 1 : i32
    %1612 = tpu.dynamic_rotate %1511 by %c1_i32_99 dim 1 : vector<4x256xf32>, i32 -> vector<4x256xf32>
    %cst_100 = arith.constant 0.000000e+00 : f32
    %1613 = vector.shape_cast %12 : vector<1x256xi1> to vector<1x256xi1>
    %1614 = vector.broadcast %1613 : vector<1x256xi1> to vector<4x256xi1>
    %1615 = vector.broadcast %cst_100 : f32 to vector<4x256xf32>
    %1616 = arith.select %1614, %1612, %1615 : vector<4x256xi1>, vector<4x256xf32>
    %1617 = vector.extract_strided_slice %2 {offsets = [5, 3, 0, 0], sizes = [1, 1, 4, 1], strides = [1, 1, 1, 1]} : vector<6x9x4x4xf32> to vector<1x1x4x1xf32>
    %1618 = vector.shape_cast %1617 : vector<1x1x4x1xf32> to vector<4x1xf32>
    %1619 = vector.extract_strided_slice %1616 {offsets = [0, 0], sizes = [1, 256], strides = [1, 1]} : vector<4x256xf32> to vector<1x256xf32>
    %1620 = vector.broadcast %1618 : vector<4x1xf32> to vector<4x256xf32>
    %1621 = vector.broadcast %1619 : vector<1x256xf32> to vector<4x256xf32>
    %1622 = arith.mulf %1620, %1621 : vector<4x256xf32>
    %1623 = arith.addf %1611, %1622 : vector<4x256xf32>
    %1624 = vector.extract_strided_slice %2 {offsets = [5, 3, 0, 1], sizes = [1, 1, 4, 1], strides = [1, 1, 1, 1]} : vector<6x9x4x4xf32> to vector<1x1x4x1xf32>
    %1625 = vector.shape_cast %1624 : vector<1x1x4x1xf32> to vector<4x1xf32>
    %1626 = vector.extract_strided_slice %1616 {offsets = [1, 0], sizes = [1, 256], strides = [1, 1]} : vector<4x256xf32> to vector<1x256xf32>
    %1627 = vector.broadcast %1625 : vector<4x1xf32> to vector<4x256xf32>
    %1628 = vector.broadcast %1626 : vector<1x256xf32> to vector<4x256xf32>
    %1629 = arith.mulf %1627, %1628 : vector<4x256xf32>
    %1630 = arith.addf %1623, %1629 : vector<4x256xf32>
    %1631 = vector.extract_strided_slice %2 {offsets = [5, 3, 0, 2], sizes = [1, 1, 4, 1], strides = [1, 1, 1, 1]} : vector<6x9x4x4xf32> to vector<1x1x4x1xf32>
    %1632 = vector.shape_cast %1631 : vector<1x1x4x1xf32> to vector<4x1xf32>
    %1633 = vector.extract_strided_slice %1616 {offsets = [2, 0], sizes = [1, 256], strides = [1, 1]} : vector<4x256xf32> to vector<1x256xf32>
    %1634 = vector.broadcast %1632 : vector<4x1xf32> to vector<4x256xf32>
    %1635 = vector.broadcast %1633 : vector<1x256xf32> to vector<4x256xf32>
    %1636 = arith.mulf %1634, %1635 : vector<4x256xf32>
    %1637 = arith.addf %1630, %1636 : vector<4x256xf32>
    %1638 = vector.extract_strided_slice %2 {offsets = [5, 3, 0, 3], sizes = [1, 1, 4, 1], strides = [1, 1, 1, 1]} : vector<6x9x4x4xf32> to vector<1x1x4x1xf32>
    %1639 = vector.shape_cast %1638 : vector<1x1x4x1xf32> to vector<4x1xf32>
    %1640 = vector.extract_strided_slice %1616 {offsets = [3, 0], sizes = [1, 256], strides = [1, 1]} : vector<4x256xf32> to vector<1x256xf32>
    %1641 = vector.broadcast %1639 : vector<4x1xf32> to vector<4x256xf32>
    %1642 = vector.broadcast %1640 : vector<1x256xf32> to vector<4x256xf32>
    %1643 = arith.mulf %1641, %1642 : vector<4x256xf32>
    %1644 = arith.addf %1637, %1643 : vector<4x256xf32>
    %1645 = vector.extract_strided_slice %2 {offsets = [5, 4, 0, 0], sizes = [1, 1, 4, 1], strides = [1, 1, 1, 1]} : vector<6x9x4x4xf32> to vector<1x1x4x1xf32>
    %1646 = vector.shape_cast %1645 : vector<1x1x4x1xf32> to vector<4x1xf32>
    %1647 = vector.extract_strided_slice %1511 {offsets = [0, 0], sizes = [1, 256], strides = [1, 1]} : vector<4x256xf32> to vector<1x256xf32>
    %1648 = vector.broadcast %1646 : vector<4x1xf32> to vector<4x256xf32>
    %1649 = vector.broadcast %1647 : vector<1x256xf32> to vector<4x256xf32>
    %1650 = arith.mulf %1648, %1649 : vector<4x256xf32>
    %1651 = arith.addf %1644, %1650 : vector<4x256xf32>
    %1652 = vector.extract_strided_slice %2 {offsets = [5, 4, 0, 1], sizes = [1, 1, 4, 1], strides = [1, 1, 1, 1]} : vector<6x9x4x4xf32> to vector<1x1x4x1xf32>
    %1653 = vector.shape_cast %1652 : vector<1x1x4x1xf32> to vector<4x1xf32>
    %1654 = vector.extract_strided_slice %1511 {offsets = [1, 0], sizes = [1, 256], strides = [1, 1]} : vector<4x256xf32> to vector<1x256xf32>
    %1655 = vector.broadcast %1653 : vector<4x1xf32> to vector<4x256xf32>
    %1656 = vector.broadcast %1654 : vector<1x256xf32> to vector<4x256xf32>
    %1657 = arith.mulf %1655, %1656 : vector<4x256xf32>
    %1658 = arith.addf %1651, %1657 : vector<4x256xf32>
    %1659 = vector.extract_strided_slice %2 {offsets = [5, 4, 0, 2], sizes = [1, 1, 4, 1], strides = [1, 1, 1, 1]} : vector<6x9x4x4xf32> to vector<1x1x4x1xf32>
    %1660 = vector.shape_cast %1659 : vector<1x1x4x1xf32> to vector<4x1xf32>
    %1661 = vector.extract_strided_slice %1511 {offsets = [2, 0], sizes = [1, 256], strides = [1, 1]} : vector<4x256xf32> to vector<1x256xf32>
    %1662 = vector.broadcast %1660 : vector<4x1xf32> to vector<4x256xf32>
    %1663 = vector.broadcast %1661 : vector<1x256xf32> to vector<4x256xf32>
    %1664 = arith.mulf %1662, %1663 : vector<4x256xf32>
    %1665 = arith.addf %1658, %1664 : vector<4x256xf32>
    %1666 = vector.extract_strided_slice %2 {offsets = [5, 4, 0, 3], sizes = [1, 1, 4, 1], strides = [1, 1, 1, 1]} : vector<6x9x4x4xf32> to vector<1x1x4x1xf32>
    %1667 = vector.shape_cast %1666 : vector<1x1x4x1xf32> to vector<4x1xf32>
    %1668 = vector.extract_strided_slice %1511 {offsets = [3, 0], sizes = [1, 256], strides = [1, 1]} : vector<4x256xf32> to vector<1x256xf32>
    %1669 = vector.broadcast %1667 : vector<4x1xf32> to vector<4x256xf32>
    %1670 = vector.broadcast %1668 : vector<1x256xf32> to vector<4x256xf32>
    %1671 = arith.mulf %1669, %1670 : vector<4x256xf32>
    %1672 = arith.addf %1665, %1671 : vector<4x256xf32>
    %c255_i32_101 = arith.constant 255 : i32
    %1673 = tpu.dynamic_rotate %1511 by %c255_i32_101 dim 1 : vector<4x256xf32>, i32 -> vector<4x256xf32>
    %cst_102 = arith.constant 0.000000e+00 : f32
    %1674 = vector.shape_cast %14 : vector<1x256xi1> to vector<1x256xi1>
    %1675 = vector.broadcast %1674 : vector<1x256xi1> to vector<4x256xi1>
    %1676 = vector.broadcast %cst_102 : f32 to vector<4x256xf32>
    %1677 = arith.select %1675, %1673, %1676 : vector<4x256xi1>, vector<4x256xf32>
    %1678 = vector.extract_strided_slice %2 {offsets = [5, 5, 0, 0], sizes = [1, 1, 4, 1], strides = [1, 1, 1, 1]} : vector<6x9x4x4xf32> to vector<1x1x4x1xf32>
    %1679 = vector.shape_cast %1678 : vector<1x1x4x1xf32> to vector<4x1xf32>
    %1680 = vector.extract_strided_slice %1677 {offsets = [0, 0], sizes = [1, 256], strides = [1, 1]} : vector<4x256xf32> to vector<1x256xf32>
    %1681 = vector.broadcast %1679 : vector<4x1xf32> to vector<4x256xf32>
    %1682 = vector.broadcast %1680 : vector<1x256xf32> to vector<4x256xf32>
    %1683 = arith.mulf %1681, %1682 : vector<4x256xf32>
    %1684 = arith.addf %1672, %1683 : vector<4x256xf32>
    %1685 = vector.extract_strided_slice %2 {offsets = [5, 5, 0, 1], sizes = [1, 1, 4, 1], strides = [1, 1, 1, 1]} : vector<6x9x4x4xf32> to vector<1x1x4x1xf32>
    %1686 = vector.shape_cast %1685 : vector<1x1x4x1xf32> to vector<4x1xf32>
    %1687 = vector.extract_strided_slice %1677 {offsets = [1, 0], sizes = [1, 256], strides = [1, 1]} : vector<4x256xf32> to vector<1x256xf32>
    %1688 = vector.broadcast %1686 : vector<4x1xf32> to vector<4x256xf32>
    %1689 = vector.broadcast %1687 : vector<1x256xf32> to vector<4x256xf32>
    %1690 = arith.mulf %1688, %1689 : vector<4x256xf32>
    %1691 = arith.addf %1684, %1690 : vector<4x256xf32>
    %1692 = vector.extract_strided_slice %2 {offsets = [5, 5, 0, 2], sizes = [1, 1, 4, 1], strides = [1, 1, 1, 1]} : vector<6x9x4x4xf32> to vector<1x1x4x1xf32>
    %1693 = vector.shape_cast %1692 : vector<1x1x4x1xf32> to vector<4x1xf32>
    %1694 = vector.extract_strided_slice %1677 {offsets = [2, 0], sizes = [1, 256], strides = [1, 1]} : vector<4x256xf32> to vector<1x256xf32>
    %1695 = vector.broadcast %1693 : vector<4x1xf32> to vector<4x256xf32>
    %1696 = vector.broadcast %1694 : vector<1x256xf32> to vector<4x256xf32>
    %1697 = arith.mulf %1695, %1696 : vector<4x256xf32>
    %1698 = arith.addf %1691, %1697 : vector<4x256xf32>
    %1699 = vector.extract_strided_slice %2 {offsets = [5, 5, 0, 3], sizes = [1, 1, 4, 1], strides = [1, 1, 1, 1]} : vector<6x9x4x4xf32> to vector<1x1x4x1xf32>
    %1700 = vector.shape_cast %1699 : vector<1x1x4x1xf32> to vector<4x1xf32>
    %1701 = vector.extract_strided_slice %1677 {offsets = [3, 0], sizes = [1, 256], strides = [1, 1]} : vector<4x256xf32> to vector<1x256xf32>
    %1702 = vector.broadcast %1700 : vector<4x1xf32> to vector<4x256xf32>
    %1703 = vector.broadcast %1701 : vector<1x256xf32> to vector<4x256xf32>
    %1704 = arith.mulf %1702, %1703 : vector<4x256xf32>
    %1705 = arith.addf %1698, %1704 : vector<4x256xf32>
    %c241_i32_103 = arith.constant 241 : i32
    %1706 = tpu.dynamic_rotate %1511 by %c241_i32_103 dim 1 : vector<4x256xf32>, i32 -> vector<4x256xf32>
    %cst_104 = arith.constant 0.000000e+00 : f32
    %1707 = vector.shape_cast %17 : vector<1x256xi1> to vector<1x256xi1>
    %1708 = vector.broadcast %1707 : vector<1x256xi1> to vector<4x256xi1>
    %1709 = vector.broadcast %cst_104 : f32 to vector<4x256xf32>
    %1710 = arith.select %1708, %1706, %1709 : vector<4x256xi1>, vector<4x256xf32>
    %1711 = vector.extract_strided_slice %2 {offsets = [5, 6, 0, 0], sizes = [1, 1, 4, 1], strides = [1, 1, 1, 1]} : vector<6x9x4x4xf32> to vector<1x1x4x1xf32>
    %1712 = vector.shape_cast %1711 : vector<1x1x4x1xf32> to vector<4x1xf32>
    %1713 = vector.extract_strided_slice %1710 {offsets = [0, 0], sizes = [1, 256], strides = [1, 1]} : vector<4x256xf32> to vector<1x256xf32>
    %1714 = vector.broadcast %1712 : vector<4x1xf32> to vector<4x256xf32>
    %1715 = vector.broadcast %1713 : vector<1x256xf32> to vector<4x256xf32>
    %1716 = arith.mulf %1714, %1715 : vector<4x256xf32>
    %1717 = arith.addf %1705, %1716 : vector<4x256xf32>
    %1718 = vector.extract_strided_slice %2 {offsets = [5, 6, 0, 1], sizes = [1, 1, 4, 1], strides = [1, 1, 1, 1]} : vector<6x9x4x4xf32> to vector<1x1x4x1xf32>
    %1719 = vector.shape_cast %1718 : vector<1x1x4x1xf32> to vector<4x1xf32>
    %1720 = vector.extract_strided_slice %1710 {offsets = [1, 0], sizes = [1, 256], strides = [1, 1]} : vector<4x256xf32> to vector<1x256xf32>
    %1721 = vector.broadcast %1719 : vector<4x1xf32> to vector<4x256xf32>
    %1722 = vector.broadcast %1720 : vector<1x256xf32> to vector<4x256xf32>
    %1723 = arith.mulf %1721, %1722 : vector<4x256xf32>
    %1724 = arith.addf %1717, %1723 : vector<4x256xf32>
    %1725 = vector.extract_strided_slice %2 {offsets = [5, 6, 0, 2], sizes = [1, 1, 4, 1], strides = [1, 1, 1, 1]} : vector<6x9x4x4xf32> to vector<1x1x4x1xf32>
    %1726 = vector.shape_cast %1725 : vector<1x1x4x1xf32> to vector<4x1xf32>
    %1727 = vector.extract_strided_slice %1710 {offsets = [2, 0], sizes = [1, 256], strides = [1, 1]} : vector<4x256xf32> to vector<1x256xf32>
    %1728 = vector.broadcast %1726 : vector<4x1xf32> to vector<4x256xf32>
    %1729 = vector.broadcast %1727 : vector<1x256xf32> to vector<4x256xf32>
    %1730 = arith.mulf %1728, %1729 : vector<4x256xf32>
    %1731 = arith.addf %1724, %1730 : vector<4x256xf32>
    %1732 = vector.extract_strided_slice %2 {offsets = [5, 6, 0, 3], sizes = [1, 1, 4, 1], strides = [1, 1, 1, 1]} : vector<6x9x4x4xf32> to vector<1x1x4x1xf32>
    %1733 = vector.shape_cast %1732 : vector<1x1x4x1xf32> to vector<4x1xf32>
    %1734 = vector.extract_strided_slice %1710 {offsets = [3, 0], sizes = [1, 256], strides = [1, 1]} : vector<4x256xf32> to vector<1x256xf32>
    %1735 = vector.broadcast %1733 : vector<4x1xf32> to vector<4x256xf32>
    %1736 = vector.broadcast %1734 : vector<1x256xf32> to vector<4x256xf32>
    %1737 = arith.mulf %1735, %1736 : vector<4x256xf32>
    %1738 = arith.addf %1731, %1737 : vector<4x256xf32>
    %c240_i32_105 = arith.constant 240 : i32
    %1739 = tpu.dynamic_rotate %1511 by %c240_i32_105 dim 1 : vector<4x256xf32>, i32 -> vector<4x256xf32>
    %cst_106 = arith.constant 0.000000e+00 : f32
    %1740 = vector.shape_cast %10 : vector<1x256xi1> to vector<1x256xi1>
    %1741 = vector.broadcast %1740 : vector<1x256xi1> to vector<4x256xi1>
    %1742 = vector.broadcast %cst_106 : f32 to vector<4x256xf32>
    %1743 = arith.select %1741, %1739, %1742 : vector<4x256xi1>, vector<4x256xf32>
    %1744 = vector.extract_strided_slice %2 {offsets = [5, 7, 0, 0], sizes = [1, 1, 4, 1], strides = [1, 1, 1, 1]} : vector<6x9x4x4xf32> to vector<1x1x4x1xf32>
    %1745 = vector.shape_cast %1744 : vector<1x1x4x1xf32> to vector<4x1xf32>
    %1746 = vector.extract_strided_slice %1743 {offsets = [0, 0], sizes = [1, 256], strides = [1, 1]} : vector<4x256xf32> to vector<1x256xf32>
    %1747 = vector.broadcast %1745 : vector<4x1xf32> to vector<4x256xf32>
    %1748 = vector.broadcast %1746 : vector<1x256xf32> to vector<4x256xf32>
    %1749 = arith.mulf %1747, %1748 : vector<4x256xf32>
    %1750 = arith.addf %1738, %1749 : vector<4x256xf32>
    %1751 = vector.extract_strided_slice %2 {offsets = [5, 7, 0, 1], sizes = [1, 1, 4, 1], strides = [1, 1, 1, 1]} : vector<6x9x4x4xf32> to vector<1x1x4x1xf32>
    %1752 = vector.shape_cast %1751 : vector<1x1x4x1xf32> to vector<4x1xf32>
    %1753 = vector.extract_strided_slice %1743 {offsets = [1, 0], sizes = [1, 256], strides = [1, 1]} : vector<4x256xf32> to vector<1x256xf32>
    %1754 = vector.broadcast %1752 : vector<4x1xf32> to vector<4x256xf32>
    %1755 = vector.broadcast %1753 : vector<1x256xf32> to vector<4x256xf32>
    %1756 = arith.mulf %1754, %1755 : vector<4x256xf32>
    %1757 = arith.addf %1750, %1756 : vector<4x256xf32>
    %1758 = vector.extract_strided_slice %2 {offsets = [5, 7, 0, 2], sizes = [1, 1, 4, 1], strides = [1, 1, 1, 1]} : vector<6x9x4x4xf32> to vector<1x1x4x1xf32>
    %1759 = vector.shape_cast %1758 : vector<1x1x4x1xf32> to vector<4x1xf32>
    %1760 = vector.extract_strided_slice %1743 {offsets = [2, 0], sizes = [1, 256], strides = [1, 1]} : vector<4x256xf32> to vector<1x256xf32>
    %1761 = vector.broadcast %1759 : vector<4x1xf32> to vector<4x256xf32>
    %1762 = vector.broadcast %1760 : vector<1x256xf32> to vector<4x256xf32>
    %1763 = arith.mulf %1761, %1762 : vector<4x256xf32>
    %1764 = arith.addf %1757, %1763 : vector<4x256xf32>
    %1765 = vector.extract_strided_slice %2 {offsets = [5, 7, 0, 3], sizes = [1, 1, 4, 1], strides = [1, 1, 1, 1]} : vector<6x9x4x4xf32> to vector<1x1x4x1xf32>
    %1766 = vector.shape_cast %1765 : vector<1x1x4x1xf32> to vector<4x1xf32>
    %1767 = vector.extract_strided_slice %1743 {offsets = [3, 0], sizes = [1, 256], strides = [1, 1]} : vector<4x256xf32> to vector<1x256xf32>
    %1768 = vector.broadcast %1766 : vector<4x1xf32> to vector<4x256xf32>
    %1769 = vector.broadcast %1767 : vector<1x256xf32> to vector<4x256xf32>
    %1770 = arith.mulf %1768, %1769 : vector<4x256xf32>
    %1771 = arith.addf %1764, %1770 : vector<4x256xf32>
    %c239_i32_107 = arith.constant 239 : i32
    %1772 = tpu.dynamic_rotate %1511 by %c239_i32_107 dim 1 : vector<4x256xf32>, i32 -> vector<4x256xf32>
    %cst_108 = arith.constant 0.000000e+00 : f32
    %1773 = vector.shape_cast %18 : vector<1x256xi1> to vector<1x256xi1>
    %1774 = vector.broadcast %1773 : vector<1x256xi1> to vector<4x256xi1>
    %1775 = vector.broadcast %cst_108 : f32 to vector<4x256xf32>
    %1776 = arith.select %1774, %1772, %1775 : vector<4x256xi1>, vector<4x256xf32>
    %1777 = vector.extract_strided_slice %2 {offsets = [5, 8, 0, 0], sizes = [1, 1, 4, 1], strides = [1, 1, 1, 1]} : vector<6x9x4x4xf32> to vector<1x1x4x1xf32>
    %1778 = vector.shape_cast %1777 : vector<1x1x4x1xf32> to vector<4x1xf32>
    %1779 = vector.extract_strided_slice %1776 {offsets = [0, 0], sizes = [1, 256], strides = [1, 1]} : vector<4x256xf32> to vector<1x256xf32>
    %1780 = vector.broadcast %1778 : vector<4x1xf32> to vector<4x256xf32>
    %1781 = vector.broadcast %1779 : vector<1x256xf32> to vector<4x256xf32>
    %1782 = arith.mulf %1780, %1781 : vector<4x256xf32>
    %1783 = arith.addf %1771, %1782 : vector<4x256xf32>
    %1784 = vector.extract_strided_slice %2 {offsets = [5, 8, 0, 1], sizes = [1, 1, 4, 1], strides = [1, 1, 1, 1]} : vector<6x9x4x4xf32> to vector<1x1x4x1xf32>
    %1785 = vector.shape_cast %1784 : vector<1x1x4x1xf32> to vector<4x1xf32>
    %1786 = vector.extract_strided_slice %1776 {offsets = [1, 0], sizes = [1, 256], strides = [1, 1]} : vector<4x256xf32> to vector<1x256xf32>
    %1787 = vector.broadcast %1785 : vector<4x1xf32> to vector<4x256xf32>
    %1788 = vector.broadcast %1786 : vector<1x256xf32> to vector<4x256xf32>
    %1789 = arith.mulf %1787, %1788 : vector<4x256xf32>
    %1790 = arith.addf %1783, %1789 : vector<4x256xf32>
    %1791 = vector.extract_strided_slice %2 {offsets = [5, 8, 0, 2], sizes = [1, 1, 4, 1], strides = [1, 1, 1, 1]} : vector<6x9x4x4xf32> to vector<1x1x4x1xf32>
    %1792 = vector.shape_cast %1791 : vector<1x1x4x1xf32> to vector<4x1xf32>
    %1793 = vector.extract_strided_slice %1776 {offsets = [2, 0], sizes = [1, 256], strides = [1, 1]} : vector<4x256xf32> to vector<1x256xf32>
    %1794 = vector.broadcast %1792 : vector<4x1xf32> to vector<4x256xf32>
    %1795 = vector.broadcast %1793 : vector<1x256xf32> to vector<4x256xf32>
    %1796 = arith.mulf %1794, %1795 : vector<4x256xf32>
    %1797 = arith.addf %1790, %1796 : vector<4x256xf32>
    %1798 = vector.extract_strided_slice %2 {offsets = [5, 8, 0, 3], sizes = [1, 1, 4, 1], strides = [1, 1, 1, 1]} : vector<6x9x4x4xf32> to vector<1x1x4x1xf32>
    %1799 = vector.shape_cast %1798 : vector<1x1x4x1xf32> to vector<4x1xf32>
    %1800 = vector.extract_strided_slice %1776 {offsets = [3, 0], sizes = [1, 256], strides = [1, 1]} : vector<4x256xf32> to vector<1x256xf32>
    %1801 = vector.broadcast %1799 : vector<4x1xf32> to vector<4x256xf32>
    %1802 = vector.broadcast %1800 : vector<1x256xf32> to vector<4x256xf32>
    %1803 = arith.mulf %1801, %1802 : vector<4x256xf32>
    %1804 = arith.addf %1797, %1803 : vector<4x256xf32>
    %1805 = vector.extract_strided_slice %3 {offsets = [5, 0, 0], sizes = [1, 4, 1], strides = [1, 1, 1]} : vector<6x4x1xf32> to vector<1x4x1xf32>
    %1806 = vector.shape_cast %1805 : vector<1x4x1xf32> to vector<4x1xf32>
    %1807 = vector.broadcast %1806 : vector<4x1xf32> to vector<4x256xf32>
    %1808 = arith.addf %1804, %1807 : vector<4x256xf32>
    %1809 = arith.addf %1212, %1808 : vector<4x256xf32>
    %c0_109 = arith.constant 0 : index
    %c0_110 = arith.constant 0 : index
    %c0_111 = arith.constant 0 : index
    %1810 = vector.load %arg4[%c0_109, %c0_110, %c0_111] : memref<1x4x256xf32, #tpu.memory_space<vmem>>, vector<1x4x256xf32>
    %1811 = vector.shape_cast %1810 : vector<1x4x256xf32> to vector<4x256xf32>
    %1812 = vector.shape_cast %1809 : vector<4x256xf32> to vector<1x4x256xf32>
    tpu.vector_store %arg4[%c0_109, %c0_110, %c0_111], %1812 {strides = array<i32>} : memref<1x4x256xf32, #tpu.memory_space<vmem>>, vector<1x4x256xf32>,
    return
  }
  func.func @transform_0(%arg0: i32) -> (i32, i32, i32) {
    %c0_i32 = arith.constant 0 : i32
    %c0_i32_0 = arith.constant 0 : i32
    %c0_i32_1 = arith.constant 0 : i32
    return %arg0, %c0_i32, %c0_i32_0 : i32, i32, i32
  }
  func.func @transform_1(%arg0: i32) -> (i32, i32, i32, i32) {
    %c0_i32 = arith.constant 0 : i32
    %c0_i32_0 = arith.constant 0 : i32
    %c0_i32_1 = arith.constant 0 : i32
    %c0_i32_2 = arith.constant 0 : i32
    %c0_i32_3 = arith.constant 0 : i32
    return %c0_i32, %c0_i32_0, %c0_i32_1, %c0_i32_2 : i32, i32, i32, i32
  }
  func.func @transform_2(%arg0: i32) -> (i32, i32, i32) {
    %c0_i32 = arith.constant 0 : i32
    %c0_i32_0 = arith.constant 0 : i32
    %c0_i32_1 = arith.constant 0 : i32
    %c0_i32_2 = arith.constant 0 : i32
    return %c0_i32, %c0_i32_0, %c0_i32_1 : i32, i32, i32
  }
  func.func @transform_3(%arg0: i32) -> (i32, i32, i32) {
    %c0_i32 = arith.constant 0 : i32
    %c0_i32_0 = arith.constant 0 : i32
    %c0_i32_1 = arith.constant 0 : i32
    return %arg0, %c0_i32, %c0_i32_0 : i32, i32, i32
  }
}

</mosaic_0001>

<bundles_post_ra>
// kernel: motion_refinement_network.1
= control target key start
LH: loop header
LB: loop body
LE: loop exit
PB: predicated region body
PF: predicated region fallthrough
CT: control target
= control target key end

     0   :  { %s3451_s12 = smov 0   ;;  %s5380_s0 = inlined_call_operand.vmem [shape: f32[2,4,256], index: 0, kind: input, shape index: {}]   ;;  %s5381_s1 = inlined_call_operand.vmem [shape: f32[6,9,4,4], index: 1, kind: input, shape index: {}]   ;;  %s5382_s2 = inlined_call_operand.vmem [shape: f32[6,4,1], index: 2, kind: input, shape index: {}]   ;;  %s5383_s3 = inlined_call_operand.vmem [shape: f32[2,4,256], index: 3, kind: output, shape index: {}]  }
   0x1 LB: > { %s3185_s13 = sadd.s32 4294967295, %s3417_s12   ;;  %p3189_p0 = scmp.ge.s32.totalorder %s3417_s12, 1  ;;  %s3417_s12 = sphi %s3451_s12, %s13_s12  }
   0x2   : > { %p137_p1 = scmp.lt.s32.totalorder %s3417_s12, 3 }
   0x4   : > { %p138_p2 = pnand %p3189_p0, %p137_p1 }
   0x6   : > { %141 = sbr.rel (%p138_p2) target bundleno = 1441 (0x5a1), region = 32 }
   0xb   : > { %v172_v0 = vld [vmem:[%s5381_s1] sm:$0xf]  ;;  %v5397_v1 = vmov 2   ;;  %v5388_v2 = vmov 0   ;;  %p161_p3 = scmp.lt.s32.totalorder %s3185_s13, 1  ;;  %v5392_v3 = vmov 3   ;;  %v232_v37 = vlaneseq }
   0xc   : > { %3220 = vset.pattern.permute.xlu2 %v5397_v1  ;;  %3218 = vset.pattern.permute.xlu1 %v5388_v2  ;;  %v5390_v5 = vmov 1   ;;  %s3423_s20 = smov 17   ;;  %v173_v8 = vld [vmem:[%s5381_s1 + $0x4] sm:$0xf]  ;;  %s3424_s23 = smov 16   ;;  %v5411_v54 = vmov 0 }
   0xd   : > { %294 = vperm.xlu2 %3220, %v172_v0   ;;  %274 = vperm.xlu1 %3218, %v172_v0   ;;  %s5479_s13 = smov (!%p161_p3, %s3185_s13), 1  ;;  %s3425_s24 = smov 15   ;;  %v174_v15 = vld [vmem:[%s5381_s1 + $0x8] sm:$0xf]  ;;  %v176_v16 = vld [vmem:[%s5381_s1 + $0x10] sm:$0xf] }
   0xe   : > { %3234 = vset.pattern.permute.xlu0 %v5392_v3  ;;  %s3196_s16 = sshll.u32 %s5479_s13, 3  ;;  %s3426_s25 = smov 1   ;;  %v175_v17 = vld [vmem:[%s5381_s1 + $0xc] sm:$0xf]  ;;  %v178_v20 = vld [vmem:[%s5381_s1 + $0x18] sm:$0xf] }
   0xf   : > { %s165_s19 = scalar_lea.vmem %s5380_s0, %s3196_s16  ;;  %v179_v25 = vld [vmem:[%s5381_s1 + $0x1c] sm:$0xf]  ;;  %s3427_s9 = smov 127   ;;  %v177_v26 = vld [vmem:[%s5381_s1 + $0x14] sm:$0xf]  ;;  %v3563_v41 = vand.u32 127, %v232_v37 }
  0x10   : > { %v3473_v4 = vld [vmem:[%s165_s19] sm:$0xff]  ;;  %s3428_s14 = smov 113   ;;  %s3429_s15 = smov 111  }
  0x11   : > { %254 = vst [vmem:[#allocation1] ss:$2 sm:$0xff] %v3473_v4  ;;  %v3546_v31 = vld [vmem:[%s5381_s1 + $0x20] sm:$0xf]  ;;  %s3430_s19 = smov 112   ;;  %v3567_v43 = vadd.s32 128, %v3563_v41  ;;  %s170_s21 = scalar_lea.vmem %s5383_s3, %s3196_s16 }
  0x12   : > { %v235_v46 = vand.u32 15, %v3563_v41  ;;  %vm263_vm0 = vcmp.lt.s32.totalorder %v3563_v41, 17  ;;  %vm237_vm1 = vcmp.ge.s32.totalorder %v3563_v41, 16  ;;  %vm322_vm5 = vcmp.lt.s32.totalorder %v3563_v41, 16 }
  0x13   : > { %5406 = vst [vmem:[#allocation2_spill] sm:$0xff] %v3567_v43  ;;  %v236_v47 = vand.u32 15, %v3567_v43  ;;  %vm381_vm7 = vcmp.lt.s32.totalorder %v3563_v41, 15  ;;  %vm5387_vm10 = vcmp.lt.s32.totalorder %v3563_v41, 1  ;;  %vm5386_vm11 = vcmp.lt.s32.totalorder %v3563_v41, 127 }
  0x14   : > { %vm3580_vm2 = vcmp.ge.s32.totalorder %v235_v46, 1  ;;  %vm3643_vm6 = vcmp.le.s32.totalorder %v235_v46, 14  ;;  %vm240_vm12 = vcmp.lt.s32.totalorder %v3567_v43, 240  ;;  %vm5384_vm13 = vcmp.lt.s32.totalorder %v3563_v41, 113 }
  0x15   : > { %3221 = vset.pattern.permute.xlu2 %v5392_v3  ;;  %3219 = vset.pattern.permute.xlu1 %v5390_v5  ;;  %vm3586_vm3 = vcmp.ge.s32.totalorder %v236_v47, 1  ;;  %vm3600_vm4 = vmand %vm237_vm1, %vm3580_vm2  ;;  %vm3654_vm8 = vcmp.le.s32.totalorder %v236_v47, 14  ;;  %vm5385_vm15 = vcmp.lt.s32.totalorder %v3563_v41, 112 }
  0x16   : > { %304 = vperm.xlu2 %3221, %v172_v0   ;;  %284 = vperm.xlu1 %3219, %v172_v0   ;;  %v5412_v54 = vsel %vm3600_vm4, 4294967295, %v5411_v54  ;;  %vm3662_vm9 = vmand %vm237_vm1, %vm3643_vm6 }
  0x17   : > { %5413 = vst [vmem:[#allocation3_spill] sm:$0xff] %v5412_v54  ;;  %vm3774_vm14 = vmand %vm240_vm12, %vm3586_vm3 }
  0x18   : > { %v255_v6 = vld.sshfl [vmem:[#allocation1] sm:$0xff pattern:$0x75316420]  ;;  %v256_v7 = vld.sshfl [vmem:[#allocation1 + $0x8] sm:$0xff pattern:$0x75316420] }
  0x19   : > { %259 = vrot.lane.b32.xlu0 %v255_v6, %s3423_s20  ;;  %313 = vst [vmem:[#allocation1] ss:$2 sm:$0xff] %v3473_v4 }
  0x1e   : > { %3222 = vset.pattern.permute.xlu2 %v5388_v2  ;;  %3223 = vset.pattern.permute.xlu1 %v5397_v1 }
  0x1f   : > { %333 = vperm.xlu2 %3222, %v173_v8  }
  0x20   : > { %v315_v9 = vld.sshfl [vmem:[#allocation1 + $0x8] sm:$0xff pattern:$0x75316420]  ;;  %v314_v10 = vld.sshfl [vmem:[#allocation1] sm:$0xff pattern:$0x75316420] }
  0x21   : > { %261 = vrot.lane.b32.xlu0 %v256_v7, %s3423_s20  ;;  %320 = vrot.lane.b32.xlu1 %v315_v9, %s3424_s23  ;;  %372 = vst [vmem:[#allocation1] ss:$2 sm:$0xff] %v3473_v4 }
  0x27   : > { %3224 = vset.pattern.permute.xlu2 %v5392_v3 }
  0x28   : > { %363 = vperm.xlu2 %3224, %v173_v8   ;;  %v374_v11 = vld.sshfl [vmem:[#allocation1 + $0x8] sm:$0xff pattern:$0x75316420]  ;;  %v373_v12 = vld.sshfl [vmem:[#allocation1] sm:$0xff pattern:$0x75316420] }
  0x29   : > { %353 = vperm.xlu1 %3223, %v173_v8   ;;  %318 = vrot.lane.b32.xlu0 %v314_v10, %s3424_s23  ;;  %431 = vst [vmem:[#allocation1] ss:$2 sm:$0xff] %v3473_v4 }
  0x30   : > { %379 = vrot.lane.b32.xlu2 %v374_v11, %s3425_s24  ;;  %v433_v13 = vld.sshfl [vmem:[#allocation1 + $0x8] sm:$0xff pattern:$0x75316420]  ;;  %v432_v14 = vld.sshfl [vmem:[#allocation1] sm:$0xff pattern:$0x75316420] }
  0x31   : > { %3226 = vset.pattern.permute.xlu2 %v5397_v1  ;;  %377 = vrot.lane.b32.xlu1 %v373_v12, %s3425_s24  ;;  %547 = vst [vmem:[#allocation1] ss:$2 sm:$0xff] %v3473_v4 }
  0x32   : > { %438 = vrot.lane.b32.xlu0 %v433_v13, %s3426_s25  ;;  %3225 = vset.pattern.permute.xlu1 %v5390_v5 }
  0x38   : > { %412 = vperm.xlu2 %3226, %v174_v15   ;;  %v549_v18 = vld.sshfl [vmem:[#allocation1 + $0x8] sm:$0xff pattern:$0x75316420]  ;;  %v548_v19 = vld.sshfl [vmem:[#allocation1] sm:$0xff pattern:$0x75316420] }
  0x39   : > { %402 = vperm.xlu1 %3225, %v174_v15   ;;  %606 = vst [vmem:[#allocation1] ss:$2 sm:$0xff] %v3473_v4 }
  0x3a   : > { %534 = vperm.xlu0 %3234, %v176_v16  }
  0x40   : > { %436 = vrot.lane.b32.xlu2 %v432_v14, %s3426_s25  ;;  %v607_v21 = vld.sshfl [vmem:[#allocation1] sm:$0xff pattern:$0x75316420]  ;;  %v608_v22 = vld.sshfl [vmem:[#allocation1 + $0x8] sm:$0xff pattern:$0x75316420] }
  0x41   : > { %3229 = vset.pattern.permute.xlu2 %v5390_v5  ;;  %3227 = vset.pattern.permute.xlu1 %v5392_v3  ;;  %665 = vst [vmem:[#allocation1] ss:$2 sm:$0xff] %v3473_v4 }
  0x42   : > { %3235 = vset.pattern.permute.xlu0 %v5390_v5  ;;  %422 = vperm.xlu1 %3227, %v174_v15  }
  0x43   : > { %343 = vperm.xlu0 %3235, %v173_v8   ;;  %v226_v8 = vld [vmem:[%s5382_s2] sm:$0xf] }
  0x48   : > { %461 = vperm.xlu2 %3229, %v175_v17   ;;  %v666_v23 = vld.sshfl [vmem:[#allocation1] sm:$0xff pattern:$0x75316420]  ;;  %v667_v24 = vld.sshfl [vmem:[#allocation1 + $0x8] sm:$0xff pattern:$0x75316420] }
  0x49   : > { %724 = vst [vmem:[#allocation1] ss:$2 sm:$0xff] %v3473_v4 }
  0x4a   : > { %3228 = vset.pattern.permute.xlu1 %v5388_v2 }
  0x4b   : > { %636 = vperm.xlu0 %3235, %v178_v20   ;;  %451 = vperm.xlu1 %3228, %v175_v17  }
  0x50   : > { %3231 = vset.pattern.permute.xlu2 %v5388_v2  ;;  %v726_v29 = vld.sshfl [vmem:[#allocation1 + $0x8] sm:$0xff pattern:$0x75316420]  ;;  %v725_v42 = vld.sshfl [vmem:[#allocation1] sm:$0xff pattern:$0x75316420] }
  0x51   : > { %492 = vperm.xlu2 %3231, %v176_v16  }
  0x53   : > { %3240 = vset.pattern.permute.xlu0 %v5388_v2  ;;  %3230 = vset.pattern.permute.xlu1 %v5392_v3 }
  0x54   : > { %392 = vperm.xlu0 %3240, %v174_v15   ;;  %481 = vperm.xlu1 %3230, %v175_v17  }
  0x59   : > { %3233 = vset.pattern.permute.xlu2 %v5397_v1 }
  0x5a   : > { %520 = vperm.xlu2 %3233, %v176_v16  }
  0x5c   : > { %685 = vperm.xlu0 %3240, %v179_v25   ;;  %3232 = vset.pattern.permute.xlu1 %v5390_v5 }
  0x5d   : > { %506 = vperm.xlu1 %3232, %v176_v16  }
  0x62   : > { %554 = vrot.lane.b32.xlu2 %v549_v18, %s3427_s9 }
  0x63   : > { %3237 = vset.pattern.permute.xlu2 %v5390_v5 }
  0x64   : > { %3243 = vset.pattern.permute.xlu0 %v5397_v1 }
  0x65   : > { %471 = vperm.xlu0 %3243, %v175_v17   ;;  %552 = vrot.lane.b32.xlu1 %v548_v19, %s3427_s9 }
  0x66   : > { %3236 = vset.pattern.permute.xlu1 %v5388_v2 }
  0x67   : > { %v3532_v27 = vpop.permute.xlu2 %294 }
  0x6a   : > { %577 = vperm.xlu2 %3237, %v177_v26  }
  0x6d   : > { %587 = vperm.xlu0 %3243, %v177_v26   ;;  %567 = vperm.xlu1 %3236, %v177_v26  }
  0x70   : > { %v3535_v28 = vpop.permute.xlu2 %304 }
  0x72   : > { %611 = vrot.lane.b32.xlu2 %v607_v21, %s3428_s14 }
  0x73   : > { %3239 = vset.pattern.permute.xlu2 %v5388_v2 }
  0x75   : > { %731 = vrot.lane.b32.xlu0 %v726_v29, %s3429_s15  ;;  %3238 = vset.pattern.permute.xlu1 %v5392_v3 }
  0x76   : > { %597 = vperm.xlu1 %3238, %v177_v26  }
  0x79   : > { %v3541_v30 = vpop.permute.xlu2 %333 }
  0x7a   : > { %626 = vperm.xlu2 %3239, %v178_v20  }
  0x7d   : > { %764 = vperm.xlu0 %3243, %v3546_v31  }
  0x7e   : > { %613 = vrot.lane.b32.xlu1 %v608_v22, %s3428_s14 }
  0x7f   : > { %v275_v32 = vpop.permute.xlu1 %274  ;;  %3241 = vset.pattern.permute.xlu1 %v5397_v1 }
  0x82   : > { %3242 = vset.pattern.permute.xlu2 %v5392_v3  ;;  %v3552_v33 = vpop.permute.xlu2 %363 }
  0x83   : > { %656 = vperm.xlu2 %3242, %v178_v20  }
  0x85   : > { %3258 = vset.pattern.permute.xlu0 %v5390_v5 }
  0x86   : > { %646 = vperm.xlu1 %3241, %v178_v20  }
  0x88   : > { %v285_v34 = vpop.permute.xlu1 %284 }
  0x8a   : > { %v3557_v36 = vpop.permute.xlu2 %379 }
  0x8b   : > { %672 = vrot.lane.b32.xlu2 %v667_v24, %s3430_s19  ;;  %v260_v35 = vpop.permute.xlu0 %259 }
  0x8c   : > { %3245 = vset.pattern.permute.xlu2 %v5397_v1 }
  0x8e   : > { %670 = vrot.lane.b32.xlu1 %v666_v23, %s3430_s19 }
  0x8f   : > { %3244 = vset.pattern.permute.xlu1 %v5390_v5 }
  0x92   : > { %v3561_v40 = vpop.permute.xlu2 %412 }
  0x93   : > { %705 = vperm.xlu2 %3245, %v179_v25   ;;  %v262_v38 = vpop.permute.xlu0 %261  ;;  %v321_v39 = vpop.permute.xlu1 %320 }
  0x94   : > { %v264_v51 = vsel %vm263_vm0, %v260_v35, %v262_v38  ;;  %v265_v55 = vsel %vm263_vm0, %v262_v38, %v260_v35 }
  0x95   : > { %v271_v56 = vsel %vm3586_vm3, %v264_v51, 0.0  ;;  %v270_v57 = vsel %vm3600_vm4, %v265_v55, 0.0 }
  0x96   : > { %695 = vperm.xlu1 %3244, %v179_v25   ;;  %v278_v58 = vperm.slane %v271_v56, 0  ;;  %v288_v59 = vperm.slane %v271_v56, 1  ;;  %v277_v61 = vperm.slane %v270_v57, 0  ;;  %v287_v62 = vperm.slane %v270_v57, 1 }
  0x97   : > { %v298_v9 = vperm.slane %v271_v56, 2  ;;  %v297_v14 = vperm.slane %v270_v57, 2  ;;  %v308_v16 = vperm.slane %v271_v56, 3  ;;  %v307_v21 = vperm.slane %v270_v57, 3 }
  0x98   : > { %v280_v6 = vmul.f32 %v278_v58, %v275_v32  ;;  %v290_v7 = vmul.f32 %v288_v59, %v285_v34  ;;  %v279_v10 = vmul.f32 %v277_v61, %v275_v32  ;;  %v289_v11 = vmul.f32 %v287_v62, %v285_v34 }
  0x99   : > { %v300_v15 = vmul.f32 %v298_v9, %v3532_v27  ;;  %v309_v34 = vmul.f32 %v307_v21, %v3535_v28 }
  0x9a   : > { %v3576_v48 = vpop.permute.xlu2 %436  ;;  %v292_v13 = vadd.f32 %v290_v7, %v280_v6  ;;  %v291_v19 = vadd.f32 %v289_v11, %v279_v10 }
  0x9b   : > { %729 = vrot.lane.b32.xlu2 %v725_v42, %s3429_s15  ;;  %v3570_v44 = vpop.permute.xlu1 %353  ;;  %v319_v45 = vpop.permute.xlu0 %318 }
  0x9c   : > { %3248 = vset.pattern.permute.xlu2 %v5390_v5  ;;  %v324_v12 = vsel %vm322_vm5, %v321_v39, %v319_v45  ;;  %v323_v17 = vsel %vm322_vm5, %v319_v45, %v321_v39  ;;  %v302_v23 = vadd.f32 %v300_v15, %v292_v13 }
  0x9d   : > { %v329_v18 = vsel %vm237_vm1, %v324_v12, 0.0  ;;  %v337_v29 = vperm.slane %v323_v17, 0  ;;  %v347_v42 = vperm.slane %v323_v17, 1  ;;  %v357_v57 = vperm.slane %v323_v17, 2 }
  0x9e   : > { %3246 = vset.pattern.permute.xlu1 %v5392_v3  ;;  %v336_v26 = vperm.slane %v329_v18, 0  ;;  %v346_v39 = vperm.slane %v329_v18, 1  ;;  %v366_v9 = vperm.slane %v329_v18, 3  ;;  %v367_v10 = vperm.slane %v323_v17, 3 }
  0x9f   : > { %715 = vperm.xlu1 %3246, %v179_v25   ;;  %v299_v25 = vmul.f32 %v297_v14, %v3532_v27  ;;  %v339_v38 = vmul.f32 %v337_v29, %v3541_v30  ;;  %v359_v14 = vmul.f32 %v357_v57, %v3570_v44 }
  0xa0   : > { %v338_v37 = vmul.f32 %v336_v26, %v3541_v30 }
  0xa1   : > { %v301_v32 = vadd.f32 %v299_v25, %v291_v19 }
  0xa2   : > { %v3612_v60 = vpop.permute.xlu2 %461 }
  0xa3   : > { %754 = vperm.xlu2 %3248, %v3546_v31   ;;  %v3592_v52 = vpop.permute.xlu1 %377  ;;  %v311_v45 = vadd.f32 %v309_v34, %v301_v32 }
  0xa4   : > { %v3594_v53 = vpop.permute.xlu0 %438  ;;  %v382_v6 = vsel %vm381_vm7, %v3592_v52, %v3557_v36  ;;  %v383_v47 = vsel %vm381_vm7, %v3557_v36, %v3592_v52  ;;  %v368_v36 = vmul.f32 %v366_v9, %v3552_v33  ;;  %v369_v52 = vmul.f32 %v367_v10, %v3552_v33 }
  0xa5   : > { %v340_v58 = vadd.f32 %v338_v37, %v311_v45  ;;  %v388_v11 = vsel %vm3662_vm9, %v383_v47, 0.0  ;;  %v389_v12 = vsel %vm3654_vm8, %v382_v6, 0.0 }
  0xa6   : > { %v395_v19 = vperm.slane %v388_v11, 0  ;;  %v396_v21 = vperm.slane %v389_v12, 0  ;;  %v406_v32 = vperm.slane %v389_v12, 1  ;;  %v416_v37 = vperm.slane %v389_v12, 2 }
  0xa7   : > { %3247 = vset.pattern.permute.xlu1 %v5388_v2  ;;  %v425_v6 = vperm.slane %v388_v11, 3  ;;  %v426_v47 = vperm.slane %v389_v12, 3 }
  0xa8   : > { %744 = vperm.xlu1 %3247, %v3546_v31   ;;  %v418_v57 = vmul.f32 %v416_v37, %v3561_v40 }
  0xab   : > { %3250 = vset.pattern.permute.xlu2 %v5388_v2  ;;  %v3615_v63 = vpop.permute.xlu1 %402  ;;  %v3632_v20 = vpop.permute.xlu2 %492 }
  0xac   : > { %v3617_v0 = vpop.permute.xlu0 %534  ;;  %785 = vperm.xlu2 %3250, %v226_v8   ;;  %v408_v33 = vmul.f32 %v406_v32, %v3615_v63  ;;  %v495_v32 = vperm.slane %v3473_v4, 0 }
  0xb0   : > { %3249 = vset.pattern.permute.xlu1 %v5392_v3 }
  0xb1   : > { %774 = vperm.xlu1 %3249, %v3546_v31   ;;  %v310_v31 = vmul.f32 %v308_v16, %v3535_v28  ;;  %v356_v28 = vperm.slane %v329_v18, 2 }
  0xb3   : > { %v312_v35 = vadd.f32 %v310_v31, %v302_v23  ;;  %v358_v13 = vmul.f32 %v356_v28, %v3570_v44  ;;  %v405_v31 = vperm.slane %v388_v11, 1 }
  0xb4   : > { %v3634_v22 = vpop.permute.xlu1 %422  ;;  %3252 = vset.pattern.permute.xlu2 %v5397_v1  ;;  %v3650_v30 = vpop.permute.xlu2 %520 }
  0xb5   : > { %v344_v24 = vpop.permute.xlu0 %343  ;;  %v341_v59 = vadd.f32 %v339_v38, %v312_v35  ;;  %v415_v35 = vperm.slane %v388_v11, 2  ;;  %v407_v38 = vmul.f32 %v405_v31, %v3615_v63  ;;  %v428_v9 = vmul.f32 %v426_v47, %v3634_v22 }
  0xb6   : > { %v348_v51 = vmul.f32 %v346_v39, %v344_v24  ;;  %v349_v55 = vmul.f32 %v347_v42, %v344_v24  ;;  %v441_v39 = vsel %vm5387_vm10, %v3576_v48, %v3594_v53  ;;  %v442_v42 = vsel %vm5387_vm10, %v3594_v53, %v3576_v48 }
  0xb7   : > { %v417_v28 = vmul.f32 %v415_v35, %v3561_v40  ;;  %v447_v63 = vsel %vm3580_vm2, %v442_v42, 0.0  ;;  %v3720_v35 = vld [vmem:[%s5381_s1 + $0x24] sm:$0xf]  ;;  %v499_v42 = vperm.slane %v495_v32, 0 }
  0xb8   : > { %v350_v7 = vadd.f32 %v348_v51, %v340_v58  ;;  %v351_v8 = vadd.f32 %v349_v55, %v341_v59  ;;  %v448_v59 = vsel %vm3586_vm3, %v441_v39, 0.0  ;;  %v454_v10 = vperm.slane %v447_v63, 0  ;;  %822 = vperm.xlu2 %3252, %v3720_v35  }
  0xb9   : > { %3251 = vset.pattern.permute.xlu1 %v5390_v5  ;;  %v455_v40 = vperm.slane %v448_v59, 0  ;;  %v485_v37 = vperm.slane %v448_v59, 3 }
  0xba   : > { %v360_v15 = vadd.f32 %v358_v13, %v350_v7  ;;  %v361_v16 = vadd.f32 %v359_v14, %v351_v8  ;;  %v427_v8 = vmul.f32 %v425_v6, %v3634_v22  ;;  %812 = vperm.xlu1 %3251, %v3720_v35   ;;  %v510_v6 = vperm.slane %v3473_v4, 5 }
  0xbc   : > { %v3684_v25 = vpop.permute.xlu2 %554  ;;  %v370_v26 = vadd.f32 %v368_v36, %v360_v15  ;;  %v371_v29 = vadd.f32 %v369_v52, %v361_v16  ;;  %v464_v15 = vperm.slane %v447_v63, 1  ;;  %v465_v16 = vperm.slane %v448_v59, 1 }
  0xbd   : > { %v3648_v56 = vpop.permute.xlu0 %636  ;;  %v452_v61 = vpop.permute.xlu1 %451 }
  0xc0   : > { %3255 = vset.pattern.permute.xlu2 %v5390_v5 }
  0xc2   : > { %3253 = vset.pattern.permute.xlu1 %v5392_v3 }
  0xc3   : > { %832 = vperm.xlu1 %3253, %v3720_v35  }
  0xc4   : > { %v3707_v53 = vpop.permute.xlu2 %577 }
  0xc6   : > { %v393_v18 = vpop.permute.xlu0 %392  ;;  %v3682_v24 = vpop.permute.xlu1 %481 }
  0xc7   : > { %v397_v17 = vmul.f32 %v395_v19, %v393_v18  ;;  %v398_v23 = vmul.f32 %v396_v21, %v393_v18  ;;  %v456_v19 = vmul.f32 %v454_v10, %v452_v61  ;;  %v457_v21 = vmul.f32 %v455_v40, %v452_v61 }
  0xc8   : > { %v474_v18 = vperm.slane %v447_v63, 2  ;;  %v514_v10 = vperm.slane %v510_v6, 1 }
  0xc9   : > { %v399_v44 = vadd.f32 %v397_v17, %v370_v26  ;;  %v400_v34 = vadd.f32 %v398_v23, %v371_v29  ;;  %v475_v17 = vperm.slane %v448_v59, 2  ;;  %v466_v23 = vmul.f32 %v464_v15, %v3612_v60 }
  0xca   : > { %v467_v26 = vmul.f32 %v465_v16, %v3612_v60  ;;  %v484_v60 = vperm.slane %v447_v63, 3  ;;  %v524_v63 = vperm.slane %v3473_v4, 6  ;;  %v501_v59 = vmul.f32 %v499_v42, %v3632_v20  ;;  %v3766_v42 = vld [vmem:[%s5381_s1 + $0x28] sm:$0xf] }
  0xcb   : > { %v409_v45 = vadd.f32 %v407_v38, %v399_v44  ;;  %v410_v51 = vadd.f32 %v408_v33, %v400_v34  ;;  %v496_v44 = vperm.slane %v3473_v4, 4  ;;  %v538_v15 = vperm.slane %v3473_v4, 7  ;;  %3254 = vset.pattern.permute.xlu1 %v5388_v2  ;;  %861 = vperm.xlu2 %3255, %v3766_v42  }
  0xcc   : > { %v3713_v29 = vpop.permute.xlu2 %611  ;;  %851 = vperm.xlu1 %3254, %v3766_v42  }
  0xcd   : > { %v419_v7 = vadd.f32 %v417_v28, %v409_v45  ;;  %v420_v48 = vadd.f32 %v418_v57, %v410_v51  ;;  %v500_v45 = vperm.slane %v496_v44, 0  ;;  %v486_v51 = vmul.f32 %v484_v60, %v3682_v24 }
  0xce   : > { %v3697_v55 = vpop.permute.xlu0 %685  ;;  %v487_v28 = vmul.f32 %v485_v37, %v3682_v24  ;;  %v509_v57 = vperm.slane %v3473_v4, 1 }
  0xcf   : > { %v3701_v58 = vpop.permute.xlu1 %506  ;;  %v429_v13 = vadd.f32 %v427_v8, %v419_v7  ;;  %v430_v14 = vadd.f32 %v428_v9, %v420_v48  ;;  %v523_v48 = vperm.slane %v3473_v4, 2  ;;  %v502_v8 = vmul.f32 %v500_v45, %v3632_v20 }
  0xd0   : > { %v513_v9 = vperm.slane %v509_v57, 1  ;;  %v528_v20 = vperm.slane %v524_v63, 2 }
  0xd1   : > { %v458_v11 = vadd.f32 %v456_v19, %v429_v13  ;;  %v459_v12 = vadd.f32 %v457_v21, %v430_v14  ;;  %v537_v14 = vperm.slane %v3473_v4, 3  ;;  %v527_v19 = vperm.slane %v523_v48, 2 }
  0xd2   : > { %v515_v21 = vmul.f32 %v513_v9, %v3701_v58 }
  0xd3   : > { %v468_v34 = vadd.f32 %v466_v23, %v458_v11  ;;  %v469_v61 = vadd.f32 %v467_v26, %v459_v12  ;;  %v529_v23 = vmul.f32 %v527_v19, %v3650_v30  ;;  %v530_v26 = vmul.f32 %v528_v20, %v3650_v30  ;;  %3257 = vset.pattern.permute.xlu2 %v5388_v2 }
  0xd4   : > { %v3732_v40 = vpop.permute.xlu2 %626  ;;  %3256 = vset.pattern.permute.xlu1 %v5392_v3 }
  0xd5   : > { %881 = vperm.xlu1 %3256, %v3766_v42  }
  0xd7   : > { %v553_v36 = vpop.permute.xlu1 %552  ;;  %v472_v52 = vpop.permute.xlu0 %471 }
  0xd8   : > { %v476_v22 = vmul.f32 %v474_v18, %v472_v52  ;;  %v477_v31 = vmul.f32 %v475_v17, %v472_v52  ;;  %v516_v52 = vmul.f32 %v514_v10, %v3701_v58  ;;  %v541_v18 = vperm.slane %v537_v14, 3 }
  0xd9   : > { %v542_v17 = vperm.slane %v538_v15, 3 }
  0xda   : > { %v478_v38 = vadd.f32 %v476_v22, %v468_v34  ;;  %v479_v33 = vadd.f32 %v477_v31, %v469_v61  ;;  %v557_v22 = vsel %vm5386_vm11, %v553_v36, %v3684_v25  ;;  %v558_v31 = vsel %vm5386_vm11, %v3684_v25, %v553_v36 }
  0xdb   : > { %v563_v34 = vsel %vm3643_vm6, %v557_v22, 0.0  ;;  %v564_v30 = vsel %vm3654_vm8, %v558_v31, 0.0  ;;  %v543_v60 = vmul.f32 %v541_v18, %v3617_v0  ;;  %v544_v37 = vmul.f32 %v542_v17, %v3617_v0 }
  0xdc   : > { %v488_v47 = vadd.f32 %v486_v51, %v478_v38  ;;  %v489_v7 = vadd.f32 %v487_v28, %v479_v33  ;;  %v570_v25 = vperm.slane %v563_v34, 0  ;;  %v571_v36 = vperm.slane %v564_v30, 0 }
  0xdd   : > { %v3752_v32 = vpop.permute.xlu2 %656  ;;  %v580_v45 = vperm.slane %v563_v34, 1  ;;  %v581_v51 = vperm.slane %v564_v30, 1  ;;  %v591_v14 = vperm.slane %v564_v30, 2  ;;  %v600_v20 = vperm.slane %v563_v34, 3  ;;  %3260 = vset.pattern.permute.xlu1 %v5397_v1 }
  0xde   : > { %v503_v24 = vadd.f32 %v501_v59, %v488_v47  ;;  %v504_v13 = vadd.f32 %v502_v8, %v489_v7 }
  0xdf   : > { %v568_v39 = vpop.permute.xlu1 %567  ;;  %v582_v63 = vmul.f32 %v580_v45, %v3707_v53  ;;  %v583_v59 = vmul.f32 %v581_v51, %v3707_v53  ;;  %v588_v9 = vpop.permute.xlu0 %587  ;;  %v183_v53 = vld [vmem:[%s5381_s1 + $0x2c] sm:$0xf] }
  0xe0   : > { %v517_v11 = vadd.f32 %v515_v21, %v503_v24  ;;  %v518_v12 = vadd.f32 %v516_v52, %v504_v13  ;;  %v572_v28 = vmul.f32 %v570_v25, %v568_v39  ;;  %v573_v57 = vmul.f32 %v571_v36, %v568_v39  ;;  %910 = vperm.xlu0 %3258, %v183_v53  }
  0xe1   : > { %v590_v13 = vperm.slane %v563_v34, 2  ;;  %v601_v21 = vperm.slane %v564_v30, 3  ;;  %v593_v52 = vmul.f32 %v591_v14, %v588_v9  ;;  %900 = vperm.xlu2 %3257, %v183_v53   ;;  %920 = vperm.xlu1 %3260, %v183_v53  }
  0xe2   : > { %v531_v58 = vadd.f32 %v529_v23, %v517_v11  ;;  %v532_v44 = vadd.f32 %v530_v26, %v518_v12 }
  0xe4   : > { %v545_v38 = vadd.f32 %v543_v60, %v531_v58  ;;  %v546_v33 = vadd.f32 %v544_v37, %v532_v44 }
  0xe5   : > { %v673_v8 = vpop.permute.xlu2 %672 }
  0xe6   : > { %v574_v0 = vadd.f32 %v572_v28, %v545_v38  ;;  %v575_v6 = vadd.f32 %v573_v57, %v546_v33 }
  0xe8   : > { %v3739_v16 = vpop.permute.xlu1 %597  ;;  %v584_v15 = vadd.f32 %v582_v63, %v574_v0  ;;  %v585_v19 = vadd.f32 %v583_v59, %v575_v6  ;;  %3259 = vset.pattern.permute.xlu0 %v5388_v2 }
  0xe9   : > { %v602_v23 = vmul.f32 %v600_v20, %v3739_v16  ;;  %v603_v26 = vmul.f32 %v601_v21, %v3739_v16  ;;  %3261 = vset.pattern.permute.xlu2 %v5392_v3  ;;  %802 = vperm.xlu0 %3259, %v3720_v35  }
  0xea   : > { %v595_v17 = vadd.f32 %v593_v52, %v585_v19  ;;  %930 = vperm.xlu2 %3261, %v183_v53   ;;  %v732_v19 = vpop.permute.xlu0 %731  ;;  %3262 = vset.pattern.permute.xlu1 %v5390_v5 }
  0xec   : > { %v605_v34 = vadd.f32 %v603_v26, %v595_v17 }
  0xed   : > { %v706_v30 = vpop.permute.xlu2 %705 }
  0xf0   : > { %v614_v61 = vpop.permute.xlu1 %613 }
  0xf1   : > { %v616_v7 = vsel %vm5384_vm13, %v3713_v29, %v614_v61  ;;  %v617_v39 = vsel %vm5384_vm13, %v614_v61, %v3713_v29  ;;  %v592_v29 = vmul.f32 %v590_v13, %v588_v9  ;;  %vm733_vm13 = vcmp.lt.s32.totalorder %v3563_v41, 111 }
  0xf2   : > { %v622_v10 = vsel %vm3580_vm2, %v616_v7, 0.0  ;;  %v623_v24 = vsel %vm3774_vm14, %v617_v39, 0.0  ;;  %3263 = vset.pattern.permute.xlu2 %v5397_v1 }
  0xf3   : > { %v629_v11 = vperm.slane %v622_v10, 0  ;;  %v630_v12 = vperm.slane %v623_v24, 0  ;;  %v594_v18 = vadd.f32 %v592_v29, %v584_v15  ;;  %v639_v61 = vperm.slane %v622_v10, 1 }
  0xf4   : > { %v640_v60 = vperm.slane %v623_v24, 1  ;;  %v649_v25 = vperm.slane %v622_v10, 2  ;;  %v650_v36 = vperm.slane %v623_v24, 2  ;;  %v660_v39 = vperm.slane %v623_v24, 3 }
  0xf5   : > { %v631_v31 = vmul.f32 %v629_v11, %v3732_v40  ;;  %v632_v58 = vmul.f32 %v630_v12, %v3732_v40  ;;  %v604_v44 = vadd.f32 %v602_v23, %v594_v18  ;;  %v641_v16 = vmul.f32 %v639_v61, %v3648_v56  ;;  %v730_v9 = vpop.permute.xlu2 %729 }
  0xf6   : > { %v642_v40 = vmul.f32 %v640_v60, %v3648_v56  ;;  %v659_v56 = vperm.slane %v622_v10, 3  ;;  %v662_v15 = vmul.f32 %v660_v39, %v3752_v32  ;;  %v734_v10 = vsel %vm733_vm13, %v730_v9, %v732_v19 }
  0xf7   : > { %v633_v37 = vadd.f32 %v631_v31, %v604_v44  ;;  %v634_v38 = vadd.f32 %v632_v58, %v605_v34  ;;  %v735_v24 = vsel %vm733_vm13, %v732_v19, %v730_v9  ;;  %v740_v26 = vsel %vm3643_vm6, %v734_v10, 0.0 }
  0xf8   : > { %v647_v48 = vpop.permute.xlu1 %646  ;;  %v661_v14 = vmul.f32 %v659_v56, %v3752_v32  ;;  %v5422_v32 = vmov 0  ;;  %v747_v61 = vperm.slane %v740_v26, 0 }
  0xf9   : > { %v643_v57 = vadd.f32 %v641_v16, %v633_v37  ;;  %v644_v0 = vadd.f32 %v642_v40, %v634_v38  ;;  %v651_v6 = vmul.f32 %v649_v25, %v647_v48  ;;  %v652_v7 = vmul.f32 %v650_v36, %v647_v48 }
  0xfb   : > { %v653_v13 = vadd.f32 %v651_v6, %v643_v57 }
  0xfd   : > { %v755_v39 = vpop.permute.xlu2 %754 }
 0x100   : > { %v671_v22 = vpop.permute.xlu1 %670 }
 0x101   : > { %v676_v33 = vsel %vm5385_vm15, %v673_v8, %v671_v22  ;;  %v675_v45 = vsel %vm5385_vm15, %v671_v22, %v673_v8  ;;  %v654_v8 = vadd.f32 %v652_v7, %v644_v0  ;;  %vm3828_vm15 = vmand %vm240_vm12, %vm3654_vm8 }
 0x102   : > { %v682_v51 = vsel %vm240_vm12, %v676_v33, 0.0  ;;  %v688_v63 = vperm.slane %v675_v45, 0  ;;  %v698_v21 = vperm.slane %v675_v45, 1  ;;  %v5423_v32 = vsel %vm3828_vm15, 4294967295, %v5422_v32 }
 0x103   : > { %v689_v59 = vperm.slane %v682_v51, 0  ;;  %v699_v48 = vperm.slane %v682_v51, 1  ;;  %5424 = vst [vmem:[#allocation4_spill] sm:$0xff] %v5423_v32  ;;  %v664_v29 = vadd.f32 %v662_v15, %v654_v8  ;;  %v708_v53 = vperm.slane %v675_v45, 2  ;;  %v765_v8 = vpop.permute.xlu0 %764 }
 0x104   : > { %v690_v35 = vmul.f32 %v688_v63, %v3697_v55  ;;  %v709_v18 = vperm.slane %v682_v51, 2  ;;  %v741_v22 = vsel %vm3828_vm15, %v735_v24, 0.0  ;;  %v718_v44 = vperm.slane %v675_v45, 3 }
 0x105   : > { %v691_v20 = vmul.f32 %v689_v59, %v3697_v55  ;;  %v663_v55 = vadd.f32 %v661_v14, %v653_v13  ;;  %v719_v34 = vperm.slane %v682_v51, 3  ;;  %v748_v60 = vperm.slane %v741_v22, 0 }
 0x106   : > { %v710_v37 = vmul.f32 %v708_v53, %v706_v30  ;;  %v711_v38 = vmul.f32 %v709_v18, %v706_v30  ;;  %v758_v57 = vperm.slane %v741_v22, 1  ;;  %v767_v45 = vperm.slane %v740_v26, 2 }
 0x107   : > { %v692_v17 = vadd.f32 %v690_v35, %v663_v55  ;;  %v693_v23 = vadd.f32 %v691_v20, %v664_v29  ;;  %v768_v51 = vperm.slane %v741_v22, 2  ;;  %v777_v35 = vperm.slane %v740_v26, 3  ;;  %v786_v29 = vpop.permute.xlu2 %785 }
 0x108   : > { %v696_v28 = vpop.permute.xlu1 %695  ;;  %v760_v13 = vmul.f32 %v758_v57, %v755_v39  ;;  %v769_v15 = vmul.f32 %v767_v45, %v765_v8  ;;  %v778_v20 = vperm.slane %v741_v22, 3  ;;  %v187_v22 = vld [vmem:[%s5381_s1 + $0x3c] sm:$0xf] }
 0x109   : > { %v700_v52 = vmul.f32 %v698_v21, %v696_v28  ;;  %v701_v11 = vmul.f32 %v699_v48, %v696_v28  ;;  %v757_v28 = vperm.slane %v740_v26, 1  ;;  %v770_v19 = vmul.f32 %v768_v51, %v765_v8  ;;  %v186_v26 = vld [vmem:[%s5381_s1 + $0x38] sm:$0xf] }
 0x10b   : > { %v702_v31 = vadd.f32 %v700_v52, %v692_v17  ;;  %v703_v58 = vadd.f32 %v701_v11, %v693_v23  ;;  %v759_v9 = vmul.f32 %v757_v28, %v755_v39  ;;  %v184_v23 = vld [vmem:[%s5381_s1 + $0x30] sm:$0xf] }
 0x10d   : > { %v712_v40 = vadd.f32 %v710_v37, %v702_v31  ;;  %v713_v25 = vadd.f32 %v711_v38, %v703_v58  ;;  %v185_v31 = vld [vmem:[%s5381_s1 + $0x34] sm:$0xf]  ;;  %v188_v58 = vld [vmem:[%s5381_s1 + $0x40] sm:$0xf]  ;;  %v189_v37 = vld [vmem:[%s5381_s1 + $0x44] sm:$0xf] }
 0x111   : > { %v716_v12 = vpop.permute.xlu1 %715 }
 0x112   : > { %v720_v33 = vmul.f32 %v718_v44, %v716_v12  ;;  %v721_v16 = vmul.f32 %v719_v34, %v716_v12 }
 0x114   : > { %v722_v0 = vadd.f32 %v720_v33, %v712_v40  ;;  %v723_v6 = vadd.f32 %v721_v16, %v713_v25  ;;  %v3914_v40 = vld [vmem:[%s5381_s1 + $0x4c] sm:$0xf] }
 0x11a   : > { %v745_v36 = vpop.permute.xlu1 %744 }
 0x11b   : > { %v749_v7 = vmul.f32 %v747_v61, %v745_v36  ;;  %v750_v56 = vmul.f32 %v748_v60, %v745_v36 }
 0x11d   : > { %v751_v63 = vadd.f32 %v749_v7, %v722_v0  ;;  %v752_v59 = vadd.f32 %v750_v56, %v723_v6  ;;  %v3928_v0 = vld [vmem:[%s5381_s1 + $0x50] sm:$0xf] }
 0x11f   : > { %v761_v30 = vadd.f32 %v759_v9, %v751_v63  ;;  %v762_v14 = vadd.f32 %v760_v13, %v752_v59  ;;  %v3953_v9 = vld [vmem:[%s5381_s1 + $0x58] sm:$0xf] }
 0x121   : > { %v771_v24 = vadd.f32 %v769_v15, %v761_v30  ;;  %v772_v55 = vadd.f32 %v770_v19, %v762_v14 }
 0x123   : > { %v775_v21 = vpop.permute.xlu1 %774 }
 0x124   : > { %v779_v48 = vmul.f32 %v777_v35, %v775_v21  ;;  %v780_v10 = vmul.f32 %v778_v20, %v775_v21 }
 0x126   : > { %v781_v52 = vadd.f32 %v779_v48, %v771_v24  ;;  %v782_v11 = vadd.f32 %v780_v10, %v772_v55 }
 0x128   : > { %v788_v12 = vadd.f32 %v786_v29, %v781_v52  ;;  %v789_v53 = vadd.f32 %v786_v29, %v782_v11 }
 0x12a   : > { %v3836_v18 = vmax.f32 %v788_v12, 0.0  ;;  %v3838_v17 = vmax.f32 %v789_v53, 0.0 }
 0x12c   : > { %843 = vrot.lane.b32.xlu0 %v3838_v17, %s3424_s23  ;;  %794 = vrot.lane.b32.xlu2 %v3838_v17, %s3423_s20  ;;  %v813_v34 = vpop.permute.xlu1 %812 }
 0x12d   : > { %792 = vrot.lane.b32.xlu1 %v3836_v18, %s3423_s20 }
 0x134   : > { %949 = vperm.xlu0 %3259, %v184_v23   ;;  %841 = vrot.lane.b32.xlu2 %v3836_v18, %s3424_s23 }
 0x135   : > { %892 = vrot.lane.b32.xlu1 %v3838_v17, %s3425_s24  ;;  %v3896_v60 = vpop.permute.xlu1 %832 }
 0x13c   : > { %1039 = vperm.xlu0 %3259, %v186_v26   ;;  %890 = vrot.lane.b32.xlu2 %v3836_v18, %s3425_s24 }
 0x13d   : > { %939 = vrot.lane.b32.xlu1 %v3836_v18, %s3426_s25 }
 0x13e   : > { %v3906_v33 = vpop.permute.xlu1 %851 }
 0x144   : > { %3268 = vset.pattern.permute.xlu0 %v5397_v1  ;;  %941 = vrot.lane.b32.xlu2 %v3838_v17, %s3426_s25 }
 0x145   : > { %959 = vperm.xlu1 %3262, %v184_v23   ;;  %871 = vperm.xlu0 %3268, %v3766_v42   ;;  %v3877_v42 = vpop.permute.xlu2 %822 }
 0x147   : > { %v3921_v36 = vpop.permute.xlu1 %881 }
 0x14c   : > { %969 = vperm.xlu2 %3263, %v184_v23  }
 0x14d   : > { %3264 = vset.pattern.permute.xlu1 %v5392_v3  ;;  %1080 = vrot.lane.b32.xlu0 %v3838_v17, %s3428_s14  ;;  %v3888_v44 = vpop.permute.xlu2 %861 }
 0x14e   : > { %979 = vperm.xlu1 %3264, %v184_v23  }
 0x152   : > { %v3919_v25 = vpop.permute.xlu0 %910 }
 0x153   : > { %v3930_v6 = vpop.permute.xlu1 %920 }
 0x154   : > { %3265 = vset.pattern.permute.xlu2 %v5388_v2 }
 0x155   : > { %1108 = vperm.xlu0 %3268, %v187_v22   ;;  %990 = vperm.xlu2 %3265, %v185_v31   ;;  %v3892_v61 = vpop.permute.xlu2 %900 }
 0x156   : > { %3266 = vset.pattern.permute.xlu1 %v5397_v1 }
 0x157   : > { %1010 = vperm.xlu1 %3266, %v185_v31  }
 0x15b   : > { %v803_v57 = vpop.permute.xlu0 %802 }
 0x15d   : > { %3274 = vset.pattern.permute.xlu0 %v5390_v5  ;;  %3267 = vset.pattern.permute.xlu2 %v5392_v3  ;;  %v3903_v38 = vpop.permute.xlu2 %930 }
 0x15e   : > { %1000 = vperm.xlu0 %3274, %v185_v31   ;;  %1020 = vperm.xlu2 %3267, %v185_v31  }
 0x15f   : > { %1029 = vrot.lane.b32.xlu1 %v3836_v18, %s3427_s9 }
 0x160   : > { %3269 = vset.pattern.permute.xlu1 %v5390_v5 }
 0x166   : > { %1031 = vrot.lane.b32.xlu2 %v3838_v17, %s3427_s9  ;;  %1147 = vperm.xlu0 %3274, %v188_v58  }
 0x167   : > { %1049 = vperm.xlu1 %3269, %v186_v26   ;;  %3270 = vset.pattern.permute.xlu2 %v5397_v1 }
 0x16e   : > { %1059 = vperm.xlu2 %3270, %v186_v26   ;;  %3279 = vset.pattern.permute.xlu0 %v5388_v2 }
 0x16f   : > { %3271 = vset.pattern.permute.xlu1 %v5392_v3  ;;  %1186 = vperm.xlu0 %3279, %v189_v37  }
 0x170   : > { %1069 = vperm.xlu1 %3271, %v186_v26  }
 0x176   : > { %1078 = vrot.lane.b32.xlu2 %v3836_v18, %s3428_s14 }
 0x177   : > { %3273 = vset.pattern.permute.xlu2 %v5390_v5  ;;  %1309 = vperm.xlu0 %3279, %v3914_v40  }
 0x178   : > { %3272 = vset.pattern.permute.xlu1 %v5388_v2 }
 0x179   : > { %1088 = vperm.xlu1 %3272, %v187_v22  }
 0x17e   : > { %1098 = vperm.xlu2 %3273, %v187_v22  }
 0x17f   : > { %3291 = vset.pattern.permute.xlu0 %v5397_v1 }
 0x180   : > { %1383 = vperm.xlu0 %3291, %v3928_v0  }
 0x181   : > { %3275 = vset.pattern.permute.xlu1 %v5392_v3 }
 0x182   : > { %1118 = vperm.xlu1 %3275, %v187_v22  }
 0x186   : > { %1127 = vrot.lane.b32.xlu2 %v3836_v18, %s3430_s19  ;;  %v795_v16 = vpop.permute.xlu2 %794 }
 0x187   : > { %3276 = vset.pattern.permute.xlu2 %v5388_v2 }
 0x188   : > { %1486 = vperm.xlu0 %3291, %v3953_v9  }
 0x18a   : > { %1129 = vrot.lane.b32.xlu1 %v3838_v17, %s3430_s19 }
 0x18b   : > { %3277 = vset.pattern.permute.xlu1 %v5397_v1 }
 0x18e   : > { %1137 = vperm.xlu2 %3276, %v188_v58   ;;  %v842_v28 = vpop.permute.xlu2 %841 }
 0x192   : > { %1157 = vperm.xlu1 %3277, %v188_v58  }
 0x196   : > { %3278 = vset.pattern.permute.xlu2 %v5392_v3  ;;  %v3934_v7 = vpop.permute.xlu2 %890 }
 0x197   : > { %1167 = vperm.xlu2 %3278, %v188_v58  }
 0x19a   : > { %1176 = vrot.lane.b32.xlu1 %v3836_v18, %s3429_s15 }
 0x19b   : > { %3280 = vset.pattern.permute.xlu1 %v5390_v5 }
 0x19e   : > { %v844_v56 = vpop.permute.xlu0 %843  ;;  %v3939_v39 = vpop.permute.xlu2 %941 }
 0x19f   : > { %v793_v63 = vpop.permute.xlu1 %792  ;;  %1178 = vrot.lane.b32.xlu2 %v3838_v17, %s3429_s15  ;;  %v846_v52 = vsel %vm322_vm5, %v844_v56, %v842_v28  ;;  %v845_v31 = vsel %vm322_vm5, %v842_v28, %v844_v56  ;;  %v3982_v28 = vld [vmem:[%s5381_s1 + $0x48] sm:$0xf] }
 0x1a0   : > { %3281 = vset.pattern.permute.xlu2 %v5397_v1  ;;  %v796_v59 = vsel %vm263_vm0, %v793_v63, %v795_v16  ;;  %v797_v45 = vsel %vm263_vm0, %v795_v16, %v793_v63  ;;  %v847_v58 = vsel %vm237_vm1, %v846_v52, 0.0 }
 0x1a1   : > { %v799_v51 = vsel %vm3586_vm3, %v796_v59, 0.0  ;;  %v798_v13 = vsel %vm3600_vm4, %v797_v45, 0.0  ;;  %v854_v59 = vperm.slane %v847_v58, 0  ;;  %v855_v45 = vperm.slane %v845_v31, 0 }
 0x1a2   : > { %1196 = vperm.xlu1 %3280, %v189_v37   ;;  %v806_v8 = vperm.slane %v799_v51, 0  ;;  %v816_v30 = vperm.slane %v799_v51, 1  ;;  %v805_v14 = vperm.slane %v798_v13, 0  ;;  %v815_v15 = vperm.slane %v798_v13, 1 }
 0x1a3   : > { %v825_v10 = vperm.slane %v798_v13, 2  ;;  %v826_v24 = vperm.slane %v799_v51, 2  ;;  %v835_v26 = vperm.slane %v798_v13, 3  ;;  %v836_v22 = vperm.slane %v799_v51, 3 }
 0x1a4   : > { %v808_v19 = vmul.f32 %v806_v8, %v803_v57  ;;  %v818_v35 = vmul.f32 %v816_v30, %v813_v34  ;;  %v807_v20 = vmul.f32 %v805_v14, %v803_v57  ;;  %v817_v21 = vmul.f32 %v815_v15, %v813_v34  ;;  %v227_v57 = vld [vmem:[%s5382_s2 + $0x4] sm:$0xf] }
 0x1a5   : > { %v827_v53 = vmul.f32 %v825_v10, %v3877_v42  ;;  %v828_v23 = vmul.f32 %v826_v24, %v3877_v42  ;;  %v837_v42 = vmul.f32 %v835_v26, %v3896_v60  ;;  %v856_v30 = vmul.f32 %v854_v59, %v3906_v33 }
 0x1a6   : > { %v3958_v48 = vpop.permute.xlu0 %949  ;;  %v3960_v29 = vpop.permute.xlu2 %969  ;;  %v819_v11 = vadd.f32 %v817_v21, %v807_v20  ;;  %v820_v12 = vadd.f32 %v818_v35, %v808_v19  ;;  %v857_v14 = vmul.f32 %v855_v45, %v3906_v33  ;;  %v864_v15 = vperm.slane %v847_v58, 1 }
 0x1a7   : > { %v893_v55 = vpop.permute.xlu1 %892  ;;  %1206 = vperm.xlu2 %3281, %v189_v37   ;;  %v865_v19 = vperm.slane %v845_v31, 1  ;;  %v874_v20 = vperm.slane %v847_v58, 2  ;;  %v875_v21 = vperm.slane %v845_v31, 2  ;;  %v884_v26 = vperm.slane %v847_v58, 3 }
 0x1a8   : > { %v829_v34 = vadd.f32 %v827_v53, %v819_v11  ;;  %v830_v16 = vadd.f32 %v828_v23, %v820_v12  ;;  %v894_v10 = vsel %vm381_vm7, %v3934_v7, %v893_v55  ;;  %v895_v24 = vsel %vm381_vm7, %v893_v55, %v3934_v7 }
 0x1a9   : > { %v866_v11 = vmul.f32 %v864_v15, %v3888_v44  ;;  %v867_v12 = vmul.f32 %v865_v19, %v3888_v44  ;;  %v897_v7 = vsel %vm3654_vm8, %v894_v10, 0.0 }
 0x1aa   : > { %3282 = vset.pattern.permute.xlu1 %v5392_v3  ;;  %v839_v56 = vadd.f32 %v837_v42, %v829_v34  ;;  %v904_v42 = vperm.slane %v897_v7, 0  ;;  %v914_v19 = vperm.slane %v897_v7, 1  ;;  %v924_v10 = vperm.slane %v897_v7, 2 }
 0x1ab   : > { %1216 = vperm.xlu1 %3282, %v189_v37   ;;  %v838_v37 = vmul.f32 %v836_v22, %v3896_v60  ;;  %v885_v22 = vperm.slane %v845_v31, 3 }
 0x1ac   : > { %v858_v60 = vadd.f32 %v856_v30, %v839_v56 }
 0x1ad   : > { %v840_v13 = vadd.f32 %v838_v37, %v830_v16  ;;  %v886_v37 = vmul.f32 %v884_v26, %v3921_v36  ;;  %v887_v31 = vmul.f32 %v885_v22, %v3921_v36  ;;  %v934_v26 = vperm.slane %v897_v7, 3 }
 0x1ae   : > { %v3974_v63 = vpop.permute.xlu0 %1039  ;;  %v868_v34 = vadd.f32 %v866_v11, %v858_v60 }
 0x1af   : > { %v940_v51 = vpop.permute.xlu1 %939  ;;  %3283 = vset.pattern.permute.xlu2 %v5388_v2  ;;  %v3984_v8 = vpop.permute.xlu2 %990  ;;  %v859_v35 = vadd.f32 %v857_v14, %v840_v13  ;;  %v906_v14 = vmul.f32 %v904_v42, %v3892_v61 }
 0x1b0   : > { %1227 = vperm.xlu2 %3283, %v227_v57   ;;  %v896_v57 = vsel %vm3662_vm9, %v895_v24, 0.0 }
 0x1b1   : > { %v869_v16 = vadd.f32 %v867_v12, %v859_v35  ;;  %v903_v44 = vperm.slane %v896_v57, 0  ;;  %v913_v15 = vperm.slane %v896_v57, 1 }
 0x1b3   : > { %3284 = vset.pattern.permute.xlu1 %v5397_v1  ;;  %v905_v30 = vmul.f32 %v903_v44, %v3892_v61  ;;  %v915_v36 = vmul.f32 %v913_v15, %v3919_v25  ;;  %v943_v61 = vsel %vm5387_vm10, %v940_v51, %v3939_v39 }
 0x1b4   : > { %1275 = vperm.xlu1 %3284, %v3982_v28  }
 0x1b7   : > { %v3996_v52 = vpop.permute.xlu1 %959  ;;  %v872_v33 = vpop.permute.xlu0 %871 }
 0x1b8   : > { %v876_v53 = vmul.f32 %v874_v20, %v872_v33  ;;  %v877_v23 = vmul.f32 %v875_v21, %v872_v33  ;;  %1255 = vperm.xlu2 %3283, %v3982_v28   ;;  %v4005_v45 = vpop.permute.xlu2 %1020  ;;  %v916_v20 = vmul.f32 %v914_v19, %v3919_v25  ;;  %v923_v21 = vperm.slane %v896_v57, 2 }
 0x1b9   : > { %v944_v33 = vsel %vm5387_vm10, %v3939_v39, %v940_v51 }
 0x1ba   : > { %v878_v55 = vadd.f32 %v876_v53, %v868_v34  ;;  %v879_v59 = vadd.f32 %v877_v23, %v869_v16  ;;  %v925_v25 = vmul.f32 %v923_v21, %v3930_v6  ;;  %v926_v53 = vmul.f32 %v924_v10, %v3930_v6 }
 0x1bb   : > { %v933_v23 = vperm.slane %v896_v57, 3  ;;  %v945_v34 = vsel %vm3580_vm2, %v944_v33, 0.0  ;;  %v946_v16 = vsel %vm3586_vm3, %v943_v61, 0.0  ;;  %v936_v57 = vmul.f32 %v934_v26, %v3903_v38  ;;  %v4064_v33 = vld [vmem:[%s5381_s1 + $0x54] sm:$0xf] }
 0x1bc   : > { %3286 = vset.pattern.permute.xlu1 %v5390_v5  ;;  %v888_v58 = vadd.f32 %v886_v37, %v878_v55  ;;  %v889_v56 = vadd.f32 %v887_v31, %v879_v59  ;;  %v952_v7 = vperm.slane %v945_v34, 0  ;;  %v953_v59 = vperm.slane %v946_v16, 0 }
 0x1bd   : > { %1319 = vperm.xlu1 %3286, %v3914_v40   ;;  %v935_v6 = vmul.f32 %v933_v23, %v3903_v38  ;;  %v972_v19 = vperm.slane %v945_v34, 2  ;;  %v993_v23 = vperm.slane %v3836_v18, 0  ;;  %v994_v26 = vperm.slane %v3838_v17, 0 }
 0x1be   : > { %v907_v60 = vadd.f32 %v905_v30, %v888_v58  ;;  %v908_v35 = vadd.f32 %v906_v14, %v889_v56  ;;  %v954_v31 = vmul.f32 %v952_v7, %v3958_v48  ;;  %v962_v56 = vperm.slane %v945_v34, 1 }
 0x1bf   : > { %v4038_v55 = vpop.permute.xlu0 %1080  ;;  %v963_v30 = vperm.slane %v946_v16, 1  ;;  %v996_v7 = vmul.f32 %v994_v26, %v3984_v8 }
 0x1c0   : > { %v4011_v13 = vpop.permute.xlu1 %979  ;;  %3285 = vset.pattern.permute.xlu2 %v5392_v3  ;;  %v4020_v24 = vpop.permute.xlu2 %1031  ;;  %v917_v11 = vadd.f32 %v915_v36, %v907_v60  ;;  %v918_v12 = vadd.f32 %v916_v20, %v908_v35  ;;  %v973_v60 = vperm.slane %v946_v16, 2  ;;  %v964_v35 = vmul.f32 %v962_v56, %v3996_v52 }
 0x1c1   : > { %1285 = vperm.xlu2 %3285, %v3982_v28   ;;  %v965_v36 = vmul.f32 %v963_v30, %v3996_v52  ;;  %v1013_v56 = vperm.slane %v3836_v18, 2 }
 0x1c2   : > { %v927_v39 = vadd.f32 %v925_v25, %v917_v11  ;;  %v928_v51 = vadd.f32 %v926_v53, %v918_v12  ;;  %v975_v10 = vmul.f32 %v973_v60, %v3960_v29  ;;  %v982_v25 = vperm.slane %v945_v34, 3 }
 0x1c3   : > { %v983_v53 = vperm.slane %v946_v16, 3  ;;  %v1004_v34 = vperm.slane %v3838_v17, 1  ;;  %v995_v16 = vmul.f32 %v993_v23, %v3984_v8 }
 0x1c4   : > { %v937_v44 = vadd.f32 %v935_v6, %v927_v39  ;;  %v938_v42 = vadd.f32 %v936_v57, %v928_v51  ;;  %v1003_v57 = vperm.slane %v3836_v18, 1 }
 0x1c5   : > { %3288 = vset.pattern.permute.xlu1 %v5392_v3 }
 0x1c6   : > { %1339 = vperm.xlu1 %3288, %v3914_v40   ;;  %v956_v38 = vadd.f32 %v954_v31, %v937_v44 }
 0x1c7   : > { %v4051_v15 = vpop.permute.xlu0 %1108 }
 0x1c8   : > { %v4045_v37 = vpop.permute.xlu2 %1059  ;;  %v966_v20 = vadd.f32 %v964_v35, %v956_v38 }
 0x1c9   : > { %v4031_v22 = vpop.permute.xlu1 %1010  ;;  %3287 = vset.pattern.permute.xlu2 %v5397_v1 }
 0x1ca   : > { %1329 = vperm.xlu2 %3287, %v3914_v40   ;;  %v955_v40 = vmul.f32 %v953_v59, %v3958_v48  ;;  %v974_v48 = vmul.f32 %v972_v19, %v3960_v29  ;;  %v985_v29 = vmul.f32 %v983_v53, %v4011_v13  ;;  %v1015_v60 = vmul.f32 %v1013_v56, %v4031_v22 }
 0x1cc   : > { %v957_v14 = vadd.f32 %v955_v40, %v938_v42  ;;  %v976_v12 = vadd.f32 %v974_v48, %v966_v20  ;;  %v1014_v40 = vperm.slane %v3838_v17, 2  ;;  %v1024_v48 = vperm.slane %v3838_v17, 3 }
 0x1ce   : > { %3289 = vset.pattern.permute.xlu1 %v5388_v2  ;;  %v967_v21 = vadd.f32 %v965_v36, %v957_v14  ;;  %v1016_v35 = vmul.f32 %v1014_v40, %v4031_v22  ;;  %v1026_v22 = vmul.f32 %v1024_v48, %v4005_v45 }
 0x1cf   : > { %1363 = vperm.xlu1 %3289, %v3928_v0  }
 0x1d0   : > { %v1079_v11 = vpop.permute.xlu2 %1078  ;;  %v977_v52 = vadd.f32 %v975_v10, %v967_v21  ;;  %v1001_v39 = vpop.permute.xlu0 %1000  ;;  %v1023_v21 = vperm.slane %v3836_v18, 3 }
 0x1d1   : > { %v1030_v58 = vpop.permute.xlu1 %1029  ;;  %v1005_v59 = vmul.f32 %v1003_v57, %v1001_v39  ;;  %v1006_v44 = vmul.f32 %v1004_v34, %v1001_v39 }
 0x1d2   : > { %3290 = vset.pattern.permute.xlu2 %v5390_v5  ;;  %v987_v6 = vadd.f32 %v985_v29, %v977_v52  ;;  %v1033_v8 = vsel %vm5386_vm11, %v1030_v58, %v4020_v24  ;;  %v1034_v19 = vsel %vm5386_vm11, %v4020_v24, %v1030_v58  ;;  %v1025_v24 = vmul.f32 %v1023_v21, %v4005_v45 }
 0x1d3   : > { %1373 = vperm.xlu2 %3290, %v3928_v0   ;;  %v1035_v36 = vsel %vm3643_vm6, %v1033_v8, 0.0  ;;  %v1036_v20 = vsel %vm3654_vm8, %v1034_v19, 0.0  ;;  %vm5425_vm11 = vcmp.lt.s32.totalorder %v3563_v41, 113  ;;  %v4126_v8 = vld [vmem:[%s5381_s1 + $0x5c] sm:$0xf] }
 0x1d4   : > { %v998_v31 = vadd.f32 %v996_v7, %v987_v6  ;;  %v1042_v58 = vperm.slane %v1035_v36, 0  ;;  %v1043_v52 = vperm.slane %v1036_v20, 0  ;;  %v1052_v23 = vperm.slane %v1035_v36, 1  ;;  %vm5426_vm10 = vmmov %vm5425_vm11 }
 0x1d5   : > { %v1053_v26 = vperm.slane %v1036_v20, 1  ;;  %v1082_v45 = vsel %vm5425_vm11, %v1079_v11, %v4038_v55  ;;  %v1083_v39 = vsel %vm5426_vm10, %v4038_v55, %v1079_v11  ;;  %v1063_v7 = vperm.slane %v1036_v20, 2 }
 0x1d6   : > { %v1008_v14 = vadd.f32 %v1006_v44, %v998_v31  ;;  %v1044_v17 = vmul.f32 %v1042_v58, %v3974_v63  ;;  %v1045_v29 = vmul.f32 %v1043_v52, %v3974_v63  ;;  %v1084_v63 = vsel %vm3580_vm2, %v1082_v45, 0.0 }
 0x1d7   : > { %3292 = vset.pattern.permute.xlu1 %v5392_v3  ;;  %v1073_v31 = vperm.slane %v1036_v20, 3  ;;  %v1101_v48 = vperm.slane %v1084_v63, 1  ;;  %vm5427_vm10 = vcmp.lt.s32.totalorder %v3563_v41, 112 }
 0x1d8   : > { %1393 = vperm.xlu1 %3292, %v3928_v0   ;;  %v984_v0 = vmul.f32 %v982_v25, %v4011_v13  ;;  %v4080_v30 = vpop.permute.xlu2 %1098  ;;  %vm5428_vm11 = vmmov %vm5427_vm10 }
 0x1d9   : > { %v4059_v61 = vpop.permute.xlu1 %1049 }
 0x1da   : > { %v986_v51 = vadd.f32 %v984_v0, %v976_v12  ;;  %v1018_v12 = vadd.f32 %v1016_v35, %v1008_v14  ;;  %v1054_v57 = vmul.f32 %v1052_v23, %v4059_v61  ;;  %v1055_v34 = vmul.f32 %v1053_v26, %v4059_v61 }
 0x1db   : > { %3293 = vset.pattern.permute.xlu2 %v5388_v2  ;;  %v1065_v61 = vmul.f32 %v1063_v7, %v4045_v37 }
 0x1dc   : > { %1417 = vperm.xlu2 %3293, %v4064_v33   ;;  %v997_v42 = vadd.f32 %v995_v16, %v986_v51  ;;  %v1028_v0 = vadd.f32 %v1026_v22, %v1018_v12  ;;  %v1062_v16 = vperm.slane %v1035_v36, 2 }
 0x1de   : > { %v1007_v38 = vadd.f32 %v1005_v59, %v997_v42  ;;  %v1047_v6 = vadd.f32 %v1045_v29, %v1028_v0  ;;  %v1085_v59 = vsel %vm3774_vm14, %v1083_v39, 0.0  ;;  %v1072_v42 = vperm.slane %v1035_v36, 3 }
 0x1df   : > { %v1064_v40 = vmul.f32 %v1062_v16, %v4045_v37  ;;  %v1092_v14 = vperm.slane %v1085_v59, 0  ;;  %v1103_v0 = vmul.f32 %v1101_v48, %v4080_v30  ;;  %v1121_v29 = vperm.slane %v1084_v63, 3 }
 0x1e0   : > { %3294 = vset.pattern.permute.xlu1 %v5397_v1  ;;  %v1017_v10 = vadd.f32 %v1015_v60, %v1007_v38  ;;  %v1128_v18 = vpop.permute.xlu2 %1127  ;;  %v1057_v11 = vadd.f32 %v1055_v34, %v1047_v6  ;;  %v1122_v23 = vperm.slane %v1085_v59, 3 }
 0x1e1   : > { %1437 = vperm.xlu1 %3294, %v4064_v33  }
 0x1e2   : > { %v1070_v13 = vpop.permute.xlu1 %1069  ;;  %v1027_v53 = vadd.f32 %v1025_v24, %v1017_v10  ;;  %v1067_v35 = vadd.f32 %v1065_v61, %v1057_v11  ;;  %v1102_v10 = vperm.slane %v1085_v59, 1  ;;  %v1148_v61 = vpop.permute.xlu0 %1147 }
 0x1e3   : > { %v1074_v56 = vmul.f32 %v1072_v42, %v1070_v13  ;;  %v1075_v38 = vmul.f32 %v1073_v31, %v1070_v13 }
 0x1e4   : > { %3295 = vset.pattern.permute.xlu2 %v5392_v3  ;;  %v1046_v51 = vadd.f32 %v1044_v17, %v1027_v53  ;;  %v1112_v53 = vperm.slane %v1085_v59, 2  ;;  %v1104_v17 = vmul.f32 %v1102_v10, %v4080_v30 }
 0x1e5   : > { %1447 = vperm.xlu2 %3295, %v4064_v33   ;;  %v1077_v37 = vadd.f32 %v1075_v38, %v1067_v35 }
 0x1e6   : > { %v1056_v55 = vadd.f32 %v1054_v57, %v1046_v51  ;;  %v1114_v57 = vmul.f32 %v1112_v53, %v4051_v15 }
 0x1e8   : > { %v1138_v19 = vpop.permute.xlu2 %1137  ;;  %v1066_v60 = vadd.f32 %v1064_v40, %v1056_v55 }
 0x1e9   : > { %3296 = vset.pattern.permute.xlu1 %v5388_v2 }
 0x1ea   : > { %1458 = vperm.xlu1 %3296, %v3953_v9   ;;  %v1076_v21 = vadd.f32 %v1074_v56, %v1066_v60 }
 0x1eb   : > { %v1089_v25 = vpop.permute.xlu1 %1088 }
 0x1ec   : > { %v1094_v20 = vmul.f32 %v1092_v14, %v1089_v25 }
 0x1ed   : > { %3297 = vset.pattern.permute.xlu2 %v5390_v5 }
 0x1ee   : > { %1472 = vperm.xlu2 %3297, %v3953_v9   ;;  %v1096_v24 = vadd.f32 %v1094_v20, %v1077_v37 }
 0x1f0   : > { %v1106_v45 = vadd.f32 %v1104_v17, %v1096_v24  ;;  %v1187_v17 = vpop.permute.xlu0 %1186 }
 0x1f2   : > { %3298 = vset.pattern.permute.xlu1 %v5392_v3 }
 0x1f3   : > { %1500 = vperm.xlu1 %3298, %v3953_v9   ;;  %v1091_v9 = vperm.slane %v1084_v63, 0 }
 0x1f4   : > { %v1119_v44 = vpop.permute.xlu1 %1118 }
 0x1f5   : > { %v1093_v36 = vmul.f32 %v1091_v9, %v1089_v25  ;;  %v1111_v25 = vperm.slane %v1084_v63, 2  ;;  %v1123_v34 = vmul.f32 %v1121_v29, %v1119_v44  ;;  %v1124_v16 = vmul.f32 %v1122_v23, %v1119_v44 }
 0x1f6   : > { %3299 = vset.pattern.permute.xlu2 %v5388_v2  ;;  %v1116_v63 = vadd.f32 %v1114_v57, %v1106_v45 }
 0x1f7   : > { %1528 = vperm.xlu2 %3299, %v4126_v8   ;;  %v1095_v12 = vadd.f32 %v1093_v36, %v1076_v21  ;;  %v1113_v6 = vmul.f32 %v1111_v25, %v4051_v15  ;;  %v4147_v15 = vld [vmem:[%s5381_s1 + $0x60] sm:$0xf] }
 0x1f8   : > { %v1126_v42 = vadd.f32 %v1124_v16, %v1116_v63 }
 0x1f9   : > { %v1105_v26 = vadd.f32 %v1103_v0, %v1095_v12  ;;  %v4163_v0 = vld [vmem:[%s5381_s1 + $0x64] sm:$0xf] }
 0x1fb   : > { %3300 = vset.pattern.permute.xlu1 %v5397_v1  ;;  %v1115_v30 = vadd.f32 %v1113_v6, %v1105_v26 }
 0x1fc   : > { %v1130_v13 = vpop.permute.xlu1 %1129  ;;  %1548 = vperm.xlu1 %3300, %v4126_v8  }
 0x1fd   : > { %v1132_v22 = vsel %vm5427_vm10, %v1130_v13, %v1128_v18  ;;  %v1131_v58 = vsel %vm5428_vm11, %v1128_v18, %v1130_v13  ;;  %v1168_v18 = vpop.permute.xlu2 %1167  ;;  %v1125_v11 = vadd.f32 %v1123_v34, %v1115_v30  ;;  %vm5396_vm10 = vcmask 1043456  }
 0x1fe   : > { %v1134_v52 = vsel %vm240_vm12, %v1132_v22, 0.0  ;;  %v1140_v39 = vperm.slane %v1131_v58, 0  ;;  %v1150_v31 = vperm.slane %v1131_v58, 1  ;;  %v1170_v24 = vperm.slane %v1131_v58, 3 }
 0x1ff   : > { %3301 = vset.pattern.permute.xlu2 %v5392_v3  ;;  %v1141_v51 = vperm.slane %v1134_v52, 0  ;;  %v1151_v40 = vperm.slane %v1134_v52, 1  ;;  %v1161_v60 = vperm.slane %v1134_v52, 2  ;;  %v1171_v22 = vperm.slane %v1134_v52, 3 }
 0x200   : > { %1558 = vperm.xlu2 %3301, %v4126_v8   ;;  %v1142_v59 = vmul.f32 %v1140_v39, %v1138_v19  ;;  %v1152_v44 = vmul.f32 %v1150_v31, %v1148_v61  ;;  %v1172_v26 = vmul.f32 %v1170_v24, %v1168_v18  ;;  %vm5432_vm11 = vcmp.lt.s32.totalorder %v3563_v41, 1 }
 0x201   : > { %v1143_v55 = vmul.f32 %v1141_v51, %v1138_v19  ;;  %v1153_v9 = vmul.f32 %v1151_v40, %v1148_v61  ;;  %v1160_v19 = vperm.slane %v1131_v58, 2  ;;  %v1173_v45 = vmul.f32 %v1171_v22, %v1168_v18 }
 0x202   : > { %v1144_v56 = vadd.f32 %v1142_v59, %v1125_v11 }
 0x203   : > { %v1145_v38 = vadd.f32 %v1143_v55, %v1126_v42 }
 0x204   : > { %v1158_v7 = vpop.permute.xlu1 %1157  ;;  %3302 = vset.pattern.permute.xlu1 %v5390_v5  ;;  %v1154_v36 = vadd.f32 %v1152_v44, %v1144_v56 }
 0x205   : > { %1592 = vperm.xlu1 %3302, %v4147_v15   ;;  %v1179_v14 = vpop.permute.xlu2 %1178  ;;  %v1155_v20 = vadd.f32 %v1153_v9, %v1145_v38  ;;  %v1162_v48 = vmul.f32 %v1160_v19, %v1158_v7  ;;  %v1163_v13 = vmul.f32 %v1161_v60, %v1158_v7 }
 0x207   : > { %v1164_v29 = vadd.f32 %v1162_v48, %v1154_v36  ;;  %v1165_v23 = vadd.f32 %v1163_v13, %v1155_v20 }
 0x208   : > { %3303 = vset.pattern.permute.xlu2 %v5397_v1 }
 0x209   : > { %1602 = vperm.xlu2 %3303, %v4147_v15   ;;  %v1174_v57 = vadd.f32 %v1172_v26, %v1164_v29  ;;  %v1175_v34 = vadd.f32 %v1173_v45, %v1165_v23 }
 0x20c   : > { %v1177_v35 = vpop.permute.xlu1 %1176 }
 0x20d   : > { %v1180_v21 = vsel %vm733_vm13, %v1177_v35, %v1179_v14  ;;  %v1181_v37 = vsel %vm733_vm13, %v1179_v14, %v1177_v35  ;;  %3304 = vset.pattern.permute.xlu1 %v5392_v3  ;;  %v1207_v30 = vpop.permute.xlu2 %1206 }
 0x20e   : > { %v1182_v10 = vsel %vm3643_vm6, %v1180_v21, 0.0  ;;  %v1183_v12 = vsel %vm3828_vm15, %v1181_v37, 0.0  ;;  %1612 = vperm.xlu1 %3304, %v4147_v15  }
 0x20f   : > { %v1189_v25 = vperm.slane %v1182_v10, 0  ;;  %v1190_v53 = vperm.slane %v1183_v12, 0  ;;  %v1199_v51 = vperm.slane %v1182_v10, 1  ;;  %v1200_v6 = vperm.slane %v1183_v12, 1 }
 0x210   : > { %v1209_v63 = vperm.slane %v1182_v10, 2  ;;  %v1210_v59 = vperm.slane %v1183_v12, 2  ;;  %v1219_v61 = vperm.slane %v1182_v10, 3  ;;  %v1220_v56 = vperm.slane %v1183_v12, 3 }
 0x211   : > { %3306 = vset.pattern.permute.xlu2 %v5390_v5  ;;  %v1191_v58 = vmul.f32 %v1189_v25, %v1187_v17  ;;  %v1192_v52 = vmul.f32 %v1190_v53, %v1187_v17 }
 0x212   : > { %1646 = vperm.xlu2 %3306, %v4163_v0   ;;  %v1211_v31 = vmul.f32 %v1209_v63, %v1207_v30  ;;  %v1212_v40 = vmul.f32 %v1210_v59, %v1207_v30 }
 0x213   : > { %v1193_v55 = vadd.f32 %v1191_v58, %v1174_v57  ;;  %v1194_v11 = vadd.f32 %v1192_v52, %v1175_v34 }
 0x214   : > { %v1197_v39 = vpop.permute.xlu1 %1196 }
 0x215   : > { %v1201_v16 = vmul.f32 %v1199_v51, %v1197_v39  ;;  %v1202_v7 = vmul.f32 %v1200_v6, %v1197_v39  ;;  %v1228_v36 = vpop.permute.xlu2 %1227 }
 0x216   : > { %3305 = vset.pattern.permute.xlu1 %v5388_v2 }
 0x217   : > { %v1203_v42 = vadd.f32 %v1201_v16, %v1193_v55  ;;  %v1204_v18 = vadd.f32 %v1202_v7, %v1194_v11 }
 0x219   : > { %v1213_v44 = vadd.f32 %v1211_v31, %v1203_v42  ;;  %v1214_v9 = vadd.f32 %v1212_v40, %v1204_v18  ;;  %v228_v42 = vld [vmem:[%s5382_s2 + $0x8] sm:$0xf]  ;;  %v201_v18 = vld [vmem:[%s5381_s1 + $0x74] sm:$0xf] }
 0x21a   : > { %3309 = vset.pattern.permute.xlu2 %v5388_v2 }
 0x21d   : > { %v1217_v38 = vpop.permute.xlu1 %1216 }
 0x21e   : > { %v1221_v14 = vmul.f32 %v1219_v61, %v1217_v38  ;;  %v1222_v19 = vmul.f32 %v1220_v56, %v1217_v38  ;;  %v4258_v61 = vld [vmem:[%s5381_s1 + $0x7c] sm:$0xf] }
 0x220   : > { %v1223_v60 = vadd.f32 %v1221_v14, %v1213_v44  ;;  %v1224_v35 = vadd.f32 %v1222_v19, %v1214_v9  ;;  %v4269_v44 = vld [vmem:[%s5381_s1 + $0x70] sm:$0xf]  ;;  %v4271_v9 = vpop.permute.xlu0 %1309 }
 0x222   : > { %v1231_v20 = vadd.f32 %v1228_v36, %v1224_v35  ;;  %v1230_v21 = vadd.f32 %v1228_v36, %v1223_v60  ;;  %v202_v35 = vld [vmem:[%s5381_s1 + $0x78] sm:$0xf] }
 0x224   : > { %v1234_v37 = vrot.slane %v1231_v20, 4 }
 0x226   : > { %v1236_v48 = vsel %vm5396_vm10, %v1230_v21, %v1234_v37  ;;  %v4179_v25 = vpop.permute.xlu1 %1275  ;;  %vm5433_vm10 = vmmov %vm5432_vm11 }
 0x227   : > { %v4173_v13 = vadd.f32 %v1236_v48, %v3473_v4  ;;  %v4185_v4 = vpop.permute.xlu2 %1255 }
 0x228   : > { %v4279_v19 = vpop.permute.xlu0 %1383 }
 0x229   : > { %5429 = vst [vmem:[#allocation5_spill] sm:$0xff] %v4173_v13 }
 0x22a   : > { %1240 = vst [vmem:[#allocation1] ss:$2 sm:$0xff] %v4173_v13 }
 0x22f   : > { %v4192_v29 = vpop.permute.xlu1 %1319  ;;  %v4194_v23 = vpop.permute.xlu2 %1285 }
 0x230   : > { %v4292_v20 = vpop.permute.xlu0 %1486 }
 0x231   : > { %v1242_v10 = vld.sshfl [vmem:[#allocation1 + $0x8] sm:$0xff pattern:$0x75316420]  ;;  %v1241_v12 = vld.sshfl [vmem:[#allocation1] sm:$0xff pattern:$0x75316420] }
 0x232   : > { %1247 = vrot.lane.b32.xlu1 %v1242_v10, %s3423_s20  ;;  %1245 = vrot.lane.b32.xlu0 %v1241_v12, %s3423_s20  ;;  %1294 = vst [vmem:[#allocation1] ss:$2 sm:$0xff] %v4173_v13 }
 0x237   : > { %v4205_v39 = vpop.permute.xlu2 %1329 }
 0x238   : > { %v4201_v58 = vpop.permute.xlu1 %1339 }
 0x239   : > { %v1296_v24 = vld.sshfl [vmem:[#allocation1 + $0x8] sm:$0xff pattern:$0x75316420]  ;;  %v1295_v22 = vld.sshfl [vmem:[#allocation1] sm:$0xff pattern:$0x75316420] }
 0x23a   : > { %1656 = vperm.xlu0 %3291, %v4163_v0   ;;  %1301 = vrot.lane.b32.xlu2 %v1296_v24, %s3424_s23  ;;  %1348 = vst [vmem:[#allocation1] ss:$2 sm:$0xff] %v4173_v13 }
 0x23b   : > { %1299 = vrot.lane.b32.xlu1 %v1295_v22, %s3424_s23 }
 0x23f   : > { %v4217_v34 = vpop.permute.xlu2 %1373 }
 0x241   : > { %v1349_v53 = vld.sshfl [vmem:[#allocation1] sm:$0xff pattern:$0x75316420]  ;;  %v1350_v17 = vld.sshfl [vmem:[#allocation1 + $0x8] sm:$0xff pattern:$0x75316420]  ;;  %v4212_v51 = vpop.permute.xlu1 %1363 }
 0x242   : > { %3307 = vset.pattern.permute.xlu0 %v5390_v5  ;;  %1353 = vrot.lane.b32.xlu2 %v1349_v53, %s3425_s24  ;;  %1402 = vst [vmem:[#allocation1] ss:$2 sm:$0xff] %v4173_v13 }
 0x243   : > { %1636 = vperm.xlu1 %3305, %v4163_v0   ;;  %1265 = vperm.xlu0 %3307, %v3982_v28  }
 0x247   : > { %v4226_v63 = vpop.permute.xlu2 %1417 }
 0x249   : > { %v1404_v26 = vld.sshfl [vmem:[#allocation1 + $0x8] sm:$0xff pattern:$0x75316420]  ;;  %v1403_v45 = vld.sshfl [vmem:[#allocation1] sm:$0xff pattern:$0x75316420] }
 0x24a   : > { %1407 = vrot.lane.b32.xlu2 %v1403_v45, %s3426_s25  ;;  %1513 = vst [vmem:[#allocation1] ss:$2 sm:$0xff] %v4173_v13  ;;  %v4219_v30 = vpop.permute.xlu1 %1393 }
 0x24b   : > { %1409 = vrot.lane.b32.xlu1 %v1404_v26, %s3426_s25  ;;  %1427 = vperm.xlu0 %3307, %v4064_v33   ;;  %v198_v33 = vld [vmem:[%s5381_s1 + $0x68] sm:$0xf] }
 0x24c   : > { %3308 = vset.pattern.permute.xlu1 %v5392_v3 }
 0x24f   : > { %v4233_v55 = vpop.permute.xlu2 %1447 }
 0x251   : > { %v1515_v52 = vld.sshfl [vmem:[#allocation1 + $0x8] sm:$0xff pattern:$0x75316420]  ;;  %v1514_v28 = vld.sshfl [vmem:[#allocation1] sm:$0xff pattern:$0x75316420] }
 0x252   : > { %1518 = vrot.lane.b32.xlu2 %v1514_v28, %s3427_s9  ;;  %1567 = vst [vmem:[#allocation1] ss:$2 sm:$0xff] %v4173_v13 }
 0x253   : > { %1520 = vrot.lane.b32.xlu1 %v1515_v52, %s3427_s9  ;;  %1355 = vrot.lane.b32.xlu0 %v1350_v17, %s3425_s24 }
 0x257   : > { %v4246_v31 = vpop.permute.xlu2 %1472 }
 0x259   : > { %v1568_v6 = vld.sshfl [vmem:[#allocation1] sm:$0xff pattern:$0x75316420]  ;;  %v1569_v57 = vld.sshfl [vmem:[#allocation1 + $0x8] sm:$0xff pattern:$0x75316420] }
 0x25a   : > { %1690 = vperm.xlu2 %3309, %v198_v33   ;;  %1621 = vst [vmem:[#allocation1] ss:$2 sm:$0xff] %v4173_v13 }
 0x25b   : > { %1572 = vrot.lane.b32.xlu1 %v1568_v6, %s3428_s14  ;;  %1538 = vperm.xlu0 %3307, %v4126_v8   ;;  %v4230_v8 = vpop.permute.xlu1 %1437 }
 0x25f   : > { %v4260_v56 = vpop.permute.xlu2 %1528 }
 0x261   : > { %v1623_v16 = vld.sshfl [vmem:[#allocation1 + $0x8] sm:$0xff pattern:$0x75316420]  ;;  %v1622_v7 = vld.sshfl [vmem:[#allocation1] sm:$0xff pattern:$0x75316420] }
 0x262   : > { %1574 = vrot.lane.b32.xlu2 %v1569_v57, %s3428_s14  ;;  %1675 = vst [vmem:[#allocation1] ss:$2 sm:$0xff] %v4173_v13 }
 0x263   : > { %1666 = vperm.xlu1 %3308, %v4163_v0   ;;  %1628 = vrot.lane.b32.xlu0 %v1623_v16, %s3430_s19  ;;  %v4238_v0 = vpop.permute.xlu1 %1458 }
 0x264   : > { %3312 = vset.pattern.permute.xlu2 %v5392_v3 }
 0x267   : > { %v4276_v14 = vpop.permute.xlu2 %1558 }
 0x269   : > { %v1677_v59 = vld.sshfl [vmem:[#allocation1 + $0x8] sm:$0xff pattern:$0x75316420]  ;;  %v1676_v11 = vld.sshfl [vmem:[#allocation1] sm:$0xff pattern:$0x75316420] }
 0x26a   : > { %1626 = vrot.lane.b32.xlu2 %v1622_v7, %s3430_s19 }
 0x26b   : > { %1682 = vrot.lane.b32.xlu1 %v1677_v59, %s3429_s15  ;;  %1700 = vperm.xlu0 %3307, %v198_v33   ;;  %v4249_v40 = vpop.permute.xlu1 %1500 }
 0x26c   : > { %3311 = vset.pattern.permute.xlu1 %v5397_v1 }
 0x26f   : > { %v4290_v36 = vpop.permute.xlu2 %1602 }
 0x272   : > { %1680 = vrot.lane.b32.xlu2 %v1676_v11, %s3429_s15 }
 0x273   : > { %1710 = vperm.xlu1 %3311, %v198_v33   ;;  %3310 = vset.pattern.permute.xlu0 %v5388_v2  ;;  %v4264_v38 = vpop.permute.xlu1 %1548 }
 0x274   : > { %1582 = vperm.xlu0 %3310, %v4147_v15   ;;  %v199_v15 = vld [vmem:[%s5381_s1 + $0x6c] sm:$0xf] }
 0x277   : > { %v4298_v37 = vpop.permute.xlu2 %1646 }
 0x27a   : > { %1720 = vperm.xlu2 %3312, %v198_v33  }
 0x27b   : > { %3313 = vset.pattern.permute.xlu1 %v5388_v2  ;;  %v4281_v60 = vpop.permute.xlu1 %1592 }
 0x27c   : > { %1731 = vperm.xlu1 %3313, %v228_v42   ;;  %1846 = vperm.xlu0 %3310, %v201_v18  }
 0x282   : > { %3314 = vset.pattern.permute.xlu2 %v5390_v5 }
 0x283   : > { %1758 = vperm.xlu2 %3314, %v199_v15   ;;  %v4294_v21 = vpop.permute.xlu1 %1612 }
 0x284   : > { %1748 = vperm.xlu1 %3313, %v199_v15   ;;  %3328 = vset.pattern.permute.xlu0 %v5392_v3 }
 0x285   : > { %1966 = vperm.xlu0 %3328, %v4258_v61  }
 0x28b   : > { %3316 = vset.pattern.permute.xlu2 %v5388_v2 }
 0x28c   : > { %3315 = vset.pattern.permute.xlu1 %v5392_v3  ;;  %1797 = vperm.xlu2 %3316, %v4269_v44  }
 0x28d   : > { %1778 = vperm.xlu1 %3315, %v199_v15   ;;  %3329 = vset.pattern.permute.xlu0 %v5397_v1 }
 0x28e   : > { %1768 = vperm.xlu0 %3329, %v199_v15  }
 0x294   : > { %3318 = vset.pattern.permute.xlu2 %v5392_v3  ;;  %v1302_v12 = vpop.permute.xlu2 %1301 }
 0x295   : > { %3317 = vset.pattern.permute.xlu1 %v5397_v1  ;;  %1827 = vperm.xlu2 %3318, %v4269_v44  }
 0x296   : > { %1817 = vperm.xlu1 %3317, %v4269_v44   ;;  %1915 = vperm.xlu0 %3329, %v202_v35  }
 0x29c   : > { %v1354_v16 = vpop.permute.xlu2 %1353 }
 0x29d   : > { %3320 = vset.pattern.permute.xlu2 %v5397_v1 }
 0x29e   : > { %3319 = vset.pattern.permute.xlu1 %v5390_v5  ;;  %1866 = vperm.xlu2 %3320, %v201_v18  }
 0x29f   : > { %1856 = vperm.xlu1 %3319, %v201_v18  }
 0x2a4   : > { %v1246_v48 = vpop.permute.xlu0 %1245  ;;  %v1248_v10 = vpop.permute.xlu1 %1247 }
 0x2a5   : > { %v1249_v22 = vsel %vm263_vm0, %v1246_v48, %v1248_v10  ;;  %v1250_v53 = vsel %vm263_vm0, %v1248_v10, %v1246_v48 }
 0x2a6   : > { %3323 = vset.pattern.permute.xlu2 %v5390_v5  ;;  %v1251_v17 = vsel %vm3600_vm4, %v1250_v53, 0.0  ;;  %v1252_v26 = vsel %vm3586_vm3, %v1249_v22, 0.0 }
 0x2a7   : > { %3321 = vset.pattern.permute.xlu1 %v5392_v3  ;;  %1905 = vperm.xlu2 %3323, %v202_v35   ;;  %v1258_v52 = vperm.slane %v1251_v17, 0  ;;  %v1259_v28 = vperm.slane %v1252_v26, 0  ;;  %v1278_v6 = vperm.slane %v1251_v17, 2  ;;  %v1279_v57 = vperm.slane %v1252_v26, 2 }
 0x2a8   : > { %1876 = vperm.xlu1 %3321, %v201_v18   ;;  %v1268_v7 = vperm.slane %v1251_v17, 1  ;;  %v1269_v59 = vperm.slane %v1252_v26, 1  ;;  %v1288_v11 = vperm.slane %v1251_v17, 3  ;;  %v1289_v42 = vperm.slane %v1252_v26, 3 }
 0x2a9   : > { %v1260_v10 = vmul.f32 %v1258_v52, %v4185_v4  ;;  %v1261_v22 = vmul.f32 %v1259_v28, %v4185_v4  ;;  %v1280_v5 = vmul.f32 %v1278_v6, %v4179_v25  ;;  %v1281_v3 = vmul.f32 %v1279_v57, %v4179_v25 }
 0x2aa   : > { %v1290_v52 = vmul.f32 %v1288_v11, %v4194_v23  ;;  %v1291_v4 = vmul.f32 %v1289_v42, %v4194_v23 }
 0x2ac   : > { %v4302_v24 = vpop.permute.xlu0 %1656 }
 0x2ad   : > { %v1300_v45 = vpop.permute.xlu1 %1299 }
 0x2ae   : > { %v1304_v33 = vsel %vm322_vm5, %v1302_v12, %v1300_v45  ;;  %v1303_v18 = vsel %vm322_vm5, %v1300_v45, %v1302_v12  ;;  %v5430_v45 = vmov 3  }
 0x2af   : > { %3325 = vset.pattern.permute.xlu2 %v5388_v2  ;;  %v1305_v15 = vsel %vm237_vm1, %v1304_v33, 0.0  ;;  %v1313_v26 = vperm.slane %v1303_v18, 0  ;;  %v1323_v57 = vperm.slane %v1303_v18, 1 }
 0x2b0   : > { %3322 = vset.pattern.permute.xlu1 %v5388_v2  ;;  %1936 = vperm.xlu2 %3325, %v4258_v61   ;;  %v1312_v17 = vperm.slane %v1305_v15, 0  ;;  %v1322_v25 = vperm.slane %v1305_v15, 1  ;;  %v1332_v42 = vperm.slane %v1305_v15, 2 }
 0x2b1   : > { %1895 = vperm.xlu1 %3322, %v202_v35   ;;  %v1325_v23 = vmul.f32 %v1323_v57, %v4192_v29 }
 0x2b2   : > { %v1324_v11 = vmul.f32 %v1322_v25, %v4192_v29 }
 0x2b5   : > { %v1266_v48 = vpop.permute.xlu0 %1265  ;;  %v4330_v28 = vpop.permute.xlu1 %1636 }
 0x2b6   : > { %v1270_v53 = vmul.f32 %v1268_v7, %v1266_v48  ;;  %v1271_v2 = vmul.f32 %v1269_v59, %v1266_v48  ;;  %v1314_v7 = vmul.f32 %v1312_v17, %v4271_v9  ;;  %v1315_v59 = vmul.f32 %v1313_v26, %v4271_v9 }
 0x2b7   : > { %v1334_v9 = vmul.f32 %v1332_v42, %v4205_v39  ;;  %v5434_v42 = vmov 0  }
 0x2b8   : > { %3327 = vset.pattern.permute.xlu2 %v5397_v1  ;;  %v1272_v54 = vadd.f32 %v1270_v53, %v1260_v10  ;;  %v1273_v12 = vadd.f32 %v1271_v2, %v1261_v22  ;;  %v1408_v22 = vpop.permute.xlu2 %1407 }
 0x2b9   : > { %3324 = vset.pattern.permute.xlu1 %v5430_v45  ;;  %1956 = vperm.xlu2 %3327, %v4258_v61  }
 0x2ba   : > { %1925 = vperm.xlu1 %3324, %v202_v35   ;;  %v1282_v33 = vadd.f32 %v1280_v5, %v1272_v54  ;;  %v1283_v6 = vadd.f32 %v1281_v3, %v1273_v12  ;;  %v1333_v5 = vperm.slane %v1303_v18, 2  ;;  %v5431_v3 = vmov 1  }
 0x2bb   : > { %v1342_v12 = vperm.slane %v1305_v15, 3 }
 0x2bc   : > { %v1292_v2 = vadd.f32 %v1290_v52, %v1282_v33  ;;  %v1293_v48 = vadd.f32 %v1291_v4, %v1283_v6  ;;  %v1335_v26 = vmul.f32 %v1333_v5, %v4205_v39  ;;  %v1343_v52 = vperm.slane %v1303_v18, 3 }
 0x2bd   : > { %v4334_v10 = vpop.permute.xlu0 %1427  ;;  %v1410_v4 = vpop.permute.xlu1 %1409  ;;  %v1344_v39 = vmul.f32 %v1342_v12, %v4201_v58 }
 0x2be   : > { %v1316_v35 = vadd.f32 %v1314_v7, %v1292_v2  ;;  %v1317_v53 = vadd.f32 %v1315_v59, %v1293_v48  ;;  %v1411_v7 = vsel %vm5432_vm11, %v1408_v22, %v1410_v4  ;;  %v1345_v18 = vmul.f32 %v1343_v52, %v4201_v58 }
 0x2c0   : > { %v1326_v54 = vadd.f32 %v1324_v11, %v1316_v35  ;;  %v1327_v17 = vadd.f32 %v1325_v23, %v1317_v53  ;;  %v4353_v15 = vpop.permute.xlu2 %1518 }
 0x2c1   : > { %3331 = vset.pattern.permute.xlu2 %v5431_v3 }
 0x2c2   : > { %3326 = vset.pattern.permute.xlu1 %v5431_v3  ;;  %v1336_v6 = vadd.f32 %v1334_v9, %v1326_v54  ;;  %v1337_v29 = vadd.f32 %v1335_v26, %v1327_v17 }
 0x2c3   : > { %1946 = vperm.xlu1 %3326, %v4258_v61   ;;  %v1412_v61 = vsel %vm5433_vm10, %v1410_v4, %v1408_v22  ;;  %v4365_v22 = vsel %vm3586_vm3, %v1411_v7, 0.0  ;;  %vm5435_vm10 = vcmp.lt.s32.totalorder %v3563_v41, 127 }
 0x2c4   : > { %v4361_v11 = vsel %vm3580_vm2, %v1412_v61, 0.0  ;;  %v1346_v58 = vadd.f32 %v1344_v39, %v1336_v6  ;;  %v1347_v23 = vadd.f32 %v1345_v18, %v1337_v29  ;;  %v1421_v29 = vperm.slane %v4365_v22, 0  ;;  %vm5436_vm11 = vmmov %vm5435_vm10 }
 0x2c5   : > { %v1356_v33 = vpop.permute.xlu0 %1355  ;;  %v1420_v6 = vperm.slane %v4361_v11, 0  ;;  %v1489_v18 = vperm.slane %v4173_v13, 2 }
 0x2c6   : > { %v1357_v25 = vsel %vm381_vm7, %v1354_v16, %v1356_v33  ;;  %v1358_v57 = vsel %vm381_vm7, %v1356_v33, %v1354_v16 }
 0x2c7   : > { %v1359_v59 = vsel %vm3662_vm9, %v1358_v57, 0.0  ;;  %v1360_v2 = vsel %vm3654_vm8, %v1357_v25, 0.0 }
 0x2c8   : > { %v1366_v48 = vperm.slane %v1359_v59, 0  ;;  %v1367_v16 = vperm.slane %v1360_v2, 0  ;;  %v1376_v35 = vperm.slane %v1359_v59, 1  ;;  %v1377_v53 = vperm.slane %v1360_v2, 1 }
 0x2c9   : > { %v1386_v17 = vperm.slane %v1359_v59, 2  ;;  %v1387_v9 = vperm.slane %v1360_v2, 2  ;;  %v1396_v26 = vperm.slane %v1359_v59, 3  ;;  %v1397_v12 = vperm.slane %v1360_v2, 3 }
 0x2ca   : > { %v1368_v5 = vmul.f32 %v1366_v48, %v4212_v51  ;;  %v1369_v54 = vmul.f32 %v1367_v16, %v4212_v51  ;;  %v1378_v33 = vmul.f32 %v1376_v35, %v4217_v34  ;;  %v1379_v25 = vmul.f32 %v1377_v53, %v4217_v34  ;;  %v1521_v48 = vpop.permute.xlu1 %1520 }
 0x2cb   : > { %3330 = vset.pattern.permute.xlu1 %v5434_v42  ;;  %v1388_v51 = vmul.f32 %v1386_v17, %v4279_v19  ;;  %v1389_v39 = vmul.f32 %v1387_v9, %v4279_v19  ;;  %v1490_v59 = vperm.slane %v4173_v13, 6  ;;  %v1430_v2 = vperm.slane %v4361_v11, 1  ;;  %v4386_v19 = vpop.permute.xlu2 %1690 }
 0x2cc   : > { %v1370_v52 = vadd.f32 %v1368_v5, %v1346_v58  ;;  %v1371_v4 = vadd.f32 %v1369_v54, %v1347_v23  ;;  %v1431_v34 = vperm.slane %v4365_v22, 1  ;;  %v1398_v53 = vmul.f32 %v1396_v26, %v4219_v30 }
 0x2cd   : > { %v4372_v57 = vpop.permute.xlu0 %1538  ;;  %v1399_v58 = vmul.f32 %v1397_v12, %v4219_v30  ;;  %v1475_v23 = vperm.slane %v4173_v13, 1  ;;  %v1476_v5 = vperm.slane %v4173_v13, 5  ;;  %v1440_v54 = vperm.slane %v4361_v11, 2 }
 0x2ce   : > { %v1380_v7 = vadd.f32 %v1378_v33, %v1370_v52  ;;  %v1381_v61 = vadd.f32 %v1379_v25, %v1371_v4  ;;  %v1441_v17 = vperm.slane %v4365_v22, 2  ;;  %v1422_v9 = vmul.f32 %v1420_v6, %v4226_v63 }
 0x2cf   : > { %v1423_v52 = vmul.f32 %v1421_v29, %v4226_v63  ;;  %v1461_v26 = vperm.slane %v4173_v13, 0  ;;  %v1462_v30 = vperm.slane %v4173_v13, 4  ;;  %v1450_v12 = vperm.slane %v4361_v11, 3 }
 0x2d0   : > { %v1390_v16 = vadd.f32 %v1388_v51, %v1380_v7  ;;  %v1391_v35 = vadd.f32 %v1389_v39, %v1381_v61  ;;  %v1451_v25 = vperm.slane %v4365_v22, 3  ;;  %v1432_v7 = vmul.f32 %v1430_v2, %v4334_v10 }
 0x2d1   : > { %v1433_v61 = vmul.f32 %v1431_v34, %v4334_v10  ;;  %v1493_v6 = vperm.slane %v1489_v18, 2  ;;  %v1494_v63 = vperm.slane %v1490_v59, 2  ;;  %v1503_v29 = vperm.slane %v4173_v13, 3  ;;  %v204_v10 = vld [vmem:[%s5381_s1 + $0x80] sm:$0xf] }
 0x2d2   : > { %v1400_v4 = vadd.f32 %v1398_v53, %v1390_v16  ;;  %v1401_v33 = vadd.f32 %v1399_v58, %v1391_v35  ;;  %v1504_v16 = vperm.slane %v4173_v13, 7  ;;  %v1442_v35 = vmul.f32 %v1440_v54, %v4230_v8  ;;  %2005 = vperm.xlu0 %3329, %v204_v10   ;;  %1985 = vperm.xlu1 %3330, %v204_v10  }
 0x2d3   : > { %v1443_v11 = vmul.f32 %v1441_v17, %v4230_v8  ;;  %v1465_v2 = vperm.slane %v1461_v26, 0  ;;  %v1466_v34 = vperm.slane %v1462_v30, 0  ;;  %v1522_v18 = vsel %vm5435_vm10, %v4353_v15, %v1521_v48  ;;  %1995 = vperm.xlu2 %3331, %v204_v10   ;;  %v1573_v26 = vpop.permute.xlu1 %1572 }
 0x2d4   : > { %v1424_v51 = vadd.f32 %v1422_v9, %v1400_v4  ;;  %v1425_v39 = vadd.f32 %v1423_v52, %v1401_v33  ;;  %v1523_v59 = vsel %vm5436_vm11, %v1521_v48, %v4353_v15  ;;  %v1452_v8 = vmul.f32 %v1450_v12, %v4233_v55 }
 0x2d5   : > { %v4398_v1 = vpop.permute.xlu0 %1628  ;;  %v1453_v58 = vmul.f32 %v1451_v25, %v4233_v55  ;;  %v1479_v9 = vperm.slane %v1475_v23, 1  ;;  %v1480_v52 = vperm.slane %v1476_v5, 1  ;;  %v1467_v4 = vmul.f32 %v1465_v2, %v4238_v0  ;;  %v1575_v55 = vpop.permute.xlu2 %1574 }
 0x2d6   : > { %v1434_v53 = vadd.f32 %v1432_v7, %v1424_v51  ;;  %v1435_v22 = vadd.f32 %v1433_v61, %v1425_v39  ;;  %v1468_v33 = vmul.f32 %v1466_v34, %v4238_v0  ;;  %v1524_v30 = vsel %vm3643_vm6, %v1522_v18, 0.0 }
 0x2d7   : > { %v1525_v15 = vsel %vm3654_vm8, %v1523_v59, 0.0  ;;  %v1507_v7 = vperm.slane %v1503_v29, 3  ;;  %v1481_v25 = vmul.f32 %v1479_v9, %v4246_v31  ;;  %v1482_v23 = vmul.f32 %v1480_v52, %v4246_v31 }
 0x2d8   : > { %v1444_v54 = vadd.f32 %v1442_v35, %v1434_v53  ;;  %v1445_v17 = vadd.f32 %v1443_v11, %v1435_v22  ;;  %v1495_v51 = vmul.f32 %v1493_v6, %v4292_v20  ;;  %v1508_v0 = vperm.slane %v1504_v16, 3 }
 0x2d9   : > { %v1531_v39 = vperm.slane %v1524_v30, 0  ;;  %v1532_v35 = vperm.slane %v1525_v15, 0  ;;  %v1496_v53 = vmul.f32 %v1494_v63, %v4292_v20  ;;  %vm5437_vm10 = vcmp.lt.s32.totalorder %v3563_v41, 113 }
 0x2da   : > { %v1454_v48 = vadd.f32 %v1452_v8, %v1444_v54  ;;  %v1455_v12 = vadd.f32 %v1453_v58, %v1445_v17  ;;  %v1576_v22 = vsel %vm5437_vm10, %v1573_v26, %v1575_v55  ;;  %v1509_v34 = vmul.f32 %v1507_v7, %v4249_v40  ;;  %3333 = vset.pattern.permute.xlu1 %v5430_v45  ;;  %vm5438_vm11 = vmmov %vm5437_vm10 }
 0x2db   : > { %v1510_v31 = vmul.f32 %v1508_v0, %v4249_v40  ;;  %3332 = vset.pattern.permute.xlu0 %v5431_v3  ;;  %v1551_v6 = vperm.slane %v1524_v30, 2  ;;  %v1577_v16 = vsel %vm5438_vm11, %v1575_v55, %v1573_v26  ;;  %2015 = vperm.xlu1 %3333, %v204_v10   ;;  %v1552_v20 = vperm.slane %v1525_v15, 2  ;;  %v4442_v10 = vpop.permute.xlu1 %1666 }
 0x2dc   : > { %v1469_v5 = vadd.f32 %v1467_v4, %v1454_v48  ;;  %v1470_v61 = vadd.f32 %v1468_v33, %v1455_v12  ;;  %3334 = vset.pattern.permute.xlu2 %v5434_v42  ;;  %v1578_v63 = vsel %vm3580_vm2, %v1576_v22, 0.0  ;;  %v1533_v8 = vmul.f32 %v1531_v39, %v4260_v56 }
 0x2dd   : > { %v4424_v11 = vpop.permute.xlu0 %1700  ;;  %v1534_v40 = vmul.f32 %v1532_v35, %v4260_v56  ;;  %v1541_v17 = vperm.slane %v1524_v30, 1  ;;  %v1542_v9 = vperm.slane %v1525_v15, 1  ;;  %v1561_v52 = vperm.slane %v1524_v30, 3  ;;  %v1627_v55 = vpop.permute.xlu2 %1626 }
 0x2de   : > { %v1483_v29 = vadd.f32 %v1481_v25, %v1469_v5  ;;  %v1484_v2 = vadd.f32 %v1482_v23, %v1470_v61  ;;  %v1562_v4 = vperm.slane %v1525_v15, 3  ;;  %v1579_v33 = vsel %vm3774_vm14, %v1577_v16, 0.0 }
 0x2df   : > { %v1543_v12 = vmul.f32 %v1541_v17, %v4372_v57  ;;  %v1544_v7 = vmul.f32 %v1542_v9, %v4372_v57  ;;  %v1595_v25 = vperm.slane %v1578_v63, 1  ;;  %v1553_v5 = vmul.f32 %v1551_v6, %v4264_v38 }
 0x2e0   : > { %v1497_v18 = vadd.f32 %v1495_v51, %v1483_v29  ;;  %v1498_v59 = vadd.f32 %v1496_v53, %v1484_v2  ;;  %v1554_v30 = vmul.f32 %v1552_v20, %v4264_v38  ;;  %v1596_v15 = vperm.slane %v1579_v33, 1 }
 0x2e1   : > { %v1563_v51 = vmul.f32 %v1561_v52, %v4276_v14  ;;  %v1564_v0 = vmul.f32 %v1562_v4, %v4276_v14  ;;  %v1585_v39 = vperm.slane %v1578_v63, 0  ;;  %vm5439_vm10 = vcmp.lt.s32.totalorder %v3563_v41, 112 }
 0x2e2   : > { %v1511_v58 = vadd.f32 %v1509_v34, %v1497_v18  ;;  %v1512_v54 = vadd.f32 %v1510_v31, %v1498_v59  ;;  %v1631_v57 = vsel %vm5439_vm10, %v4398_v1, %v1627_v55  ;;  %v1586_v22 = vperm.slane %v1579_v33, 0  ;;  %vm5441_vm11 = vmmov %vm5439_vm10 }
 0x2e3   : > { %v5440_v29 = vmov 2   ;;  %v1605_v2 = vperm.slane %v1578_v63, 2  ;;  %v1606_v34 = vperm.slane %v1579_v33, 2  ;;  %v1615_v18 = vperm.slane %v1578_v63, 3  ;;  %v1683_v17 = vpop.permute.xlu1 %1682 }
 0x2e4   : > { %v1535_v26 = vadd.f32 %v1533_v8, %v1511_v58  ;;  %v1536_v48 = vadd.f32 %v1534_v40, %v1512_v54  ;;  %3335 = vset.pattern.permute.xlu1 %v5440_v29  ;;  %v1616_v59 = vperm.slane %v1579_v33, 3  ;;  %v1630_v14 = vsel %vm5441_vm11, %v1627_v55, %v4398_v1 }
 0x2e5   : > { %v1633_v20 = vsel %vm240_vm12, %v1631_v57, 0.0  ;;  %v1597_v58 = vmul.f32 %v1595_v25, %v4281_v60  ;;  %v1598_v54 = vmul.f32 %v1596_v15, %v4281_v60  ;;  %v1607_v9 = vmul.f32 %v1605_v2, %v4290_v36 }
 0x2e6   : > { %v1545_v56 = vadd.f32 %v1543_v12, %v1535_v26  ;;  %v1546_v23 = vadd.f32 %v1544_v7, %v1536_v48  ;;  %v1583_v61 = vpop.permute.xlu0 %1582  ;;  %v1608_v52 = vmul.f32 %v1606_v34, %v4290_v36  ;;  %v1639_v63 = vperm.slane %v1630_v14, 0  ;;  %v1681_v12 = vpop.permute.xlu2 %1680 }
 0x2e7   : > { %v1587_v6 = vmul.f32 %v1585_v39, %v1583_v61  ;;  %v1588_v16 = vmul.f32 %v1586_v22, %v1583_v61  ;;  %v1640_v4 = vperm.slane %v1633_v20, 0  ;;  %v1617_v1 = vmul.f32 %v1615_v18, %v4294_v21 }
 0x2e8   : > { %v1555_v35 = vadd.f32 %v1553_v5, %v1545_v56  ;;  %v1556_v53 = vadd.f32 %v1554_v30, %v1546_v23  ;;  %v1618_v48 = vmul.f32 %v1616_v59, %v4294_v21  ;;  %v1649_v7 = vperm.slane %v1630_v14, 1 }
 0x2e9   : > { %v1650_v55 = vperm.slane %v1633_v20, 1  ;;  %v1684_v25 = vsel %vm733_vm13, %v1681_v12, %v1683_v17  ;;  %v1685_v60 = vsel %vm733_vm13, %v1683_v17, %v1681_v12  ;;  %v1659_v36 = vperm.slane %v1630_v14, 2 }
 0x2ea   : > { %v1565_v31 = vadd.f32 %v1563_v51, %v1555_v35  ;;  %v1566_v38 = vadd.f32 %v1564_v0, %v1556_v53  ;;  %v1660_v5 = vperm.slane %v1633_v20, 2  ;;  %v1641_v30 = vmul.f32 %v1639_v63, %v4330_v28 }
 0x2eb   : > { %v1642_v15 = vmul.f32 %v1640_v4, %v4330_v28  ;;  %v1651_v21 = vmul.f32 %v1649_v7, %v4298_v37  ;;  %v1669_v0 = vperm.slane %v1630_v14, 3  ;;  %v1686_v39 = vsel %vm3643_vm6, %v1684_v25, 0.0  ;;  %v1711_v63 = vpop.permute.xlu1 %1710 }
 0x2ec   : > { %v1589_v8 = vadd.f32 %v1587_v6, %v1565_v31  ;;  %v1590_v40 = vadd.f32 %v1588_v16, %v1566_v38  ;;  %v1687_v35 = vsel %vm3828_vm15, %v1685_v60, 0.0  ;;  %v1652_v53 = vmul.f32 %v1650_v55, %v4298_v37 }
 0x2ed   : > { %v1670_v57 = vperm.slane %v1633_v20, 3  ;;  %v1661_v34 = vmul.f32 %v1659_v36, %v4302_v24  ;;  %v1662_v28 = vmul.f32 %v1660_v5, %v4302_v24  ;;  %v1693_v31 = vperm.slane %v1686_v39, 0 }
 0x2ee   : > { %v1599_v33 = vadd.f32 %v1597_v58, %v1589_v8  ;;  %v1600_v26 = vadd.f32 %v1598_v54, %v1590_v40  ;;  %v1694_v38 = vperm.slane %v1687_v35, 0  ;;  %v1671_v18 = vmul.f32 %v1669_v0, %v4442_v10  ;;  %v1721_v25 = vpop.permute.xlu2 %1720 }
 0x2ef   : > { %v1703_v59 = vperm.slane %v1686_v39, 1  ;;  %v1672_v14 = vmul.f32 %v1670_v57, %v4442_v10  ;;  %v1704_v8 = vperm.slane %v1687_v35, 1  ;;  %v1695_v37 = vmul.f32 %v1693_v31, %v4386_v19 }
 0x2f0   : > { %v1609_v56 = vadd.f32 %v1607_v9, %v1599_v33  ;;  %v1610_v23 = vadd.f32 %v1608_v52, %v1600_v26  ;;  %v1696_v20 = vmul.f32 %v1694_v38, %v4386_v19  ;;  %v1723_v9 = vperm.slane %v1686_v39, 3 }
 0x2f1   : > { %v1724_v24 = vperm.slane %v1687_v35, 3  ;;  %v1705_v52 = vmul.f32 %v1703_v59, %v4424_v11  ;;  %v1713_v4 = vperm.slane %v1686_v39, 2  ;;  %v1706_v33 = vmul.f32 %v1704_v8, %v4424_v11  ;;  %v4564_v59 = vpop.permute.xlu0 %1846 }
 0x2f2   : > { %v1619_v61 = vadd.f32 %v1617_v1, %v1609_v56  ;;  %v1620_v51 = vadd.f32 %v1618_v48, %v1610_v23  ;;  %v1714_v26 = vperm.slane %v1687_v35, 2  ;;  %v1725_v56 = vmul.f32 %v1723_v9, %v1721_v25  ;;  %v229_v9 = vld [vmem:[%s5382_s2 + $0xc] sm:$0xf] }
 0x2f3   : > { %v1715_v48 = vmul.f32 %v1713_v4, %v1711_v63  ;;  %v1726_v23 = vmul.f32 %v1724_v24, %v1721_v25  ;;  %vm5444_vm10 = vcmp.lt.s32.totalorder %v3563_v41, 1 }
 0x2f4   : > { %v1643_v22 = vadd.f32 %v1641_v30, %v1619_v61  ;;  %v1644_v2 = vadd.f32 %v1642_v15, %v1620_v51  ;;  %v1716_v12 = vmul.f32 %v1714_v26, %v1711_v63  ;;  %v1732_v30 = vpop.permute.xlu1 %1731  ;;  %v209_v63 = vld [vmem:[%s5381_s1 + $0x94] sm:$0xf]  ;;  %v4604_v26 = vld [vmem:[%s5381_s1 + $0x9c] sm:$0xf]  ;;  %vm5445_vm11 = vmmov %vm5444_vm10 }
 0x2f6   : > { %v1653_v6 = vadd.f32 %v1651_v21, %v1643_v22  ;;  %v1654_v16 = vadd.f32 %v1652_v53, %v1644_v2  ;;  %v205_v21 = vld [vmem:[%s5381_s1 + $0x84] sm:$0xf]  ;;  %v4501_v0 = vpop.permute.xlu2 %1758  ;;  %v206_v53 = vld [vmem:[%s5381_s1 + $0x88] sm:$0xf] }
 0x2f8   : > { %v1663_v40 = vadd.f32 %v1661_v34, %v1653_v6  ;;  %v1664_v58 = vadd.f32 %v1662_v28, %v1654_v16  ;;  %v207_v28 = vld [vmem:[%s5381_s1 + $0x8c] sm:$0xf]  ;;  %v208_v6 = vld [vmem:[%s5381_s1 + $0x90] sm:$0xf] }
 0x2fa   : > { %v1673_v54 = vadd.f32 %v1671_v18, %v1663_v40  ;;  %v1674_v17 = vadd.f32 %v1672_v14, %v1664_v58  ;;  %v4571_v40 = vpop.permute.xlu0 %1966 }
 0x2fc   : > { %v1697_v1 = vadd.f32 %v1695_v37, %v1673_v54  ;;  %v1698_v10 = vadd.f32 %v1696_v20, %v1674_v17  ;;  %v4503_v39 = vpop.permute.xlu1 %1748 }
 0x2fe   : > { %v1707_v7 = vadd.f32 %v1705_v52, %v1697_v1  ;;  %v1708_v55 = vadd.f32 %v1706_v33, %v1698_v10  ;;  %v4510_v35 = vpop.permute.xlu2 %1797 }
 0x300   : > { %v1717_v60 = vadd.f32 %v1715_v48, %v1707_v7  ;;  %v1718_v19 = vadd.f32 %v1716_v12, %v1708_v55 }
 0x302   : > { %v1727_v36 = vadd.f32 %v1725_v56, %v1717_v60  ;;  %v1728_v5 = vadd.f32 %v1726_v23, %v1718_v19  ;;  %v1769_v20 = vpop.permute.xlu0 %1768  ;;  %v4621_v56 = vld [vmem:[%s5381_s1 + $0x98] sm:$0xf] }
 0x304   : > { %v1734_v15 = vadd.f32 %v1732_v30, %v1727_v36  ;;  %v1735_v61 = vadd.f32 %v1732_v30, %v1728_v5 }
 0x306   : > { %v4485_v51 = vmax.f32 %v1734_v15, 0.0  ;;  %v4487_v11 = vmax.f32 %v1735_v61, 0.0  ;;  %v4525_v57 = vpop.permute.xlu2 %1827 }
 0x308   : > { %1789 = vrot.lane.b32.xlu1 %v4487_v11, %s3424_s23  ;;  %1740 = vrot.lane.b32.xlu0 %v4487_v11, %s3423_s20 }
 0x309   : > { %1738 = vrot.lane.b32.xlu2 %v4485_v51, %s3423_s20 }
 0x30a   : > { %v4587_v24 = vpop.permute.xlu0 %1915 }
 0x30e   : > { %v4536_v2 = vpop.permute.xlu2 %1866 }
 0x310   : > { %1807 = vperm.xlu0 %3332, %v4269_v44   ;;  %1836 = vrot.lane.b32.xlu1 %v4485_v51, %s3425_s24  ;;  %v4517_v44 = vpop.permute.xlu1 %1778 }
 0x311   : > { %2034 = vperm.xlu2 %3334, %v205_v21  }
 0x316   : > { %v4546_v31 = vpop.permute.xlu2 %1905 }
 0x318   : > { %1887 = vrot.lane.b32.xlu0 %v4487_v11, %s3426_s25  ;;  %2054 = vperm.xlu1 %3335, %v205_v21   ;;  %v4529_v22 = vpop.permute.xlu1 %1817 }
 0x319   : > { %1787 = vrot.lane.b32.xlu2 %v4485_v51, %s3424_s23 }
 0x31a   : > { %3336 = vset.pattern.permute.xlu2 %v5430_v45 }
 0x31e   : > { %v4557_v16 = vpop.permute.xlu2 %1936 }
 0x320   : > { %2044 = vperm.xlu0 %3332, %v205_v21   ;;  %1975 = vrot.lane.b32.xlu1 %v4485_v51, %s3427_s9  ;;  %v4538_v34 = vpop.permute.xlu1 %1856 }
 0x321   : > { %1838 = vrot.lane.b32.xlu2 %v4487_v11, %s3425_s24  ;;  %3338 = vset.pattern.permute.xlu1 %v5431_v3 }
 0x326   : > { %v4566_v14 = vpop.permute.xlu2 %1956 }
 0x328   : > { %3337 = vset.pattern.permute.xlu0 %v5434_v42  ;;  %2026 = vrot.lane.b32.xlu1 %v4487_v11, %s3428_s14  ;;  %v4548_v38 = vpop.permute.xlu1 %1876 }
 0x329   : > { %1885 = vrot.lane.b32.xlu2 %v4485_v51, %s3426_s25  ;;  %2083 = vperm.xlu0 %3337, %v206_v53  }
 0x32e   : > { %v4575_v58 = vpop.permute.xlu2 %1995 }
 0x330   : > { %2073 = vrot.lane.b32.xlu1 %v4485_v51, %s3430_s19  ;;  %v4562_v18 = vpop.permute.xlu1 %1895 }
 0x331   : > { %2064 = vperm.xlu2 %3336, %v205_v21   ;;  %2124 = vrot.lane.b32.xlu0 %v4487_v11, %s3429_s15 }
 0x332   : > { %3343 = vset.pattern.permute.xlu0 %v5440_v29 }
 0x338   : > { %2093 = vperm.xlu1 %3338, %v206_v53   ;;  %v4569_v8 = vpop.permute.xlu1 %1925 }
 0x339   : > { %1977 = vrot.lane.b32.xlu2 %v4487_v11, %s3427_s9  ;;  %2152 = vperm.xlu0 %3343, %v207_v28  }
 0x33a   : > { %3339 = vset.pattern.permute.xlu2 %v5440_v29 }
 0x340   : > { %3340 = vset.pattern.permute.xlu1 %v5430_v45  ;;  %v4579_v37 = vpop.permute.xlu1 %1946 }
 0x341   : > { %2024 = vrot.lane.b32.xlu2 %v4485_v51, %s3428_s14  ;;  %2113 = vperm.xlu1 %3340, %v206_v53  }
 0x342   : > { %3346 = vset.pattern.permute.xlu0 %v5434_v42 }
 0x343   : > { %2200 = vperm.xlu0 %3346, %v208_v6  }
 0x344   : > { %v4598_v33 = vpop.permute.xlu0 %2005 }
 0x348   : > { %v4582_v17 = vpop.permute.xlu1 %1985 }
 0x349   : > { %2075 = vrot.lane.b32.xlu2 %v4487_v11, %s3430_s19  ;;  %3341 = vset.pattern.permute.xlu1 %v5434_v42 }
 0x34a   : > { %2132 = vperm.xlu1 %3341, %v207_v28  }
 0x34b   : > { %2362 = vperm.xlu0 %3346, %v4604_v26  }
 0x350   : > { %v4596_v4 = vpop.permute.xlu1 %2015 }
 0x351   : > { %2103 = vperm.xlu2 %3339, %v206_v53  }
 0x352   : > { %3344 = vset.pattern.permute.xlu1 %v5430_v45 }
 0x353   : > { %2162 = vperm.xlu1 %3344, %v207_v28   ;;  %3356 = vset.pattern.permute.xlu0 %v5440_v29 }
 0x354   : > { %2274 = vperm.xlu0 %3356, %v209_v63  }
 0x359   : > { %2122 = vrot.lane.b32.xlu2 %v4485_v51, %s3429_s15 }
 0x35a   : > { %3342 = vset.pattern.permute.xlu2 %v5431_v3 }
 0x35b   : > { %3347 = vset.pattern.permute.xlu1 %v5431_v3 }
 0x35c   : > { %2210 = vperm.xlu1 %3347, %v208_v6  }
 0x361   : > { %2142 = vperm.xlu2 %3342, %v207_v28  }
 0x363   : > { %v1739_v54 = vpop.permute.xlu2 %1738 }
 0x364   : > { %3349 = vset.pattern.permute.xlu1 %v5430_v45 }
 0x365   : > { %2230 = vperm.xlu1 %3349, %v208_v6  }
 0x369   : > { %3345 = vset.pattern.permute.xlu2 %v5434_v42 }
 0x36a   : > { %2173 = vperm.xlu2 %3345, %v229_v9  }
 0x36b   : > { %v4590_v52 = vpop.permute.xlu2 %2034 }
 0x36c   : > { %5442 = vst [vmem:[#allocation6_spill] sm:$0xff] %v4590_v52 }
 0x36d   : > { %3350 = vset.pattern.permute.xlu1 %v5434_v42 }
 0x36e   : > { %2254 = vperm.xlu1 %3350, %v209_v63  }
 0x372   : > { %3348 = vset.pattern.permute.xlu2 %v5440_v29 }
 0x373   : > { %2220 = vperm.xlu2 %3348, %v208_v6   ;;  %v1788_v1 = vpop.permute.xlu2 %1787 }
 0x376   : > { %3352 = vset.pattern.permute.xlu1 %v5430_v45 }
 0x377   : > { %2284 = vperm.xlu1 %3352, %v209_v63  }
 0x37a   : > { %v1790_v10 = vpop.permute.xlu1 %1789  ;;  %v1741_v48 = vpop.permute.xlu0 %1740 }
 0x37b   : > { %v1792_v12 = vsel %vm322_vm5, %v1790_v10, %v1788_v1  ;;  %v1742_v7 = vsel %vm263_vm0, %v1739_v54, %v1741_v48  ;;  %v1743_v55 = vsel %vm263_vm0, %v1741_v48, %v1739_v54  ;;  %3351 = vset.pattern.permute.xlu2 %v5431_v3  ;;  %v1839_v25 = vpop.permute.xlu2 %1838  ;;  %v1791_v28 = vsel %vm322_vm5, %v1788_v1, %v1790_v10 }
 0x37c   : > { %2264 = vperm.xlu2 %3351, %v209_v63   ;;  %v1744_v19 = vsel %vm3600_vm4, %v1743_v55, 0.0  ;;  %v4625_v23 = vsel %vm237_vm1, %v1792_v12, 0.0  ;;  %v1745_v36 = vsel %vm3586_vm3, %v1742_v7, 0.0  ;;  %v1801_v43 = vperm.slane %v1791_v28, 0 }
 0x37d   : > { %v1751_v5 = vperm.slane %v1744_v19, 0  ;;  %v1761_v30 = vperm.slane %v1744_v19, 1  ;;  %v1752_v15 = vperm.slane %v1745_v36, 0  ;;  %v1762_v61 = vperm.slane %v1745_v36, 1 }
 0x37e   : > { %v1771_v21 = vperm.slane %v1744_v19, 2  ;;  %v1772_v53 = vperm.slane %v1745_v36, 2  ;;  %v1781_v9 = vperm.slane %v1744_v19, 3  ;;  %v1782_v12 = vperm.slane %v1745_v36, 3 }
 0x37f   : > { %3354 = vset.pattern.permute.xlu1 %v5440_v29  ;;  %v1753_v6 = vmul.f32 %v1751_v5, %v4503_v39  ;;  %v1763_v54 = vmul.f32 %v1761_v30, %v4501_v0  ;;  %v1754_v63 = vmul.f32 %v1752_v15, %v4503_v39  ;;  %v1764_v48 = vmul.f32 %v1762_v61, %v4501_v0 }
 0x380   : > { %2328 = vperm.xlu1 %3354, %v4621_v56   ;;  %v1800_v7 = vperm.slane %v4625_v23, 0  ;;  %v1773_v60 = vmul.f32 %v1771_v21, %v1769_v20  ;;  %v1774_v10 = vmul.f32 %v1772_v53, %v1769_v20  ;;  %v1821_v52 = vperm.slane %v1791_v28, 2 }
 0x381   : > { %v1765_v55 = vadd.f32 %v1763_v54, %v1753_v6  ;;  %v1766_v1 = vadd.f32 %v1764_v48, %v1754_v63  ;;  %v1783_v19 = vmul.f32 %v1781_v9, %v4517_v44  ;;  %v1820_v39 = vperm.slane %v4625_v23, 2 }
 0x382   : > { %v1808_v13 = vpop.permute.xlu0 %1807  ;;  %v1837_v32 = vpop.permute.xlu1 %1836  ;;  %v1784_v0 = vmul.f32 %v1782_v12, %v4517_v44  ;;  %v1802_v20 = vmul.f32 %v1800_v7, %v4510_v35  ;;  %v1810_v21 = vperm.slane %v4625_v23, 1  ;;  %v1803_v6 = vmul.f32 %v1801_v43, %v4510_v35 }
 0x383   : > { %v1886_v5 = vpop.permute.xlu2 %1885  ;;  %v1775_v30 = vadd.f32 %v1773_v60, %v1765_v55  ;;  %v1776_v36 = vadd.f32 %v1774_v10, %v1766_v1  ;;  %v1840_v15 = vsel %vm381_vm7, %v1837_v32, %v1839_v25  ;;  %v1841_v60 = vsel %vm381_vm7, %v1839_v25, %v1837_v32 }
 0x384   : > { %3353 = vset.pattern.permute.xlu2 %v5434_v42  ;;  %v1811_v54 = vperm.slane %v1791_v28, 1  ;;  %v1842_v44 = vsel %vm3662_vm9, %v1841_v60, 0.0  ;;  %v1830_v9 = vperm.slane %v4625_v23, 3  ;;  %v1812_v48 = vmul.f32 %v1810_v21, %v1808_v13 }
 0x385   : > { %2308 = vperm.xlu2 %3353, %v4621_v56   ;;  %v1785_v61 = vadd.f32 %v1783_v19, %v1775_v30  ;;  %v1786_v53 = vadd.f32 %v1784_v0, %v1776_v36  ;;  %v1843_v12 = vsel %vm3654_vm8, %v1840_v15, 0.0  ;;  %v1831_v7 = vperm.slane %v1791_v28, 3 }
 0x386   : > { %v1813_v1 = vmul.f32 %v1811_v54, %v1808_v13  ;;  %v1822_v43 = vmul.f32 %v1820_v39, %v4529_v22  ;;  %v1849_v35 = vperm.slane %v1842_v44, 0  ;;  %v1823_v19 = vmul.f32 %v1821_v52, %v4529_v22 }
 0x387   : > { %v1804_v63 = vadd.f32 %v1802_v20, %v1785_v61  ;;  %v1805_v55 = vadd.f32 %v1803_v6, %v1786_v53  ;;  %v1850_v30 = vperm.slane %v1843_v12, 0  ;;  %v1832_v28 = vmul.f32 %v1830_v9, %v4525_v57 }
 0x388   : > { %3357 = vset.pattern.permute.xlu1 %v5431_v3  ;;  %v1859_v15 = vperm.slane %v1842_v44, 1  ;;  %v1833_v61 = vmul.f32 %v1831_v7, %v4525_v57  ;;  %v1860_v20 = vperm.slane %v1843_v12, 1  ;;  %v1851_v52 = vmul.f32 %v1849_v35, %v4564_v59 }
 0x389   : > { %2372 = vperm.xlu1 %3357, %v4604_v26   ;;  %v1814_v32 = vadd.f32 %v1812_v48, %v1804_v63  ;;  %v1815_v23 = vadd.f32 %v1813_v1, %v1805_v55  ;;  %v1869_v60 = vperm.slane %v1842_v44, 2  ;;  %v1852_v6 = vmul.f32 %v1850_v30, %v4564_v59 }
 0x38a   : > { %v1888_v25 = vpop.permute.xlu0 %1887  ;;  %v4658_v10 = vpop.permute.xlu1 %2054  ;;  %v1870_v54 = vperm.slane %v1843_v12, 2  ;;  %v1861_v63 = vmul.f32 %v1859_v15, %v4538_v34  ;;  %v1879_v48 = vperm.slane %v1842_v44, 3  ;;  %v1862_v55 = vmul.f32 %v1860_v20, %v4538_v34 }
 0x38b   : > { %v4661_v0 = vpop.permute.xlu2 %2064  ;;  %v1824_v36 = vadd.f32 %v1822_v43, %v1814_v32  ;;  %v1890_v13 = vsel %vm5444_vm10, %v1888_v25, %v1886_v5  ;;  %v1825_v39 = vadd.f32 %v1823_v19, %v1815_v23  ;;  %v1889_v21 = vsel %vm5445_vm11, %v1886_v5, %v1888_v25 }
 0x38c   : > { %v1891_v57 = vsel %vm3580_vm2, %v1890_v13, 0.0  ;;  %v1892_v5 = vsel %vm3586_vm3, %v1889_v21, 0.0  ;;  %v1880_v1 = vperm.slane %v1843_v12, 3  ;;  %v1871_v59 = vmul.f32 %v1869_v60, %v4536_v2 }
 0x38d   : > { %3355 = vset.pattern.permute.xlu2 %v5430_v45  ;;  %v1834_v22 = vadd.f32 %v1832_v28, %v1824_v36  ;;  %v1835_v53 = vadd.f32 %v1833_v61, %v1825_v39  ;;  %v1898_v43 = vperm.slane %v1891_v57, 0  ;;  %v1872_v23 = vmul.f32 %v1870_v54, %v4536_v2 }
 0x38e   : > { %2338 = vperm.xlu2 %3355, %v4621_v56   ;;  %v1899_v44 = vperm.slane %v1892_v5, 0  ;;  %v1881_v36 = vmul.f32 %v1879_v48, %v4548_v38  ;;  %v1908_v28 = vperm.slane %v1891_v57, 1  ;;  %v1882_v12 = vmul.f32 %v1880_v1, %v4548_v38  ;;  %v4693_v38 = vld [vmem:[%s5381_s1 + $0xa0] sm:$0xf] }
 0x38f   : > { %v1853_v9 = vadd.f32 %v1851_v52, %v1834_v22  ;;  %v1854_v7 = vadd.f32 %v1852_v6, %v1835_v53  ;;  %v1909_v15 = vperm.slane %v1892_v5, 1  ;;  %v1900_v61 = vmul.f32 %v1898_v43, %v4562_v18 }
 0x390   : > { %v1918_v39 = vperm.slane %v1891_v57, 2  ;;  %v1901_v21 = vmul.f32 %v1899_v44, %v4562_v18  ;;  %v1919_v2 = vperm.slane %v1892_v5, 2  ;;  %v1910_v52 = vmul.f32 %v1908_v28, %v4546_v31 }
 0x391   : > { %3359 = vset.pattern.permute.xlu1 %v5430_v45  ;;  %v1863_v32 = vadd.f32 %v1861_v63, %v1853_v9  ;;  %v1864_v25 = vadd.f32 %v1862_v55, %v1854_v7  ;;  %v1928_v60 = vperm.slane %v1891_v57, 3  ;;  %v1911_v6 = vmul.f32 %v1909_v15, %v4546_v31 }
 0x392   : > { %2392 = vperm.xlu1 %3359, %v4604_v26   ;;  %v1976_v35 = vpop.permute.xlu1 %1975  ;;  %v1929_v54 = vperm.slane %v1892_v5, 3  ;;  %v1939_v9 = vperm.slane %v4485_v51, 0  ;;  %v1920_v18 = vmul.f32 %v1918_v39, %v4587_v24  ;;  %v1940_v48 = vperm.slane %v4487_v11, 0 }
 0x393   : > { %v1978_v19 = vpop.permute.xlu2 %1977  ;;  %v1873_v30 = vadd.f32 %v1871_v59, %v1863_v32  ;;  %v1874_v34 = vadd.f32 %v1872_v23, %v1864_v25  ;;  %v1921_v7 = vmul.f32 %v1919_v2, %v4587_v24  ;;  %v1930_v31 = vmul.f32 %v1928_v60, %v4569_v8 }
 0x394   : > { %vm5446_vm10 = vcmp.lt.s32.totalorder %v3563_v41, 127  ;;  %v1931_v59 = vmul.f32 %v1929_v54, %v4569_v8  ;;  %v1969_v25 = vperm.slane %v4485_v51, 3  ;;  %v1941_v23 = vmul.f32 %v1939_v9, %v4557_v16 }
 0x395   : > { %v1883_v13 = vadd.f32 %v1881_v36, %v1873_v30  ;;  %v1884_v20 = vadd.f32 %v1882_v12, %v1874_v34  ;;  %v1979_v5 = vsel %vm5446_vm10, %v1976_v35, %v1978_v19  ;;  %vm5447_vm11 = vmmov %vm5446_vm10  ;;  %v1949_v24 = vperm.slane %v4485_v51, 1  ;;  %v4718_v12 = vpop.permute.xlu0 %2044 }
 0x396   : > { %3358 = vset.pattern.permute.xlu2 %v5440_v29  ;;  %v1980_v43 = vsel %vm5447_vm11, %v1978_v19, %v1976_v35  ;;  %v1942_v30 = vmul.f32 %v1940_v48, %v4557_v16  ;;  %v1950_v36 = vperm.slane %v4487_v11, 1  ;;  %v1981_v34 = vsel %vm3643_vm6, %v1979_v5, 0.0 }
 0x397   : > { %2382 = vperm.xlu2 %3358, %v4604_v26   ;;  %v1902_v22 = vadd.f32 %v1900_v61, %v1883_v13  ;;  %v1903_v53 = vadd.f32 %v1901_v21, %v1884_v20  ;;  %v1959_v8 = vperm.slane %v4485_v51, 2  ;;  %v1951_v35 = vmul.f32 %v1949_v24, %v4579_v37 }
 0x398   : > { %v1982_v15 = vsel %vm3654_vm8, %v1980_v43, 0.0  ;;  %v1970_v16 = vperm.slane %v4487_v11, 3  ;;  %v1960_v13 = vperm.slane %v4487_v11, 2  ;;  %v1952_v61 = vmul.f32 %v1950_v36, %v4579_v37 }
 0x399   : > { %v1912_v63 = vadd.f32 %v1910_v52, %v1902_v22  ;;  %v1913_v57 = vadd.f32 %v1911_v6, %v1903_v53  ;;  %v1961_v20 = vmul.f32 %v1959_v8, %v4566_v14  ;;  %v1988_v21 = vperm.slane %v1981_v34, 0  ;;  %v4732_v6 = vld [vmem:[%s5381_s1 + $0xa4] sm:$0xf] }
 0x39a   : > { %3361 = vset.pattern.permute.xlu1 %v5440_v29  ;;  %v2027_v26 = vpop.permute.xlu1 %2026  ;;  %v1962_v22 = vmul.f32 %v1960_v13, %v4566_v14  ;;  %v1989_v60 = vperm.slane %v1982_v15, 0  ;;  %v1971_v11 = vmul.f32 %v1969_v25, %v4571_v40  ;;  %v1998_v54 = vperm.slane %v1981_v34, 1 }
 0x39b   : > { %v2025_v55 = vpop.permute.xlu2 %2024  ;;  %2431 = vperm.xlu1 %3361, %v4693_v38   ;;  %v1922_v1 = vadd.f32 %v1920_v18, %v1912_v63  ;;  %v1923_v32 = vadd.f32 %v1921_v7, %v1913_v57  ;;  %vm5448_vm10 = vcmp.lt.s32.totalorder %v3563_v41, 113  ;;  %v1972_v14 = vmul.f32 %v1970_v16, %v4571_v40 }
 0x39c   : > { %v2028_v9 = vsel %vm5448_vm10, %v2025_v55, %v2027_v26  ;;  %v1999_v18 = vperm.slane %v1982_v15, 1  ;;  %vm5449_vm11 = vmmov %vm5448_vm10  ;;  %v1990_v7 = vmul.f32 %v1988_v21, %v4582_v17  ;;  %v1991_v5 = vmul.f32 %v1989_v60, %v4582_v17 }
 0x39d   : > { %v1932_v44 = vadd.f32 %v1930_v31, %v1922_v1  ;;  %v1933_v28 = vadd.f32 %v1931_v59, %v1923_v32  ;;  %v2029_v48 = vsel %vm5449_vm11, %v2027_v26, %v2025_v55  ;;  %v2008_v1 = vperm.slane %v1981_v34, 2  ;;  %v2084_v36 = vpop.permute.xlu0 %2083 }
 0x39e   : > { %v2009_v32 = vperm.slane %v1982_v15, 2  ;;  %v2030_v59 = vsel %vm3580_vm2, %v2028_v9, 0.0  ;;  %v2000_v25 = vmul.f32 %v1998_v54, %v4575_v58  ;;  %v2018_v40 = vperm.slane %v1981_v34, 3 }
 0x39f   : > { %3360 = vset.pattern.permute.xlu2 %v5434_v42  ;;  %v1943_v19 = vadd.f32 %v1941_v23, %v1932_v44  ;;  %v1944_v39 = vadd.f32 %v1942_v30, %v1933_v28  ;;  %v2031_v23 = vsel %vm3774_vm14, %v2029_v48, 0.0  ;;  %v2001_v55 = vmul.f32 %v1999_v18, %v4575_v58 }
 0x3a0   : > { %2403 = vperm.xlu2 %3360, %v4693_v38   ;;  %v2019_v24 = vperm.slane %v1982_v15, 3  ;;  %v2010_v44 = vmul.f32 %v2008_v1, %v4598_v33  ;;  %v2037_v30 = vperm.slane %v2030_v59, 0  ;;  %v2011_v34 = vmul.f32 %v2009_v32, %v4598_v33  ;;  %v5451_v33 = vld [vmem:[#allocation6_spill] sm:$0xff] }
 0x3a1   : > { %v1953_v51 = vadd.f32 %v1951_v35, %v1943_v19  ;;  %v1954_v52 = vadd.f32 %v1952_v61, %v1944_v39  ;;  %v2038_v35 = vperm.slane %v2031_v23, 0  ;;  %v2020_v13 = vmul.f32 %v2018_v40, %v4596_v4 }
 0x3a2   : > { %v2074_v2 = vpop.permute.xlu1 %2073  ;;  %v2047_v61 = vperm.slane %v2030_v59, 1  ;;  %v2021_v15 = vmul.f32 %v2019_v24, %v4596_v4  ;;  %v2048_v39 = vperm.slane %v2031_v23, 1  ;;  %vm5450_vm10 = vcmp.lt.s32.totalorder %v3563_v41, 112 }
 0x3a3   : > { %v2076_v53 = vpop.permute.xlu2 %2075  ;;  %3363 = vset.pattern.permute.xlu1 %v5431_v3  ;;  %v1963_v37 = vadd.f32 %v1961_v20, %v1953_v51  ;;  %v1964_v63 = vadd.f32 %v1962_v22, %v1954_v52  ;;  %v2039_v21 = vmul.f32 %v2037_v30, %v5451_v33  ;;  %v2057_v22 = vperm.slane %v2030_v59, 2  ;;  %vm5452_vm11 = vmmov %vm5450_vm10 }
 0x3a4   : > { %2483 = vperm.xlu1 %3363, %v4732_v6   ;;  %v2078_v20 = vsel %vm5450_vm10, %v2076_v53, %v2074_v2  ;;  %v2040_v60 = vmul.f32 %v2038_v35, %v5451_v33  ;;  %v2049_v4 = vmul.f32 %v2047_v61, %v4718_v12  ;;  %v2067_v9 = vperm.slane %v2030_v59, 3 }
 0x3a5   : > { %v1973_v57 = vadd.f32 %v1971_v11, %v1963_v37  ;;  %v1974_v31 = vadd.f32 %v1972_v14, %v1964_v63  ;;  %v2058_v11 = vperm.slane %v2031_v23, 2  ;;  %v2077_v37 = vsel %vm5452_vm11, %v2074_v2, %v2076_v53 }
 0x3a6   : > { %v2080_v63 = vsel %vm240_vm12, %v2078_v20, 0.0  ;;  %v2050_v48 = vmul.f32 %v2048_v39, %v4718_v12  ;;  %v2059_v2 = vmul.f32 %v2057_v22, %v4658_v10  ;;  %v2086_v53 = vperm.slane %v2077_v37, 0 }
 0x3a7   : > { %v1992_v43 = vadd.f32 %v1990_v7, %v1973_v57  ;;  %v1993_v26 = vadd.f32 %v1991_v5, %v1974_v31  ;;  %v2068_v57 = vperm.slane %v2031_v23, 3  ;;  %v4773_v7 = vld [vmem:[%s5381_s1 + $0xa8] sm:$0xf]  ;;  %v2060_v5 = vmul.f32 %v2058_v11, %v4658_v10 }
 0x3a8   : > { %3362 = vset.pattern.permute.xlu2 %v5430_v45  ;;  %2547 = vperm.xlu0 %3356, %v4773_v7   ;;  %v2087_v12 = vperm.slane %v2080_v63, 0  ;;  %v2088_v10 = vmul.f32 %v2086_v53, %v2084_v36  ;;  %v2106_v35 = vperm.slane %v2077_v37, 2  ;;  %v2107_v20 = vperm.slane %v2080_v63, 2 }
 0x3a9   : > { %2445 = vperm.xlu2 %3362, %v4693_v38   ;;  %v2002_v17 = vadd.f32 %v2000_v25, %v1992_v43  ;;  %v2003_v8 = vadd.f32 %v2001_v55, %v1993_v26  ;;  %v2069_v43 = vmul.f32 %v2067_v9, %v4661_v0  ;;  %v2125_v25 = vpop.permute.xlu0 %2124  ;;  %v2070_v23 = vmul.f32 %v2068_v57, %v4661_v0 }
 0x3aa   : > { %v2094_v28 = vpop.permute.xlu1 %2093  ;;  %v2117_v22 = vperm.slane %v2080_v63, 3  ;;  %vm5455_vm10 = vcmask 1043456   ;;  %vm5459_vm11 = vcmp.lt.s32.totalorder %v3563_v41, 1 }
 0x3ab   : > { %v4753_v19 = vpop.permute.xlu2 %2103  ;;  %v2012_v16 = vadd.f32 %v2010_v44, %v2002_v17  ;;  %v2013_v58 = vadd.f32 %v2011_v34, %v2003_v8  ;;  %v2096_v44 = vperm.slane %v2077_v37, 1  ;;  %v2089_v8 = vmul.f32 %v2087_v12, %v2084_v36 }
 0x3ac   : > { %3365 = vset.pattern.permute.xlu1 %v5430_v45  ;;  %v2097_v34 = vperm.slane %v2080_v63, 1  ;;  %v2108_v33 = vmul.f32 %v2106_v35, %v4753_v19 }
 0x3ad   : > { %2503 = vperm.xlu1 %3365, %v4732_v6   ;;  %v2022_v51 = vadd.f32 %v2020_v13, %v2012_v16  ;;  %v2023_v52 = vadd.f32 %v2021_v15, %v2013_v58  ;;  %v2098_v0 = vmul.f32 %v2096_v44, %v2094_v28 }
 0x3ae   : > { %v2099_v39 = vmul.f32 %v2097_v34, %v2094_v28 }
 0x3af   : > { %v2041_v54 = vadd.f32 %v2039_v21, %v2022_v51  ;;  %v2042_v18 = vadd.f32 %v2040_v60, %v2023_v52  ;;  %v2116_v21 = vperm.slane %v2077_v37, 3  ;;  %v2109_v52 = vmul.f32 %v2107_v20, %v4753_v19  ;;  %v5456_v20 = vld [vmem:[#allocation5_spill] sm:$0xff] }
 0x3b0   : > { %3368 = vset.pattern.permute.xlu0 %v5431_v3 }
 0x3b1   : > { %3364 = vset.pattern.permute.xlu2 %v5440_v29  ;;  %v2051_v1 = vadd.f32 %v2049_v4, %v2041_v54  ;;  %v2052_v31 = vadd.f32 %v2050_v48, %v2042_v18  ;;  %2318 = vperm.xlu0 %3368, %v4621_v56  }
 0x3b2   : > { %2493 = vperm.xlu2 %3364, %v4732_v6  }
 0x3b3   : > { %v2123_v32 = vpop.permute.xlu2 %2122  ;;  %v2114_v59 = vpop.permute.xlu1 %2113  ;;  %v2061_v40 = vadd.f32 %v2059_v2, %v2051_v1  ;;  %v2062_v26 = vadd.f32 %v2060_v5, %v2052_v31 }
 0x3b4   : > { %v2126_v55 = vsel %vm733_vm13, %v2123_v32, %v2125_v25  ;;  %v2127_v24 = vsel %vm733_vm13, %v2125_v25, %v2123_v32  ;;  %v2118_v54 = vmul.f32 %v2116_v21, %v2114_v59  ;;  %v2119_v18 = vmul.f32 %v2117_v22, %v2114_v59  ;;  %v2153_v32 = vpop.permute.xlu0 %2152 }
 0x3b5   : > { %3366 = vset.pattern.permute.xlu1 %v5434_v42  ;;  %v2071_v17 = vadd.f32 %v2069_v43, %v2061_v40  ;;  %v2072_v30 = vadd.f32 %v2070_v23, %v2062_v26  ;;  %v2128_v13 = vsel %vm3643_vm6, %v2126_v55, 0.0  ;;  %v2129_v58 = vsel %vm3828_vm15, %v2127_v24, 0.0 }
 0x3b6   : > { %2527 = vperm.xlu1 %3366, %v4773_v7   ;;  %v2135_v60 = vperm.slane %v2128_v13, 0  ;;  %v2136_v11 = vperm.slane %v2129_v58, 0  ;;  %v2145_v1 = vperm.slane %v2128_v13, 1  ;;  %v2146_v19 = vperm.slane %v2129_v58, 1 }
 0x3b7   : > { %v2090_v16 = vadd.f32 %v2088_v10, %v2071_v17  ;;  %v2091_v15 = vadd.f32 %v2089_v8, %v2072_v30  ;;  %v2155_v53 = vperm.slane %v2128_v13, 2  ;;  %v2156_v31 = vperm.slane %v2129_v58, 2 }
 0x3b8   : > { %v2165_v26 = vperm.slane %v2128_v13, 3  ;;  %v2166_v55 = vperm.slane %v2129_v58, 3 }
 0x3b9   : > { %v2100_v51 = vadd.f32 %v2098_v0, %v2090_v16  ;;  %v2101_v36 = vadd.f32 %v2099_v39, %v2091_v15  ;;  %v2157_v59 = vmul.f32 %v2155_v53, %v2153_v32  ;;  %v2158_v23 = vmul.f32 %v2156_v31, %v2153_v32  ;;  %v4866_v32 = vld [vmem:[%s5381_s1 + $0xbc] sm:$0xf] }
 0x3ba   : > { %3367 = vset.pattern.permute.xlu2 %v5431_v3 }
 0x3bb   : > { %2537 = vperm.xlu2 %3367, %v4773_v7   ;;  %v2110_v28 = vadd.f32 %v2108_v33, %v2100_v51  ;;  %v2111_v9 = vadd.f32 %v2109_v52, %v2101_v36  ;;  %v2143_v37 = vpop.permute.xlu2 %2142 }
 0x3bc   : > { %v2133_v4 = vpop.permute.xlu1 %2132  ;;  %v2147_v5 = vmul.f32 %v2145_v1, %v2143_v37  ;;  %v2148_v56 = vmul.f32 %v2146_v19, %v2143_v37  ;;  %v216_v19 = vld [vmem:[%s5381_s1 + $0xb0] sm:$0xf] }
 0x3bd   : > { %v2137_v63 = vmul.f32 %v2135_v60, %v2133_v4  ;;  %v2138_v48 = vmul.f32 %v2136_v11, %v2133_v4  ;;  %v2120_v57 = vadd.f32 %v2118_v54, %v2110_v28  ;;  %v2121_v2 = vadd.f32 %v2119_v18, %v2111_v9  ;;  %v215_v60 = vld [vmem:[%s5381_s1 + $0xac] sm:$0xf] }
 0x3be   : > { %3369 = vset.pattern.permute.xlu1 %v5430_v45 }
 0x3bf   : > { %v2139_v12 = vadd.f32 %v2137_v63, %v2120_v57  ;;  %v2140_v43 = vadd.f32 %v2138_v48, %v2121_v2 }
 0x3c1   : > { %v2149_v25 = vadd.f32 %v2147_v5, %v2139_v12  ;;  %v2150_v40 = vadd.f32 %v2148_v56, %v2140_v43  ;;  %v217_v43 = vld [vmem:[%s5381_s1 + $0xb4] sm:$0xf] }
 0x3c3   : > { %3370 = vset.pattern.permute.xlu2 %v5434_v42  ;;  %v2159_v44 = vadd.f32 %v2157_v59, %v2149_v25  ;;  %v2160_v30 = vadd.f32 %v2158_v23, %v2150_v40  ;;  %v230_v59 = vld [vmem:[%s5382_s2 + $0x10] sm:$0xf]  ;;  %v2201_v23 = vpop.permute.xlu0 %2200 }
 0x3c4   : > { %v2174_v8 = vpop.permute.xlu2 %2173 }
 0x3c5   : > { %v2163_v24 = vpop.permute.xlu1 %2162 }
 0x3c6   : > { %v2167_v17 = vmul.f32 %v2165_v26, %v2163_v24  ;;  %v2168_v10 = vmul.f32 %v2166_v55, %v2163_v24  ;;  %v4886_v26 = vld [vmem:[%s5381_s1 + $0xb8] sm:$0xf] }
 0x3c7   : > { %5457 = vst [vmem:[#allocation6_spill] sm:$0xff] %v4886_v26 }
 0x3c8   : > { %v2169_v34 = vadd.f32 %v2167_v17, %v2159_v44  ;;  %v2170_v35 = vadd.f32 %v2168_v10, %v2160_v30 }
 0x3ca   : > { %v2177_v16 = vadd.f32 %v2174_v8, %v2170_v35  ;;  %v2176_v0 = vadd.f32 %v2174_v8, %v2169_v34 }
 0x3cb   : > { %v4895_v17 = vpop.permute.xlu0 %2362 }
 0x3cc   : > { %v2180_v15 = vrot.slane %v2177_v16, 4  ;;  %v4917_v16 = vld [vmem:[%s5381_s1 + $0xc0] sm:$0xf] }
 0x3cd   : > { %v4807_v33 = vpop.permute.xlu2 %2220 }
 0x3ce   : > { %v2181_v39 = vsel %vm5455_vm10, %v2176_v0, %v2180_v15  ;;  %v4809_v21 = vpop.permute.xlu1 %2210  ;;  %vm5460_vm10 = vmmov %vm5459_vm11 }
 0x3cf   : > { %v4801_v51 = vadd.f32 %v2181_v39, %v5456_v20 }
 0x3d1   : > { %2185 = vst [vmem:[#allocation1] ss:$2 sm:$0xff] %v4801_v51 }
 0x3d3   : > { %v4902_v30 = vpop.permute.xlu0 %2274 }
 0x3d6   : > { %v4815_v52 = vpop.permute.xlu2 %2264 }
 0x3d7   : > { %v4820_v54 = vpop.permute.xlu1 %2230 }
 0x3d8   : > { %v2187_v13 = vld.sshfl [vmem:[#allocation1 + $0x8] sm:$0xff pattern:$0x75316420]  ;;  %v2186_v58 = vld.sshfl [vmem:[#allocation1] sm:$0xff pattern:$0x75316420] }
 0x3d9   : > { %2192 = vrot.lane.b32.xlu2 %v2187_v13, %s3423_s20  ;;  %2190 = vrot.lane.b32.xlu1 %v2186_v58, %s3423_s20  ;;  %2239 = vst [vmem:[#allocation1] ss:$2 sm:$0xff] %v4801_v51 }
 0x3e0   : > { %v2241_v22 = vld.sshfl [vmem:[#allocation1 + $0x8] sm:$0xff pattern:$0x75316420]  ;;  %v2240_v36 = vld.sshfl [vmem:[#allocation1] sm:$0xff pattern:$0x75316420]  ;;  %v4830_v18 = vpop.permute.xlu1 %2254 }
 0x3e1   : > { %2557 = vperm.xlu1 %3369, %v4773_v7   ;;  %2246 = vrot.lane.b32.xlu0 %v2241_v22, %s3424_s23  ;;  %2293 = vst [vmem:[#allocation1] ss:$2 sm:$0xff] %v4801_v51  ;;  %v4825_v7 = vpop.permute.xlu2 %2308 }
 0x3e2   : > { %2244 = vrot.lane.b32.xlu2 %v2240_v36, %s3424_s23 }
 0x3e8   : > { %v2295_v11 = vld.sshfl [vmem:[#allocation1 + $0x8] sm:$0xff pattern:$0x75316420]  ;;  %v2294_v28 = vld.sshfl [vmem:[#allocation1] sm:$0xff pattern:$0x75316420] }
 0x3e9   : > { %3372 = vset.pattern.permute.xlu1 %v5440_v29  ;;  %2417 = vperm.xlu0 %3368, %v4693_v38   ;;  %2347 = vst [vmem:[#allocation1] ss:$2 sm:$0xff] %v4801_v51  ;;  %v4833_v63 = vpop.permute.xlu2 %2338  ;;  %v4841_v48 = vpop.permute.xlu1 %2284 }
 0x3ea   : > { %2581 = vperm.xlu2 %3370, %v215_v60   ;;  %2601 = vperm.xlu1 %3372, %v215_v60  }
 0x3f0   : > { %v2348_v4 = vld.sshfl [vmem:[#allocation1] sm:$0xff pattern:$0x75316420]  ;;  %v2349_v9 = vld.sshfl [vmem:[#allocation1 + $0x8] sm:$0xff pattern:$0x75316420] }
 0x3f1   : > { %2591 = vperm.xlu0 %3368, %v215_v60   ;;  %2458 = vst [vmem:[#allocation1] ss:$2 sm:$0xff] %v4801_v51  ;;  %v4846_v2 = vpop.permute.xlu2 %2382 }
 0x3f2   : > { %3373 = vset.pattern.permute.xlu2 %v5430_v45  ;;  %2300 = vrot.lane.b32.xlu1 %v2295_v11, %s3425_s24 }
 0x3f3   : > { %2611 = vperm.xlu2 %3373, %v215_v60   ;;  %3374 = vset.pattern.permute.xlu1 %v5431_v3 }
 0x3f8   : > { %v2460_v38 = vld.sshfl [vmem:[#allocation1 + $0x8] sm:$0xff pattern:$0x75316420]  ;;  %v2459_v37 = vld.sshfl [vmem:[#allocation1] sm:$0xff pattern:$0x75316420] }
 0x3f9   : > { %3371 = vset.pattern.permute.xlu0 %v5434_v42  ;;  %2512 = vst [vmem:[#allocation1] ss:$2 sm:$0xff] %v4801_v51 }
 0x3fa   : > { %2473 = vperm.xlu0 %3371, %v4732_v6   ;;  %2352 = vrot.lane.b32.xlu1 %v2348_v4, %s3426_s25  ;;  %v4849_v6 = vpop.permute.xlu1 %2328  ;;  %v4856_v5 = vpop.permute.xlu2 %2403 }
 0x3fb   : > { %2298 = vrot.lane.b32.xlu2 %v2294_v28, %s3425_s24 }
 0x3fc   : > { %3375 = vset.pattern.permute.xlu2 %v5440_v29 }
 0x400   : > { %v2514_v57 = vld.sshfl [vmem:[#allocation1 + $0x8] sm:$0xff pattern:$0x75316420]  ;;  %v2513_v1 = vld.sshfl [vmem:[#allocation1] sm:$0xff pattern:$0x75316420] }
 0x401   : > { %2566 = vst [vmem:[#allocation1] ss:$2 sm:$0xff] %v4801_v51 }
 0x402   : > { %2463 = vrot.lane.b32.xlu1 %v2459_v37, %s3427_s9  ;;  %2519 = vrot.lane.b32.xlu0 %v2514_v57, %s3428_s14  ;;  %v4858_v12 = vpop.permute.xlu1 %2372 }
 0x403   : > { %2354 = vrot.lane.b32.xlu2 %v2349_v9, %s3426_s25  ;;  %v4868_v56 = vpop.permute.xlu2 %2445 }
 0x408   : > { %v2568_v53 = vld.sshfl [vmem:[#allocation1 + $0x8] sm:$0xff pattern:$0x75316420]  ;;  %v2567_v31 = vld.sshfl [vmem:[#allocation1] sm:$0xff pattern:$0x75316420] }
 0x409   : > { %2620 = vst [vmem:[#allocation1] ss:$2 sm:$0xff] %v4801_v51 }
 0x40a   : > { %2645 = vperm.xlu1 %3374, %v216_v19   ;;  %2635 = vperm.xlu0 %3371, %v216_v19   ;;  %v4874_v25 = vpop.permute.xlu1 %2392 }
 0x40b   : > { %2465 = vrot.lane.b32.xlu2 %v2460_v38, %s3427_s9 }
 0x40c   : > { %v4877_v40 = vpop.permute.xlu2 %2493 }
 0x410   : > { %v2621_v39 = vld.sshfl [vmem:[#allocation1] sm:$0xff pattern:$0x75316420]  ;;  %v2622_v4 = vld.sshfl [vmem:[#allocation1 + $0x8] sm:$0xff pattern:$0x75316420] }
 0x412   : > { %3376 = vset.pattern.permute.xlu1 %v5430_v45  ;;  %3385 = vset.pattern.permute.xlu0 %v5440_v29  ;;  %v4890_v55 = vpop.permute.xlu1 %2431 }
 0x413   : > { %2517 = vrot.lane.b32.xlu2 %v2513_v1, %s3428_s14  ;;  %2665 = vperm.xlu1 %3376, %v216_v19  }
 0x414   : > { %2811 = vperm.xlu0 %3385, %v4866_v32  }
 0x415   : > { %v4893_v24 = vpop.permute.xlu2 %2537 }
 0x41a   : > { %v4898_v10 = vpop.permute.xlu1 %2483  ;;  %v4911_v35 = vpop.permute.xlu0 %2547 }
 0x41b   : > { %2655 = vperm.xlu2 %3375, %v216_v19   ;;  %3378 = vset.pattern.permute.xlu1 %v5440_v29 }
 0x41c   : > { %2713 = vperm.xlu1 %3378, %v217_v43   ;;  %3386 = vset.pattern.permute.xlu0 %v5431_v3 }
 0x41d   : > { %2703 = vperm.xlu0 %3386, %v217_v43  }
 0x422   : > { %v4906_v8 = vpop.permute.xlu1 %2503 }
 0x423   : > { %3377 = vset.pattern.permute.xlu2 %v5434_v42  ;;  %v4927_v20 = vpop.permute.xlu0 %2318 }
 0x424   : > { %2676 = vperm.xlu2 %3377, %v230_v59   ;;  %3380 = vset.pattern.permute.xlu1 %v5431_v3 }
 0x425   : > { %2752 = vperm.xlu1 %3380, %v4886_v26   ;;  %2850 = vperm.xlu0 %3386, %v4917_v16  }
 0x42a   : > { %v4919_v0 = vpop.permute.xlu1 %2527 }
 0x42c   : > { %2693 = vperm.xlu2 %3377, %v217_v43  }
 0x42d   : > { %3382 = vset.pattern.permute.xlu1 %v5430_v45 }
 0x42e   : > { %2772 = vperm.xlu1 %3382, %v4886_v26  }
 0x433   : > { %v2193_v44 = vpop.permute.xlu2 %2192 }
 0x434   : > { %3379 = vset.pattern.permute.xlu2 %v5430_v45 }
 0x435   : > { %2723 = vperm.xlu2 %3379, %v217_v43  }
 0x436   : > { %3383 = vset.pattern.permute.xlu1 %v5434_v42 }
 0x437   : > { %2791 = vperm.xlu1 %3383, %v4866_v32  }
 0x43c   : > { %v2245_v34 = vpop.permute.xlu2 %2244 }
 0x43d   : > { %3381 = vset.pattern.permute.xlu2 %v5440_v29 }
 0x43e   : > { %2762 = vperm.xlu2 %3381, %v4886_v26  }
 0x43f   : > { %2573 = vrot.lane.b32.xlu1 %v2568_v53, %s3430_s19 }
 0x440   : > { %3387 = vset.pattern.permute.xlu1 %v5430_v45 }
 0x444   : > { %v4922_v15 = vpop.permute.xlu2 %2581 }
 0x446   : > { %2571 = vrot.lane.b32.xlu2 %v2567_v31, %s3430_s19 }
 0x447   : > { %2625 = vrot.lane.b32.xlu1 %v2621_v39, %s3429_s15  ;;  %3384 = vset.pattern.permute.xlu2 %v5431_v3 }
 0x44b   : > { %v2191_v13 = vpop.permute.xlu1 %2190 }
 0x44c   : > { %v2194_v58 = vsel %vm263_vm0, %v2191_v13, %v2193_v44  ;;  %v2195_v22 = vsel %vm263_vm0, %v2193_v44, %v2191_v13 }
 0x44d   : > { %v2196_v60 = vsel %vm3600_vm4, %v2195_v22, 0.0  ;;  %v2197_v11 = vsel %vm3586_vm3, %v2194_v58, 0.0  ;;  %v4937_v28 = vpop.permute.xlu2 %2611 }
 0x44e   : > { %v2203_v9 = vperm.slane %v2196_v60, 0  ;;  %v2204_v38 = vperm.slane %v2197_v11, 0  ;;  %v2213_v37 = vperm.slane %v2196_v60, 1  ;;  %v2214_v57 = vperm.slane %v2197_v11, 1  ;;  %2627 = vrot.lane.b32.xlu2 %v2622_v4, %s3429_s15 }
 0x44f   : > { %v2224_v1 = vperm.slane %v2197_v11, 2  ;;  %2821 = vperm.xlu1 %3387, %v4866_v32   ;;  %v2223_v59 = vperm.slane %v2196_v60, 2  ;;  %v2234_v58 = vperm.slane %v2197_v11, 3  ;;  %v2233_v26 = vperm.slane %v2196_v60, 3 }
 0x450   : > { %v2205_v19 = vmul.f32 %v2203_v9, %v2201_v23  ;;  %v2206_v53 = vmul.f32 %v2204_v38, %v2201_v23  ;;  %v2215_v31 = vmul.f32 %v2213_v37, %v4809_v21  ;;  %v2216_v43 = vmul.f32 %v2214_v57, %v4809_v21 }
 0x451   : > { %v2226_v13 = vmul.f32 %v2224_v1, %v4807_v33  ;;  %v2225_v9 = vmul.f32 %v2223_v59, %v4807_v33  ;;  %v2236_v60 = vmul.f32 %v2234_v58, %v4820_v54 }
 0x452   : > { %v2218_v44 = vadd.f32 %v2216_v43, %v2206_v53  ;;  %v2217_v39 = vadd.f32 %v2215_v31, %v2205_v19 }
 0x453   : > { %v4944_v22 = vpop.permute.xlu1 %2557  ;;  %v2247_v36 = vpop.permute.xlu0 %2246 }
 0x454   : > { %v2248_v4 = vsel %vm322_vm5, %v2245_v34, %v2247_v36  ;;  %v2249_v23 = vsel %vm322_vm5, %v2247_v36, %v2245_v34  ;;  %v2228_v38 = vadd.f32 %v2226_v13, %v2218_v44  ;;  %v2227_v11 = vadd.f32 %v2225_v9, %v2217_v39 }
 0x455   : > { %v2250_v21 = vsel %vm237_vm1, %v2249_v23, 0.0  ;;  %v2258_v37 = vperm.slane %v2248_v4, 0  ;;  %v2299_v57 = vpop.permute.xlu2 %2298  ;;  %v2235_v34 = vmul.f32 %v2233_v26, %v4820_v54  ;;  %v2268_v43 = vperm.slane %v2248_v4, 1  ;;  %v4968_v54 = vld [vmem:[%s5381_s1 + $0xc4] sm:$0xf] }
 0x456   : > { %v2257_v1 = vperm.slane %v2250_v21, 0  ;;  %2801 = vperm.xlu2 %3384, %v4866_v32   ;;  %v2238_v36 = vadd.f32 %v2236_v60, %v2228_v38  ;;  %v2267_v31 = vperm.slane %v2250_v21, 1  ;;  %v2277_v58 = vperm.slane %v2250_v21, 2 }
 0x457   : > { %3389 = vset.pattern.permute.xlu1 %v5440_v29  ;;  %v2260_v19 = vmul.f32 %v2258_v37, %v4830_v18  ;;  %v2237_v53 = vadd.f32 %v2235_v34, %v2227_v11  ;;  %v2278_v23 = vperm.slane %v2248_v4, 2  ;;  %v2287_v37 = vperm.slane %v2250_v21, 3 }
 0x458   : > { %2860 = vperm.xlu1 %3389, %v4917_v16   ;;  %v2259_v33 = vmul.f32 %v2257_v1, %v4830_v18  ;;  %v2269_v26 = vmul.f32 %v2267_v31, %v4815_v52  ;;  %v2270_v18 = vmul.f32 %v2268_v43, %v4815_v52  ;;  %v2288_v1 = vperm.slane %v2248_v4, 3 }
 0x459   : > { %v2262_v44 = vadd.f32 %v2260_v19, %v2238_v36  ;;  %v2279_v11 = vmul.f32 %v2277_v58, %v4902_v30  ;;  %v2280_v60 = vmul.f32 %v2278_v23, %v4902_v30  ;;  %v2289_v31 = vmul.f32 %v2287_v37, %v4841_v48 }
 0x45a   : > { %v2261_v32 = vadd.f32 %v2259_v33, %v2237_v53  ;;  %v2290_v21 = vmul.f32 %v2288_v1, %v4841_v48 }
 0x45b   : > { %v4962_v39 = vpop.permute.xlu0 %2417  ;;  %v2272_v38 = vadd.f32 %v2270_v18, %v2262_v44 }
 0x45c   : > { %v4960_v59 = vpop.permute.xlu1 %2601  ;;  %v2271_v9 = vadd.f32 %v2269_v26, %v2261_v32 }
 0x45d   : > { %v2355_v13 = vpop.permute.xlu2 %2354  ;;  %v2282_v33 = vadd.f32 %v2280_v60, %v2272_v38 }
 0x45e   : > { %3388 = vset.pattern.permute.xlu2 %v5434_v42  ;;  %v2281_v36 = vadd.f32 %v2279_v11, %v2271_v9 }
 0x45f   : > { %2840 = vperm.xlu2 %3388, %v4917_v16   ;;  %v2292_v48 = vadd.f32 %v2290_v21, %v2282_v33 }
 0x460   : > { %3391 = vset.pattern.permute.xlu1 %v5434_v42  ;;  %v2291_v23 = vadd.f32 %v2289_v31, %v2281_v36  ;;  %v2407_v36 = vperm.slane %v4801_v51, 4 }
 0x461   : > { %2881 = vperm.xlu1 %3391, %v4968_v54  }
 0x463   : > { %v4989_v43 = vpop.permute.xlu0 %2591 }
 0x464   : > { %v2301_v34 = vpop.permute.xlu1 %2300 }
 0x465   : > { %v2302_v52 = vsel %vm381_vm7, %v2299_v57, %v2301_v34  ;;  %v2303_v19 = vsel %vm381_vm7, %v2301_v34, %v2299_v57  ;;  %v4981_v53 = vpop.permute.xlu2 %2465 }
 0x466   : > { %v2304_v4 = vsel %vm3662_vm9, %v2303_v19, 0.0  ;;  %v2305_v30 = vsel %vm3654_vm8, %v2302_v52, 0.0 }
 0x467   : > { %v2311_v32 = vperm.slane %v2304_v4, 0  ;;  %v2312_v44 = vperm.slane %v2305_v30, 0  ;;  %v2321_v26 = vperm.slane %v2304_v4, 1  ;;  %v2322_v18 = vperm.slane %v2305_v30, 1  ;;  %3390 = vset.pattern.permute.xlu2 %v5430_v45 }
 0x468   : > { %v2331_v57 = vperm.slane %v2304_v4, 2  ;;  %v2332_v58 = vperm.slane %v2305_v30, 2  ;;  %2870 = vperm.xlu2 %3390, %v4917_v16   ;;  %v2341_v37 = vperm.slane %v2304_v4, 3  ;;  %v2342_v1 = vperm.slane %v2305_v30, 3 }
 0x469   : > { %v2313_v9 = vmul.f32 %v2311_v32, %v4825_v7  ;;  %v2314_v38 = vmul.f32 %v2312_v44, %v4825_v7  ;;  %3393 = vset.pattern.permute.xlu1 %v5430_v45  ;;  %v2323_v34 = vmul.f32 %v2321_v26, %v4927_v20  ;;  %v2324_v52 = vmul.f32 %v2322_v18, %v4927_v20 }
 0x46a   : > { %2911 = vperm.xlu1 %3393, %v4968_v54   ;;  %v2406_v16 = vperm.slane %v4801_v51, 0  ;;  %v2333_v33 = vmul.f32 %v2331_v57, %v4849_v6  ;;  %v2334_v7 = vmul.f32 %v2332_v58, %v4849_v6  ;;  %v2343_v20 = vmul.f32 %v2341_v37, %v4833_v63 }
 0x46b   : > { %v2315_v11 = vadd.f32 %v2313_v9, %v2291_v23  ;;  %v2316_v60 = vadd.f32 %v2314_v38, %v2292_v48  ;;  %v2344_v44 = vmul.f32 %v2342_v1, %v4833_v63 }
 0x46c   : > { %v2353_v19 = vpop.permute.xlu1 %2352 }
 0x46d   : > { %v2325_v31 = vadd.f32 %v2323_v34, %v2315_v11  ;;  %v2326_v21 = vadd.f32 %v2324_v52, %v2316_v60  ;;  %v2356_v4 = vsel %vm5459_vm11, %v2353_v19, %v2355_v13  ;;  %v2357_v30 = vsel %vm5460_vm10, %v2355_v13, %v2353_v19  ;;  %v5007_v32 = vpop.permute.xlu2 %2517  ;;  %v5016_v60 = vpop.permute.xlu0 %2473 }
 0x46e   : > { %v2358_v26 = vsel %vm3580_vm2, %v2357_v30, 0.0  ;;  %v2359_v6 = vsel %vm3586_vm3, %v2356_v4, 0.0  ;;  %v2448_v34 = vperm.slane %v4801_v51, 3  ;;  %v2449_v52 = vperm.slane %v4801_v51, 7 }
 0x46f   : > { %v2335_v18 = vadd.f32 %v2333_v33, %v2325_v31  ;;  %v2336_v57 = vadd.f32 %v2334_v7, %v2326_v21  ;;  %v2365_v58 = vperm.slane %v2358_v26, 0  ;;  %v2366_v23 = vperm.slane %v2359_v6, 0 }
 0x470   : > { %v2375_v48 = vperm.slane %v2358_v26, 1  ;;  %v2376_v9 = vperm.slane %v2359_v6, 1  ;;  %v2385_v38 = vperm.slane %v2358_v26, 2  ;;  %v2386_v13 = vperm.slane %v2359_v6, 2  ;;  %3392 = vset.pattern.permute.xlu2 %v5431_v3 }
 0x471   : > { %v2345_v11 = vadd.f32 %v2343_v20, %v2335_v18  ;;  %v2346_v37 = vadd.f32 %v2344_v44, %v2336_v57  ;;  %v2367_v63 = vmul.f32 %v2365_v58, %v4895_v17  ;;  %v2368_v1 = vmul.f32 %v2366_v23, %v4895_v17  ;;  %2891 = vperm.xlu2 %3392, %v4968_v54  }
 0x472   : > { %v2377_v33 = vmul.f32 %v2375_v48, %v4858_v12  ;;  %v2378_v7 = vmul.f32 %v2376_v9, %v4858_v12  ;;  %3396 = vset.pattern.permute.xlu1 %v5440_v29  ;;  %v2395_v21 = vperm.slane %v2358_v26, 3  ;;  %v2396_v4 = vperm.slane %v2359_v6, 3 }
 0x473   : > { %v2369_v19 = vadd.f32 %v2367_v63, %v2345_v11  ;;  %v2370_v31 = vadd.f32 %v2368_v1, %v2346_v37  ;;  %v2434_v30 = vperm.slane %v4801_v51, 2  ;;  %v2435_v17 = vperm.slane %v4801_v51, 6 }
 0x474   : > { %v2420_v20 = vperm.slane %v4801_v51, 1  ;;  %v2421_v44 = vperm.slane %v4801_v51, 5  ;;  %v2464_v18 = vpop.permute.xlu1 %2463  ;;  %v2387_v23 = vmul.f32 %v2385_v38, %v4846_v2  ;;  %v2388_v12 = vmul.f32 %v2386_v13, %v4846_v2 }
 0x475   : > { %v2379_v57 = vadd.f32 %v2377_v33, %v2369_v19  ;;  %v2380_v58 = vadd.f32 %v2378_v7, %v2370_v31  ;;  %v5032_v48 = vpop.permute.xlu2 %2655  ;;  %v2410_v9 = vperm.slane %v2406_v16, 0  ;;  %v2411_v26 = vperm.slane %v2407_v36, 0 }
 0x476   : > { %vm5461_vm11 = vcmp.lt.s32.totalorder %v3563_v41, 127  ;;  %v2397_v1 = vmul.f32 %v2395_v21, %v4874_v25  ;;  %v2398_v38 = vmul.f32 %v2396_v4, %v4874_v25  ;;  %v2424_v16 = vperm.slane %v2420_v20, 1  ;;  %v2520_v20 = vpop.permute.xlu0 %2519 }
 0x477   : > { %v2467_v6 = vsel %vm5461_vm11, %v2464_v18, %v4981_v53  ;;  %vm5462_vm10 = vmmov %vm5461_vm11  ;;  %v2389_v37 = vadd.f32 %v2387_v23, %v2379_v57  ;;  %v2390_v63 = vadd.f32 %v2388_v12, %v2380_v58  ;;  %v2412_v2 = vmul.f32 %v2410_v9, %v4856_v5 }
 0x478   : > { %v2468_v11 = vsel %vm5462_vm10, %v4981_v53, %v2464_v18  ;;  %v2413_v13 = vmul.f32 %v2411_v26, %v4856_v5  ;;  %v2425_v36 = vperm.slane %v2421_v44, 1  ;;  %v2469_v19 = vsel %vm3643_vm6, %v2467_v6, 0.0 }
 0x479   : > { %v2399_v33 = vadd.f32 %v2397_v1, %v2389_v37  ;;  %v2400_v7 = vadd.f32 %v2398_v38, %v2390_v63  ;;  %v2470_v53 = vsel %vm3654_vm8, %v2468_v11, 0.0  ;;  %3394 = vset.pattern.permute.xlu2 %v5434_v42  ;;  %v2438_v31 = vperm.slane %v2434_v30, 2 }
 0x47a   : > { %v2439_v21 = vperm.slane %v2435_v17, 2  ;;  %v2426_v25 = vmul.f32 %v2424_v16, %v4962_v39  ;;  %v2427_v4 = vmul.f32 %v2425_v36, %v4962_v39  ;;  %v2452_v44 = vperm.slane %v2448_v34, 3 }
 0x47b   : > { %v2414_v18 = vadd.f32 %v2412_v2, %v2399_v33  ;;  %v2415_v5 = vadd.f32 %v2413_v13, %v2400_v7  ;;  %v2453_v57 = vperm.slane %v2449_v52, 3  ;;  %v2476_v58 = vperm.slane %v2469_v19, 0 }
 0x47c   : > { %v2477_v23 = vperm.slane %v2470_v53, 0  ;;  %v5051_v12 = vpop.permute.xlu1 %2645  ;;  %v2440_v9 = vmul.f32 %v2438_v31, %v4890_v55  ;;  %v2441_v26 = vmul.f32 %v2439_v21, %v4890_v55  ;;  %v2486_v17 = vperm.slane %v2469_v19, 1 }
 0x47d   : > { %v2428_v6 = vadd.f32 %v2426_v25, %v2414_v18  ;;  %v2429_v30 = vadd.f32 %v2427_v4, %v2415_v5  ;;  %v2487_v11 = vperm.slane %v2470_v53, 1  ;;  %vm5463_vm11 = vcmp.lt.s32.totalorder %v3563_v41, 113 }
 0x47e   : > { %v2521_v39 = vsel %vm5463_vm11, %v5007_v32, %v2520_v20  ;;  %vm5464_vm10 = vmmov %vm5463_vm11  ;;  %v5061_v52 = vpop.permute.xlu2 %2676  ;;  %v2454_v37 = vmul.f32 %v2452_v44, %v4868_v56  ;;  %v2455_v63 = vmul.f32 %v2453_v57, %v4868_v56  ;;  %v2478_v38 = vmul.f32 %v2476_v58, %v5016_v60 }
 0x47f   : > { %v2522_v34 = vsel %vm5464_vm10, %v2520_v20, %v5007_v32  ;;  %v2442_v1 = vadd.f32 %v2440_v9, %v2428_v6  ;;  %v2443_v55 = vadd.f32 %v2441_v26, %v2429_v30  ;;  %v2479_v2 = vmul.f32 %v2477_v23, %v5016_v60 }
 0x480   : > { %v2496_v13 = vperm.slane %v2469_v19, 2  ;;  %v2497_v16 = vperm.slane %v2470_v53, 2  ;;  %v2523_v7 = vsel %vm3580_vm2, %v2521_v39, 0.0  ;;  %v2524_v32 = vsel %vm3774_vm14, %v2522_v34, 0.0 }
 0x481   : > { %v2456_v36 = vadd.f32 %v2454_v37, %v2442_v1  ;;  %v2457_v33 = vadd.f32 %v2455_v63, %v2443_v55  ;;  %v2488_v31 = vmul.f32 %v2486_v17, %v4898_v10  ;;  %v2489_v56 = vmul.f32 %v2487_v11, %v4898_v10 }
 0x482   : > { %v2506_v4 = vperm.slane %v2469_v19, 3  ;;  %v2507_v18 = vperm.slane %v2470_v53, 3  ;;  %v2530_v5 = vperm.slane %v2523_v7, 0  ;;  %v2531_v60 = vperm.slane %v2524_v32, 0 }
 0x483   : > { %v2480_v21 = vadd.f32 %v2478_v38, %v2456_v36  ;;  %v2481_v25 = vadd.f32 %v2479_v2, %v2457_v33  ;;  %v2498_v57 = vmul.f32 %v2496_v13, %v4877_v40  ;;  %v2499_v58 = vmul.f32 %v2497_v16, %v4877_v40 }
 0x484   : > { %v2540_v9 = vperm.slane %v2523_v7, 1  ;;  %v2541_v26 = vperm.slane %v2524_v32, 1  ;;  %v2508_v17 = vmul.f32 %v2506_v4, %v4906_v8  ;;  %v2509_v19 = vmul.f32 %v2507_v18, %v4906_v8 }
 0x485   : > { %v2490_v20 = vadd.f32 %v2488_v31, %v2480_v21  ;;  %v2491_v44 = vadd.f32 %v2489_v56, %v2481_v25  ;;  %v5075_v23 = vpop.permute.xlu1 %2665  ;;  %v2532_v53 = vmul.f32 %v2530_v5, %v4919_v0  ;;  %v2533_v11 = vmul.f32 %v2531_v60, %v4919_v0 }
 0x486   : > { %v5077_v6 = vpop.permute.xlu2 %2693  ;;  %v2550_v37 = vperm.slane %v2523_v7, 2  ;;  %v2551_v40 = vperm.slane %v2524_v32, 2  ;;  %v2542_v63 = vmul.f32 %v2540_v9, %v4893_v24  ;;  %v2543_v1 = vmul.f32 %v2541_v26, %v4893_v24 }
 0x487   : > { %v2500_v30 = vadd.f32 %v2498_v57, %v2490_v20  ;;  %v2501_v10 = vadd.f32 %v2499_v58, %v2491_v44  ;;  %v2560_v2 = vperm.slane %v2523_v7, 3  ;;  %v2561_v13 = vperm.slane %v2524_v32, 3 }
 0x488   : > { %v2552_v8 = vmul.f32 %v2550_v37, %v4911_v35  ;;  %v2553_v33 = vmul.f32 %v2551_v40, %v4911_v35  ;;  %v222_v35 = vld [vmem:[%s5381_s1 + $0xc8] sm:$0xf]  ;;  %vm5465_vm11 = vcmp.lt.s32.totalorder %v3563_v41, 112 }
 0x489   : > { %v2510_v39 = vadd.f32 %v2508_v17, %v2500_v30  ;;  %v2511_v34 = vadd.f32 %v2509_v19, %v2501_v10  ;;  %v2562_v21 = vmul.f32 %v2560_v2, %v4944_v22  ;;  %v2563_v25 = vmul.f32 %v2561_v13, %v4944_v22  ;;  %2930 = vperm.xlu2 %3394, %v222_v35   ;;  %vm5466_vm10 = vmmov %vm5465_vm11 }
 0x48a   : > { %2940 = vperm.xlu0 %3386, %v222_v35   ;;  %2950 = vperm.xlu1 %3396, %v222_v35  }
 0x48b   : > { %v2534_v55 = vadd.f32 %v2532_v53, %v2510_v39  ;;  %v2535_v38 = vadd.f32 %v2533_v11, %v2511_v34 }
 0x48d   : > { %v2544_v16 = vadd.f32 %v2542_v63, %v2534_v55  ;;  %v2545_v36 = vadd.f32 %v2543_v1, %v2535_v38 }
 0x48e   : > { %v5087_v31 = vpop.permute.xlu1 %2713 }
 0x48f   : > { %v2554_v0 = vadd.f32 %v2552_v8, %v2544_v16  ;;  %v2555_v56 = vadd.f32 %v2553_v33, %v2545_v36  ;;  %v5091_v4 = vpop.permute.xlu2 %2723 }
 0x491   : > { %v2564_v24 = vadd.f32 %v2562_v21, %v2554_v0  ;;  %v2565_v18 = vadd.f32 %v2563_v25, %v2555_v56  ;;  %3397 = vset.pattern.permute.xlu2 %v5430_v45 }
 0x492   : > { %3395 = vset.pattern.permute.xlu0 %v5434_v42  ;;  %2960 = vperm.xlu2 %3397, %v222_v35  }
 0x493   : > { %3399 = vset.pattern.permute.xlu1 %v5431_v3 }
 0x497   : > { %v5093_v7 = vpop.permute.xlu1 %2752 }
 0x498   : > { %v5095_v32 = vpop.permute.xlu2 %2762 }
 0x49a   : > { %3400 = vset.pattern.permute.xlu2 %v5440_v29 }
 0x4a0   : > { %v2572_v5 = vpop.permute.xlu2 %2571  ;;  %v5097_v60 = vpop.permute.xlu1 %2772 }
 0x4a8   : > { %v2628_v20 = vpop.permute.xlu2 %2627 }
 0x4a9   : > { %v5102_v22 = vpop.permute.xlu1 %2791 }
 0x4b0   : > { %v5107_v44 = vpop.permute.xlu2 %2801 }
 0x4b1   : > { %v2574_v57 = vpop.permute.xlu1 %2573 }
 0x4b2   : > { %v2575_v58 = vsel %vm5465_vm11, %v2572_v5, %v2574_v57  ;;  %v2576_v9 = vsel %vm5466_vm10, %v2574_v57, %v2572_v5  ;;  %v2636_v57 = vpop.permute.xlu0 %2635 }
 0x4b3   : > { %v2578_v26 = vsel %vm240_vm12, %v2576_v9, 0.0  ;;  %v2584_v30 = vperm.slane %v2575_v58, 0  ;;  %v2594_v10 = vperm.slane %v2575_v58, 1  ;;  %v2604_v11 = vperm.slane %v2575_v58, 2 }
 0x4b4   : > { %v2585_v17 = vperm.slane %v2578_v26, 0  ;;  %v2595_v19 = vperm.slane %v2578_v26, 1  ;;  %v2605_v39 = vperm.slane %v2578_v26, 2  ;;  %v2614_v37 = vperm.slane %v2575_v58, 3 }
 0x4b5   : > { %v2586_v53 = vmul.f32 %v2584_v30, %v4922_v15  ;;  %v2596_v63 = vmul.f32 %v2594_v10, %v4989_v43  ;;  %v2615_v1 = vperm.slane %v2578_v26, 3  ;;  %v2606_v13 = vmul.f32 %v2604_v11, %v4960_v59 }
 0x4b6   : > { %v2587_v34 = vmul.f32 %v2585_v17, %v4922_v15  ;;  %v2597_v38 = vmul.f32 %v2595_v19, %v4989_v43  ;;  %v2607_v16 = vmul.f32 %v2605_v39, %v4960_v59  ;;  %v2616_v15 = vmul.f32 %v2614_v37, %v4937_v28 }
 0x4b7   : > { %v2588_v40 = vadd.f32 %v2586_v53, %v2564_v24  ;;  %v2617_v43 = vmul.f32 %v2615_v1, %v4937_v28 }
 0x4b8   : > { %v2589_v55 = vadd.f32 %v2587_v34, %v2565_v18 }
 0x4b9   : > { %v2598_v2 = vadd.f32 %v2596_v63, %v2588_v40  ;;  %v2626_v36 = vpop.permute.xlu1 %2625  ;;  %v5122_v8 = vpop.permute.xlu2 %2840 }
 0x4ba   : > { %v2599_v33 = vadd.f32 %v2597_v38, %v2589_v55  ;;  %v2629_v0 = vsel %vm733_vm13, %v2626_v36, %v2628_v20  ;;  %v2630_v56 = vsel %vm733_vm13, %v2628_v20, %v2626_v36 }
 0x4bb   : > { %v2608_v21 = vadd.f32 %v2606_v13, %v2598_v2  ;;  %v2631_v25 = vsel %vm3643_vm6, %v2629_v0, 0.0  ;;  %v2632_v59 = vsel %vm3828_vm15, %v2630_v56, 0.0 }
 0x4bc   : > { %v2609_v24 = vadd.f32 %v2607_v16, %v2599_v33  ;;  %v2638_v18 = vperm.slane %v2631_v25, 0  ;;  %v2639_v5 = vperm.slane %v2632_v59, 0  ;;  %v2648_v35 = vperm.slane %v2631_v25, 1 }
 0x4bd   : > { %v2618_v58 = vadd.f32 %v2616_v15, %v2608_v21  ;;  %v2649_v9 = vperm.slane %v2632_v59, 1  ;;  %v2658_v26 = vperm.slane %v2631_v25, 2  ;;  %v2659_v17 = vperm.slane %v2632_v59, 2 }
 0x4be   : > { %v2619_v30 = vadd.f32 %v2617_v43, %v2609_v24  ;;  %v2640_v10 = vmul.f32 %v2638_v18, %v2636_v57  ;;  %v2641_v20 = vmul.f32 %v2639_v5, %v2636_v57  ;;  %v2650_v28 = vmul.f32 %v2648_v35, %v5051_v12  ;;  %v5467_v18 = vld [vmem:[#allocation6_spill] sm:$0xff] }
 0x4bf   : > { %v2651_v19 = vmul.f32 %v2649_v9, %v5051_v12  ;;  %v2668_v39 = vperm.slane %v2631_v25, 3  ;;  %v2669_v34 = vperm.slane %v2632_v59, 3  ;;  %v2660_v1 = vmul.f32 %v2658_v26, %v5032_v48  ;;  %v223_v5 = vld [vmem:[%s5381_s1 + $0xcc] sm:$0xf]  ;;  %v224_v9 = vld [vmem:[%s5381_s1 + $0xd0] sm:$0xf]  ;;  %v5222_v26 = vpop.permute.xlu0 %2811 }
 0x4c0   : > { %v2642_v53 = vadd.f32 %v2640_v10, %v2618_v58  ;;  %v2643_v11 = vadd.f32 %v2641_v20, %v2619_v30  ;;  %v2661_v55 = vmul.f32 %v2659_v17, %v5032_v48  ;;  %v231_v10 = vld [vmem:[%s5382_s2 + $0x14] sm:$0xf] }
 0x4c1   : > { %v5136_v37 = vpop.permute.xlu1 %2821  ;;  %v2670_v16 = vmul.f32 %v2668_v39, %v5075_v23  ;;  %v2671_v12 = vmul.f32 %v2669_v34, %v5075_v23 }
 0x4c2   : > { %v2652_v40 = vadd.f32 %v2650_v28, %v2642_v53  ;;  %v2653_v63 = vadd.f32 %v2651_v19, %v2643_v11  ;;  %v5140_v38 = vpop.permute.xlu2 %2870 }
 0x4c4   : > { %v2662_v2 = vadd.f32 %v2660_v1, %v2652_v40  ;;  %v2663_v13 = vadd.f32 %v2661_v55, %v2653_v63 }
 0x4c6   : > { %v2672_v36 = vadd.f32 %v2670_v16, %v2662_v2  ;;  %v2673_v33 = vadd.f32 %v2671_v12, %v2663_v13 }
 0x4c8   : > { %v2679_v15 = vadd.f32 %v5061_v52, %v2672_v36  ;;  %v2680_v0 = vadd.f32 %v5061_v52, %v2673_v33 }
 0x4ca   : > { %v5146_v56 = vmax.f32 %v2679_v15, 0.0  ;;  %v5148_v21 = vmax.f32 %v2680_v0, 0.0  ;;  %v5150_v43 = vpop.permute.xlu1 %2860 }
 0x4cb   : > { %v5152_v48 = vpop.permute.xlu2 %2891 }
 0x4cc   : > { %2734 = vrot.lane.b32.xlu2 %v5148_v21, %s3424_s23  ;;  %2685 = vrot.lane.b32.xlu1 %v5148_v21, %s3423_s20  ;;  %v2895_v23 = vperm.slane %v5148_v21, 1  ;;  %v2885_v25 = vperm.slane %v5148_v21, 0  ;;  %v2915_v35 = vperm.slane %v5148_v21, 3 }
 0x4cd   : > { %2683 = vrot.lane.b32.xlu0 %v5146_v56, %s3423_s20 }
 0x4ce   : > { %v5162_v52 = vmul.f32 %v2895_v23, %v5152_v48 }
 0x4d3   : > { %v5165_v59 = vpop.permute.xlu1 %2881 }
 0x4d4   : > { %v5168_v24 = vmul.f32 %v2885_v25, %v5165_v59  ;;  %2781 = vrot.lane.b32.xlu2 %v5146_v56, %s3425_s24  ;;  %2732 = vrot.lane.b32.xlu1 %v5146_v56, %s3424_s23 }
 0x4d5   : > { %2742 = vperm.xlu0 %3395, %v5467_v18  }
 0x4dc   : > { %v5179_v57 = vpop.permute.xlu1 %2911  ;;  %2999 = vperm.xlu2 %3400, %v223_v5   ;;  %2989 = vperm.xlu1 %3399, %v223_v5  }
 0x4dd   : > { %v5182_v58 = vmul.f32 %v2915_v35, %v5179_v57  ;;  %2783 = vrot.lane.b32.xlu0 %v5148_v21, %s3425_s24 }
 0x4e3   : > { %v5224_v30 = vpop.permute.xlu2 %2930 }
 0x4e4   : > { %2830 = vrot.lane.b32.xlu2 %v5146_v56, %s3426_s25  ;;  %3401 = vset.pattern.permute.xlu1 %v5430_v45 }
 0x4e5   : > { %2979 = vperm.xlu0 %3395, %v223_v5   ;;  %3009 = vperm.xlu1 %3401, %v223_v5  }
 0x4e6   : > { %3403 = vset.pattern.permute.xlu2 %v5431_v3 }
 0x4ec   : > { %3038 = vperm.xlu2 %3403, %v224_v9   ;;  %v5231_v20 = vpop.permute.xlu2 %2960 }
 0x4ed   : > { %3398 = vset.pattern.permute.xlu0 %v5440_v29  ;;  %2832 = vrot.lane.b32.xlu1 %v5148_v21, %s3426_s25 }
 0x4ee   : > { %2901 = vperm.xlu0 %3398, %v4968_v54   ;;  %3402 = vset.pattern.permute.xlu1 %v5434_v42  ;;  %v225_v54 = vld [vmem:[%s5381_s1 + $0xd4] sm:$0xf] }
 0x4f4   : > { %2920 = vrot.lane.b32.xlu2 %v5146_v56, %s3427_s9 }
 0x4f5   : > { %3028 = vperm.xlu1 %3402, %v224_v9   ;;  %3405 = vset.pattern.permute.xlu2 %v5434_v42 }
 0x4f6   : > { %3020 = vrot.lane.b32.xlu0 %v5148_v21, %s3430_s19 }
 0x4fc   : > { %2971 = vrot.lane.b32.xlu2 %v5148_v21, %s3428_s14  ;;  %v5235_v28 = vpop.permute.xlu1 %2950 }
 0x4fd   : > { %2922 = vrot.lane.b32.xlu1 %v5148_v21, %s3427_s9 }
 0x4fe   : > { %3048 = vperm.xlu0 %3398, %v224_v9   ;;  %3404 = vset.pattern.permute.xlu1 %v5430_v45 }
 0x504   : > { %3018 = vrot.lane.b32.xlu2 %v5146_v56, %s3430_s19 }
 0x505   : > { %2969 = vrot.lane.b32.xlu1 %v5146_v56, %s3428_s14 }
 0x506   : > { %3406 = vset.pattern.permute.xlu0 %v5431_v3  ;;  %v2704_v3 = vpop.permute.xlu0 %2703 }
 0x507   : > { %3087 = vperm.xlu0 %3406, %v225_v54  }
 0x50c   : > { %3069 = vrot.lane.b32.xlu2 %v5148_v21, %s3429_s15 }
 0x50d   : > { %3058 = vperm.xlu1 %3404, %v224_v9  }
 0x50e   : > { %v5233_v17 = vpop.permute.xlu0 %2850 }
 0x50f   : > { %3410 = vset.pattern.permute.xlu0 %v5434_v42 }
 0x514   : > { %3077 = vperm.xlu2 %3405, %v225_v54  }
 0x515   : > { %3067 = vrot.lane.b32.xlu1 %v5146_v56, %s3429_s15 }
 0x516   : > { %3407 = vset.pattern.permute.xlu1 %v5440_v29  ;;  %v5237_v19 = vpop.permute.xlu0 %2940 }
 0x51c   : > { %3408 = vset.pattern.permute.xlu2 %v5430_v45 }
 0x51d   : > { %3097 = vperm.xlu1 %3407, %v225_v54   ;;  %3107 = vperm.xlu2 %3408, %v225_v54  }
 0x525   : > { %3409 = vset.pattern.permute.xlu1 %v5434_v42 }
 0x526   : > { %3118 = vperm.xlu1 %3409, %v231_v10   ;;  %v2735_v29 = vpop.permute.xlu2 %2734 }
 0x52e   : > { %v2782_v45 = vpop.permute.xlu2 %2781 }
 0x536   : > { %v5247_v36 = vpop.permute.xlu2 %2999 }
 0x53e   : > { %v2686_v53 = vpop.permute.xlu1 %2685 }
 0x53f   : > { %v2684_v11 = vpop.permute.xlu0 %2683 }
 0x540   : > { %v2687_v39 = vsel %vm263_vm0, %v2684_v11, %v2686_v53  ;;  %v2688_v34 = vsel %vm263_vm0, %v2686_v53, %v2684_v11  ;;  %vm5469_vm0 = vcmp.lt.s32.totalorder %v3563_v41, 1 }
 0x541   : > { %v2689_v40 = vsel %vm3600_vm4, %v2688_v34, 0.0  ;;  %v2690_v63 = vsel %vm3586_vm3, %v2687_v39, 0.0 }
 0x542   : > { %v2696_v1 = vperm.slane %v2689_v40, 0  ;;  %v2697_v55 = vperm.slane %v2690_v63, 0  ;;  %v2706_v2 = vperm.slane %v2689_v40, 1  ;;  %v2707_v13 = vperm.slane %v2690_v63, 1 }
 0x543   : > { %v2716_v16 = vperm.slane %v2689_v40, 2  ;;  %v2717_v12 = vperm.slane %v2690_v63, 2  ;;  %v2726_v25 = vperm.slane %v2689_v40, 3  ;;  %v2727_v18 = vperm.slane %v2690_v63, 3 }
 0x544   : > { %v2698_v33 = vmul.f32 %v2696_v1, %v5077_v6  ;;  %v2699_v15 = vmul.f32 %v2697_v55, %v5077_v6  ;;  %v2708_v0 = vmul.f32 %v2706_v2, %v2704_v3  ;;  %v2709_v23 = vmul.f32 %v2707_v13, %v2704_v3 }
 0x545   : > { %v2718_v54 = vmul.f32 %v2716_v16, %v5087_v31  ;;  %v2719_v11 = vmul.f32 %v2717_v12, %v5087_v31  ;;  %v2728_v34 = vmul.f32 %v2726_v25, %v5091_v4  ;;  %v2729_v63 = vmul.f32 %v2727_v18, %v5091_v4 }
 0x546   : > { %v2733_v5 = vpop.permute.xlu1 %2732  ;;  %v2710_v35 = vadd.f32 %v2708_v0, %v2698_v33  ;;  %v2711_v9 = vadd.f32 %v2709_v23, %v2699_v15 }
 0x547   : > { %v2737_v10 = vsel %vm322_vm5, %v2735_v29, %v2733_v5  ;;  %v2743_v53 = vpop.permute.xlu0 %2742  ;;  %v2736_v39 = vsel %vm322_vm5, %v2733_v5, %v2735_v29  ;;  %v2831_v29 = vpop.permute.xlu2 %2830  ;;  %vm5473_vm5 = vmmov %vm5466_vm10 }
 0x548   : > { %v2738_v6 = vsel %vm237_vm1, %v2737_v10, 0.0  ;;  %v2720_v3 = vadd.f32 %v2718_v54, %v2710_v35  ;;  %v2721_v40 = vadd.f32 %v2719_v11, %v2711_v9  ;;  %v2756_v55 = vperm.slane %v2736_v39, 1  ;;  %vm5470_vm1 = vmmov %vm5469_vm0 }
 0x549   : > { %v2755_v42 = vperm.slane %v2738_v6, 1  ;;  %v2745_v1 = vperm.slane %v2738_v6, 0  ;;  %v2746_v2 = vperm.slane %v2736_v39, 0  ;;  %v2765_v13 = vperm.slane %v2738_v6, 2 }
 0x54a   : > { %v2730_v16 = vadd.f32 %v2728_v34, %v2720_v3  ;;  %v2731_v33 = vadd.f32 %v2729_v63, %v2721_v40  ;;  %v2766_v12 = vperm.slane %v2736_v39, 2  ;;  %v2775_v0 = vperm.slane %v2738_v6, 3 }
 0x54b   : > { %v2747_v31 = vmul.f32 %v2745_v1, %v2743_v53  ;;  %v2748_v15 = vmul.f32 %v2746_v2, %v2743_v53  ;;  %v2757_v5 = vmul.f32 %v2755_v42, %v5093_v7  ;;  %v2776_v25 = vperm.slane %v2736_v39, 3 }
 0x54c   : > { %v2758_v4 = vmul.f32 %v2756_v55, %v5093_v7  ;;  %v2767_v54 = vmul.f32 %v2765_v13, %v5095_v32  ;;  %v2768_v6 = vmul.f32 %v2766_v12, %v5095_v32  ;;  %v2777_v7 = vmul.f32 %v2775_v0, %v5097_v60 }
 0x54d   : > { %v2749_v23 = vadd.f32 %v2747_v31, %v2730_v16  ;;  %v2750_v9 = vadd.f32 %v2748_v15, %v2731_v33  ;;  %v2778_v1 = vmul.f32 %v2776_v25, %v5097_v60 }
 0x54e   : > { %v5262_v35 = vpop.permute.xlu1 %2989 }
 0x54f   : > { %v2784_v18 = vpop.permute.xlu0 %2783  ;;  %v2759_v10 = vadd.f32 %v2757_v5, %v2749_v23  ;;  %v2760_v3 = vadd.f32 %v2758_v4, %v2750_v9  ;;  %v5281_v15 = vpop.permute.xlu2 %3038 }
 0x550   : > { %v2785_v11 = vsel %vm381_vm7, %v2782_v45, %v2784_v18  ;;  %v2786_v53 = vsel %vm381_vm7, %v2784_v18, %v2782_v45  ;;  %vm5474_vm7 = vcmp.lt.s32.totalorder %v3563_v41, 113 }
 0x551   : > { %v2787_v34 = vsel %vm3662_vm9, %v2786_v53, 0.0  ;;  %v2788_v39 = vsel %vm3654_vm8, %v2785_v11, 0.0  ;;  %v2769_v42 = vadd.f32 %v2767_v54, %v2759_v10  ;;  %v2770_v55 = vadd.f32 %v2768_v6, %v2760_v3  ;;  %vm5476_vm9 = vmmov %vm5473_vm5 }
 0x552   : > { %v2794_v40 = vperm.slane %v2787_v34, 0  ;;  %v2795_v63 = vperm.slane %v2788_v39, 0  ;;  %v2804_v16 = vperm.slane %v2787_v34, 1  ;;  %v2805_v62 = vperm.slane %v2788_v39, 1 }
 0x553   : > { %v2779_v2 = vadd.f32 %v2777_v7, %v2769_v42  ;;  %v2780_v13 = vadd.f32 %v2778_v1, %v2770_v55  ;;  %v2814_v60 = vperm.slane %v2787_v34, 2  ;;  %v2815_v5 = vperm.slane %v2788_v39, 2 }
 0x554   : > { %v2796_v45 = vmul.f32 %v2794_v40, %v5102_v22  ;;  %v2797_v32 = vmul.f32 %v2795_v63, %v5102_v22  ;;  %v2806_v0 = vmul.f32 %v2804_v16, %v5107_v44  ;;  %v2807_v23 = vmul.f32 %v2805_v62, %v5107_v44 }
 0x555   : > { %v2816_v4 = vmul.f32 %v2814_v60, %v5222_v26  ;;  %v2817_v22 = vmul.f32 %v2815_v5, %v5222_v26  ;;  %v2824_v18 = vperm.slane %v2787_v34, 3  ;;  %v2825_v54 = vperm.slane %v2788_v39, 3 }
 0x556   : > { %v2798_v33 = vadd.f32 %v2796_v45, %v2779_v2  ;;  %v2799_v31 = vadd.f32 %v2797_v32, %v2780_v13 }
 0x557   : > { %v5279_v12 = vpop.permute.xlu1 %3009  ;;  %v5287_v6 = vpop.permute.xlu0 %2979  ;;  %v2826_v7 = vmul.f32 %v2824_v18, %v5136_v37  ;;  %v2827_v42 = vmul.f32 %v2825_v54, %v5136_v37 }
 0x558   : > { %v2808_v25 = vadd.f32 %v2806_v0, %v2798_v33  ;;  %v2809_v9 = vadd.f32 %v2807_v23, %v2799_v31  ;;  %v2921_v39 = vpop.permute.xlu2 %2920 }
 0x55a   : > { %v2818_v10 = vadd.f32 %v2816_v4, %v2808_v25  ;;  %v2819_v11 = vadd.f32 %v2817_v22, %v2809_v9  ;;  %v2884_v4 = vperm.slane %v5146_v56, 0 }
 0x55c   : > { %v2828_v2 = vadd.f32 %v2826_v7, %v2818_v10  ;;  %v2829_v45 = vadd.f32 %v2827_v42, %v2819_v11  ;;  %v2905_v7 = vperm.slane %v5148_v21, 2 }
 0x55f   : > { %v2833_v53 = vpop.permute.xlu1 %2832 }
 0x560   : > { %v2834_v3 = vsel %vm5469_vm0, %v2831_v29, %v2833_v53  ;;  %v2835_v44 = vsel %vm5470_vm1, %v2833_v53, %v2831_v29  ;;  %v2902_v11 = vpop.permute.xlu0 %2901  ;;  %v2972_v53 = vpop.permute.xlu2 %2971 }
 0x561   : > { %v2836_v26 = vsel %vm3580_vm2, %v2835_v44, 0.0  ;;  %v2837_v34 = vsel %vm3586_vm3, %v2834_v3, 0.0  ;;  %vm5471_vm3 = vcmp.lt.s32.totalorder %v3563_v41, 127 }
 0x562   : > { %v2843_v40 = vperm.slane %v2836_v26, 0  ;;  %v2844_v63 = vperm.slane %v2837_v34, 0  ;;  %v2853_v1 = vperm.slane %v2836_v26, 1  ;;  %v2854_v55 = vperm.slane %v2837_v34, 1  ;;  %vm5472_vm4 = vmmov %vm5471_vm3 }
 0x563   : > { %v2863_v13 = vperm.slane %v2836_v26, 2  ;;  %v2864_v16 = vperm.slane %v2837_v34, 2  ;;  %v2873_v37 = vperm.slane %v2836_v26, 3  ;;  %v2874_v62 = vperm.slane %v2837_v34, 3 }
 0x564   : > { %v2845_v32 = vmul.f32 %v2843_v40, %v5122_v8  ;;  %v2846_v29 = vmul.f32 %v2844_v63, %v5122_v8  ;;  %v2855_v50 = vmul.f32 %v2853_v1, %v5233_v17  ;;  %v2856_v0 = vmul.f32 %v2854_v55, %v5233_v17 }
 0x565   : > { %v2865_v25 = vmul.f32 %v2863_v13, %v5150_v43  ;;  %v2866_v9 = vmul.f32 %v2864_v16, %v5150_v43  ;;  %v2894_v8 = vperm.slane %v5146_v56, 1  ;;  %v2875_v54 = vmul.f32 %v2873_v37, %v5140_v38 }
 0x566   : > { %v2847_v33 = vadd.f32 %v2845_v32, %v2828_v2  ;;  %v2848_v31 = vadd.f32 %v2846_v29, %v2829_v45  ;;  %v2876_v10 = vmul.f32 %v2874_v62, %v5140_v38  ;;  %v2886_v17 = vmul.f32 %v2884_v4, %v5165_v59 }
 0x567   : > { %v5303_v23 = vpop.permute.xlu1 %3028  ;;  %v2904_v43 = vperm.slane %v5146_v56, 2  ;;  %v2896_v42 = vmul.f32 %v2894_v8, %v5152_v48  ;;  %v2914_v40 = vperm.slane %v5146_v56, 3  ;;  %v2907_v1 = vmul.f32 %v2905_v7, %v2902_v11 }
 0x568   : > { %v2857_v60 = vadd.f32 %v2855_v50, %v2847_v33  ;;  %v2858_v5 = vadd.f32 %v2856_v0, %v2848_v31 }
 0x569   : > { %v2906_v63 = vmul.f32 %v2904_v43, %v2902_v11  ;;  %v2916_v45 = vmul.f32 %v2914_v40, %v5179_v57 }
 0x56a   : > { %v2867_v22 = vadd.f32 %v2865_v25, %v2857_v60  ;;  %v2868_v18 = vadd.f32 %v2866_v9, %v2858_v5  ;;  %v3019_v60 = vpop.permute.xlu2 %3018 }
 0x56c   : > { %v2877_v3 = vadd.f32 %v2875_v54, %v2867_v22  ;;  %v2878_v44 = vadd.f32 %v2876_v10, %v2868_v18 }
 0x56e   : > { %v2888_v26 = vadd.f32 %v2886_v17, %v2877_v3  ;;  %v2889_v34 = vadd.f32 %v5168_v24, %v2878_v44 }
 0x56f   : > { %v2923_v38 = vpop.permute.xlu1 %2922 }
 0x570   : > { %v2898_v55 = vadd.f32 %v2896_v42, %v2888_v26  ;;  %v2899_v59 = vadd.f32 %v5162_v52, %v2889_v34  ;;  %v2924_v2 = vsel %vm5471_vm3, %v2921_v39, %v2923_v38  ;;  %v2925_v21 = vsel %vm5472_vm4, %v2923_v38, %v2921_v39  ;;  %v3021_v39 = vpop.permute.xlu0 %3020 }
 0x571   : > { %v2926_v48 = vsel %vm3643_vm6, %v2924_v2, 0.0  ;;  %v2927_v56 = vsel %vm3654_vm8, %v2925_v21, 0.0  ;;  %v3023_v4 = vsel %vm5473_vm5, %v3021_v39, %v3019_v60  ;;  %vm5475_vm8 = vmmov %vm5474_vm7 }
 0x572   : > { %v2908_v24 = vadd.f32 %v2906_v63, %v2898_v55  ;;  %v2909_v32 = vadd.f32 %v2907_v1, %v2899_v59  ;;  %v2933_v29 = vperm.slane %v2926_v48, 0  ;;  %v2934_v13 = vperm.slane %v2927_v56, 0 }
 0x573   : > { %v2943_v16 = vperm.slane %v2926_v48, 1  ;;  %v2944_v52 = vperm.slane %v2927_v56, 1  ;;  %v2953_v37 = vperm.slane %v2926_v48, 2  ;;  %v2954_v62 = vperm.slane %v2927_v56, 2 }
 0x574   : > { %v2918_v33 = vadd.f32 %v2916_v45, %v2908_v24  ;;  %v2919_v31 = vadd.f32 %v5182_v58, %v2909_v32  ;;  %v2935_v57 = vmul.f32 %v2933_v29, %v5224_v30  ;;  %v2936_v50 = vmul.f32 %v2934_v13, %v5224_v30  ;;  %v3070_v24 = vpop.permute.xlu2 %3069 }
 0x575   : > { %v2945_v0 = vmul.f32 %v2943_v16, %v5237_v19  ;;  %v2946_v46 = vmul.f32 %v2944_v52, %v5237_v19  ;;  %v2963_v9 = vperm.slane %v2926_v48, 3  ;;  %v2964_v8 = vperm.slane %v2927_v56, 3 }
 0x576   : > { %v2937_v5 = vadd.f32 %v2935_v57, %v2918_v33  ;;  %v2938_v25 = vadd.f32 %v2936_v50, %v2919_v31  ;;  %v2955_v54 = vmul.f32 %v2953_v37, %v5235_v28  ;;  %v2956_v10 = vmul.f32 %v2954_v62, %v5235_v28 }
 0x577   : > { %v2970_v22 = vpop.permute.xlu1 %2969  ;;  %v2965_v30 = vmul.f32 %v2963_v9, %v5231_v20  ;;  %v2966_v11 = vmul.f32 %v2964_v8, %v5231_v20  ;;  %v3022_v20 = vsel %vm5476_vm9, %v3019_v60, %v3021_v39  ;;  %v3025_v40 = vsel %vm240_vm12, %v3023_v4, 0.0 }
 0x578   : > { %v2947_v18 = vadd.f32 %v2945_v0, %v2937_v5  ;;  %v2948_v58 = vadd.f32 %v2946_v46, %v2938_v25  ;;  %v2973_v19 = vsel %vm5474_vm7, %v2970_v22, %v2972_v53  ;;  %v2974_v17 = vsel %vm5475_vm8, %v2972_v53, %v2970_v22  ;;  %v3049_v62 = vpop.permute.xlu0 %3048 }
 0x579   : > { %v2975_v7 = vsel %vm3580_vm2, %v2973_v19, 0.0  ;;  %v2976_v43 = vsel %vm3774_vm14, %v2974_v17, 0.0  ;;  %v3031_v14 = vperm.slane %v3022_v20, 0  ;;  %v3032_v32 = vperm.slane %v3025_v40, 0 }
 0x57a   : > { %v2957_v3 = vadd.f32 %v2955_v54, %v2947_v18  ;;  %v2958_v44 = vadd.f32 %v2956_v10, %v2948_v58  ;;  %v2982_v42 = vperm.slane %v2975_v7, 0  ;;  %v2983_v28 = vperm.slane %v2976_v43, 0 }
 0x57b   : > { %v2992_v26 = vperm.slane %v2975_v7, 1  ;;  %v2993_v34 = vperm.slane %v2976_v43, 1  ;;  %v3002_v38 = vperm.slane %v2975_v7, 2  ;;  %v3003_v55 = vperm.slane %v2976_v43, 2 }
 0x57c   : > { %v2967_v63 = vadd.f32 %v2965_v30, %v2957_v3  ;;  %v2968_v53 = vadd.f32 %v2966_v11, %v2958_v44  ;;  %v2984_v1 = vmul.f32 %v2982_v42, %v5287_v6  ;;  %v2985_v49 = vmul.f32 %v2983_v28, %v5287_v6 }
 0x57d   : > { %v2994_v47 = vmul.f32 %v2992_v26, %v5262_v35  ;;  %v2995_v59 = vmul.f32 %v2993_v34, %v5262_v35  ;;  %v3012_v45 = vperm.slane %v2975_v7, 3  ;;  %v3013_v48 = vperm.slane %v2976_v43, 3 }
 0x57e   : > { %v2986_v2 = vadd.f32 %v2984_v1, %v2967_v63  ;;  %v2987_v21 = vadd.f32 %v2985_v49, %v2968_v53  ;;  %v3004_v16 = vmul.f32 %v3002_v38, %v5247_v36  ;;  %v3005_v6 = vmul.f32 %v3003_v55, %v5247_v36 }
 0x57f   : > { %v3059_v56 = vpop.permute.xlu1 %3058  ;;  %v3041_v52 = vperm.slane %v3022_v20, 1  ;;  %v3042_v37 = vperm.slane %v3025_v40, 1  ;;  %v3014_v35 = vmul.f32 %v3012_v45, %v5279_v12  ;;  %v3015_v39 = vmul.f32 %v3013_v48, %v5279_v12  ;;  %v3078_v12 = vpop.permute.xlu2 %3077 }
 0x580   : > { %v2996_v29 = vadd.f32 %v2994_v47, %v2986_v2  ;;  %v2997_v13 = vadd.f32 %v2995_v59, %v2987_v21  ;;  %v3033_v57 = vmul.f32 %v3031_v14, %v5303_v23  ;;  %v3034_v50 = vmul.f32 %v3032_v32, %v5303_v23  ;;  %v3088_v26 = vpop.permute.xlu0 %3087 }
 0x581   : > { %v3043_v60 = vmul.f32 %v3041_v52, %v5281_v15  ;;  %v3044_v5 = vmul.f32 %v3042_v37, %v5281_v15  ;;  %v3051_v36 = vperm.slane %v3022_v20, 2  ;;  %v3052_v25 = vperm.slane %v3025_v40, 2 }
 0x582   : > { %v3006_v33 = vadd.f32 %v3004_v16, %v2996_v29  ;;  %v3007_v31 = vadd.f32 %v3005_v6, %v2997_v13  ;;  %v3061_v4 = vperm.slane %v3022_v20, 3  ;;  %v3062_v22 = vperm.slane %v3025_v40, 3 }
 0x583   : > { %v3053_v58 = vmul.f32 %v3051_v36, %v3049_v62  ;;  %v3054_v54 = vmul.f32 %v3052_v25, %v3049_v62  ;;  %vm5477_vm2 = vcmask 1043456  }
 0x584   : > { %v3016_v0 = vadd.f32 %v3014_v35, %v3006_v33  ;;  %v3017_v46 = vadd.f32 %v3015_v39, %v3007_v31  ;;  %v3063_v17 = vmul.f32 %v3061_v4, %v3059_v56  ;;  %v3064_v28 = vmul.f32 %v3062_v22, %v3059_v56 }
 0x586   : > { %v3035_v9 = vadd.f32 %v3033_v57, %v3016_v0  ;;  %v3036_v8 = vadd.f32 %v3034_v50, %v3017_v46 }
 0x587   : > { %v3068_v18 = vpop.permute.xlu1 %3067  ;;  %v3108_v48 = vpop.permute.xlu2 %3107 }
 0x588   : > { %v3071_v10 = vsel %vm733_vm13, %v3068_v18, %v3070_v24  ;;  %v3072_v23 = vsel %vm733_vm13, %v3070_v24, %v3068_v18  ;;  %v3045_v30 = vadd.f32 %v3043_v60, %v3035_v9  ;;  %v3046_v11 = vadd.f32 %v3044_v5, %v3036_v8 }
 0x589   : > { %v3073_v15 = vsel %vm3643_vm6, %v3071_v10, 0.0  ;;  %v3074_v19 = vsel %vm3828_vm15, %v3072_v23, 0.0 }
 0x58a   : > { %v3080_v3 = vperm.slane %v3073_v15, 0  ;;  %v3081_v44 = vperm.slane %v3074_v19, 0  ;;  %v3090_v7 = vperm.slane %v3073_v15, 1  ;;  %v3055_v43 = vadd.f32 %v3053_v58, %v3045_v30 }
 0x58b   : > { %v3056_v42 = vadd.f32 %v3054_v54, %v3046_v11  ;;  %v3091_v34 = vperm.slane %v3074_v19, 1  ;;  %v3101_v1 = vperm.slane %v3074_v19, 2  ;;  %v3100_v55 = vperm.slane %v3073_v15, 2 }
 0x58c   : > { %v3082_v20 = vmul.f32 %v3080_v3, %v3078_v12  ;;  %v3083_v41 = vmul.f32 %v3081_v44, %v3078_v12  ;;  %v3065_v40 = vadd.f32 %v3063_v17, %v3055_v43  ;;  %v3092_v53 = vmul.f32 %v3090_v7, %v3088_v26 }
 0x58d   : > { %v3066_v63 = vadd.f32 %v3064_v28, %v3056_v42  ;;  %v3093_v38 = vmul.f32 %v3091_v34, %v3088_v26  ;;  %v3111_v21 = vperm.slane %v3074_v19, 3  ;;  %v3110_v56 = vperm.slane %v3073_v15, 3 }
 0x58e   : > { %v3084_v27 = vadd.f32 %v3082_v20, %v3065_v40 }
 0x58f   : > { %v3085_v49 = vadd.f32 %v3083_v41, %v3066_v63  ;;  %v3098_v61 = vpop.permute.xlu1 %3097  ;;  %v3113_v14 = vmul.f32 %v3111_v21, %v3108_v48  ;;  %v3112_v29 = vmul.f32 %v3110_v56, %v3108_v48 }
 0x590   : > { %v3103_v47 = vmul.f32 %v3101_v1, %v3098_v61  ;;  %v3094_v59 = vadd.f32 %v3092_v53, %v3084_v27  ;;  %v3102_v45 = vmul.f32 %v3100_v55, %v3098_v61 }
 0x591   : > { %v3095_v2 = vadd.f32 %v3093_v38, %v3085_v49 }
 0x592   : > { %v3104_v32 = vadd.f32 %v3102_v45, %v3094_v59 }
 0x593   : > { %v3105_v24 = vadd.f32 %v3103_v47, %v3095_v2 }
 0x594   : > { %v3114_v6 = vadd.f32 %v3112_v29, %v3104_v32 }
 0x595   : > { %v3115_v13 = vadd.f32 %v3113_v14, %v3105_v24 }
 0x598   : > { %v3119_v16 = vpop.permute.xlu1 %3118 }
 0x599   : > { %v3122_v52 = vadd.f32 %v3119_v16, %v3115_v13  ;;  %v3121_v37 = vadd.f32 %v3119_v16, %v3114_v6 }
 0x59b   : > { %v3125_v62 = vrot.slane %v3122_v52, 4 }
 0x59d   : > { %v3126_v33 = vsel %vm5477_vm2, %v3121_v37, %v3125_v62 }
 0x59e   : > { %v3128_v31 = vadd.f32 %v3126_v33, %v4801_v51 }
 0x5a0   : > { %3129 = vst [vmem:[%s170_s21] sm:$0xff] %v3128_v31 }
 0x5a1 PF: > { %s13_s12 = sadd.s32 1, %s3417_s12  }
 0x5a2   : > { %p10_p4 = scmp.ge.s32.totalorder %s13_s12, 4  }
 0x5a4   :  { %12 = sbr.rel (!%p10_p4) target bundleno = 1 (0x1), region = 62 }

</bundles_post_ra>
